<compile_context>
chip_gen: v7x
topology: tpu7x:2x2x1
jax: 0.10.0
libtpu: 0.0.40
codegen_flags: <defaults>
</compile_context>

<pallas_src>
import functools
import math

import jax
import jax.numpy as jnp
from jax.experimental import pallas as pl
from jax.experimental.pallas import tpu as pltpu


# dtype used for MXU matmul operands (accumulation is always f32).
# Set to jnp.float32 for bit-faithful numerics (halves MXU rate on v6e/v7x).
MM_DTYPE = jnp.bfloat16
# Column offset of the conv halo-buffer interior: sublane-aligned writes.
LPAD = 8


def _round_up(x, m):
    return (x + m - 1) // m * m


# ----------------------------- in-kernel helpers ------------------------------
def _gn_apply(xf, gamma, beta, p_mat, inv_n, eps):
    """GroupNorm on an (H*W, C) f32 tile.

    Channel sums are XLU reductions; group pooling + broadcast-back is a single
    (2, C) x (C, C) dot with the precomputed block-diagonal matrix P.
    """
    s = jnp.sum(xf, axis=0, keepdims=True)                         # (1, C)
    sq = jnp.sum(xf * xf, axis=0, keepdims=True)                   # (1, C)
    stats = jnp.concatenate([s, sq], axis=0)                       # (2, C)
    mv = jnp.dot(stats, p_mat, preferred_element_type=jnp.float32) * inv_n
    mean = mv[0:1]
    var = jnp.maximum(mv[1:2] - mean * mean, 0.0)                  # clamp >= 0
    scale = jax.lax.rsqrt(var + eps) * gamma                       # (1, C)
    shift = beta - mean * scale                                    # (1, C)
    return xf * scale + shift                                      # 2 VPU ops on big tile


def _conv3x3(pad_ref, w_ref, b_ref, H, W):
    """3x3 / pad=1 conv via bf16 im2col from a zero-bordered halo scratch.

    Interior image lives at pad_ref[1:H+1, LPAD:LPAD+W, :]; the 1-element halo
    ring around it stays zero (== padding=1).
    """
    C = pad_ref.shape[-1]
    pieces = []
    for ky in range(3):
        for kx in range(3):
            c0 = LPAD - 1 + kx
            pieces.append(pad_ref[ky:ky + H, c0:c0 + W, :].reshape(H * W, C))
    cols = jnp.concatenate(pieces, axis=-1)                        # bf16 (H*W, 9C)
    return (jnp.dot(cols, w_ref[...], preferred_element_type=jnp.float32)
            + b_ref[...])


def _if_step(mem_ref, ss_ref, current, threshold):
    """One signed integrate-and-fire step; state is carried across the T grid
    axis in VMEM scratch."""
    v = mem_ref[...] + current
    spike = (v >= threshold).astype(jnp.float32)
    v = v - spike * threshold
    ss = ss_ref[...] + spike
    inhibit = jnp.logical_and(v <= -1e-3, ss > 0).astype(jnp.float32)
    mem_ref[...] = v + inhibit * threshold
    ss_ref[...] = ss - inhibit
    return (spike - inhibit) * threshold


# ------------------------------ fused block kernel -----------------------------
def _s_resblock_kernel(x_ref, temb_ref,
                       gn1_g_ref, gn1_b_ref, p1_ref, w1_ref, b1_ref,
                       wt_ref, bt_ref,
                       gn2_g_ref, gn2_b_ref, p2_ref, w2_ref, b2_ref,
                       wsc_ref, bsc_ref,
                       out_ref,
                       pad1_ref, pad2_ref,
                       mem1_ref, ss1_ref, memt_ref, sst_ref, mem2_ref, ss2_ref,
                       *, H, W, eps, inv_n1, inv_n2,
                       theta1, theta_t, theta2, use_sc_conv, mm_dtype):
    t = pl.program_id(1)
    Cin = x_ref.shape[-1]
    Cout = out_ref.shape[-1]
    tdim = temb_ref.shape[-1]

    # ---- start of a new batch element: zero halos, reset IF state ----
    @pl.when(t == 0)
    def _():
        pad1_ref[...] = jnp.zeros_like(pad1_ref)
        pad2_ref[...] = jnp.zeros_like(pad2_ref)
        mem1_ref[...] = jnp.full(mem1_ref.shape, 0.5 * theta1, jnp.float32)
        ss1_ref[...] = jnp.zeros_like(ss1_ref)
        memt_ref[...] = jnp.full(memt_ref.shape, 0.5 * theta_t, jnp.float32)
        sst_ref[...] = jnp.zeros_like(sst_ref)
        mem2_ref[...] = jnp.full(mem2_ref.shape, 0.5 * theta2, jnp.float32)
        ss2_ref[...] = jnp.zeros_like(ss2_ref)

    # ---- block1 = Spiking(GroupNorm -> IF -> Conv3x3): current + IF step ----
    xf = x_ref[...].reshape(H * W, Cin)                            # f32
    g1 = _gn_apply(xf, gn1_g_ref[...], gn1_b_ref[...], p1_ref[...], inv_n1, eps)
    pad1_ref[1:H + 1, LPAD:LPAD + W, :] = g1.reshape(H, W, Cin).astype(mm_dtype)
    u1 = _conv3x3(pad1_ref, w1_ref, b1_ref, H, W)                  # (H*W, Cout)
    s1 = _if_step(mem1_ref, ss1_ref, u1, theta1)

    # ---- temb_proj = Spiking(IF -> Linear): current + IF step ----
    temb_row = temb_ref[:, pl.ds(t, 1), :].reshape(1, tdim)
    ut = (jnp.dot(temb_row.astype(mm_dtype), wt_ref[...],
                  preferred_element_type=jnp.float32) + bt_ref[...])  # (1, Cout)
    st = _if_step(memt_ref, sst_ref, ut, theta_t)

    h1 = s1 + st                                                   # lane broadcast

    # ---- block2 = Spiking(GroupNorm -> IF -> Dropout(eval) -> Conv3x3) ----
    g2 = _gn_apply(h1, gn2_g_ref[...], gn2_b_ref[...], p2_ref[...], inv_n2, eps)
    pad2_ref[1:H + 1, LPAD:LPAD + W, :] = g2.reshape(H, W, Cout).astype(mm_dtype)
    u2 = _conv3x3(pad2_ref, w2_ref, b2_ref, H, W)
    s2 = _if_step(mem2_ref, ss2_ref, u2, theta2)

    # ---- shortcut (1x1 conv or identity) + residual, NHWC store ----
    if use_sc_conv:
        sc = (jnp.dot(xf.astype(mm_dtype), wsc_ref[...],
                      preferred_element_type=jnp.float32) + bsc_ref[...])
    else:
        sc = xf
    out_ref[...] = (s2 + sc).reshape(1, 1, H, W, Cout)


# ------------------------------ parameter handling -----------------------------
def init_params(key, in_ch, out_ch, tdim):
    ks = jax.random.split(key, 4)

    def xavier(k, shape, fan_in, fan_out, gain=1.0):
        bound = gain * math.sqrt(6.0 / (fan_in + fan_out))
        return jax.random.uniform(k, shape, jnp.float32, -bound, bound)

    return dict(
        gn1_w=jnp.ones((in_ch,), jnp.float32),
        gn1_b=jnp.zeros((in_ch,), jnp.float32),
        conv1_w=xavier(ks[0], (out_ch, in_ch, 3, 3), in_ch * 9, out_ch * 9),
        conv1_b=jnp.zeros((out_ch,), jnp.float32),
        lin_w=xavier(ks[1], (out_ch, tdim), tdim, out_ch),
        lin_b=jnp.zeros((out_ch,), jnp.float32),
        gn2_w=jnp.ones((out_ch,), jnp.float32),
        gn2_b=jnp.zeros((out_ch,), jnp.float32),
        conv2_w=xavier(ks[2], (out_ch, out_ch, 3, 3), out_ch * 9, out_ch * 9,
                       gain=1e-5),
        conv2_b=jnp.zeros((out_ch,), jnp.float32),
        sc_w=xavier(ks[3], (out_ch, in_ch, 1, 1), in_ch, out_ch),
        sc_b=jnp.zeros((out_ch,), jnp.float32),
        theta1=4.0, theta_t=4.0, theta2=4.0,   # IF act_alpha thresholds
    )


def prepare_params(p, in_ch, out_ch, num_groups=32):
    """One-time kernel-layout parameter prep (hoisted out of the forward)."""
    def group_pool(C, G):
        gs = C // G
        gmat = jnp.zeros((C, G), jnp.float32).at[
            jnp.arange(C), jnp.arange(C) // gs].set(1.0)
        return jnp.dot(gmat, gmat.T)          # (C, C) block-diagonal, unnormalised

    def conv_w(w_oihw):                        # (Co, Ci, 3, 3) -> (9*Ci, Co)
        co, ci = w_oihw.shape[0], w_oihw.shape[1]
        return jnp.transpose(w_oihw, (2, 3, 1, 0)).reshape(9 * ci, co)

    return dict(
        gn1_g=p["gn1_w"].reshape(1, in_ch), gn1_b=p["gn1_b"].reshape(1, in_ch),
        p1=group_pool(in_ch, num_groups),
        w1=conv_w(p["conv1_w"]).astype(MM_DTYPE),
        b1=p["conv1_b"].reshape(1, out_ch),
        wt=p["lin_w"].T.astype(MM_DTYPE),
        bt=p["lin_b"].reshape(1, out_ch),
        gn2_g=p["gn2_w"].reshape(1, out_ch), gn2_b=p["gn2_b"].reshape(1, out_ch),
        p2=group_pool(out_ch, num_groups),
        w2=conv_w(p["conv2_w"]).astype(MM_DTYPE),
        b2=p["conv2_b"].reshape(1, out_ch),
        wsc=p["sc_w"].reshape(out_ch, in_ch).T.astype(MM_DTYPE),
        bsc=p["sc_b"].reshape(1, out_ch),
        theta1=float(p["theta1"]), theta_t=float(p["theta_t"]),
        theta2=float(p["theta2"]),
    )


# ------------------------------ S_ResBlock.forward -----------------------------
def s_resblock_forward(prep, x, temb, num_groups=32, eps=1e-5):
    B, T, Cin, H, W = x.shape
    Cout = prep["b1"].shape[-1]
    tdim = temb.shape[-1]
    use_sc = (Cin != Cout)
    inv_n1 = 1.0 / float(H * W * (Cin // num_groups))
    inv_n2 = 1.0 / float(H * W * (Cout // num_groups))

    # Boundary layout change only: NCHW -> NHWC (channels on the lane axis).
    x_nhwc = jnp.transpose(x, (0, 1, 3, 4, 2))                     # (B,T,H,W,Cin)

    kern = functools.partial(
        _s_resblock_kernel, H=H, W=W, eps=eps, inv_n1=inv_n1, inv_n2=inv_n2,
        theta1=prep["theta1"], theta_t=prep["theta_t"], theta2=prep["theta2"],
        use_sc_conv=use_sc, mm_dtype=MM_DTYPE)

    def rep(shape):                    # resident (constant-index) parameter block
        return pl.BlockSpec(shape, lambda b, t: (0,) * len(shape))

    pw = _round_up(LPAD + W + 1, 8)    # aligned halo-buffer row length

    out = pl.pallas_call(
        kern,
        out_shape=jax.ShapeDtypeStruct((B, T, H, W, Cout), jnp.float32),
        grid=(B, T),
        in_specs=[
            pl.BlockSpec((1, 1, H, W, Cin), lambda b, t: (b, t, 0, 0, 0)),
            pl.BlockSpec((1, T, tdim), lambda b, t: (b, 0, 0)),
            rep((1, Cin)), rep((1, Cin)), rep((Cin, Cin)),
            rep((9 * Cin, Cout)), rep((1, Cout)),
            rep((tdim, Cout)), rep((1, Cout)),
            rep((1, Cout)), rep((1, Cout)), rep((Cout, Cout)),
            rep((9 * Cout, Cout)), rep((1, Cout)),
            rep((Cin, Cout)), rep((1, Cout)),
        ],
        out_specs=pl.BlockSpec((1, 1, H, W, Cout), lambda b, t: (b, t, 0, 0, 0)),
        scratch_shapes=[
            pltpu.VMEM((H + 2, pw, Cin), MM_DTYPE),     # conv1 halo buffer (bf16)
            pltpu.VMEM((H + 2, pw, Cout), MM_DTYPE),    # conv2 halo buffer (bf16)
            pltpu.VMEM((H * W, Cout), jnp.float32),     # block1 IF membrane
            pltpu.VMEM((H * W, Cout), jnp.float32),     # block1 IF spike count
            pltpu.VMEM((1, Cout), jnp.float32),         # temb   IF membrane
            pltpu.VMEM((1, Cout), jnp.float32),         # temb   IF spike count
            pltpu.VMEM((H * W, Cout), jnp.float32),     # block2 IF membrane
            pltpu.VMEM((H * W, Cout), jnp.float32),     # block2 IF spike count
        ],
        compiler_params=pltpu.CompilerParams(
            dimension_semantics=("parallel", "arbitrary")),
    )(x_nhwc, temb,
      prep["gn1_g"], prep["gn1_b"], prep["p1"], prep["w1"], prep["b1"],
      prep["wt"], prep["bt"],
      prep["gn2_g"], prep["gn2_b"], prep["p2"], prep["w2"], prep["b2"],
      prep["wsc"], prep["bsc"])

    return jnp.transpose(out, (0, 1, 4, 2, 3))          # back to (B, T, C, H, W)


if __name__ == "__main__":
    B, T, Cin, Cout, H, W, tdim = 2, 3, 32, 64, 16, 16, 64
    key = jax.random.PRNGKey(0)
    kp, kx, kt = jax.random.split(key, 3)
    params = init_params(kp, Cin, Cout, tdim)
    prep = prepare_params(params, Cin, Cout)

    x = jax.random.normal(kx, (B, T, Cin, H, W), jnp.float32)
    temb = jax.random.normal(kt, (B, T, tdim), jnp.float32)

    out = s_resblock_forward(prep, x, temb)
    jax.block_until_ready(out)
    assert out.shape == (B, T, Cout, H, W) and out.dtype == jnp.float32
    print("KERNEL_OK")
</pallas_src>

<mosaic_0001>
module attributes {stable_mosaic.version = 11 : i64} {
  func.func @_s_resblock_kernel(%arg0: i32, %arg1: i32, %arg2: memref<1x1x16x16x32xf32, #tpu.memory_space<vmem>>, %arg3: memref<1x3x64xf32, #tpu.memory_space<vmem>>, %arg4: memref<1x32xf32, #tpu.memory_space<vmem>>, %arg5: memref<1x32xf32, #tpu.memory_space<vmem>>, %arg6: memref<32x32xf32, #tpu.memory_space<vmem>>, %arg7: memref<288x64xbf16, #tpu.memory_space<vmem>>, %arg8: memref<1x64xf32, #tpu.memory_space<vmem>>, %arg9: memref<64x64xbf16, #tpu.memory_space<vmem>>, %arg10: memref<1x64xf32, #tpu.memory_space<vmem>>, %arg11: memref<1x64xf32, #tpu.memory_space<vmem>>, %arg12: memref<1x64xf32, #tpu.memory_space<vmem>>, %arg13: memref<64x64xf32, #tpu.memory_space<vmem>>, %arg14: memref<576x64xbf16, #tpu.memory_space<vmem>>, %arg15: memref<1x64xf32, #tpu.memory_space<vmem>>, %arg16: memref<32x64xbf16, #tpu.memory_space<vmem>>, %arg17: memref<1x64xf32, #tpu.memory_space<vmem>>, %arg18: memref<1x1x16x16x64xf32, #tpu.memory_space<vmem>>, %arg19: memref<18x32x32xbf16, #tpu.memory_space<vmem>>, %arg20: memref<18x32x64xbf16, #tpu.memory_space<vmem>>, %arg21: memref<256x64xf32, #tpu.memory_space<vmem>>, %arg22: memref<256x64xf32, #tpu.memory_space<vmem>>, %arg23: memref<1x64xf32, #tpu.memory_space<vmem>>, %arg24: memref<1x64xf32, #tpu.memory_space<vmem>>, %arg25: memref<256x64xf32, #tpu.memory_space<vmem>>, %arg26: memref<256x64xf32, #tpu.memory_space<vmem>>) attributes {dimension_semantics = [#tpu.dimension_semantics<parallel>, #tpu.dimension_semantics<arbitrary>], iteration_bounds = array<i64: 2, 3>, scalar_prefetch = 0 : i64, scratch_operands = 8 : i64, tpu.core_type = #tpu.core_type<tc>, window_params = [{transform_indices = @transform_0, window_bounds = array<i64: 1, 1, 16, 16, 32>}, {transform_indices = @transform_1, window_bounds = array<i64: 1, 3, 64>}, {pipeline_mode = #tpu.pipeline_mode<synchronous>, transform_indices = @transform_2, window_bounds = array<i64: 1, 32>}, {pipeline_mode = #tpu.pipeline_mode<synchronous>, transform_indices = @transform_3, window_bounds = array<i64: 1, 32>}, {pipeline_mode = #tpu.pipeline_mode<synchronous>, transform_indices = @transform_4, window_bounds = array<i64: 32, 32>}, {pipeline_mode = #tpu.pipeline_mode<synchronous>, transform_indices = @transform_5, window_bounds = array<i64: 288, 64>}, {pipeline_mode = #tpu.pipeline_mode<synchronous>, transform_indices = @transform_6, window_bounds = array<i64: 1, 64>}, {pipeline_mode = #tpu.pipeline_mode<synchronous>, transform_indices = @transform_7, window_bounds = array<i64: 64, 64>}, {pipeline_mode = #tpu.pipeline_mode<synchronous>, transform_indices = @transform_8, window_bounds = array<i64: 1, 64>}, {pipeline_mode = #tpu.pipeline_mode<synchronous>, transform_indices = @transform_9, window_bounds = array<i64: 1, 64>}, {pipeline_mode = #tpu.pipeline_mode<synchronous>, transform_indices = @transform_10, window_bounds = array<i64: 1, 64>}, {pipeline_mode = #tpu.pipeline_mode<synchronous>, transform_indices = @transform_11, window_bounds = array<i64: 64, 64>}, {pipeline_mode = #tpu.pipeline_mode<synchronous>, transform_indices = @transform_12, window_bounds = array<i64: 576, 64>}, {pipeline_mode = #tpu.pipeline_mode<synchronous>, transform_indices = @transform_13, window_bounds = array<i64: 1, 64>}, {pipeline_mode = #tpu.pipeline_mode<synchronous>, transform_indices = @transform_14, window_bounds = array<i64: 32, 64>}, {pipeline_mode = #tpu.pipeline_mode<synchronous>, transform_indices = @transform_15, window_bounds = array<i64: 1, 64>}, {transform_indices = @transform_16, window_bounds = array<i64: 1, 1, 16, 16, 64>}]} {
    %c0_i32 = arith.constant 0 : i32
    %0 = arith.cmpi eq, %arg1, %c0_i32 : i32
    %1 = arith.extui %0 : i1 to i32
    %c0_i32_0 = arith.constant 0 : i32
    %2 = arith.cmpi ne, %1, %c0_i32_0 : i32
    scf.if %2 {
      %cst_152 = arith.constant 0.000000e+00 : bf16
      %215 = vector.broadcast %cst_152 : bf16 to vector<18x32x32xbf16>
      %c0_153 = arith.constant 0 : index
      %c0_154 = arith.constant 0 : index
      %c0_155 = arith.constant 0 : index
      %216 = vector.load %arg19[%c0_153, %c0_154, %c0_155] : memref<18x32x32xbf16, #tpu.memory_space<vmem>>, vector<18x32x32xbf16>
      tpu.vector_store %arg19[%c0_153, %c0_154, %c0_155], %215 {strides = array<i32>} : memref<18x32x32xbf16, #tpu.memory_space<vmem>>, vector<18x32x32xbf16>,
      %cst_156 = arith.constant 0.000000e+00 : bf16
      %217 = vector.broadcast %cst_156 : bf16 to vector<18x32x64xbf16>
      %c0_157 = arith.constant 0 : index
      %c0_158 = arith.constant 0 : index
      %c0_159 = arith.constant 0 : index
      %218 = vector.load %arg20[%c0_157, %c0_158, %c0_159] : memref<18x32x64xbf16, #tpu.memory_space<vmem>>, vector<18x32x64xbf16>
      tpu.vector_store %arg20[%c0_157, %c0_158, %c0_159], %217 {strides = array<i32>} : memref<18x32x64xbf16, #tpu.memory_space<vmem>>, vector<18x32x64xbf16>,
      %cst_160 = arith.constant 2.000000e+00 : f32
      %219 = vector.broadcast %cst_160 : f32 to vector<256x64xf32>
      %c0_161 = arith.constant 0 : index
      %c0_162 = arith.constant 0 : index
      %220 = vector.load %arg21[%c0_161, %c0_162] : memref<256x64xf32, #tpu.memory_space<vmem>>, vector<256x64xf32>
      tpu.vector_store %arg21[%c0_161, %c0_162], %219 {strides = array<i32>} : memref<256x64xf32, #tpu.memory_space<vmem>>, vector<256x64xf32>,
      %cst_163 = arith.constant 0.000000e+00 : f32
      %221 = vector.broadcast %cst_163 : f32 to vector<256x64xf32>
      %c0_164 = arith.constant 0 : index
      %c0_165 = arith.constant 0 : index
      %222 = vector.load %arg22[%c0_164, %c0_165] : memref<256x64xf32, #tpu.memory_space<vmem>>, vector<256x64xf32>
      tpu.vector_store %arg22[%c0_164, %c0_165], %221 {strides = array<i32>} : memref<256x64xf32, #tpu.memory_space<vmem>>, vector<256x64xf32>,
      %cst_166 = arith.constant 2.000000e+00 : f32
      %223 = vector.broadcast %cst_166 : f32 to vector<1x64xf32>
      %c0_167 = arith.constant 0 : index
      %c0_168 = arith.constant 0 : index
      %224 = vector.load %arg23[%c0_167, %c0_168] : memref<1x64xf32, #tpu.memory_space<vmem>>, vector<1x64xf32>
      tpu.vector_store %arg23[%c0_167, %c0_168], %223 {strides = array<i32>} : memref<1x64xf32, #tpu.memory_space<vmem>>, vector<1x64xf32>,
      %cst_169 = arith.constant 0.000000e+00 : f32
      %225 = vector.broadcast %cst_169 : f32 to vector<1x64xf32>
      %c0_170 = arith.constant 0 : index
      %c0_171 = arith.constant 0 : index
      %226 = vector.load %arg24[%c0_170, %c0_171] : memref<1x64xf32, #tpu.memory_space<vmem>>, vector<1x64xf32>
      tpu.vector_store %arg24[%c0_170, %c0_171], %225 {strides = array<i32>} : memref<1x64xf32, #tpu.memory_space<vmem>>, vector<1x64xf32>,
      %cst_172 = arith.constant 2.000000e+00 : f32
      %227 = vector.broadcast %cst_172 : f32 to vector<256x64xf32>
      %c0_173 = arith.constant 0 : index
      %c0_174 = arith.constant 0 : index
      %228 = vector.load %arg25[%c0_173, %c0_174] : memref<256x64xf32, #tpu.memory_space<vmem>>, vector<256x64xf32>
      tpu.vector_store %arg25[%c0_173, %c0_174], %227 {strides = array<i32>} : memref<256x64xf32, #tpu.memory_space<vmem>>, vector<256x64xf32>,
      %cst_175 = arith.constant 0.000000e+00 : f32
      %229 = vector.broadcast %cst_175 : f32 to vector<256x64xf32>
      %c0_176 = arith.constant 0 : index
      %c0_177 = arith.constant 0 : index
      %230 = vector.load %arg26[%c0_176, %c0_177] : memref<256x64xf32, #tpu.memory_space<vmem>>, vector<256x64xf32>
      tpu.vector_store %arg26[%c0_176, %c0_177], %229 {strides = array<i32>} : memref<256x64xf32, #tpu.memory_space<vmem>>, vector<256x64xf32>,
    } else {
    }
    %c0 = arith.constant 0 : index
    %c0_1 = arith.constant 0 : index
    %c0_2 = arith.constant 0 : index
    %c0_3 = arith.constant 0 : index
    %c0_4 = arith.constant 0 : index
    %3 = vector.load %arg2[%c0, %c0_1, %c0_2, %c0_3, %c0_4] : memref<1x1x16x16x32xf32, #tpu.memory_space<vmem>>, vector<1x1x16x16x32xf32>
    %4 = vector.shape_cast %3 : vector<1x1x16x16x32xf32> to vector<256x32xf32>
    %c0_5 = arith.constant 0 : index
    %c0_6 = arith.constant 0 : index
    %5 = vector.load %arg4[%c0_5, %c0_6] : memref<1x32xf32, #tpu.memory_space<vmem>>, vector<1x32xf32>
    %c0_7 = arith.constant 0 : index
    %c0_8 = arith.constant 0 : index
    %6 = vector.load %arg5[%c0_7, %c0_8] : memref<1x32xf32, #tpu.memory_space<vmem>>, vector<1x32xf32>
    %c0_9 = arith.constant 0 : index
    %c0_10 = arith.constant 0 : index
    %7 = vector.load %arg6[%c0_9, %c0_10] : memref<32x32xf32, #tpu.memory_space<vmem>>, vector<32x32xf32>
    %cst = arith.constant dense<0.000000e+00> : vector<32xf32>
    %8 = vector.multi_reduction <add>, %4, %cst [0] : vector<256x32xf32> to vector<32xf32>
    %9 = vector.shape_cast %8 : vector<32xf32> to vector<1x32xf32>
    %10 = arith.mulf %4, %4 : vector<256x32xf32>
    %cst_11 = arith.constant dense<0.000000e+00> : vector<32xf32>
    %11 = vector.multi_reduction <add>, %10, %cst_11 [0] : vector<256x32xf32> to vector<32xf32>
    %12 = vector.shape_cast %11 : vector<32xf32> to vector<1x32xf32>
    %13 = tpu.concatenate %9, %12 in 0 : vector<1x32xf32>, vector<1x32xf32> -> vector<2x32xf32>
    %cst_12 = arith.constant dense<0.000000e+00> : vector<2x32xf32>
    %14 = tpu.matmul %13, %7, %cst_12 {dimension_numbers = #tpu.dot_dimension_numbers<[1], [0], [0], [1], [0, 0, 1, 1], [], []>} : vector<2x32xf32>, vector<32x32xf32>, vector<2x32xf32> -> vector<2x32xf32>
    %cst_13 = arith.constant 3.906250e-03 : f32
    %15 = vector.broadcast %cst_13 : f32 to vector<2x32xf32>
    %16 = arith.mulf %14, %15 : vector<2x32xf32>
    %17 = vector.extract_strided_slice %16 {offsets = [0, 0], sizes = [1, 32], strides = [1, 1]} : vector<2x32xf32> to vector<1x32xf32>
    %18 = vector.extract_strided_slice %16 {offsets = [1, 0], sizes = [1, 32], strides = [1, 1]} : vector<2x32xf32> to vector<1x32xf32>
    %19 = arith.mulf %17, %17 : vector<1x32xf32>
    %20 = arith.subf %18, %19 : vector<1x32xf32>
    %cst_14 = arith.constant 0.000000e+00 : f32
    %21 = vector.broadcast %cst_14 : f32 to vector<1x32xf32>
    %22 = arith.maximumf %20, %21 : vector<1x32xf32>
    %cst_15 = arith.constant 9.99999974E-6 : f32
    %23 = vector.broadcast %cst_15 : f32 to vector<1x32xf32>
    %24 = arith.addf %22, %23 : vector<1x32xf32>
    %25 = math.rsqrt %24 : vector<1x32xf32>
    %26 = arith.mulf %25, %5 : vector<1x32xf32>
    %27 = arith.mulf %17, %26 : vector<1x32xf32>
    %28 = arith.subf %6, %27 : vector<1x32xf32>
    %29 = vector.broadcast %26 : vector<1x32xf32> to vector<256x32xf32>
    %30 = arith.mulf %4, %29 : vector<256x32xf32>
    %31 = vector.broadcast %28 : vector<1x32xf32> to vector<256x32xf32>
    %32 = arith.addf %30, %31 : vector<256x32xf32>
    %33 = vector.shape_cast %32 : vector<256x32xf32> to vector<16x16x32xf32>
    %34 = arith.truncf %33 : vector<16x16x32xf32> to vector<16x16x32xbf16>
    %c1 = arith.constant 1 : index
    %c8 = arith.constant 8 : index
    %c0_16 = arith.constant 0 : index
    %35 = vector.load %arg19[%c1, %c8, %c0_16] : memref<18x32x32xbf16, #tpu.memory_space<vmem>>, vector<16x16x32xbf16>
    tpu.vector_store %arg19[%c1, %c8, %c0_16], %34 {strides = array<i32>} : memref<18x32x32xbf16, #tpu.memory_space<vmem>>, vector<16x16x32xbf16>,
    %c0_17 = arith.constant 0 : index
    %c7 = arith.constant 7 : index
    %c0_18 = arith.constant 0 : index
    %36 = vector.load %arg19[%c0_17, %c7, %c0_18] : memref<18x32x32xbf16, #tpu.memory_space<vmem>>, vector<16x16x32xbf16>
    %37 = vector.shape_cast %36 : vector<16x16x32xbf16> to vector<256x32xbf16>
    %c0_19 = arith.constant 0 : index
    %c8_20 = arith.constant 8 : index
    %c0_21 = arith.constant 0 : index
    %38 = vector.load %arg19[%c0_19, %c8_20, %c0_21] : memref<18x32x32xbf16, #tpu.memory_space<vmem>>, vector<16x16x32xbf16>
    %39 = vector.shape_cast %38 : vector<16x16x32xbf16> to vector<256x32xbf16>
    %c0_22 = arith.constant 0 : index
    %c9 = arith.constant 9 : index
    %c0_23 = arith.constant 0 : index
    %40 = vector.load %arg19[%c0_22, %c9, %c0_23] : memref<18x32x32xbf16, #tpu.memory_space<vmem>>, vector<16x16x32xbf16>
    %41 = vector.shape_cast %40 : vector<16x16x32xbf16> to vector<256x32xbf16>
    %c1_24 = arith.constant 1 : index
    %c7_25 = arith.constant 7 : index
    %c0_26 = arith.constant 0 : index
    %42 = vector.load %arg19[%c1_24, %c7_25, %c0_26] : memref<18x32x32xbf16, #tpu.memory_space<vmem>>, vector<16x16x32xbf16>
    %43 = vector.shape_cast %42 : vector<16x16x32xbf16> to vector<256x32xbf16>
    %c1_27 = arith.constant 1 : index
    %c8_28 = arith.constant 8 : index
    %c0_29 = arith.constant 0 : index
    %44 = vector.load %arg19[%c1_27, %c8_28, %c0_29] : memref<18x32x32xbf16, #tpu.memory_space<vmem>>, vector<16x16x32xbf16>
    %45 = vector.shape_cast %44 : vector<16x16x32xbf16> to vector<256x32xbf16>
    %c1_30 = arith.constant 1 : index
    %c9_31 = arith.constant 9 : index
    %c0_32 = arith.constant 0 : index
    %46 = vector.load %arg19[%c1_30, %c9_31, %c0_32] : memref<18x32x32xbf16, #tpu.memory_space<vmem>>, vector<16x16x32xbf16>
    %47 = vector.shape_cast %46 : vector<16x16x32xbf16> to vector<256x32xbf16>
    %c2 = arith.constant 2 : index
    %c7_33 = arith.constant 7 : index
    %c0_34 = arith.constant 0 : index
    %48 = vector.load %arg19[%c2, %c7_33, %c0_34] : memref<18x32x32xbf16, #tpu.memory_space<vmem>>, vector<16x16x32xbf16>
    %49 = vector.shape_cast %48 : vector<16x16x32xbf16> to vector<256x32xbf16>
    %c2_35 = arith.constant 2 : index
    %c8_36 = arith.constant 8 : index
    %c0_37 = arith.constant 0 : index
    %50 = vector.load %arg19[%c2_35, %c8_36, %c0_37] : memref<18x32x32xbf16, #tpu.memory_space<vmem>>, vector<16x16x32xbf16>
    %51 = vector.shape_cast %50 : vector<16x16x32xbf16> to vector<256x32xbf16>
    %c2_38 = arith.constant 2 : index
    %c9_39 = arith.constant 9 : index
    %c0_40 = arith.constant 0 : index
    %52 = vector.load %arg19[%c2_38, %c9_39, %c0_40] : memref<18x32x32xbf16, #tpu.memory_space<vmem>>, vector<16x16x32xbf16>
    %53 = vector.shape_cast %52 : vector<16x16x32xbf16> to vector<256x32xbf16>
    %54 = tpu.concatenate %37, %39, %41, %43, %45, %47, %49, %51, %53 in 1 : vector<256x32xbf16>, vector<256x32xbf16>, vector<256x32xbf16>, vector<256x32xbf16>, vector<256x32xbf16>, vector<256x32xbf16>, vector<256x32xbf16>, vector<256x32xbf16>, vector<256x32xbf16> -> vector<256x288xbf16>
    %c0_41 = arith.constant 0 : index
    %c0_42 = arith.constant 0 : index
    %55 = vector.load %arg7[%c0_41, %c0_42] : memref<288x64xbf16, #tpu.memory_space<vmem>>, vector<288x64xbf16>
    %cst_43 = arith.constant dense<0.000000e+00> : vector<256x64xf32>
    %56 = tpu.matmul %54, %55, %cst_43 {dimension_numbers = #tpu.dot_dimension_numbers<[1], [0], [0], [1], [0, 0, 1, 1], [], []>} : vector<256x288xbf16>, vector<288x64xbf16>, vector<256x64xf32> -> vector<256x64xf32>
    %c0_44 = arith.constant 0 : index
    %c0_45 = arith.constant 0 : index
    %57 = vector.load %arg8[%c0_44, %c0_45] : memref<1x64xf32, #tpu.memory_space<vmem>>, vector<1x64xf32>
    %58 = vector.broadcast %57 : vector<1x64xf32> to vector<256x64xf32>
    %59 = arith.addf %56, %58 : vector<256x64xf32>
    %c0_46 = arith.constant 0 : index
    %c0_47 = arith.constant 0 : index
    %60 = vector.load %arg21[%c0_46, %c0_47] : memref<256x64xf32, #tpu.memory_space<vmem>>, vector<256x64xf32>
    %61 = arith.addf %60, %59 : vector<256x64xf32>
    %cst_48 = arith.constant 4.000000e+00 : f32
    %62 = vector.broadcast %cst_48 : f32 to vector<256x64xf32>
    %63 = arith.cmpf oge, %61, %62 : vector<256x64xf32>
    %64 = arith.extui %63 : vector<256x64xi1> to vector<256x64xi32>
    %65 = arith.sitofp %64 : vector<256x64xi32> to vector<256x64xf32>
    %cst_49 = arith.constant 4.000000e+00 : f32
    %66 = vector.broadcast %cst_49 : f32 to vector<256x64xf32>
    %67 = arith.mulf %65, %66 : vector<256x64xf32>
    %68 = arith.subf %61, %67 : vector<256x64xf32>
    %c0_50 = arith.constant 0 : index
    %c0_51 = arith.constant 0 : index
    %69 = vector.load %arg22[%c0_50, %c0_51] : memref<256x64xf32, #tpu.memory_space<vmem>>, vector<256x64xf32>
    %70 = arith.addf %69, %65 : vector<256x64xf32>
    %cst_52 = arith.constant -1.000000e-03 : f32
    %71 = vector.broadcast %cst_52 : f32 to vector<256x64xf32>
    %72 = arith.cmpf ole, %68, %71 : vector<256x64xf32>
    %cst_53 = arith.constant 0.000000e+00 : f32
    %73 = vector.broadcast %cst_53 : f32 to vector<256x64xf32>
    %74 = arith.cmpf ogt, %70, %73 : vector<256x64xf32>
    %75 = arith.andi %72, %74 : vector<256x64xi1>
    %76 = arith.extui %75 : vector<256x64xi1> to vector<256x64xi32>
    %77 = arith.sitofp %76 : vector<256x64xi32> to vector<256x64xf32>
    %cst_54 = arith.constant 4.000000e+00 : f32
    %78 = vector.broadcast %cst_54 : f32 to vector<256x64xf32>
    %79 = arith.mulf %77, %78 : vector<256x64xf32>
    %80 = arith.addf %68, %79 : vector<256x64xf32>
    %c0_55 = arith.constant 0 : index
    %c0_56 = arith.constant 0 : index
    %81 = vector.load %arg21[%c0_55, %c0_56] : memref<256x64xf32, #tpu.memory_space<vmem>>, vector<256x64xf32>
    tpu.vector_store %arg21[%c0_55, %c0_56], %80 {strides = array<i32>} : memref<256x64xf32, #tpu.memory_space<vmem>>, vector<256x64xf32>,
    %82 = arith.subf %70, %77 : vector<256x64xf32>
    %c0_57 = arith.constant 0 : index
    %c0_58 = arith.constant 0 : index
    %83 = vector.load %arg22[%c0_57, %c0_58] : memref<256x64xf32, #tpu.memory_space<vmem>>, vector<256x64xf32>
    tpu.vector_store %arg22[%c0_57, %c0_58], %82 {strides = array<i32>} : memref<256x64xf32, #tpu.memory_space<vmem>>, vector<256x64xf32>,
    %84 = arith.subf %65, %77 : vector<256x64xf32>
    %cst_59 = arith.constant 4.000000e+00 : f32
    %85 = vector.broadcast %cst_59 : f32 to vector<256x64xf32>
    %86 = arith.mulf %84, %85 : vector<256x64xf32>
    %c0_60 = arith.constant 0 : index
    %87 = arith.index_cast %arg1 : i32 to index
    %c0_61 = arith.constant 0 : index
    %88 = vector.load %arg3[%c0_60, %87, %c0_61] : memref<1x3x64xf32, #tpu.memory_space<vmem>>, vector<1x1x64xf32>
    %89 = vector.shape_cast %88 : vector<1x1x64xf32> to vector<1x64xf32>
    %90 = arith.truncf %89 : vector<1x64xf32> to vector<1x64xbf16>
    %c0_62 = arith.constant 0 : index
    %c0_63 = arith.constant 0 : index
    %91 = vector.load %arg9[%c0_62, %c0_63] : memref<64x64xbf16, #tpu.memory_space<vmem>>, vector<64x64xbf16>
    %cst_64 = arith.constant dense<0.000000e+00> : vector<1x64xf32>
    %92 = tpu.matmul %90, %91, %cst_64 {dimension_numbers = #tpu.dot_dimension_numbers<[1], [0], [0], [1], [0, 0, 1, 1], [], []>} : vector<1x64xbf16>, vector<64x64xbf16>, vector<1x64xf32> -> vector<1x64xf32>
    %c0_65 = arith.constant 0 : index
    %c0_66 = arith.constant 0 : index
    %93 = vector.load %arg10[%c0_65, %c0_66] : memref<1x64xf32, #tpu.memory_space<vmem>>, vector<1x64xf32>
    %94 = arith.addf %92, %93 : vector<1x64xf32>
    %c0_67 = arith.constant 0 : index
    %c0_68 = arith.constant 0 : index
    %95 = vector.load %arg23[%c0_67, %c0_68] : memref<1x64xf32, #tpu.memory_space<vmem>>, vector<1x64xf32>
    %96 = arith.addf %95, %94 : vector<1x64xf32>
    %cst_69 = arith.constant 4.000000e+00 : f32
    %97 = vector.broadcast %cst_69 : f32 to vector<1x64xf32>
    %98 = arith.cmpf oge, %96, %97 : vector<1x64xf32>
    %99 = arith.extui %98 : vector<1x64xi1> to vector<1x64xi32>
    %100 = arith.sitofp %99 : vector<1x64xi32> to vector<1x64xf32>
    %cst_70 = arith.constant 4.000000e+00 : f32
    %101 = vector.broadcast %cst_70 : f32 to vector<1x64xf32>
    %102 = arith.mulf %100, %101 : vector<1x64xf32>
    %103 = arith.subf %96, %102 : vector<1x64xf32>
    %c0_71 = arith.constant 0 : index
    %c0_72 = arith.constant 0 : index
    %104 = vector.load %arg24[%c0_71, %c0_72] : memref<1x64xf32, #tpu.memory_space<vmem>>, vector<1x64xf32>
    %105 = arith.addf %104, %100 : vector<1x64xf32>
    %cst_73 = arith.constant -1.000000e-03 : f32
    %106 = vector.broadcast %cst_73 : f32 to vector<1x64xf32>
    %107 = arith.cmpf ole, %103, %106 : vector<1x64xf32>
    %cst_74 = arith.constant 0.000000e+00 : f32
    %108 = vector.broadcast %cst_74 : f32 to vector<1x64xf32>
    %109 = arith.cmpf ogt, %105, %108 : vector<1x64xf32>
    %110 = arith.andi %107, %109 : vector<1x64xi1>
    %111 = arith.extui %110 : vector<1x64xi1> to vector<1x64xi32>
    %112 = arith.sitofp %111 : vector<1x64xi32> to vector<1x64xf32>
    %cst_75 = arith.constant 4.000000e+00 : f32
    %113 = vector.broadcast %cst_75 : f32 to vector<1x64xf32>
    %114 = arith.mulf %112, %113 : vector<1x64xf32>
    %115 = arith.addf %103, %114 : vector<1x64xf32>
    %c0_76 = arith.constant 0 : index
    %c0_77 = arith.constant 0 : index
    %116 = vector.load %arg23[%c0_76, %c0_77] : memref<1x64xf32, #tpu.memory_space<vmem>>, vector<1x64xf32>
    tpu.vector_store %arg23[%c0_76, %c0_77], %115 {strides = array<i32>} : memref<1x64xf32, #tpu.memory_space<vmem>>, vector<1x64xf32>,
    %117 = arith.subf %105, %112 : vector<1x64xf32>
    %c0_78 = arith.constant 0 : index
    %c0_79 = arith.constant 0 : index
    %118 = vector.load %arg24[%c0_78, %c0_79] : memref<1x64xf32, #tpu.memory_space<vmem>>, vector<1x64xf32>
    tpu.vector_store %arg24[%c0_78, %c0_79], %117 {strides = array<i32>} : memref<1x64xf32, #tpu.memory_space<vmem>>, vector<1x64xf32>,
    %119 = arith.subf %100, %112 : vector<1x64xf32>
    %cst_80 = arith.constant 4.000000e+00 : f32
    %120 = vector.broadcast %cst_80 : f32 to vector<1x64xf32>
    %121 = arith.mulf %119, %120 : vector<1x64xf32>
    %122 = vector.broadcast %121 : vector<1x64xf32> to vector<256x64xf32>
    %123 = arith.addf %86, %122 : vector<256x64xf32>
    %c0_81 = arith.constant 0 : index
    %c0_82 = arith.constant 0 : index
    %124 = vector.load %arg11[%c0_81, %c0_82] : memref<1x64xf32, #tpu.memory_space<vmem>>, vector<1x64xf32>
    %c0_83 = arith.constant 0 : index
    %c0_84 = arith.constant 0 : index
    %125 = vector.load %arg12[%c0_83, %c0_84] : memref<1x64xf32, #tpu.memory_space<vmem>>, vector<1x64xf32>
    %c0_85 = arith.constant 0 : index
    %c0_86 = arith.constant 0 : index
    %126 = vector.load %arg13[%c0_85, %c0_86] : memref<64x64xf32, #tpu.memory_space<vmem>>, vector<64x64xf32>
    %cst_87 = arith.constant dense<0.000000e+00> : vector<64xf32>
    %127 = vector.multi_reduction <add>, %123, %cst_87 [0] : vector<256x64xf32> to vector<64xf32>
    %128 = vector.shape_cast %127 : vector<64xf32> to vector<1x64xf32>
    %129 = arith.mulf %123, %123 : vector<256x64xf32>
    %cst_88 = arith.constant dense<0.000000e+00> : vector<64xf32>
    %130 = vector.multi_reduction <add>, %129, %cst_88 [0] : vector<256x64xf32> to vector<64xf32>
    %131 = vector.shape_cast %130 : vector<64xf32> to vector<1x64xf32>
    %132 = tpu.concatenate %128, %131 in 0 : vector<1x64xf32>, vector<1x64xf32> -> vector<2x64xf32>
    %cst_89 = arith.constant dense<0.000000e+00> : vector<2x64xf32>
    %133 = tpu.matmul %132, %126, %cst_89 {dimension_numbers = #tpu.dot_dimension_numbers<[1], [0], [0], [1], [0, 0, 1, 1], [], []>} : vector<2x64xf32>, vector<64x64xf32>, vector<2x64xf32> -> vector<2x64xf32>
    %cst_90 = arith.constant 0.001953125 : f32
    %134 = vector.broadcast %cst_90 : f32 to vector<2x64xf32>
    %135 = arith.mulf %133, %134 : vector<2x64xf32>
    %136 = vector.extract_strided_slice %135 {offsets = [0, 0], sizes = [1, 64], strides = [1, 1]} : vector<2x64xf32> to vector<1x64xf32>
    %137 = vector.extract_strided_slice %135 {offsets = [1, 0], sizes = [1, 64], strides = [1, 1]} : vector<2x64xf32> to vector<1x64xf32>
    %138 = arith.mulf %136, %136 : vector<1x64xf32>
    %139 = arith.subf %137, %138 : vector<1x64xf32>
    %cst_91 = arith.constant 0.000000e+00 : f32
    %140 = vector.broadcast %cst_91 : f32 to vector<1x64xf32>
    %141 = arith.maximumf %139, %140 : vector<1x64xf32>
    %cst_92 = arith.constant 9.99999974E-6 : f32
    %142 = vector.broadcast %cst_92 : f32 to vector<1x64xf32>
    %143 = arith.addf %141, %142 : vector<1x64xf32>
    %144 = math.rsqrt %143 : vector<1x64xf32>
    %145 = arith.mulf %144, %124 : vector<1x64xf32>
    %146 = arith.mulf %136, %145 : vector<1x64xf32>
    %147 = arith.subf %125, %146 : vector<1x64xf32>
    %148 = vector.broadcast %145 : vector<1x64xf32> to vector<256x64xf32>
    %149 = arith.mulf %123, %148 : vector<256x64xf32>
    %150 = vector.broadcast %147 : vector<1x64xf32> to vector<256x64xf32>
    %151 = arith.addf %149, %150 : vector<256x64xf32>
    %152 = vector.shape_cast %151 : vector<256x64xf32> to vector<16x16x64xf32>
    %153 = arith.truncf %152 : vector<16x16x64xf32> to vector<16x16x64xbf16>
    %c1_93 = arith.constant 1 : index
    %c8_94 = arith.constant 8 : index
    %c0_95 = arith.constant 0 : index
    %154 = vector.load %arg20[%c1_93, %c8_94, %c0_95] : memref<18x32x64xbf16, #tpu.memory_space<vmem>>, vector<16x16x64xbf16>
    tpu.vector_store %arg20[%c1_93, %c8_94, %c0_95], %153 {strides = array<i32>} : memref<18x32x64xbf16, #tpu.memory_space<vmem>>, vector<16x16x64xbf16>,
    %c0_96 = arith.constant 0 : index
    %c7_97 = arith.constant 7 : index
    %c0_98 = arith.constant 0 : index
    %155 = vector.load %arg20[%c0_96, %c7_97, %c0_98] : memref<18x32x64xbf16, #tpu.memory_space<vmem>>, vector<16x16x64xbf16>
    %156 = vector.shape_cast %155 : vector<16x16x64xbf16> to vector<256x64xbf16>
    %c0_99 = arith.constant 0 : index
    %c8_100 = arith.constant 8 : index
    %c0_101 = arith.constant 0 : index
    %157 = vector.load %arg20[%c0_99, %c8_100, %c0_101] : memref<18x32x64xbf16, #tpu.memory_space<vmem>>, vector<16x16x64xbf16>
    %158 = vector.shape_cast %157 : vector<16x16x64xbf16> to vector<256x64xbf16>
    %c0_102 = arith.constant 0 : index
    %c9_103 = arith.constant 9 : index
    %c0_104 = arith.constant 0 : index
    %159 = vector.load %arg20[%c0_102, %c9_103, %c0_104] : memref<18x32x64xbf16, #tpu.memory_space<vmem>>, vector<16x16x64xbf16>
    %160 = vector.shape_cast %159 : vector<16x16x64xbf16> to vector<256x64xbf16>
    %c1_105 = arith.constant 1 : index
    %c7_106 = arith.constant 7 : index
    %c0_107 = arith.constant 0 : index
    %161 = vector.load %arg20[%c1_105, %c7_106, %c0_107] : memref<18x32x64xbf16, #tpu.memory_space<vmem>>, vector<16x16x64xbf16>
    %162 = vector.shape_cast %161 : vector<16x16x64xbf16> to vector<256x64xbf16>
    %c1_108 = arith.constant 1 : index
    %c8_109 = arith.constant 8 : index
    %c0_110 = arith.constant 0 : index
    %163 = vector.load %arg20[%c1_108, %c8_109, %c0_110] : memref<18x32x64xbf16, #tpu.memory_space<vmem>>, vector<16x16x64xbf16>
    %164 = vector.shape_cast %163 : vector<16x16x64xbf16> to vector<256x64xbf16>
    %c1_111 = arith.constant 1 : index
    %c9_112 = arith.constant 9 : index
    %c0_113 = arith.constant 0 : index
    %165 = vector.load %arg20[%c1_111, %c9_112, %c0_113] : memref<18x32x64xbf16, #tpu.memory_space<vmem>>, vector<16x16x64xbf16>
    %166 = vector.shape_cast %165 : vector<16x16x64xbf16> to vector<256x64xbf16>
    %c2_114 = arith.constant 2 : index
    %c7_115 = arith.constant 7 : index
    %c0_116 = arith.constant 0 : index
    %167 = vector.load %arg20[%c2_114, %c7_115, %c0_116] : memref<18x32x64xbf16, #tpu.memory_space<vmem>>, vector<16x16x64xbf16>
    %168 = vector.shape_cast %167 : vector<16x16x64xbf16> to vector<256x64xbf16>
    %c2_117 = arith.constant 2 : index
    %c8_118 = arith.constant 8 : index
    %c0_119 = arith.constant 0 : index
    %169 = vector.load %arg20[%c2_117, %c8_118, %c0_119] : memref<18x32x64xbf16, #tpu.memory_space<vmem>>, vector<16x16x64xbf16>
    %170 = vector.shape_cast %169 : vector<16x16x64xbf16> to vector<256x64xbf16>
    %c2_120 = arith.constant 2 : index
    %c9_121 = arith.constant 9 : index
    %c0_122 = arith.constant 0 : index
    %171 = vector.load %arg20[%c2_120, %c9_121, %c0_122] : memref<18x32x64xbf16, #tpu.memory_space<vmem>>, vector<16x16x64xbf16>
    %172 = vector.shape_cast %171 : vector<16x16x64xbf16> to vector<256x64xbf16>
    %173 = tpu.concatenate %156, %158, %160, %162, %164, %166, %168, %170, %172 in 1 : vector<256x64xbf16>, vector<256x64xbf16>, vector<256x64xbf16>, vector<256x64xbf16>, vector<256x64xbf16>, vector<256x64xbf16>, vector<256x64xbf16>, vector<256x64xbf16>, vector<256x64xbf16> -> vector<256x576xbf16>
    %c0_123 = arith.constant 0 : index
    %c0_124 = arith.constant 0 : index
    %174 = vector.load %arg14[%c0_123, %c0_124] : memref<576x64xbf16, #tpu.memory_space<vmem>>, vector<576x64xbf16>
    %cst_125 = arith.constant dense<0.000000e+00> : vector<256x64xf32>
    %175 = tpu.matmul %173, %174, %cst_125 {dimension_numbers = #tpu.dot_dimension_numbers<[1], [0], [0], [1], [0, 0, 1, 1], [], []>} : vector<256x576xbf16>, vector<576x64xbf16>, vector<256x64xf32> -> vector<256x64xf32>
    %c0_126 = arith.constant 0 : index
    %c0_127 = arith.constant 0 : index
    %176 = vector.load %arg15[%c0_126, %c0_127] : memref<1x64xf32, #tpu.memory_space<vmem>>, vector<1x64xf32>
    %177 = vector.broadcast %176 : vector<1x64xf32> to vector<256x64xf32>
    %178 = arith.addf %175, %177 : vector<256x64xf32>
    %c0_128 = arith.constant 0 : index
    %c0_129 = arith.constant 0 : index
    %179 = vector.load %arg25[%c0_128, %c0_129] : memref<256x64xf32, #tpu.memory_space<vmem>>, vector<256x64xf32>
    %180 = arith.addf %179, %178 : vector<256x64xf32>
    %cst_130 = arith.constant 4.000000e+00 : f32
    %181 = vector.broadcast %cst_130 : f32 to vector<256x64xf32>
    %182 = arith.cmpf oge, %180, %181 : vector<256x64xf32>
    %183 = arith.extui %182 : vector<256x64xi1> to vector<256x64xi32>
    %184 = arith.sitofp %183 : vector<256x64xi32> to vector<256x64xf32>
    %cst_131 = arith.constant 4.000000e+00 : f32
    %185 = vector.broadcast %cst_131 : f32 to vector<256x64xf32>
    %186 = arith.mulf %184, %185 : vector<256x64xf32>
    %187 = arith.subf %180, %186 : vector<256x64xf32>
    %c0_132 = arith.constant 0 : index
    %c0_133 = arith.constant 0 : index
    %188 = vector.load %arg26[%c0_132, %c0_133] : memref<256x64xf32, #tpu.memory_space<vmem>>, vector<256x64xf32>
    %189 = arith.addf %188, %184 : vector<256x64xf32>
    %cst_134 = arith.constant -1.000000e-03 : f32
    %190 = vector.broadcast %cst_134 : f32 to vector<256x64xf32>
    %191 = arith.cmpf ole, %187, %190 : vector<256x64xf32>
    %cst_135 = arith.constant 0.000000e+00 : f32
    %192 = vector.broadcast %cst_135 : f32 to vector<256x64xf32>
    %193 = arith.cmpf ogt, %189, %192 : vector<256x64xf32>
    %194 = arith.andi %191, %193 : vector<256x64xi1>
    %195 = arith.extui %194 : vector<256x64xi1> to vector<256x64xi32>
    %196 = arith.sitofp %195 : vector<256x64xi32> to vector<256x64xf32>
    %cst_136 = arith.constant 4.000000e+00 : f32
    %197 = vector.broadcast %cst_136 : f32 to vector<256x64xf32>
    %198 = arith.mulf %196, %197 : vector<256x64xf32>
    %199 = arith.addf %187, %198 : vector<256x64xf32>
    %c0_137 = arith.constant 0 : index
    %c0_138 = arith.constant 0 : index
    %200 = vector.load %arg25[%c0_137, %c0_138] : memref<256x64xf32, #tpu.memory_space<vmem>>, vector<256x64xf32>
    tpu.vector_store %arg25[%c0_137, %c0_138], %199 {strides = array<i32>} : memref<256x64xf32, #tpu.memory_space<vmem>>, vector<256x64xf32>,
    %201 = arith.subf %189, %196 : vector<256x64xf32>
    %c0_139 = arith.constant 0 : index
    %c0_140 = arith.constant 0 : index
    %202 = vector.load %arg26[%c0_139, %c0_140] : memref<256x64xf32, #tpu.memory_space<vmem>>, vector<256x64xf32>
    tpu.vector_store %arg26[%c0_139, %c0_140], %201 {strides = array<i32>} : memref<256x64xf32, #tpu.memory_space<vmem>>, vector<256x64xf32>,
    %203 = arith.subf %184, %196 : vector<256x64xf32>
    %cst_141 = arith.constant 4.000000e+00 : f32
    %204 = vector.broadcast %cst_141 : f32 to vector<256x64xf32>
    %205 = arith.mulf %203, %204 : vector<256x64xf32>
    %206 = arith.truncf %4 : vector<256x32xf32> to vector<256x32xbf16>
    %c0_142 = arith.constant 0 : index
    %c0_143 = arith.constant 0 : index
    %207 = vector.load %arg16[%c0_142, %c0_143] : memref<32x64xbf16, #tpu.memory_space<vmem>>, vector<32x64xbf16>
    %cst_144 = arith.constant dense<0.000000e+00> : vector<256x64xf32>
    %208 = tpu.matmul %206, %207, %cst_144 {dimension_numbers = #tpu.dot_dimension_numbers<[1], [0], [0], [1], [0, 0, 1, 1], [], []>} : vector<256x32xbf16>, vector<32x64xbf16>, vector<256x64xf32> -> vector<256x64xf32>
    %c0_145 = arith.constant 0 : index
    %c0_146 = arith.constant 0 : index
    %209 = vector.load %arg17[%c0_145, %c0_146] : memref<1x64xf32, #tpu.memory_space<vmem>>, vector<1x64xf32>
    %210 = vector.broadcast %209 : vector<1x64xf32> to vector<256x64xf32>
    %211 = arith.addf %208, %210 : vector<256x64xf32>
    %212 = arith.addf %205, %211 : vector<256x64xf32>
    %213 = vector.shape_cast %212 : vector<256x64xf32> to vector<1x1x16x16x64xf32>
    %c0_147 = arith.constant 0 : index
    %c0_148 = arith.constant 0 : index
    %c0_149 = arith.constant 0 : index
    %c0_150 = arith.constant 0 : index
    %c0_151 = arith.constant 0 : index
    %214 = vector.load %arg18[%c0_147, %c0_148, %c0_149, %c0_150, %c0_151] : memref<1x1x16x16x64xf32, #tpu.memory_space<vmem>>, vector<1x1x16x16x64xf32>
    tpu.vector_store %arg18[%c0_147, %c0_148, %c0_149, %c0_150, %c0_151], %213 {strides = array<i32>} : memref<1x1x16x16x64xf32, #tpu.memory_space<vmem>>, vector<1x1x16x16x64xf32>,
    return
  }
  func.func @transform_0(%arg0: i32, %arg1: i32) -> (i32, i32, i32, i32, i32) {
    %c0_i32 = arith.constant 0 : i32
    %c0_i32_0 = arith.constant 0 : i32
    %c0_i32_1 = arith.constant 0 : i32
    %c0_i32_2 = arith.constant 0 : i32
    return %arg0, %arg1, %c0_i32, %c0_i32_0, %c0_i32_1 : i32, i32, i32, i32, i32
  }
  func.func @transform_1(%arg0: i32, %arg1: i32) -> (i32, i32, i32) {
    %c0_i32 = arith.constant 0 : i32
    %c0_i32_0 = arith.constant 0 : i32
    %c0_i32_1 = arith.constant 0 : i32
    return %arg0, %c0_i32, %c0_i32_0 : i32, i32, i32
  }
  func.func @transform_2(%arg0: i32, %arg1: i32) -> (i32, i32) {
    %c0_i32 = arith.constant 0 : i32
    %c0_i32_0 = arith.constant 0 : i32
    %c0_i32_1 = arith.constant 0 : i32
    return %c0_i32, %c0_i32_0 : i32, i32
  }
  func.func @transform_3(%arg0: i32, %arg1: i32) -> (i32, i32) {
    %c0_i32 = arith.constant 0 : i32
    %c0_i32_0 = arith.constant 0 : i32
    %c0_i32_1 = arith.constant 0 : i32
    return %c0_i32, %c0_i32_0 : i32, i32
  }
  func.func @transform_4(%arg0: i32, %arg1: i32) -> (i32, i32) {
    %c0_i32 = arith.constant 0 : i32
    %c0_i32_0 = arith.constant 0 : i32
    %c0_i32_1 = arith.constant 0 : i32
    return %c0_i32, %c0_i32_0 : i32, i32
  }
  func.func @transform_5(%arg0: i32, %arg1: i32) -> (i32, i32) {
    %c0_i32 = arith.constant 0 : i32
    %c0_i32_0 = arith.constant 0 : i32
    %c0_i32_1 = arith.constant 0 : i32
    return %c0_i32, %c0_i32_0 : i32, i32
  }
  func.func @transform_6(%arg0: i32, %arg1: i32) -> (i32, i32) {
    %c0_i32 = arith.constant 0 : i32
    %c0_i32_0 = arith.constant 0 : i32
    %c0_i32_1 = arith.constant 0 : i32
    return %c0_i32, %c0_i32_0 : i32, i32
  }
  func.func @transform_7(%arg0: i32, %arg1: i32) -> (i32, i32) {
    %c0_i32 = arith.constant 0 : i32
    %c0_i32_0 = arith.constant 0 : i32
    %c0_i32_1 = arith.constant 0 : i32
    return %c0_i32, %c0_i32_0 : i32, i32
  }
  func.func @transform_8(%arg0: i32, %arg1: i32) -> (i32, i32) {
    %c0_i32 = arith.constant 0 : i32
    %c0_i32_0 = arith.constant 0 : i32
    %c0_i32_1 = arith.constant 0 : i32
    return %c0_i32, %c0_i32_0 : i32, i32
  }
  func.func @transform_9(%arg0: i32, %arg1: i32) -> (i32, i32) {
    %c0_i32 = arith.constant 0 : i32
    %c0_i32_0 = arith.constant 0 : i32
    %c0_i32_1 = arith.constant 0 : i32
    return %c0_i32, %c0_i32_0 : i32, i32
  }
  func.func @transform_10(%arg0: i32, %arg1: i32) -> (i32, i32) {
    %c0_i32 = arith.constant 0 : i32
    %c0_i32_0 = arith.constant 0 : i32
    %c0_i32_1 = arith.constant 0 : i32
    return %c0_i32, %c0_i32_0 : i32, i32
  }
  func.func @transform_11(%arg0: i32, %arg1: i32) -> (i32, i32) {
    %c0_i32 = arith.constant 0 : i32
    %c0_i32_0 = arith.constant 0 : i32
    %c0_i32_1 = arith.constant 0 : i32
    return %c0_i32, %c0_i32_0 : i32, i32
  }
  func.func @transform_12(%arg0: i32, %arg1: i32) -> (i32, i32) {
    %c0_i32 = arith.constant 0 : i32
    %c0_i32_0 = arith.constant 0 : i32
    %c0_i32_1 = arith.constant 0 : i32
    return %c0_i32, %c0_i32_0 : i32, i32
  }
  func.func @transform_13(%arg0: i32, %arg1: i32) -> (i32, i32) {
    %c0_i32 = arith.constant 0 : i32
    %c0_i32_0 = arith.constant 0 : i32
    %c0_i32_1 = arith.constant 0 : i32
    return %c0_i32, %c0_i32_0 : i32, i32
  }
  func.func @transform_14(%arg0: i32, %arg1: i32) -> (i32, i32) {
    %c0_i32 = arith.constant 0 : i32
    %c0_i32_0 = arith.constant 0 : i32
    %c0_i32_1 = arith.constant 0 : i32
    return %c0_i32, %c0_i32_0 : i32, i32
  }
  func.func @transform_15(%arg0: i32, %arg1: i32) -> (i32, i32) {
    %c0_i32 = arith.constant 0 : i32
    %c0_i32_0 = arith.constant 0 : i32
    %c0_i32_1 = arith.constant 0 : i32
    return %c0_i32, %c0_i32_0 : i32, i32
  }
  func.func @transform_16(%arg0: i32, %arg1: i32) -> (i32, i32, i32, i32, i32) {
    %c0_i32 = arith.constant 0 : i32
    %c0_i32_0 = arith.constant 0 : i32
    %c0_i32_1 = arith.constant 0 : i32
    %c0_i32_2 = arith.constant 0 : i32
    return %arg0, %arg1, %c0_i32, %c0_i32_0, %c0_i32_1 : i32, i32, i32, i32, i32
  }
}

</mosaic_0001>

<bundles_post_ra>
// kernel: tpu_custom_call.1
= control target key start
LH: loop header
LB: loop body
LE: loop exit
PB: predicated region body
PF: predicated region fallthrough
CT: control target
= control target key end

     0   :  { %s15793_s0 = inlined_call_operand.hbm [shape: f32[2,3,16,16,32], index: 0, kind: input, shape index: {}]   ;;  %s15794_s1 = inlined_call_operand.vmem [shape: f32[2,3,64], index: 1, kind: input, shape index: {}]   ;;  %s15795_s2 = inlined_call_operand.vmem [shape: f32[1,32], index: 2, kind: input, shape index: {}]   ;;  %s15796_s3 = inlined_call_operand.vmem [shape: f32[1,32], index: 3, kind: input, shape index: {}]   ;;  %s15797_s4 = inlined_call_operand.vmem [shape: f32[32,32], index: 4, kind: input, shape index: {}]   ;;  %s15798_s5 = inlined_call_operand.vmem [shape: bf16[288,64], index: 5, kind: input, shape index: {}]   ;;  %s15799_s6 = inlined_call_operand.vmem [shape: f32[1,64], index: 6, kind: input, shape index: {}]   ;;  %s15800_s7 = inlined_call_operand.vmem [shape: bf16[64,64], index: 7, kind: input, shape index: {}]   ;;  %s15801_s8 = inlined_call_operand.vmem [shape: f32[1,64], index: 8, kind: input, shape index: {}]   ;;  %s15802_s9 = inlined_call_operand.vmem [shape: f32[1,64], index: 9, kind: input, shape index: {}]   ;;  %s15803_s10 = inlined_call_operand.vmem [shape: f32[1,64], index: 10, kind: input, shape index: {}]   ;;  %s15804_s11 = inlined_call_operand.vmem [shape: f32[64,64], index: 11, kind: input, shape index: {}]   ;;  %s15805_s12 = inlined_call_operand.vmem [shape: bf16[576,64], index: 12, kind: input, shape index: {}]   ;;  %s15806_s13 = inlined_call_operand.vmem [shape: f32[1,64], index: 13, kind: input, shape index: {}]   ;;  %s15807_s14 = inlined_call_operand.vmem [shape: bf16[32,64], index: 14, kind: input, shape index: {}]   ;;  %s15808_s15 = inlined_call_operand.vmem [shape: f32[1,64], index: 15, kind: input, shape index: {}]   ;;  %s15809_s16 = inlined_call_operand.hbm [shape: f32[2,3,16,16,64], index: 16, kind: output, shape index: {}]  }
   0x1   :  { %15855 = sst [smem:[#allocation68_spill]] %s15793_s0 }
   0x2   :  { %15856 = sst [smem:[#allocation69_spill]] %s15794_s1 }
   0x3   :  { %15857 = sst [smem:[#allocation70_spill]] %s15795_s2 }
   0x4   :  { %15858 = sst [smem:[#allocation71_spill]] %s15796_s3 }
   0x5   :  { %15859 = sst [smem:[#allocation72_spill]] %s15799_s6 }
   0x6   :  { %15860 = sst [smem:[#allocation73_spill]] %s15802_s9 }
   0x7   :  { %15861 = sst [smem:[#allocation74_spill]] %s15803_s10 }
   0x8   :  { %15862 = sst [smem:[#allocation75_spill]] %s15804_s11 }
   0x9   :  { %15863 = sst [smem:[#allocation76_spill]] %s15805_s12 }
   0xa   :  { %15864 = sst [smem:[#allocation77_spill]] %s15806_s13 }
   0xb   :  { %15865 = sst [smem:[#allocation78_spill]] %s15807_s14 }
   0xc   :  { %15866 = sst [smem:[#allocation79_spill]] %s15808_s15 }
   0xd   :  { %15867 = sst [smem:[#allocation80_spill]] %s15809_s16 }
   0xe   :  { %21 = vsyncpa [#allocation11], 0 }
   0xf   :  { %23 = vsyncpa [#allocation11 + $0x1], 0 }
  0x10   :  { %24 = vsyncpa [#allocation12], 0 }
  0x11   :  { %26 = vsyncpa [#allocation12 + $0x1], 0  ;;  %s11400_s21 = smov 0   ;;  %s11402_s22 = smov 0  }
  0x12   :  { %s11404_s23 = smov 0   ;;  %s11406_s24 = smov 0  }
  0x13   :  { %s11408_s25 = smov 0   ;;  %s11410_s26 = smov 0  }
  0x14   :  { %s11412_s27 = smov 0   ;;  %s11414_s28 = smov 0  }
  0x15 LB: > { %15868 = sst [smem:[#allocation16_spill]] %s11270_s21  ;;  %s9939_s29 = sadd.s32 4294967295, %s11298_s28   ;;  %s11298_s28 = sphi %s11414_s28, %s32_s28   ;;  %s11294_s27 = sphi %s11412_s27, %s16100_s27   ;;  %s11290_s26 = sphi %s11410_s26, %s16099_s26   ;;  %s11286_s25 = sphi %s11408_s25, %s16098_s25   ;;  %s11282_s24 = sphi %s11406_s24, %s16097_s24   ;;  %s11278_s23 = sphi %s11404_s23, %s16096_s23   ;;  %s11274_s22 = sphi %s11402_s22, %s16095_s22   ;;  %s11270_s21 = sphi %s11400_s21, %s16094_s21  }
  0x16   : > { %s9940_s30 = sadd.s32 4294967294, %s11298_s28   ;;  %s41_s0 = sadd.s32 1, %s11290_s26 }
  0x17   : > { %s44_s17 = sadd.s32 1, %s11294_s27  ;;  %p42_p0 = scmp.ge.s32.totalorder %s41_s0, 3 }
  0x18   : > { %s53_s18 = sadd.s32 1, %s11278_s23  ;;  %p60_p1 = scmp.ne.s32.totalorder %s11278_s23, %s11274_s22 }
  0x19   : > { %p61_p2 = scmp.eq.s32.totalorder %s11298_s28, 0  ;;  %s16102_s0 = smov (%p42_p0, %s41_s0), 0 }
  0x1a   : > { %15869 = sst [smem:[#allocation17_spill]] %s16102_s0  ;;  %s16104_s17 = smov (!%p42_p0, %s44_s17), %s11294_s27 }
  0x1b   : > { %s49_s19 = ssub.s32 %s11290_s26, %s16102_s0  ;;  %p11453_p3 = por %p61_p2, %p60_p1 }
  0x1c   : > { %p46_p4 = scmp.ge.s32.totalorder %s16104_s17, 2  ;;  %p66_p5 = scmp.ne.s32.totalorder %s11274_s22, %s11270_s21 }
  0x1d   : > { %p67_p6 = scmp.eq.s32.totalorder %s9939_s29, 0  ;;  %p412_p7 = scmp.eq.s32.totalorder %s9939_s29, 5 }
  0x1e   : > { %s16106_s17 = smov (%p46_p4, %s16104_s17), 0  ;;  %p418_p10 = scmp.eq.s32.totalorder %s9940_s30, 5 }
  0x1f   : > { %15871 = sst [smem:[#allocation18_spill]] %s16106_s17  ;;  %p11461_p8 = por %p67_p6, %p66_p5 }
  0x20   : > { %p11465_p9 = por %p412_p7, %p60_p1  ;;  %s48_s15 = ssub.s32 %s11294_s27, %s16106_s17 }
  0x21   : > { %s50_s13 = sor.u32 %s49_s19, %s48_s15  ;;  %p11471_p12 = por %p418_p10, %p66_p5 }
  0x22   : > { %s15873_s0 = scalar_select %p11465_p9, 1, 0 }
  0x23   : > { %p51_p11 = scmp.eq.s32.totalorder %s50_s13, 0  ;;  %p10815_p13 = scmp.lt.s32.totalorder %s11298_s28, 6 }
  0x24   : > { %s15874_s21 = scalar_select %p11471_p12, 1, 0 }
  0x25   : > { %s480_s29 = sand.u32 1, %s11278_s23   ;;  %s9944_s9 = sshll.u32 %s11290_s26, 5 }
  0x26   : > { %s11478_s14 = scalar_select %p51_p11, %s11278_s23, %s53_s18  }
  0x27   : > { %s9943_s10 = sshll.u32 %s480_s29, 8  ;;  %s10801_s12 = smul.u32 96, %s11294_s27 }
  0x28   : > { %15875 = sst [smem:[#allocation19_spill]] %s11478_s14  ;;  %s484_s11 = scalar_lea.vmem [#allocation10], %s9943_s10 }
  0x29   : > { %s493_s6 = sshll.u32 %s484_s11, 4  ;;  %p11486_p0 = pnand %p10815_p13, %p11453_p3  ;;  %s11482_s6 = int_to_ptr.vmem [resolvable:$true] %s493_s6 }
  0x2a   : > { %s490_s13 = sadd.s32 %s10801_s12, %s9944_s9  ;;  %s15877_s18 = sld [smem:[#allocation68_spill]] }
  0x2b   : > { %s9945_s15 = sshll.u32 %s490_s13, 7  ;;  %s11495_s10 = scalar_lea.sflag [#allocation11], %s480_s29 }
  0x2c   : > { %p11172_p2 = pneg %p11486_p0 }
  0x30   : > { %s11493_s14 = scalar_lea.hbm %s15877_s18, %s9945_s15  ;;  %s11175_s17 = scalar_lea.hbm %s15877_s18, 24576 }
  0x31   : > { %s11170_s11 = scalar_lea.hbm %s11493_s14, 4096  ;;  %p11176_p5 = scmp.lt.u32.totalorder %s11493_s14, %s15877_s18 }
  0x32   : > { %p11171_p1 = scmp.ne.s32.totalorder %s11493_s14, %s11170_s11  ;;  %p11177_p6 = scmp.lt.u32.totalorder %s11175_s17, %s11170_s11 }
  0x33   : > { %p11179_p10 = scmp.lt.u32.totalorder %s11170_s11, %s11493_s14 }
  0x34   : > { %p11173_p3 = pnand %p11172_p2, %p11171_p1  ;;  %p11178_p7 = por %p11177_p6, %p11176_p5 }
  0x36   : > { %p11174_p4 = pneg %p11173_p3  ;;  %p11180_p11 = por %p11179_p10, %p11178_p7 }
  0x38   : > { %p11181_p13 = pnand %p11180_p11, %p11174_p4 }
  0x3a   : > { %11184 = shalt.err (!%p11181_p13)
}
  0x3b   : > { %s11185_s29 = scalar_lea.vmem %s11482_s6, 4096  ;;  %s11300_s15 = smov [#allocation10]  }
  0x3c   : > { %p11186_p1 = scmp.ne.s32.totalorder %s11482_s6, %s11185_s29  ;;  %s11190_s19 = sshll.u32 %s11300_s15, 4  ;;  %s11191_s19 = int_to_ptr.vmem [resolvable:$false] %s11190_s19 }
  0x3d   : > { %s11192_s9 = scalar_lea.vmem %s11191_s19, 8192  ;;  %p11193_p9 = scmp.lt.s32.totalorder %s11482_s6, %s11191_s19 }
  0x3e   : > { %p11188_p3 = pnand %p11186_p1, %p11172_p2  ;;  %p11194_p5 = scmp.lt.s32.totalorder %s11192_s9, %s11185_s29 }
  0x40   : > { %p11189_p12 = pneg %p11188_p3  ;;  %p11195_p6 = por %p11194_p5, %p11193_p9 }
  0x42   : > { %p11196_p7 = pnand %p11195_p6, %p11189_p12 }
  0x44   : > { %11199 = shalt.err (!%p11196_p7)
}
  0x45   : > { %s11301_s11 = smov 128   ;;  %s11302_s12 = smov 8  }
  0x46   : > { %10810 = dma.hbm_to_vmem [thread:$0]  (!%p11486_p0), %s11493_s14, 4096, %s11482_s6, %s11495_s10, %s11301_s11, %s11301_s11, %s11302_s12  }
  0x47   : > { %p9946_p2 = scmp.ge.s32.totalorder %s11298_s28, 1  ;;  %p508_p4 = scmp.lt.s32.totalorder %s11298_s28, 7 }
  0x49   : > { %p509_p10 = pnand %p9946_p2, %p508_p4 }
  0x4b   : > { %512 = sbr.rel (%p509_p10) target bundleno = 2193 (0x891), region = 84 }
  0x52   : > { %s11526_s17 = sand.u32 1, %s11274_s22  }
  0x53   : > { %s9947_s20 = sshll.u32 %s11526_s17, 8  ;;  %s515_s13 = scalar_lea.sflag [#allocation11], %s11526_s17 }
  0x54   : > { %s11530_s29 = scalar_lea.vmem [#allocation10], %s9947_s20 }
  0x55   : > { %11261 = dma.done.wait (%p11461_p8), %s515_s13, 4096  }
  0x56   : > { %11263 = vsyncadd (%p11461_p8), %s515_s13, 4294963200  ;;  %p571_p9 = scmp.lt.s32.totalorder %s11286_s25, 1  ;;  %s15878_s1 = sld [smem:[#allocation69_spill]] }
  0x57   : > { %s11543_s19 = scalar_lea.vmem [#allocation13], %s9947_s20  ;;  %p9950_p12 = scmp.ne.s32.totalorder %s11282_s24, 0 }
  0x58   : > { %s572_s6 = scalar_select %p571_p9, %s11286_s25, 1 }
  0x59   : > { %579 = sbr.rel (%p9950_p12) target bundleno = 191 (0xbf), region = 92  ;;  %vm580_vm0 = vcmask (!%p9950_p12), 261120   ;;  %vm617_vm1 = vcmask (!%p9950_p12), 523264   ;;  %v11303_v0 = vmov (!%p9950_p12), 0   ;;  %v11304_v1 = vmov (!%p9950_p12), 2.0  }
  0x5a   : > { %s9949_s14 = sshll.u32 %s572_s6, 2  ;;  %581 = vst.msk [vmem:[#allocation2] sm:$0xff] (!%p9950_p12), %vm580_vm0, %v11303_v0  ;;  %582 = vst.msk [vmem:[#allocation2 + $0x8] sm:$0xff] (!%p9950_p12), %vm580_vm0, %v11303_v0  ;;  %vm718_vm2 = vcmask (!%p9950_p12), 516096   ;;  %v11305_v2 = vmov (!%p9950_p12), 0.0  }
  0x5b   : > { %583 = vst.msk [vmem:[#allocation2 + $0x10] sm:$0xff] (!%p9950_p12), %vm580_vm0, %v11303_v0  ;;  %584 = vst.msk [vmem:[#allocation2 + $0x18] sm:$0xff] (!%p9950_p12), %vm580_vm0, %v11303_v0 }
  0x5c   : > { %s11541_s15 = scalar_lea.vmem %s15878_s1, %s9949_s14  ;;  %585 = vst.msk [vmem:[#allocation2 + $0x20] sm:$0xff] (!%p9950_p12), %vm580_vm0, %v11303_v0  ;;  %586 = vst.msk [vmem:[#allocation2 + $0x28] sm:$0xff] (!%p9950_p12), %vm580_vm0, %v11303_v0 }
  0x5d   : > { %587 = vst.msk [vmem:[#allocation2 + $0x30] sm:$0xff] (!%p9950_p12), %vm580_vm0, %v11303_v0  ;;  %588 = vst.msk [vmem:[#allocation2 + $0x38] sm:$0xff] (!%p9950_p12), %vm580_vm0, %v11303_v0 }
  0x5e   : > { %589 = vst.msk [vmem:[#allocation2 + $0x40] sm:$0xff] (!%p9950_p12), %vm580_vm0, %v11303_v0  ;;  %590 = vst.msk [vmem:[#allocation2 + $0x48] sm:$0xff] (!%p9950_p12), %vm580_vm0, %v11303_v0 }
  0x5f   : > { %591 = vst.msk [vmem:[#allocation2 + $0x50] sm:$0xff] (!%p9950_p12), %vm580_vm0, %v11303_v0  ;;  %592 = vst.msk [vmem:[#allocation2 + $0x58] sm:$0xff] (!%p9950_p12), %vm580_vm0, %v11303_v0 }
  0x60   : > { %593 = vst.msk [vmem:[#allocation2 + $0x60] sm:$0xff] %vm580_vm0, %v11303_v0  ;;  %594 = vst.msk [vmem:[#allocation2 + $0x68] sm:$0xff] %vm580_vm0, %v11303_v0 }
  0x61   : > { %595 = vst.msk [vmem:[#allocation2 + $0x70] sm:$0xff] %vm580_vm0, %v11303_v0  ;;  %596 = vst.msk [vmem:[#allocation2 + $0x78] sm:$0xff] %vm580_vm0, %v11303_v0 }
  0x62   : > { %597 = vst.msk [vmem:[#allocation2 + $0x80] sm:$0xff] %vm580_vm0, %v11303_v0  ;;  %598 = vst.msk [vmem:[#allocation2 + $0x88] sm:$0xff] %vm580_vm0, %v11303_v0 }
  0x63   : > { %599 = vst.msk [vmem:[#allocation2 + $0x90] sm:$0xff] %vm580_vm0, %v11303_v0  ;;  %600 = vst.msk [vmem:[#allocation2 + $0x98] sm:$0xff] %vm580_vm0, %v11303_v0 }
  0x64   : > { %601 = vst.msk [vmem:[#allocation2 + $0xa0] sm:$0xff] %vm580_vm0, %v11303_v0  ;;  %602 = vst.msk [vmem:[#allocation2 + $0xa8] sm:$0xff] %vm580_vm0, %v11303_v0 }
  0x65   : > { %603 = vst.msk [vmem:[#allocation2 + $0xb0] sm:$0xff] %vm580_vm0, %v11303_v0  ;;  %604 = vst.msk [vmem:[#allocation2 + $0xb8] sm:$0xff] %vm580_vm0, %v11303_v0 }
  0x66   : > { %605 = vst.msk [vmem:[#allocation2 + $0xc0] sm:$0xff] %vm580_vm0, %v11303_v0  ;;  %606 = vst.msk [vmem:[#allocation2 + $0xc8] sm:$0xff] %vm580_vm0, %v11303_v0 }
  0x67   : > { %607 = vst.msk [vmem:[#allocation2 + $0xd0] sm:$0xff] %vm580_vm0, %v11303_v0  ;;  %608 = vst.msk [vmem:[#allocation2 + $0xd8] sm:$0xff] %vm580_vm0, %v11303_v0 }
  0x68   : > { %609 = vst.msk [vmem:[#allocation2 + $0xe0] sm:$0xff] %vm580_vm0, %v11303_v0  ;;  %610 = vst.msk [vmem:[#allocation2 + $0xe8] sm:$0xff] %vm580_vm0, %v11303_v0 }
  0x69   : > { %611 = vst.msk [vmem:[#allocation2 + $0xf0] sm:$0xff] %vm580_vm0, %v11303_v0  ;;  %612 = vst.msk [vmem:[#allocation2 + $0xf8] sm:$0xff] %vm580_vm0, %v11303_v0 }
  0x6a   : > { %613 = vst.msk [vmem:[#allocation2 + $0x100] sm:$0xff] %vm580_vm0, %v11303_v0  ;;  %614 = vst.msk [vmem:[#allocation2 + $0x108] sm:$0xff] %vm580_vm0, %v11303_v0 }
  0x6b   : > { %615 = vst.msk [vmem:[#allocation2 + $0x110] sm:$0xff] %vm580_vm0, %v11303_v0  ;;  %616 = vst.msk [vmem:[#allocation2 + $0x118] sm:$0xff] %vm580_vm0, %v11303_v0 }
  0x6c   : > { %618 = vst.msk [vmem:[#allocation3] sm:$0xff] %vm617_vm1, %v11303_v0  ;;  %619 = vst.msk [vmem:[#allocation3 + $0x8] sm:$0xff] %vm617_vm1, %v11303_v0 }
  0x6d   : > { %620 = vst.msk [vmem:[#allocation3 + $0x10] sm:$0xff] %vm617_vm1, %v11303_v0  ;;  %621 = vst.msk [vmem:[#allocation3 + $0x18] sm:$0xff] %vm617_vm1, %v11303_v0 }
  0x6e   : > { %622 = vst.msk [vmem:[#allocation3 + $0x20] sm:$0xff] %vm617_vm1, %v11303_v0  ;;  %623 = vst.msk [vmem:[#allocation3 + $0x28] sm:$0xff] %vm617_vm1, %v11303_v0 }
  0x6f   : > { %624 = vst.msk [vmem:[#allocation3 + $0x30] sm:$0xff] %vm617_vm1, %v11303_v0  ;;  %625 = vst.msk [vmem:[#allocation3 + $0x38] sm:$0xff] %vm617_vm1, %v11303_v0 }
  0x70   : > { %626 = vst.msk [vmem:[#allocation3 + $0x40] sm:$0xff] %vm617_vm1, %v11303_v0  ;;  %627 = vst.msk [vmem:[#allocation3 + $0x48] sm:$0xff] %vm617_vm1, %v11303_v0 }
  0x71   : > { %628 = vst.msk [vmem:[#allocation3 + $0x50] sm:$0xff] %vm617_vm1, %v11303_v0  ;;  %629 = vst.msk [vmem:[#allocation3 + $0x58] sm:$0xff] %vm617_vm1, %v11303_v0 }
  0x72   : > { %630 = vst.msk [vmem:[#allocation3 + $0x60] sm:$0xff] %vm617_vm1, %v11303_v0  ;;  %631 = vst.msk [vmem:[#allocation3 + $0x68] sm:$0xff] %vm617_vm1, %v11303_v0 }
  0x73   : > { %632 = vst.msk [vmem:[#allocation3 + $0x70] sm:$0xff] %vm617_vm1, %v11303_v0  ;;  %633 = vst.msk [vmem:[#allocation3 + $0x78] sm:$0xff] %vm617_vm1, %v11303_v0 }
  0x74   : > { %634 = vst.msk [vmem:[#allocation3 + $0x80] sm:$0xff] %vm617_vm1, %v11303_v0  ;;  %635 = vst.msk [vmem:[#allocation3 + $0x88] sm:$0xff] %vm617_vm1, %v11303_v0 }
  0x75   : > { %636 = vst.msk [vmem:[#allocation3 + $0x90] sm:$0xff] %vm617_vm1, %v11303_v0  ;;  %637 = vst.msk [vmem:[#allocation3 + $0x98] sm:$0xff] %vm617_vm1, %v11303_v0 }
  0x76   : > { %638 = vst.msk [vmem:[#allocation3 + $0xa0] sm:$0xff] %vm617_vm1, %v11303_v0  ;;  %639 = vst.msk [vmem:[#allocation3 + $0xa8] sm:$0xff] %vm617_vm1, %v11303_v0 }
  0x77   : > { %640 = vst.msk [vmem:[#allocation3 + $0xb0] sm:$0xff] %vm617_vm1, %v11303_v0  ;;  %641 = vst.msk [vmem:[#allocation3 + $0xb8] sm:$0xff] %vm617_vm1, %v11303_v0 }
  0x78   : > { %642 = vst.msk [vmem:[#allocation3 + $0xc0] sm:$0xff] %vm617_vm1, %v11303_v0  ;;  %643 = vst.msk [vmem:[#allocation3 + $0xc8] sm:$0xff] %vm617_vm1, %v11303_v0 }
  0x79   : > { %644 = vst.msk [vmem:[#allocation3 + $0xd0] sm:$0xff] %vm617_vm1, %v11303_v0  ;;  %645 = vst.msk [vmem:[#allocation3 + $0xd8] sm:$0xff] %vm617_vm1, %v11303_v0 }
  0x7a   : > { %646 = vst.msk [vmem:[#allocation3 + $0xe0] sm:$0xff] %vm617_vm1, %v11303_v0  ;;  %647 = vst.msk [vmem:[#allocation3 + $0xe8] sm:$0xff] %vm617_vm1, %v11303_v0 }
  0x7b   : > { %648 = vst.msk [vmem:[#allocation3 + $0xf0] sm:$0xff] %vm617_vm1, %v11303_v0  ;;  %649 = vst.msk [vmem:[#allocation3 + $0xf8] sm:$0xff] %vm617_vm1, %v11303_v0 }
  0x7c   : > { %650 = vst.msk [vmem:[#allocation3 + $0x100] sm:$0xff] %vm617_vm1, %v11303_v0  ;;  %651 = vst.msk [vmem:[#allocation3 + $0x108] sm:$0xff] %vm617_vm1, %v11303_v0 }
  0x7d   : > { %652 = vst.msk [vmem:[#allocation3 + $0x110] sm:$0xff] %vm617_vm1, %v11303_v0  ;;  %653 = vst.msk [vmem:[#allocation3 + $0x118] sm:$0xff] %vm617_vm1, %v11303_v0 }
  0x7e   : > { %654 = vst.msk [vmem:[#allocation4] sm:$0xff] %vm617_vm1, %v11304_v1  ;;  %655 = vst.msk [vmem:[#allocation4 + $0x8] sm:$0xff] %vm617_vm1, %v11304_v1 }
  0x7f   : > { %656 = vst.msk [vmem:[#allocation4 + $0x10] sm:$0xff] %vm617_vm1, %v11304_v1  ;;  %657 = vst.msk [vmem:[#allocation4 + $0x18] sm:$0xff] %vm617_vm1, %v11304_v1 }
  0x80   : > { %658 = vst.msk [vmem:[#allocation4 + $0x20] sm:$0xff] %vm617_vm1, %v11304_v1  ;;  %659 = vst.msk [vmem:[#allocation4 + $0x28] sm:$0xff] %vm617_vm1, %v11304_v1 }
  0x81   : > { %660 = vst.msk [vmem:[#allocation4 + $0x30] sm:$0xff] %vm617_vm1, %v11304_v1  ;;  %661 = vst.msk [vmem:[#allocation4 + $0x38] sm:$0xff] %vm617_vm1, %v11304_v1 }
  0x82   : > { %662 = vst.msk [vmem:[#allocation4 + $0x40] sm:$0xff] %vm617_vm1, %v11304_v1  ;;  %663 = vst.msk [vmem:[#allocation4 + $0x48] sm:$0xff] %vm617_vm1, %v11304_v1 }
  0x83   : > { %664 = vst.msk [vmem:[#allocation4 + $0x50] sm:$0xff] %vm617_vm1, %v11304_v1  ;;  %665 = vst.msk [vmem:[#allocation4 + $0x58] sm:$0xff] %vm617_vm1, %v11304_v1 }
  0x84   : > { %666 = vst.msk [vmem:[#allocation4 + $0x60] sm:$0xff] %vm617_vm1, %v11304_v1  ;;  %667 = vst.msk [vmem:[#allocation4 + $0x68] sm:$0xff] %vm617_vm1, %v11304_v1 }
  0x85   : > { %668 = vst.msk [vmem:[#allocation4 + $0x70] sm:$0xff] %vm617_vm1, %v11304_v1  ;;  %669 = vst.msk [vmem:[#allocation4 + $0x78] sm:$0xff] %vm617_vm1, %v11304_v1 }
  0x86   : > { %670 = vst.msk [vmem:[#allocation4 + $0x80] sm:$0xff] %vm617_vm1, %v11304_v1  ;;  %671 = vst.msk [vmem:[#allocation4 + $0x88] sm:$0xff] %vm617_vm1, %v11304_v1 }
  0x87   : > { %672 = vst.msk [vmem:[#allocation4 + $0x90] sm:$0xff] %vm617_vm1, %v11304_v1  ;;  %673 = vst.msk [vmem:[#allocation4 + $0x98] sm:$0xff] %vm617_vm1, %v11304_v1 }
  0x88   : > { %674 = vst.msk [vmem:[#allocation4 + $0xa0] sm:$0xff] %vm617_vm1, %v11304_v1  ;;  %675 = vst.msk [vmem:[#allocation4 + $0xa8] sm:$0xff] %vm617_vm1, %v11304_v1 }
  0x89   : > { %676 = vst.msk [vmem:[#allocation4 + $0xb0] sm:$0xff] %vm617_vm1, %v11304_v1  ;;  %677 = vst.msk [vmem:[#allocation4 + $0xb8] sm:$0xff] %vm617_vm1, %v11304_v1 }
  0x8a   : > { %678 = vst.msk [vmem:[#allocation4 + $0xc0] sm:$0xff] %vm617_vm1, %v11304_v1  ;;  %679 = vst.msk [vmem:[#allocation4 + $0xc8] sm:$0xff] %vm617_vm1, %v11304_v1 }
  0x8b   : > { %680 = vst.msk [vmem:[#allocation4 + $0xd0] sm:$0xff] %vm617_vm1, %v11304_v1  ;;  %681 = vst.msk [vmem:[#allocation4 + $0xd8] sm:$0xff] %vm617_vm1, %v11304_v1 }
  0x8c   : > { %682 = vst.msk [vmem:[#allocation4 + $0xe0] sm:$0xff] %vm617_vm1, %v11304_v1  ;;  %683 = vst.msk [vmem:[#allocation4 + $0xe8] sm:$0xff] %vm617_vm1, %v11304_v1 }
  0x8d   : > { %684 = vst.msk [vmem:[#allocation4 + $0xf0] sm:$0xff] %vm617_vm1, %v11304_v1  ;;  %685 = vst.msk [vmem:[#allocation4 + $0xf8] sm:$0xff] %vm617_vm1, %v11304_v1 }
  0x8e   : > { %721 = vst.msk [vmem:[#allocation8] sm:$0xff] %vm617_vm1, %v11304_v1  ;;  %722 = vst.msk [vmem:[#allocation8 + $0x8] sm:$0xff] %vm617_vm1, %v11304_v1 }
  0x8f   : > { %723 = vst.msk [vmem:[#allocation8 + $0x10] sm:$0xff] %vm617_vm1, %v11304_v1  ;;  %724 = vst.msk [vmem:[#allocation8 + $0x18] sm:$0xff] %vm617_vm1, %v11304_v1 }
  0x90   : > { %725 = vst.msk [vmem:[#allocation8 + $0x20] sm:$0xff] %vm617_vm1, %v11304_v1  ;;  %726 = vst.msk [vmem:[#allocation8 + $0x28] sm:$0xff] %vm617_vm1, %v11304_v1 }
  0x91   : > { %727 = vst.msk [vmem:[#allocation8 + $0x30] sm:$0xff] %vm617_vm1, %v11304_v1  ;;  %728 = vst.msk [vmem:[#allocation8 + $0x38] sm:$0xff] %vm617_vm1, %v11304_v1 }
  0x92   : > { %729 = vst.msk [vmem:[#allocation8 + $0x40] sm:$0xff] %vm617_vm1, %v11304_v1  ;;  %730 = vst.msk [vmem:[#allocation8 + $0x48] sm:$0xff] %vm617_vm1, %v11304_v1 }
  0x93   : > { %731 = vst.msk [vmem:[#allocation8 + $0x50] sm:$0xff] %vm617_vm1, %v11304_v1  ;;  %732 = vst.msk [vmem:[#allocation8 + $0x58] sm:$0xff] %vm617_vm1, %v11304_v1 }
  0x94   : > { %733 = vst.msk [vmem:[#allocation8 + $0x60] sm:$0xff] %vm617_vm1, %v11304_v1  ;;  %734 = vst.msk [vmem:[#allocation8 + $0x68] sm:$0xff] %vm617_vm1, %v11304_v1 }
  0x95   : > { %735 = vst.msk [vmem:[#allocation8 + $0x70] sm:$0xff] %vm617_vm1, %v11304_v1  ;;  %736 = vst.msk [vmem:[#allocation8 + $0x78] sm:$0xff] %vm617_vm1, %v11304_v1 }
  0x96   : > { %737 = vst.msk [vmem:[#allocation8 + $0x80] sm:$0xff] %vm617_vm1, %v11304_v1  ;;  %738 = vst.msk [vmem:[#allocation8 + $0x88] sm:$0xff] %vm617_vm1, %v11304_v1 }
  0x97   : > { %739 = vst.msk [vmem:[#allocation8 + $0x90] sm:$0xff] %vm617_vm1, %v11304_v1  ;;  %740 = vst.msk [vmem:[#allocation8 + $0x98] sm:$0xff] %vm617_vm1, %v11304_v1 }
  0x98   : > { %741 = vst.msk [vmem:[#allocation8 + $0xa0] sm:$0xff] %vm617_vm1, %v11304_v1  ;;  %742 = vst.msk [vmem:[#allocation8 + $0xa8] sm:$0xff] %vm617_vm1, %v11304_v1 }
  0x99   : > { %743 = vst.msk [vmem:[#allocation8 + $0xb0] sm:$0xff] %vm617_vm1, %v11304_v1  ;;  %744 = vst.msk [vmem:[#allocation8 + $0xb8] sm:$0xff] %vm617_vm1, %v11304_v1 }
  0x9a   : > { %745 = vst.msk [vmem:[#allocation8 + $0xc0] sm:$0xff] %vm617_vm1, %v11304_v1  ;;  %746 = vst.msk [vmem:[#allocation8 + $0xc8] sm:$0xff] %vm617_vm1, %v11304_v1 }
  0x9b   : > { %747 = vst.msk [vmem:[#allocation8 + $0xd0] sm:$0xff] %vm617_vm1, %v11304_v1  ;;  %748 = vst.msk [vmem:[#allocation8 + $0xd8] sm:$0xff] %vm617_vm1, %v11304_v1 }
  0x9c   : > { %749 = vst.msk [vmem:[#allocation8 + $0xe0] sm:$0xff] %vm617_vm1, %v11304_v1  ;;  %750 = vst.msk [vmem:[#allocation8 + $0xe8] sm:$0xff] %vm617_vm1, %v11304_v1 }
  0x9d   : > { %751 = vst.msk [vmem:[#allocation8 + $0xf0] sm:$0xff] %vm617_vm1, %v11304_v1  ;;  %752 = vst.msk [vmem:[#allocation8 + $0xf8] sm:$0xff] %vm617_vm1, %v11304_v1 }
  0x9e   : > { %686 = vst.msk [vmem:[#allocation5] sm:$0xff] %vm617_vm1, %v11305_v2  ;;  %687 = vst.msk [vmem:[#allocation5 + $0x8] sm:$0xff] %vm617_vm1, %v11305_v2 }
  0x9f   : > { %688 = vst.msk [vmem:[#allocation5 + $0x10] sm:$0xff] %vm617_vm1, %v11305_v2  ;;  %689 = vst.msk [vmem:[#allocation5 + $0x18] sm:$0xff] %vm617_vm1, %v11305_v2 }
  0xa0   : > { %690 = vst.msk [vmem:[#allocation5 + $0x20] sm:$0xff] %vm617_vm1, %v11305_v2  ;;  %691 = vst.msk [vmem:[#allocation5 + $0x28] sm:$0xff] %vm617_vm1, %v11305_v2 }
  0xa1   : > { %692 = vst.msk [vmem:[#allocation5 + $0x30] sm:$0xff] %vm617_vm1, %v11305_v2  ;;  %693 = vst.msk [vmem:[#allocation5 + $0x38] sm:$0xff] %vm617_vm1, %v11305_v2 }
  0xa2   : > { %694 = vst.msk [vmem:[#allocation5 + $0x40] sm:$0xff] %vm617_vm1, %v11305_v2  ;;  %695 = vst.msk [vmem:[#allocation5 + $0x48] sm:$0xff] %vm617_vm1, %v11305_v2 }
  0xa3   : > { %696 = vst.msk [vmem:[#allocation5 + $0x50] sm:$0xff] %vm617_vm1, %v11305_v2  ;;  %697 = vst.msk [vmem:[#allocation5 + $0x58] sm:$0xff] %vm617_vm1, %v11305_v2 }
  0xa4   : > { %698 = vst.msk [vmem:[#allocation5 + $0x60] sm:$0xff] %vm617_vm1, %v11305_v2  ;;  %699 = vst.msk [vmem:[#allocation5 + $0x68] sm:$0xff] %vm617_vm1, %v11305_v2 }
  0xa5   : > { %700 = vst.msk [vmem:[#allocation5 + $0x70] sm:$0xff] %vm617_vm1, %v11305_v2  ;;  %701 = vst.msk [vmem:[#allocation5 + $0x78] sm:$0xff] %vm617_vm1, %v11305_v2 }
  0xa6   : > { %702 = vst.msk [vmem:[#allocation5 + $0x80] sm:$0xff] %vm617_vm1, %v11305_v2  ;;  %703 = vst.msk [vmem:[#allocation5 + $0x88] sm:$0xff] %vm617_vm1, %v11305_v2 }
  0xa7   : > { %704 = vst.msk [vmem:[#allocation5 + $0x90] sm:$0xff] %vm617_vm1, %v11305_v2  ;;  %705 = vst.msk [vmem:[#allocation5 + $0x98] sm:$0xff] %vm617_vm1, %v11305_v2 }
  0xa8   : > { %706 = vst.msk [vmem:[#allocation5 + $0xa0] sm:$0xff] %vm617_vm1, %v11305_v2  ;;  %707 = vst.msk [vmem:[#allocation5 + $0xa8] sm:$0xff] %vm617_vm1, %v11305_v2 }
  0xa9   : > { %708 = vst.msk [vmem:[#allocation5 + $0xb0] sm:$0xff] %vm617_vm1, %v11305_v2  ;;  %709 = vst.msk [vmem:[#allocation5 + $0xb8] sm:$0xff] %vm617_vm1, %v11305_v2 }
  0xaa   : > { %710 = vst.msk [vmem:[#allocation5 + $0xc0] sm:$0xff] %vm617_vm1, %v11305_v2  ;;  %711 = vst.msk [vmem:[#allocation5 + $0xc8] sm:$0xff] %vm617_vm1, %v11305_v2 }
  0xab   : > { %712 = vst.msk [vmem:[#allocation5 + $0xd0] sm:$0xff] %vm617_vm1, %v11305_v2  ;;  %713 = vst.msk [vmem:[#allocation5 + $0xd8] sm:$0xff] %vm617_vm1, %v11305_v2 }
  0xac   : > { %714 = vst.msk [vmem:[#allocation5 + $0xe0] sm:$0xff] %vm617_vm1, %v11305_v2  ;;  %715 = vst.msk [vmem:[#allocation5 + $0xe8] sm:$0xff] %vm617_vm1, %v11305_v2 }
  0xad   : > { %716 = vst.msk [vmem:[#allocation5 + $0xf0] sm:$0xff] %vm617_vm1, %v11305_v2  ;;  %717 = vst.msk [vmem:[#allocation5 + $0xf8] sm:$0xff] %vm617_vm1, %v11305_v2 }
  0xae   : > { %753 = vst.msk [vmem:[#allocation9] sm:$0xff] %vm617_vm1, %v11305_v2  ;;  %754 = vst.msk [vmem:[#allocation9 + $0x8] sm:$0xff] %vm617_vm1, %v11305_v2 }
  0xaf   : > { %755 = vst.msk [vmem:[#allocation9 + $0x10] sm:$0xff] %vm617_vm1, %v11305_v2  ;;  %756 = vst.msk [vmem:[#allocation9 + $0x18] sm:$0xff] %vm617_vm1, %v11305_v2 }
  0xb0   : > { %757 = vst.msk [vmem:[#allocation9 + $0x20] sm:$0xff] %vm617_vm1, %v11305_v2  ;;  %758 = vst.msk [vmem:[#allocation9 + $0x28] sm:$0xff] %vm617_vm1, %v11305_v2 }
  0xb1   : > { %759 = vst.msk [vmem:[#allocation9 + $0x30] sm:$0xff] %vm617_vm1, %v11305_v2  ;;  %760 = vst.msk [vmem:[#allocation9 + $0x38] sm:$0xff] %vm617_vm1, %v11305_v2 }
  0xb2   : > { %761 = vst.msk [vmem:[#allocation9 + $0x40] sm:$0xff] %vm617_vm1, %v11305_v2  ;;  %762 = vst.msk [vmem:[#allocation9 + $0x48] sm:$0xff] %vm617_vm1, %v11305_v2 }
  0xb3   : > { %763 = vst.msk [vmem:[#allocation9 + $0x50] sm:$0xff] %vm617_vm1, %v11305_v2  ;;  %764 = vst.msk [vmem:[#allocation9 + $0x58] sm:$0xff] %vm617_vm1, %v11305_v2 }
  0xb4   : > { %765 = vst.msk [vmem:[#allocation9 + $0x60] sm:$0xff] %vm617_vm1, %v11305_v2  ;;  %766 = vst.msk [vmem:[#allocation9 + $0x68] sm:$0xff] %vm617_vm1, %v11305_v2 }
  0xb5   : > { %767 = vst.msk [vmem:[#allocation9 + $0x70] sm:$0xff] %vm617_vm1, %v11305_v2  ;;  %768 = vst.msk [vmem:[#allocation9 + $0x78] sm:$0xff] %vm617_vm1, %v11305_v2 }
  0xb6   : > { %769 = vst.msk [vmem:[#allocation9 + $0x80] sm:$0xff] %vm617_vm1, %v11305_v2  ;;  %770 = vst.msk [vmem:[#allocation9 + $0x88] sm:$0xff] %vm617_vm1, %v11305_v2 }
  0xb7   : > { %771 = vst.msk [vmem:[#allocation9 + $0x90] sm:$0xff] %vm617_vm1, %v11305_v2  ;;  %772 = vst.msk [vmem:[#allocation9 + $0x98] sm:$0xff] %vm617_vm1, %v11305_v2 }
  0xb8   : > { %773 = vst.msk [vmem:[#allocation9 + $0xa0] sm:$0xff] %vm617_vm1, %v11305_v2  ;;  %774 = vst.msk [vmem:[#allocation9 + $0xa8] sm:$0xff] %vm617_vm1, %v11305_v2 }
  0xb9   : > { %775 = vst.msk [vmem:[#allocation9 + $0xb0] sm:$0xff] %vm617_vm1, %v11305_v2  ;;  %776 = vst.msk [vmem:[#allocation9 + $0xb8] sm:$0xff] %vm617_vm1, %v11305_v2 }
  0xba   : > { %777 = vst.msk [vmem:[#allocation9 + $0xc0] sm:$0xff] %vm617_vm1, %v11305_v2  ;;  %778 = vst.msk [vmem:[#allocation9 + $0xc8] sm:$0xff] %vm617_vm1, %v11305_v2 }
  0xbb   : > { %779 = vst.msk [vmem:[#allocation9 + $0xd0] sm:$0xff] %vm617_vm1, %v11305_v2  ;;  %780 = vst.msk [vmem:[#allocation9 + $0xd8] sm:$0xff] %vm617_vm1, %v11305_v2 }
  0xbc   : > { %781 = vst.msk [vmem:[#allocation9 + $0xe0] sm:$0xff] %vm617_vm1, %v11305_v2  ;;  %782 = vst.msk [vmem:[#allocation9 + $0xe8] sm:$0xff] %vm617_vm1, %v11305_v2 }
  0xbd   : > { %783 = vst.msk [vmem:[#allocation9 + $0xf0] sm:$0xff] %vm617_vm1, %v11305_v2  ;;  %784 = vst.msk [vmem:[#allocation9 + $0xf8] sm:$0xff] %vm617_vm1, %v11305_v2 }
  0xbe   : > { %719 = vst.msk [vmem:[#allocation6] sm:$0x1] %vm718_vm2, %v11304_v1  ;;  %720 = vst.msk [vmem:[#allocation7] sm:$0x1] %vm718_vm2, %v11305_v2 }
  0xbf PF: > { %v819_v3 = vld [vmem:[%s15797_s4] sm:$0xff]  ;;  %v820_v4 = vld [vmem:[%s15797_s4 + $0x8] sm:$0xff]  ;;  %v821_v5 = vld [vmem:[%s15797_s4 + $0x10] sm:$0xff]  ;;  %v15821_v6 = vmov 0.0|0.0   ;;  %vm11307_vm3 = vmmov 0   ;;  %v15823_v9 = vmov 0.0   ;;  %s4974_s6 = scalar_lea.vmem %s11541_s15, %s11282_s24 }
  0xc0   : > { %10767 = vmatprep.subr.bf16.mxu0 %v15821_v6  ;;  %v10768_v7 = vpack.c.bf16 %v820_v4, %v819_v3  ;;  %v822_v8 = vld [vmem:[%s15797_s4 + $0x18] sm:$0xff]  ;;  %10621 = vmatprep.mubr.msk.f32.mxu0 %vm11307_vm3, %v15823_v9  ;;  %v11966_v10 = vld [vmem:[%s11530_s29] sm:$0xff]  ;;  %v11969_v11 = vld [vmem:[%s11530_s29 + $0x8] sm:$0xff]  ;;  %vm823_vm4 = vcmask 261120   ;;  %vm994_vm5 = vcmask 1040384   ;;  %vm1616_vm6 = vcmask 1043456  }
  0xc1   : > { %15879 = vst [vmem:[#allocation20_spill] sm:$0xff] %v11969_v11  ;;  %v11972_v12 = vld [vmem:[%s11530_s29 + $0x10] sm:$0xff]  ;;  %v824_v13 = vsel %vm823_vm4, %v11966_v10, 0.0  ;;  %v825_v14 = vsel %vm823_vm4, %v11969_v11, 0.0  ;;  %v10771_v15 = vpack.c.bf16 %v822_v8, %v821_v5  ;;  %v11979_v16 = vld [vmem:[%s11530_s29 + $0x18] sm:$0xff]  ;;  %v11982_v17 = vld [vmem:[%s11530_s29 + $0x20] sm:$0xff] }
  0xc2   : > { %10769 = vmatpush3.bf16.msra.mxu0 %v10768_v7  ;;  %15880 = vst [vmem:[#allocation21_spill] sm:$0xff] %v11982_v17  ;;  %v826_v18 = vadd.f32 %v825_v14, %v824_v13  ;;  %v827_v19 = vsel %vm823_vm4, %v11972_v12, 0.0  ;;  %v11988_v20 = vld [vmem:[%s11530_s29 + $0x28] sm:$0xff]  ;;  %v11991_v21 = vld [vmem:[%s11530_s29 + $0x30] sm:$0xff]  ;;  %v11994_v22 = vld [vmem:[%s11530_s29 + $0x38] sm:$0xff]  ;;  %v829_v23 = vsel %vm823_vm4, %v11979_v16, 0.0 }
  0xc3   : > { %10770 = vmatprep.subr.bf16.mxu0 %v15821_v6  ;;  %15881 = vst [vmem:[#allocation22_spill] sm:$0xff] %v11988_v20  ;;  %15882 = vst [vmem:[#allocation23_spill] sm:$0xff] %v11991_v21  ;;  %v11999_v24 = vld [vmem:[%s11530_s29 + $0x40] sm:$0xff]  ;;  %v12002_v25 = vld [vmem:[%s11530_s29 + $0x48] sm:$0xff]  ;;  %v831_v28 = vsel %vm823_vm4, %v11982_v17, 0.0  ;;  %v833_v32 = vsel %vm823_vm4, %v11988_v20, 0.0  ;;  %v900_v6 = vmul.f32 %v11994_v22, %v11994_v22 }
  0xc4   : > { %15883 = vst [vmem:[#allocation24_spill] sm:$0xff] %v11994_v22  ;;  %15884 = vst [vmem:[#allocation25_spill] sm:$0xff] %v11999_v24  ;;  %v12005_v26 = vld [vmem:[%s11530_s29 + $0x50] sm:$0xff]  ;;  %v828_v27 = vadd.f32 %v827_v19, %v826_v18  ;;  %v12010_v29 = vld [vmem:[%s11530_s29 + $0x58] sm:$0xff]  ;;  %v835_v33 = vsel %vm823_vm4, %v11991_v21, 0.0  ;;  %v837_v34 = vsel %vm823_vm4, %v11994_v22, 0.0 }
  0xc5   : > { %15885 = vst [vmem:[#allocation26_spill] sm:$0xff] %v12002_v25  ;;  %v12013_v30 = vld [vmem:[%s11530_s29 + $0x60] sm:$0xff]  ;;  %v12016_v31 = vld [vmem:[%s11530_s29 + $0x68] sm:$0xff]  ;;  %v12025_v35 = vld [vmem:[%s11530_s29 + $0x70] sm:$0xff]  ;;  %v839_v39 = vsel %vm823_vm4, %v11999_v24, 0.0  ;;  %v841_v40 = vsel %vm823_vm4, %v12002_v25, 0.0  ;;  %v904_v22 = vmul.f32 %v12010_v29, %v12010_v29 }
  0xc6   : > { %15886 = vst [vmem:[#allocation27_spill] sm:$0xff] %v12016_v31  ;;  %10772 = vmatpush3.bf16.msra.mxu0 %v10771_v15  ;;  %15887 = vst [vmem:[#allocation28_spill] sm:$0xff] %v12025_v35  ;;  %v12028_v36 = vld [vmem:[%s11530_s29 + $0x78] sm:$0xff]  ;;  %v12031_v37 = vld [vmem:[%s11530_s29 + $0x80] sm:$0xff]  ;;  %v830_v38 = vadd.f32 %v829_v23, %v828_v27  ;;  %v843_v41 = vsel %vm823_vm4, %v12005_v26, 0.0  ;;  %v845_v45 = vsel %vm823_vm4, %v12010_v29, 0.0  ;;  %v893_v27 = vmul.f32 %v11966_v10, %v11966_v10 }
  0xc7   : > { %15888 = vst [vmem:[#allocation29_spill] sm:$0xff] %v12028_v36  ;;  %15889 = vst [vmem:[#allocation30_spill] sm:$0xff] %v12031_v37  ;;  %v12040_v42 = vld [vmem:[%s11530_s29 + $0x88] sm:$0xff]  ;;  %v12043_v43 = vld [vmem:[%s11530_s29 + $0x90] sm:$0xff]  ;;  %v847_v46 = vsel %vm823_vm4, %v12013_v30, 0.0  ;;  %v12054_v47 = vsel %vm823_vm4, %v12016_v31, 0.0 }
  0xc8   : > { %15890 = vst [vmem:[#allocation31_spill] sm:$0xff] %v12040_v42  ;;  %v12046_v44 = vld [vmem:[%s11530_s29 + $0x98] sm:$0xff]  ;;  %v12057_v48 = vld [vmem:[%s11530_s29 + $0xa0] sm:$0xff]  ;;  %v12060_v49 = vld [vmem:[%s11530_s29 + $0xa8] sm:$0xff]  ;;  %v832_v51 = vadd.f32 %v831_v28, %v830_v38  ;;  %v12067_v52 = vsel %vm823_vm4, %v12025_v35, 0.0  ;;  %v12071_v53 = vsel %vm823_vm4, %v12028_v36, 0.0  ;;  %v894_v28 = vmul.f32 %v11969_v11, %v11969_v11 }
  0xc9   : > { %15891 = vst [vmem:[#allocation32_spill] sm:$0xff] %v12046_v44  ;;  %15892 = vst [vmem:[#allocation33_spill] sm:$0xff] %v12060_v49  ;;  %v12063_v50 = vld [vmem:[%s11530_s29 + $0xb0] sm:$0xff]  ;;  %v12075_v54 = vsel %vm823_vm4, %v12031_v37, 0.0  ;;  %v12078_v55 = vld [vmem:[%s11530_s29 + $0xb8] sm:$0xff]  ;;  %v12085_v57 = vsel %vm823_vm4, %v12040_v42, 0.0  ;;  %v895_v38 = vmul.f32 %v11972_v12, %v11972_v12 }
  0xca   : > { %v12081_v56 = vld [vmem:[%s11530_s29 + $0xc0] sm:$0xff]  ;;  %v12089_v58 = vsel %vm823_vm4, %v12043_v43, 0.0  ;;  %v12093_v59 = vsel %vm823_vm4, %v12046_v44, 0.0  ;;  %v12097_v60 = vsel %vm823_vm4, %v12057_v48, 0.0  ;;  %v12100_v61 = vld [vmem:[%s11530_s29 + $0xc8] sm:$0xff]  ;;  %v12103_v62 = vld [vmem:[%s11530_s29 + $0xd0] sm:$0xff]  ;;  %v834_v0 = vadd.f32 %v833_v32, %v832_v51 }
  0xcb   : > { %v12106_v63 = vld [vmem:[%s11530_s29 + $0xd8] sm:$0xff]  ;;  %v12110_v1 = vsel %vm823_vm4, %v12060_v49, 0.0  ;;  %v12114_v2 = vsel %vm823_vm4, %v12063_v50, 0.0  ;;  %v12118_v3 = vsel %vm823_vm4, %v12078_v55, 0.0  ;;  %v12121_v4 = vld [vmem:[%s11530_s29 + $0xe0] sm:$0xff]  ;;  %v12124_v5 = vld [vmem:[%s11530_s29 + $0xe8] sm:$0xff]  ;;  %v897_v51 = vmul.f32 %v11982_v17, %v11982_v17 }
  0xcc   : > { %v12128_v7 = vsel %vm823_vm4, %v12081_v56, 0.0  ;;  %v12132_v8 = vsel %vm823_vm4, %v12100_v61, 0.0  ;;  %v12136_v13 = vsel %vm823_vm4, %v12103_v62, 0.0  ;;  %v12140_v14 = vsel %vm823_vm4, %v12106_v63, 0.0  ;;  %s11309_s16 = smov 32   ;;  %s15853_s9 = smov 64  }
  0xcd   : > { %v836_v15 = vadd.f32 %v835_v33, %v834_v0  ;;  %v12144_v18 = vsel %vm823_vm4, %v12121_v4, 0.0  ;;  %v12148_v19 = vsel %vm823_vm4, %v12124_v5, 0.0  ;;  %v896_v33 = vmul.f32 %v11979_v16, %v11979_v16  ;;  %s15895_s2 = sld [smem:[#allocation70_spill]]  ;;  %s15896_s3 = sld [smem:[#allocation71_spill]] }
  0xce   : > { %v925_v9 = vsel %vm823_vm4, %v893_v27, 0.0  ;;  %v926_v17 = vsel %vm823_vm4, %v894_v28, 0.0  ;;  %v909_v28 = vmul.f32 %v12031_v37, %v12031_v37  ;;  %v938_v37 = vsel %vm823_vm4, %v900_v6, 0.0  ;;  %s11311_s30 = smov 96   ;;  %s15985_s10 = sld [smem:[#allocation72_spill]] }
  0xcf   : > { %v838_v23 = vadd.f32 %v837_v34, %v836_v15  ;;  %v898_v34 = vmul.f32 %v11988_v20, %v11988_v20  ;;  %v899_v15 = vmul.f32 %v11991_v21, %v11991_v21  ;;  %v927_v20 = vadd.f32 %v926_v17, %v925_v9  ;;  %s16022_s15 = sld [smem:[#allocation76_spill]]  ;;  %s16024_s20 = sld [smem:[#allocation74_spill]] }
  0xd0   : > { %v928_v21 = vsel %vm823_vm4, %v895_v38, 0.0  ;;  %v930_v27 = vsel %vm823_vm4, %v896_v33, 0.0  ;;  %v908_v9 = vmul.f32 %v12028_v36, %v12028_v36  ;;  %v910_v38 = vmul.f32 %v12040_v42, %v12040_v42  ;;  %s16039_s11 = sld [smem:[#allocation77_spill]]  ;;  %p16088_p0 = scmp.ne.s32.totalorder %s15873_s0, 0 }
  0xd1   : > { %v840_v32 = vadd.f32 %v839_v39, %v838_v23  ;;  %v901_v39 = vmul.f32 %v11999_v24, %v11999_v24  ;;  %v902_v23 = vmul.f32 %v12002_v25, %v12002_v25  ;;  %v905_v24 = vmul.f32 %v12013_v30, %v12013_v30  ;;  %s11312_s13 = smov [#allocation13]  }
  0xd2   : > { %v906_v25 = vmul.f32 %v12016_v31, %v12016_v31  ;;  %v929_v17 = vadd.f32 %v928_v21, %v927_v20  ;;  %v932_v31 = vsel %vm823_vm4, %v897_v51, 0.0  ;;  %v914_v20 = vmul.f32 %v12060_v49, %v12060_v49 }
  0xd3   : > { %v842_v0 = vadd.f32 %v841_v40, %v840_v32  ;;  %v903_v32 = vmul.f32 %v12005_v26, %v12005_v26  ;;  %v934_v21 = vsel %vm823_vm4, %v898_v34, 0.0  ;;  %v936_v42 = vsel %vm823_vm4, %v899_v15, 0.0 }
  0xd4   : > { %v931_v36 = vadd.f32 %v930_v27, %v929_v17  ;;  %v946_v27 = vsel %vm823_vm4, %v904_v22, 0.0  ;;  %v948_v17 = vsel %vm823_vm4, %v905_v24, 0.0  ;;  %v950_v49 = vsel %vm823_vm4, %v906_v25, 0.0 }
  0xd5   : > { %v844_v40 = vadd.f32 %v843_v41, %v842_v0  ;;  %v907_v41 = vmul.f32 %v12025_v35, %v12025_v35  ;;  %v911_v0 = vmul.f32 %v12043_v43, %v12043_v43  ;;  %vm1681_vm7 = vsmask.f32 3328 }
  0xd6   : > { %v933_v51 = vadd.f32 %v932_v31, %v931_v36  ;;  %v956_v31 = vsel %vm823_vm4, %v909_v28, 0.0  ;;  %v958_v36 = vsel %vm823_vm4, %v910_v38, 0.0  ;;  %vm1229_vm8 = vcmask 261124  }
  0xd7   : > { %v846_v11 = vadd.f32 %v845_v45, %v844_v40  ;;  %v912_v45 = vmul.f32 %v12046_v44, %v12046_v44  ;;  %v913_v40 = vmul.f32 %v12057_v48, %v12057_v48  ;;  %v944_v44 = vsel %vm823_vm4, %v903_v32, 0.0 }
  0xd8   : > { %v935_v15 = vadd.f32 %v934_v21, %v933_v51  ;;  %v952_v6 = vsel %vm823_vm4, %v907_v41, 0.0  ;;  %vm1231_vm9 = vcmask 257024   ;;  %vm1295_vm10 = vsmask.f32 4352 }
  0xd9   : > { %v848_v33 = vadd.f32 %v847_v46, %v846_v11  ;;  %v940_v11 = vsel %vm823_vm4, %v901_v39, 0.0  ;;  %v942_v46 = vsel %vm823_vm4, %v902_v23, 0.0  ;;  %v960_v39 = vsel %vm823_vm4, %v911_v0, 0.0 }
  0xda   : > { %v962_v23 = vsel %vm823_vm4, %v912_v45, 0.0  ;;  %v937_v24 = vadd.f32 %v936_v42, %v935_v15  ;;  %v964_v25 = vsel %vm823_vm4, %v913_v40, 0.0  ;;  %vm3571_vm11 = vcmask 523264  }
  0xdb   : > { %v850_v35 = vadd.f32 %v12054_v47, %v848_v33  ;;  %v954_v47 = vsel %vm823_vm4, %v908_v9, 0.0  ;;  %vm3604_vm12 = vcmask 785408  }
  0xdc   : > { %v939_v32 = vadd.f32 %v938_v37, %v937_v24 }
  0xdd   : > { %v852_v34 = vadd.f32 %v12067_v52, %v850_v35  ;;  %v966_v35 = vsel %vm823_vm4, %v914_v20, 0.0 }
  0xde   : > { %v941_v9 = vadd.f32 %v940_v11, %v939_v32 }
  0xdf   : > { %v854_v22 = vadd.f32 %v12071_v53, %v852_v34 }
  0xe0   : > { %v943_v38 = vadd.f32 %v942_v46, %v941_v9  ;;  %v12237_v46 = vld [vmem:[%s11530_s29 + $0xf0] sm:$0xff]  ;;  %v922_v9 = vmul.f32 %v12124_v5, %v12124_v5 }
  0xe1   : > { %v856_v52 = vadd.f32 %v12075_v54, %v854_v22  ;;  %v920_v22 = vmul.f32 %v12106_v63, %v12106_v63 }
  0xe2   : > { %v945_v33 = vadd.f32 %v944_v44, %v943_v38 }
  0xe3   : > { %v858_v41 = vadd.f32 %v12085_v57, %v856_v52  ;;  %v921_v52 = vmul.f32 %v12121_v4, %v12121_v4 }
  0xe4   : > { %v947_v53 = vadd.f32 %v946_v27, %v945_v33  ;;  %v923_v33 = vmul.f32 %v12237_v46, %v12237_v46 }
  0xe5   : > { %v860_v28 = vadd.f32 %v12089_v58, %v858_v41 }
  0xe6   : > { %v949_v40 = vadd.f32 %v948_v17, %v947_v53 }
  0xe7   : > { %v862_v0 = vadd.f32 %v12093_v59, %v860_v28  ;;  %v978_v28 = vsel %vm823_vm4, %v920_v22, 0.0 }
  0xe8   : > { %v951_v54 = vadd.f32 %v950_v49, %v949_v40  ;;  %v982_v40 = vsel %vm823_vm4, %v922_v9, 0.0  ;;  %v15893_v9 = vmov 0.0  }
  0xe9   : > { %v864_v45 = vadd.f32 %v12097_v60, %v862_v0 }
  0xea   : > { %v953_v57 = vadd.f32 %v952_v6, %v951_v54  ;;  %v12249_v6 = vld [vmem:[%s11530_s29 + $0xf8] sm:$0xff] }
  0xeb   : > { %v866_v42 = vadd.f32 %v12110_v1, %v864_v45  ;;  %v980_v45 = vsel %vm823_vm4, %v921_v52, 0.0 }
  0xec   : > { %v955_v58 = vadd.f32 %v954_v47, %v953_v57 }
  0xed   : > { %v868_v20 = vadd.f32 %v12114_v2, %v866_v42  ;;  %v915_v2 = vmul.f32 %v12063_v50, %v12063_v50  ;;  %v924_v42 = vmul.f32 %v12249_v6, %v12249_v6 }
  0xee   : > { %v957_v59 = vadd.f32 %v956_v31, %v955_v58 }
  0xef   : > { %v870_v37 = vadd.f32 %v12118_v3, %v868_v20  ;;  %v968_v17 = vsel %vm823_vm4, %v915_v2, 0.0 }
  0xf0   : > { %v959_v60 = vadd.f32 %v958_v36, %v957_v59  ;;  %v919_v36 = vmul.f32 %v12103_v62, %v12103_v62 }
  0xf1   : > { %v872_v21 = vadd.f32 %v12128_v7, %v870_v37  ;;  %v916_v7 = vmul.f32 %v12078_v55, %v12078_v55  ;;  %v984_v37 = vsel %vm823_vm4, %v923_v33, 0.0 }
  0xf2   : > { %v961_v11 = vadd.f32 %v960_v39, %v959_v60  ;;  %v976_v32 = vsel %vm823_vm4, %v919_v36, 0.0 }
  0xf3   : > { %v874_v51 = vadd.f32 %v12132_v8, %v872_v21  ;;  %v970_v15 = vsel %vm823_vm4, %v916_v7, 0.0  ;;  %v986_v21 = vsel %vm823_vm4, %v924_v42, 0.0 }
  0xf4   : > { %v963_v3 = vadd.f32 %v962_v23, %v961_v11 }
  0xf5   : > { %v876_v44 = vadd.f32 %v12136_v13, %v874_v51  ;;  %v883_v13 = vsel %vm823_vm4, %v12237_v46, 0.0 }
  0xf6   : > { %v965_v27 = vadd.f32 %v964_v25, %v963_v3 }
  0xf7   : > { %v878_v1 = vadd.f32 %v12140_v14, %v876_v44  ;;  %v917_v14 = vmul.f32 %v12081_v56, %v12081_v56 }
  0xf8   : > { %v967_v34 = vadd.f32 %v966_v35, %v965_v27 }
  0xf9   : > { %v880_v49 = vadd.f32 %v12144_v18, %v878_v1  ;;  %v918_v18 = vmul.f32 %v12100_v61, %v12100_v61  ;;  %v972_v39 = vsel %vm823_vm4, %v917_v14, 0.0  ;;  %v1665_v14 = vld [vmem:[#allocation2 + $0x8] sm:$0x1f] }
  0xfa   : > { %v969_v31 = vadd.f32 %v968_v17, %v967_v34 }
  0xfb   : > { %v882_v8 = vadd.f32 %v12148_v19, %v880_v49  ;;  %v885_v19 = vsel %vm823_vm4, %v12249_v6, 0.0  ;;  %v974_v24 = vsel %vm823_vm4, %v918_v18, 0.0  ;;  %v1691_v18 = vshrl.u32 %v1665_v14, 16 }
  0xfc   : > { %v971_v23 = vadd.f32 %v970_v15, %v969_v31  ;;  %v1694_v15 = vshll.u32 %v1665_v14, 16  ;;  %v15898_v14 = vld [vmem:[#allocation20_spill] sm:$0xff] }
  0xfd   : > { %v884_v47 = vadd.f32 %v883_v13, %v882_v8  ;;  %v1568_v13 = vld [vmem:[#allocation2] sm:$0xf0] }
  0xfe   : > { %v973_v35 = vadd.f32 %v972_v39, %v971_v23  ;;  %v1683_v17 = vshrl.u32 %v1568_v13, 16  ;;  %v1686_v34 = vshll.u32 %v1568_v13, 16  ;;  %v1617_v31 = vrot.slane %v1568_v13, 4 }
  0xff   : > { %v886_v25 = vadd.f32 %v885_v19, %v884_v47  ;;  %v1264_v47 = vld [vmem:[#allocation2 + $0x8] sm:$0xf]  ;;  %v1693_v39 = vrot.slane %v1691_v18, 4  ;;  %v1696_v23 = vrot.slane %v1694_v15, 5  ;;  %v15901_v18 = vld [vmem:[#allocation23_spill] sm:$0xff] }
 0x100   : > { %v975_v41 = vadd.f32 %v974_v24, %v973_v35  ;;  %v1685_v19 = vrot.slane %v1683_v17, 4  ;;  %v1688_v36 = vrot.slane %v1686_v34, 5  ;;  %v1618_v22 = vrot.slane %v1264_v47, 4  ;;  %v10894_v24 = vld [vmem:[%s15798_s5 + $0x80] sm:$0xff]   ;;  %v15899_v17 = vld [vmem:[#allocation21_spill] sm:$0xff]  ;;  %v15900_v34 = vld [vmem:[#allocation22_spill] sm:$0xff] }
 0x101   : > { %v887_v38 = vrot.slane %v886_v25, 4  ;;  %v1697_v35 = vor.u32 %v1696_v23, %v1693_v39  ;;  %10624 = vmatprep.subr.bf16.mxu0 %v10894_v24 }
 0x102   : > { %v977_v0 = vadd.f32 %v976_v32, %v975_v41  ;;  %v1619_v52 = vsel %vm1616_vm6, %v1617_v31, %v1618_v22  ;;  %v10895_v41 = vld [vmem:[%s15798_s5 + $0x88] sm:$0xff]  }
 0x103   : > { %v888_v20 = vadd.f32 %v887_v38, %v886_v25  ;;  %v1689_v25 = vor.u32 %v1688_v36, %v1685_v19  ;;  %3331 = vrot.lane.b32.xlu0 %v1619_v52, %s11309_s16 }
 0x104   : > { %v979_v53 = vadd.f32 %v978_v28, %v977_v0 }
 0x105   : > { %v889_v58 = vrot.slane %v888_v20, 2  ;;  %v1698_v32 = vsel %vm1681_vm7, %v1689_v25, %v1697_v35 }
 0x106   : > { %v981_v54 = vadd.f32 %v980_v45, %v979_v53  ;;  %3363 = vrot.lane.b32.xlu1 %v1698_v32, %s15853_s9 }
 0x107   : > { %v890_v44 = vadd.f32 %v889_v58, %v888_v20  ;;  %v1090_v20 = vlaneseq }
 0x108   : > { %v983_v57 = vadd.f32 %v982_v40, %v981_v54 }
 0x109   : > { %v891_v11 = vrot.slane %v890_v44, 1  ;;  %v12286_v54 = vshrl.u32 %v1090_v20, 7 }
 0x10a   : > { %v985_v51 = vadd.f32 %v984_v37, %v983_v57  ;;  %v9952_v37 = vld [vmem:[%s15895_s2] ss:$0 sm:$0xff] }
 0x10b   : > { %v892_v3 = vadd.f32 %v891_v11, %v890_v44  ;;  %15894 = vst [vmem:[#allocation34_spill] sm:$0xff] %v12286_v54  ;;  %v15839_v57 = vsub.s32 1, %v12286_v54  ;;  %v818_v44 = vld [vmem:[%s15896_s3] sm:$0x1]  ;;  %s16037_s3 = smov 64  }
 0x10c   : > { %v987_v59 = vadd.f32 %v986_v21, %v985_v51 }
 0x10e   : > { %v988_v60 = vrot.slane %v987_v59, 4 }
 0x110   : > { %v989_v1 = vadd.f32 %v988_v60, %v987_v59 }
 0x112   : > { %v990_v2 = vrot.slane %v989_v1, 2 }
 0x114   : > { %v991_v49 = vadd.f32 %v990_v2, %v989_v1  ;;  %v12300_v1 = vsub.s32 0, %v12286_v54 }
 0x116   : > { %v992_v7 = vrot.slane %v991_v49, 1  ;;  %15897 = vst [vmem:[#allocation35_spill] sm:$0xff] %v12300_v1 }
 0x118   : > { %v993_v8 = vadd.f32 %v992_v7, %v991_v49 }
 0x11a   : > { %v995_v27 = vsel %vm994_vm5, %v892_v3, %v993_v8 }
 0x11b   : > { %10622 = vmatmul.mubr.msk.f32.vlgmr.msra.gmra.mrb[0].mxu0 %vm823_vm4, %v995_v27 }
 0x11c   : > { %10625 = vmatpush3.bf16.msra.mxu0 %v10894_v24 }
 0x11d   : > { %10626 = vmatprep.subr.bf16.mxu0 %v10895_v41 }
 0x120   : > { %10627 = vmatpush3.bf16.msra.mxu0 %v10895_v41 }
 0x121   : > { %10660 = vmatprep.subr.bf16.mxu0 %v15893_v9 }
 0x1ee   : > { %v1065_v28 = vpop.f32.mrb[0].mxu0 }
 0x1ef   : > { %v1069_v38 = vmul.f32 0.00390625, %v1065_v28  ;;  %v10623_v0 = vpop.f32.mrb[1].mxu0 }
 0x1f1   : > { %v1070_v33 = vmul.f32 %v1069_v38, %v1069_v38 }
 0x1f3   : > { %v1072_v45 = vrot.slane %v1070_v33, 7 }
 0x1f5   : > { %v1074_v53 = vsub.f32 %v1069_v38, %v1072_v45 }
 0x1f7   : > { %v1075_v42 = vmax.f32 %v1074_v53, 0.0 }
 0x1f9   : > { %v1076_v40 = vadd.f32 1e-05, %v1075_v42 }
 0x1fb   : > { %10954 = vrsqrt.f32 %v1076_v40 }
 0x205   : > { %v10955_v21 = vpop.eup %10954 }
 0x206   : > { %v1084_v58 = vmul.f32 %v10955_v21, %v9952_v37 }
 0x208   : > { %v1086_v51 = vrot.slane %v1084_v58, 1  ;;  %v12294_v59 = vrot.slane %v1084_v58, %v15839_v57  ;;  %v15902_v58 = vld [vmem:[#allocation24_spill] sm:$0xff] }
 0x20a   : > { %v1088_v60 = vmul.f32 %v1086_v51, %v1069_v38  ;;  %v1116_v11 = vmul.f32 %v12294_v59, %v12063_v50  ;;  %v1117_v2 = vmul.f32 %v12294_v59, %v12078_v55  ;;  %v1118_v49 = vmul.f32 %v12294_v59, %v12081_v56 }
 0x20b   : > { %v1119_v7 = vmul.f32 %v12294_v59, %v12100_v61  ;;  %v1120_v8 = vmul.f32 %v12294_v59, %v12103_v62  ;;  %v1121_v27 = vmul.f32 %v12294_v59, %v12106_v63  ;;  %v1122_v13 = vmul.f32 %v12294_v59, %v12121_v4 }
 0x20c   : > { %v1089_v3 = vsub.f32 %v818_v44, %v1088_v60  ;;  %v1123_v50 = vmul.f32 %v12294_v59, %v12124_v5  ;;  %v1124_v55 = vmul.f32 %v12294_v59, %v12237_v46  ;;  %v1125_v56 = vmul.f32 %v12294_v59, %v12249_v6 }
 0x20d   : > { %v1096_v62 = vmul.f32 %v12294_v59, %v11972_v12  ;;  %v1097_v63 = vmul.f32 %v12294_v59, %v11979_v16  ;;  %v1094_v4 = vmul.f32 %v12294_v59, %v11966_v10  ;;  %v1095_v5 = vmul.f32 %v12294_v59, %v15898_v14 }
 0x20e   : > { %v12323_v61 = vrot.slane %v1089_v3, %v12300_v1  ;;  %v1098_v46 = vmul.f32 %v12294_v59, %v15899_v17  ;;  %v1099_v6 = vmul.f32 %v12294_v59, %v15900_v34  ;;  %v1100_v15 = vmul.f32 %v12294_v59, %v15901_v18 }
 0x20f   : > { %v1101_v51 = vmul.f32 %v12294_v59, %v15902_v58  ;;  %v1106_v34 = vmul.f32 %v12294_v59, %v12013_v30  ;;  %v15908_v30 = vld [vmem:[#allocation33_spill] sm:$0xff] }
 0x210   : > { %v1154_v12 = vadd.f32 %v12323_v61, %v1116_v11  ;;  %v1155_v47 = vadd.f32 %v12323_v61, %v1117_v2  ;;  %v1156_v16 = vadd.f32 %v12323_v61, %v1118_v49  ;;  %v1157_v10 = vadd.f32 %v12323_v61, %v1119_v7  ;;  %v15903_v2 = vld [vmem:[#allocation25_spill] sm:$0xff] }
 0x211   : > { %v1158_v31 = vadd.f32 %v12323_v61, %v1120_v8  ;;  %v1159_v19 = vadd.f32 %v12323_v61, %v1121_v27  ;;  %v1160_v36 = vadd.f32 %v12323_v61, %v1122_v13  ;;  %v1161_v39 = vadd.f32 %v12323_v61, %v1123_v50  ;;  %v15904_v8 = vld [vmem:[#allocation26_spill] sm:$0xff] }
 0x212   : > { %v1162_v23 = vadd.f32 %v12323_v61, %v1124_v55  ;;  %v1163_v22 = vadd.f32 %v12323_v61, %v1125_v56  ;;  %v1175_v24 = vpack.c.bf16 %v1155_v47, %v1154_v12  ;;  %v1176_v25 = vpack.c.bf16 %v1157_v10, %v1156_v16  ;;  %v15906_v12 = vld [vmem:[#allocation27_spill] sm:$0xff]  ;;  %v15907_v16 = vld [vmem:[#allocation28_spill] sm:$0xff] }
 0x213   : > { %v1177_v35 = vpack.c.bf16 %v1159_v19, %v1158_v31  ;;  %v1178_v52 = vpack.c.bf16 %v1161_v39, %v1160_v36  ;;  %v1134_v32 = vadd.f32 %v12323_v61, %v1096_v62  ;;  %v1135_v41 = vadd.f32 %v12323_v61, %v1097_v63 }
 0x214   : > { %v1179_v28 = vpack.c.bf16 %v1163_v22, %v1162_v23  ;;  %v1207_v38 = vrot.slane %v1175_v24, 4  ;;  %v1208_v0 = vrot.slane %v1176_v25, 4  ;;  %v1132_v33 = vadd.f32 %v12323_v61, %v1094_v4 }
 0x215   : > { %v1209_v45 = vrot.slane %v1177_v35, 4  ;;  %v1210_v53 = vrot.slane %v1178_v52, 4  ;;  %v1165_v42 = vpack.c.bf16 %v1135_v41, %v1134_v32  ;;  %v1133_v40 = vadd.f32 %v12323_v61, %v1095_v5  ;;  %v15910_v52 = vld [vmem:[#allocation30_spill] sm:$0xff] }
 0x216   : > { %v1211_v20 = vrot.slane %v1179_v28, 4  ;;  %1253 = vst.msk [vmem:[#allocation2 + $0xc0] sm:$0xf0] %vm1229_vm8, %v1207_v38  ;;  %1255 = vst.msk [vmem:[#allocation2 + $0xd0] sm:$0xf0] %vm1229_vm8, %v1208_v0  ;;  %v1136_v37 = vadd.f32 %v12323_v61, %v1098_v46  ;;  %v1137_v21 = vadd.f32 %v12323_v61, %v1099_v6  ;;  %v1138_v11 = vadd.f32 %v12323_v61, %v1100_v15  ;;  %v15905_v6 = vld [vmem:[#allocation32_spill] sm:$0xff] }
 0x217   : > { %1254 = vst.msk [vmem:[#allocation2 + $0xc8] sm:$0xf] %vm1231_vm9, %v1207_v38  ;;  %1256 = vst.msk [vmem:[#allocation2 + $0xd8] sm:$0xf] %vm1231_vm9, %v1208_v0  ;;  %v1197_v44 = vrot.slane %v1165_v42, 4  ;;  %v1164_v60 = vpack.c.bf16 %v1133_v40, %v1132_v33  ;;  %v1102_v49 = vmul.f32 %v12294_v59, %v15903_v2  ;;  %v1139_v7 = vadd.f32 %v12323_v61, %v1101_v51 }
 0x218   : > { %1257 = vst.msk [vmem:[#allocation2 + $0xe0] sm:$0xf0] %vm1229_vm8, %v1209_v45  ;;  %1259 = vst.msk [vmem:[#allocation2 + $0xf0] sm:$0xf0] %vm1229_vm8, %v1210_v53  ;;  %v1166_v3 = vpack.c.bf16 %v1137_v21, %v1136_v37  ;;  %v1103_v27 = vmul.f32 %v12294_v59, %v15904_v8  ;;  %v1104_v13 = vmul.f32 %v12294_v59, %v12005_v26 }
 0x219   : > { %1258 = vst.msk [vmem:[#allocation2 + $0xe8] sm:$0xf] %vm1231_vm9, %v1209_v45  ;;  %1260 = vst.msk [vmem:[#allocation2 + $0xf8] sm:$0xf] %vm1231_vm9, %v1210_v53  ;;  %v1196_v50 = vrot.slane %v1164_v60, 4  ;;  %v1140_v55 = vadd.f32 %v12323_v61, %v1102_v49  ;;  %v1105_v56 = vmul.f32 %v12294_v59, %v12010_v29  ;;  %v1167_v63 = vpack.c.bf16 %v1139_v7, %v1138_v11 }
 0x21a   : > { %1261 = vst.msk [vmem:[#allocation2 + $0x100] sm:$0xf0] %vm1229_vm8, %v1211_v20  ;;  %1233 = vst.msk [vmem:[#allocation2 + $0x20] sm:$0xf0] %vm1229_vm8, %v1197_v44  ;;  %v1198_v62 = vrot.slane %v1166_v3, 4  ;;  %v1141_v4 = vadd.f32 %v12323_v61, %v1103_v27  ;;  %v1142_v14 = vadd.f32 %v12323_v61, %v1104_v13  ;;  %v1112_v29 = vmul.f32 %v12294_v59, %v12043_v43 }
 0x21b   : > { %1262 = vst.msk [vmem:[#allocation2 + $0x108] sm:$0xf] %vm1231_vm9, %v1211_v20  ;;  %1234 = vst.msk [vmem:[#allocation2 + $0x28] sm:$0xf] %vm1231_vm9, %v1197_v44  ;;  %v1143_v26 = vadd.f32 %v12323_v61, %v1105_v56  ;;  %v1199_v5 = vrot.slane %v1167_v63, 4  ;;  %v12393_v18 = vmul.f32 %v12294_v59, %v15905_v6  ;;  %v1107_v47 = vmul.f32 %v12294_v59, %v15906_v12  ;;  %v15911_v20 = vld [vmem:[#allocation31_spill] sm:$0xff] }
 0x21c   : > { %1230 = vst.msk [vmem:[#allocation2 + $0x10] sm:$0xf0] %vm1229_vm8, %v1196_v50  ;;  %1235 = vst.msk [vmem:[#allocation2 + $0x30] sm:$0xf0] %vm1229_vm8, %v1198_v62  ;;  %v1168_v17 = vpack.c.bf16 %v1141_v4, %v1140_v55  ;;  %v1108_v10 = vmul.f32 %v12294_v59, %v15907_v16  ;;  %v12403_v43 = vmul.f32 %v12294_v59, %v12057_v48  ;;  %v15909_v48 = vld [vmem:[#allocation29_spill] sm:$0xff] }
 0x21d   : > { %1232 = vst.msk [vmem:[#allocation2 + $0x18] sm:$0xf] %vm1231_vm9, %v1196_v50  ;;  %1236 = vst.msk [vmem:[#allocation2 + $0x38] sm:$0xf] %vm1231_vm9, %v1198_v62  ;;  %v1169_v46 = vpack.c.bf16 %v1143_v26, %v1142_v14  ;;  %v12407_v31 = vmul.f32 %v12294_v59, %v15908_v30  ;;  %v12410_v36 = vadd.f32 %v12323_v61, %v1106_v34 }
 0x21e   : > { %1237 = vst.msk [vmem:[#allocation2 + $0x40] sm:$0xf0] %vm1229_vm8, %v1199_v5  ;;  %v1200_v15 = vrot.slane %v1168_v17, 4  ;;  %v12417_v24 = vadd.f32 %v12323_v61, %v1107_v47  ;;  %v1109_v25 = vmul.f32 %v12294_v59, %v15909_v48  ;;  %v12422_v35 = vadd.f32 %v12323_v61, %v1108_v10  ;;  %v1677_v1 = vld [vmem:[#allocation2 + $0xc8] sm:$0x1f] }
 0x21f   : > { %1238 = vst.msk [vmem:[#allocation2 + $0x48] sm:$0xf] %vm1231_vm9, %v1199_v5  ;;  %v1201_v19 = vrot.slane %v1169_v46, 4  ;;  %v1110_v32 = vmul.f32 %v12294_v59, %v15910_v52  ;;  %v1111_v37 = vmul.f32 %v12294_v59, %v15911_v20  ;;  %v12444_v11 = vadd.f32 %v12323_v61, %v1112_v29  ;;  %v2667_v54 = vld [vmem:[#allocation2 + $0xe0] sm:$0xf8] }
 0x220   : > { %1239 = vst.msk [vmem:[#allocation2 + $0x50] sm:$0xf0] %vm1229_vm8, %v1200_v15  ;;  %v12432_v40 = vadd.f32 %v12323_v61, %v1109_v25  ;;  %v1170_v26 = vpack.c.bf16 %v12417_v24, %v12410_v36 }
 0x221   : > { %v2947_v23 = vld [vmem:[#allocation2 + $0x20] sm:$0xf0]  ;;  %1240 = vst.msk [vmem:[#allocation2 + $0x58] sm:$0xf] %vm1231_vm9, %v1200_v15  ;;  %1242 = vst.msk [vmem:[#allocation2 + $0x68] sm:$0xf] %vm1231_vm9, %v1201_v19  ;;  %v12441_v60 = vadd.f32 %v12323_v61, %v1110_v32  ;;  %v12456_v34 = vadd.f32 %v12323_v61, %v1111_v37 }
 0x222   : > { %v12412_v39 = vld [vmem:[#allocation2 + $0x28] sm:$0xf]  ;;  %v2995_v41 = vrot.slane %v2947_v23, 4  ;;  %v3060_v38 = vshrl.u32 %v2947_v23, 16  ;;  %v3063_v0 = vshll.u32 %v2947_v23, 16 }
 0x223   : > { %v3043_v22 = vld [vmem:[#allocation2 + $0x28] sm:$0x1f]  ;;  %v2996_v28 = vrot.slane %v12412_v39, 4  ;;  %1241 = vst.msk [vmem:[#allocation2 + $0x60] sm:$0xf0] %vm1229_vm8, %v1201_v19 }
 0x224   : > { %v1266_v33 = vld [vmem:[#allocation2 + $0x18] sm:$0xf]  ;;  %v12429_v45 = vld [vmem:[#allocation2 + $0x10] sm:$0xf0]  ;;  %v3068_v53 = vshrl.u32 %v3043_v22, 16  ;;  %v3071_v42 = vshll.u32 %v3043_v22, 16 }
 0x225   : > { %v2997_v21 = vsel %vm1616_vm6, %v2995_v41, %v2996_v28  ;;  %v1620_v58 = vrot.slane %v12429_v45, 4  ;;  %v12438_v51 = vld [vmem:[#allocation2 + $0x38] sm:$0xf]  ;;  %v1268_v44 = vld [vmem:[#allocation2 + $0x28] sm:$0xf]  ;;  %v1621_v2 = vrot.slane %v1266_v33, 4 }
 0x226   : > { %3491 = vrot.lane.b32.xlu0 %v2997_v21, %s11311_s30  ;;  %v3062_v49 = vrot.slane %v3060_v38, 4  ;;  %v3065_v3 = vrot.slane %v3063_v0, 5  ;;  %v3070_v59 = vrot.slane %v3068_v53, 4  ;;  %v2948_v7 = vld [vmem:[#allocation2 + $0x30] sm:$0xf0]  ;;  %v3073_v8 = vrot.slane %v3071_v42, 5 }
 0x227   : > { %v2998_v27 = vrot.slane %v2948_v7, 4  ;;  %v2999_v13 = vrot.slane %v12438_v51, 4  ;;  %v3077_v50 = vshrl.u32 %v2948_v7, 16  ;;  %v12448_v55 = vld [vmem:[#allocation2 + $0x20] sm:$0xf0]  ;;  %v1622_v56 = vsel %vm1616_vm6, %v1620_v58, %v1621_v2 }
 0x228   : > { %v3066_v62 = vor.u32 %v3065_v3, %v3062_v49  ;;  %v3080_v63 = vshll.u32 %v2948_v7, 16  ;;  %v3044_v4 = vld [vmem:[#allocation2 + $0x38] sm:$0x1f]  ;;  %v2949_v14 = vld [vmem:[#allocation2 + $0x40] sm:$0xf0]  ;;  %3333 = vrot.lane.b32.xlu1 %v1622_v56, %s11309_s16  ;;  %v3074_v5 = vor.u32 %v3073_v8, %v3070_v59  ;;  %v1623_v15 = vrot.slane %v12448_v55, 4 }
 0x229   : > { %v3000_v17 = vsel %vm1616_vm6, %v2998_v27, %v2999_v13  ;;  %v3079_v29 = vrot.slane %v3077_v50, 4  ;;  %v3045_v46 = vld [vmem:[#allocation2 + $0x48] sm:$0x1f]  ;;  %v1624_v12 = vrot.slane %v1268_v44, 4  ;;  %v3085_v47 = vshrl.u32 %v3044_v4, 16 }
 0x22a   : > { %v3082_v6 = vrot.slane %v3080_v63, 5  ;;  %3493 = vrot.lane.b32.xlu0 %v3000_v17, %s11311_s30  ;;  %v3075_v16 = vsel %vm1681_vm7, %v3066_v62, %v3074_v5  ;;  %v3088_v10 = vshll.u32 %v3044_v4, 16  ;;  %v3094_v30 = vshrl.u32 %v2949_v14, 16  ;;  %v12461_v23 = vld [vmem:[#allocation2 + $0x48] sm:$0xf] }
 0x22b   : > { %v3097_v19 = vshll.u32 %v2949_v14, 16  ;;  %10628 = vmatprep.mubr.msk.bf16.mxu0 %vm823_vm4, %v3075_v16  ;;  %v1625_v22 = vsel %vm1616_vm6, %v1623_v15, %v1624_v12  ;;  %v3087_v25 = vrot.slane %v3085_v47, 4  ;;  %v3102_v52 = vshrl.u32 %v3045_v46, 16  ;;  %v1270_v32 = vld [vmem:[#allocation2 + $0x38] sm:$0xf] }
 0x22c   : > { %v3083_v48 = vor.u32 %v3082_v6, %v3079_v29  ;;  %v1571_v41 = vld [vmem:[#allocation2 + $0x30] sm:$0xf0]  ;;  %3335 = vrot.lane.b32.xlu1 %v1625_v22, %s11309_s16  ;;  %v3090_v28 = vrot.slane %v3088_v10, 5  ;;  %v3096_v38 = vrot.slane %v3094_v30, 4  ;;  %v3105_v33 = vshll.u32 %v3045_v46, 16 }
 0x22d   : > { %v3099_v0 = vrot.slane %v3097_v19, 5  ;;  %v2950_v53 = vld [vmem:[#allocation2 + $0x50] sm:$0xf0]  ;;  %v3104_v42 = vrot.slane %v3102_v52, 4  ;;  %v3001_v20 = vrot.slane %v2949_v14, 4  ;;  %v3002_v37 = vrot.slane %v12461_v23, 4 }
 0x22e   : > { %v12467_v21 = vld [vmem:[#allocation2 + $0x58] sm:$0xf]  ;;  %v12471_v58 = vadd.f32 %v12323_v61, %v12393_v18  ;;  %v3091_v44 = vor.u32 %v3090_v28, %v3087_v25  ;;  %v3107_v49 = vrot.slane %v3105_v33, 5  ;;  %v1272_v3 = vld [vmem:[#allocation2 + $0x48] sm:$0xf]  ;;  %v1171_v7 = vpack.c.bf16 %v12432_v40, %v12422_v35 }
 0x22f   : > { %v3100_v2 = vor.u32 %v3099_v0, %v3096_v38  ;;  %v1572_v59 = vld [vmem:[#allocation2 + $0x40] sm:$0xf0]  ;;  %v3003_v8 = vsel %vm1616_vm6, %v3001_v20, %v3002_v37  ;;  %v1626_v27 = vrot.slane %v1571_v41, 4  ;;  %v1627_v13 = vrot.slane %v1270_v32, 4  ;;  %v3046_v63 = vld [vmem:[#allocation2 + $0x58] sm:$0x1f] }
 0x230   : > { %v3004_v50 = vrot.slane %v2950_v53, 4  ;;  %v3092_v56 = vsel %vm1681_vm7, %v3083_v48, %v3091_v44  ;;  %v3108_v62 = vor.u32 %v3107_v49, %v3104_v42  ;;  %3495 = vrot.lane.b32.xlu0 %v3003_v8, %s11311_s30  ;;  %v3005_v18 = vrot.slane %v12467_v21, 4  ;;  %v2951_v4 = vld [vmem:[#allocation2 + $0x60] sm:$0xf0]  ;;  %v3047_v46 = vld [vmem:[#allocation2 + $0x68] sm:$0x1f] }
 0x231   : > { %v12481_v14 = vadd.f32 %v12323_v61, %v12403_v43  ;;  %10629 = vmatmul.mubr.msk.bf16.vlgmr.msra.gmra.mrb[4].mxu0 %vm823_vm4, %v3092_v56  ;;  %v1628_v5 = vsel %vm1616_vm6, %v1626_v27, %v1627_v13  ;;  %v1629_v17 = vrot.slane %v1572_v59, 4  ;;  %v1630_v29 = vrot.slane %v1272_v3, 4  ;;  %v2652_v22 = vld [vmem:[#allocation2 + $0x68] sm:$0xf]  ;;  %v1274_v52 = vld [vmem:[#allocation2 + $0x58] sm:$0xf] }
 0x232   : > { %v12487_v6 = vadd.f32 %v12323_v61, %v12407_v31  ;;  %v3109_v15 = vsel %vm1681_vm7, %v3100_v2, %v3108_v62  ;;  %3337 = vrot.lane.b32.xlu1 %v1628_v5, %s11309_s16  ;;  %v3006_v12 = vsel %vm1616_vm6, %v3004_v50, %v3005_v18  ;;  %v3111_v47 = vshrl.u32 %v2950_v53, 16  ;;  %v1573_v0 = vld [vmem:[#allocation2 + $0x50] sm:$0xf0]  ;;  %v1574_v49 = vld [vmem:[#allocation2 + $0x60] sm:$0xf0] }
 0x233   : > { %v3114_v43 = vshll.u32 %v2950_v53, 16  ;;  %10632 = vmatprep.mubr.msk.bf16.mxu0 %vm823_vm4, %v3109_v15  ;;  %v1631_v16 = vsel %vm1616_vm6, %v1629_v17, %v1630_v29  ;;  %v3119_v10 = vshrl.u32 %v3046_v63, 16  ;;  %v3122_v30 = vshll.u32 %v3046_v63, 16  ;;  %v1276_v13 = vld [vmem:[#allocation2 + $0x68] sm:$0xf] }
 0x234   : > { %v3128_v19 = vshrl.u32 %v2951_v4, 16  ;;  %3497 = vrot.lane.b32.xlu0 %v3006_v12, %s11311_s30  ;;  %v3113_v61 = vrot.slane %v3111_v47, 4  ;;  %v3131_v48 = vshll.u32 %v2951_v4, 16  ;;  %v3136_v25 = vshrl.u32 %v3047_v46, 16  ;;  %v3053_v17 = vld [vmem:[#allocation2 + $0xc8] sm:$0x1f] }
 0x235   : > { %v3116_v31 = vrot.slane %v3114_v43, 5  ;;  %v3121_v32 = vrot.slane %v3119_v10, 4  ;;  %v3124_v41 = vrot.slane %v3122_v30, 5  ;;  %v3139_v38 = vshll.u32 %v3047_v46, 16 }
 0x236   : > { %v3130_v28 = vrot.slane %v3128_v19, 4  ;;  %3339 = vrot.lane.b32.xlu1 %v1631_v16, %s11309_s16  ;;  %v3133_v53 = vrot.slane %v3131_v48, 5  ;;  %v3138_v42 = vrot.slane %v3136_v25, 4  ;;  %v3007_v20 = vrot.slane %v2951_v4, 4  ;;  %v12508_v4 = vld [vmem:[#allocation2 + $0xc0] sm:$0xf0] }
 0x237   : > { %v3117_v33 = vor.u32 %v3116_v31, %v3113_v61  ;;  %v3125_v37 = vor.u32 %v3124_v41, %v3121_v32  ;;  %v3141_v44 = vrot.slane %v3139_v38, 5  ;;  %v3008_v2 = vrot.slane %v2652_v22, 4 }
 0x238   : > { %v1172_v3 = vpack.c.bf16 %v12456_v34, %v12441_v60  ;;  %v3134_v59 = vor.u32 %v3133_v53, %v3130_v28  ;;  %v1632_v8 = vrot.slane %v1573_v0, 4  ;;  %v1633_v27 = vrot.slane %v1274_v52, 4 }
 0x239   : > { %v1173_v50 = vpack.c.bf16 %v12471_v58, %v12444_v11  ;;  %v3126_v56 = vsel %vm1681_vm7, %v3117_v33, %v3125_v37  ;;  %v3142_v62 = vor.u32 %v3141_v44, %v3138_v42  ;;  %v3009_v18 = vsel %vm1616_vm6, %v3007_v20, %v3008_v2 }
 0x23a   : > { %v1202_v63 = vrot.slane %v1170_v26, 4  ;;  %10633 = vmatmul.mubr.msk.bf16.gmra.mrb[8].mxu0 %vm823_vm4, %v3126_v56  ;;  %3499 = vrot.lane.b32.xlu0 %v3009_v18, %s11311_s30  ;;  %v1634_v60 = vsel %vm1616_vm6, %v1632_v8, %v1633_v27  ;;  %v1635_v34 = vrot.slane %v1574_v49, 4  ;;  %v1636_v58 = vrot.slane %v1276_v13, 4  ;;  %v12542_v13 = vld [vmem:[#allocation2 + $0xd0] sm:$0xf0] }
 0x23b   : > { %v3143_v11 = vsel %vm1681_vm7, %v3134_v59, %v3142_v62  ;;  %3341 = vrot.lane.b32.xlu1 %v1634_v60, %s11309_s16  ;;  %v1203_v36 = vrot.slane %v1171_v7, 4  ;;  %v1204_v24 = vrot.slane %v1172_v3, 4  ;;  %v1205_v26 = vrot.slane %v1173_v50, 4 }
 0x23c   : > { %1243 = vst.msk [vmem:[#allocation2 + $0x70] sm:$0xf0] %vm1229_vm8, %v1202_v63  ;;  %10636 = vmatprep.mubr.msk.bf16.mxu0 %vm823_vm4, %v3143_v11  ;;  %v1174_v5 = vpack.c.bf16 %v12487_v6, %v12481_v14  ;;  %v3230_v29 = vshrl.u32 %v12508_v4, 16  ;;  %v3233_v35 = vshll.u32 %v12508_v4, 16  ;;  %v1637_v40 = vsel %vm1616_vm6, %v1635_v34, %v1636_v58  ;;  %v12529_v14 = vld [vmem:[#allocation2 + $0xc8] sm:$0xf] }
 0x23d   : > { %1244 = vst.msk [vmem:[#allocation2 + $0x78] sm:$0xf] %vm1231_vm9, %v1202_v63  ;;  %1246 = vst.msk [vmem:[#allocation2 + $0x88] sm:$0xf] %vm1231_vm9, %v1203_v36  ;;  %v3238_v46 = vshrl.u32 %v3053_v17, 16  ;;  %v3241_v6 = vshll.u32 %v3053_v17, 16 }
 0x23e   : > { %1245 = vst.msk [vmem:[#allocation2 + $0x80] sm:$0xf0] %vm1229_vm8, %v1203_v36  ;;  %1247 = vst.msk [vmem:[#allocation2 + $0x90] sm:$0xf0] %vm1229_vm8, %v1204_v24  ;;  %v1206_v7 = vrot.slane %v1174_v5, 4  ;;  %v12534_v15 = vrot.slane %v3230_v29, 4 }
 0x23f   : > { %1248 = vst.msk [vmem:[#allocation2 + $0x98] sm:$0xf] %vm1231_vm9, %v1204_v24  ;;  %1250 = vst.msk [vmem:[#allocation2 + $0xa8] sm:$0xf] %vm1231_vm9, %v1205_v26  ;;  %3343 = vrot.lane.b32.xlu1 %v1637_v40, %s11309_s16  ;;  %v12536_v12 = vrot.slane %v3233_v35, 5  ;;  %v3025_v47 = vrot.slane %v12508_v4, 4 }
 0x240   : > { %1249 = vst.msk [vmem:[#allocation2 + $0xa0] sm:$0xf0] %vm1229_vm8, %v1205_v26  ;;  %1251 = vst.msk [vmem:[#allocation2 + $0xb0] sm:$0xf0] %vm1229_vm8, %v1206_v7  ;;  %v3026_v43 = vrot.slane %v12529_v14, 4  ;;  %v12544_v58 = vrot.slane %v3238_v46, 4 }
 0x241   : > { %1252 = vst.msk [vmem:[#allocation2 + $0xb8] sm:$0xf] %vm1231_vm9, %v1206_v7  ;;  %v12546_v36 = vrot.slane %v3241_v6, 5 }
 0x243   : > { %v2952_v10 = vld [vmem:[#allocation2 + $0x70] sm:$0xf0] }
 0x244   : > { %v2654_v16 = vld [vmem:[#allocation2 + $0x78] sm:$0xf]  ;;  %v3010_v19 = vrot.slane %v2952_v10, 4  ;;  %v3145_v61 = vshrl.u32 %v2952_v10, 16  ;;  %v3148_v31 = vshll.u32 %v2952_v10, 16 }
 0x245   : > { %v3048_v30 = vld [vmem:[#allocation2 + $0x78] sm:$0x1f]  ;;  %v3011_v22 = vrot.slane %v2654_v16, 4  ;;  %v2953_v52 = vld [vmem:[#allocation2 + $0x80] sm:$0xf0] }
 0x246   : > { %v3153_v48 = vshrl.u32 %v3048_v30, 16  ;;  %v3156_v25 = vshll.u32 %v3048_v30, 16  ;;  %v3049_v32 = vld [vmem:[#allocation2 + $0x88] sm:$0x1f]  ;;  %v3147_v28 = vrot.slane %v3145_v61, 4  ;;  %v3150_v38 = vrot.slane %v3148_v31, 5 }
 0x247   : > { %v3012_v41 = vsel %vm1616_vm6, %v3010_v19, %v3011_v22  ;;  %v3162_v0 = vshrl.u32 %v2953_v52, 16  ;;  %v2656_v33 = vld [vmem:[#allocation2 + $0x88] sm:$0xf]  ;;  %v1278_v53 = vld [vmem:[#allocation2 + $0x78] sm:$0xf]  ;;  %v3165_v37 = vshll.u32 %v2953_v52, 16 }
 0x248   : > { %3501 = vrot.lane.b32.xlu0 %v3012_v41, %s11311_s30  ;;  %v3155_v42 = vrot.slane %v3153_v48, 4  ;;  %v3158_v20 = vrot.slane %v3156_v25, 5  ;;  %v3170_v44 = vshrl.u32 %v3049_v32, 16  ;;  %v1575_v2 = vld [vmem:[#allocation2 + $0x70] sm:$0xf0]  ;;  %v3151_v49 = vor.u32 %v3150_v38, %v3147_v28 }
 0x249   : > { %v3164_v3 = vrot.slane %v3162_v0, 4  ;;  %v3173_v59 = vshll.u32 %v3049_v32, 16  ;;  %v3013_v8 = vrot.slane %v2953_v52, 4  ;;  %v2658_v27 = vld [vmem:[#allocation2 + $0x98] sm:$0xf]  ;;  %v3167_v56 = vrot.slane %v3165_v37, 5 }
 0x24a   : > { %v3159_v50 = vor.u32 %v3158_v20, %v3155_v42  ;;  %v3172_v62 = vrot.slane %v3170_v44, 4  ;;  %v3014_v18 = vrot.slane %v2656_v33, 4  ;;  %v2954_v63 = vld [vmem:[#allocation2 + $0x90] sm:$0xf0]  ;;  %v1638_v34 = vrot.slane %v1575_v2, 4 }
 0x24b   : > { %v3175_v60 = vrot.slane %v3173_v59, 5  ;;  %v1280_v11 = vld [vmem:[#allocation2 + $0x88] sm:$0xf]  ;;  %v3168_v26 = vor.u32 %v3167_v56, %v3164_v3  ;;  %v1639_v17 = vrot.slane %v1278_v53, 4  ;;  %v1576_v29 = vld [vmem:[#allocation2 + $0x80] sm:$0xf0] }
 0x24c   : > { %v3160_v24 = vsel %vm1681_vm7, %v3151_v49, %v3159_v50  ;;  %v3015_v5 = vsel %vm1616_vm6, %v3013_v8, %v3014_v18  ;;  %v3016_v40 = vrot.slane %v2954_v63, 4  ;;  %v3017_v7 = vrot.slane %v2658_v27, 4  ;;  %v3050_v16 = vld [vmem:[#allocation2 + $0x98] sm:$0x1f]  ;;  %v2955_v10 = vld [vmem:[#allocation2 + $0xa0] sm:$0xf0] }
 0x24d   : > { %10637 = vmatmul.mubr.msk.bf16.gmra.mrb[12].mxu0 %vm823_vm4, %v3160_v24  ;;  %v3176_v35 = vor.u32 %v3175_v60, %v3172_v62  ;;  %3503 = vrot.lane.b32.xlu0 %v3015_v5, %s11311_s30  ;;  %v1640_v46 = vsel %vm1616_vm6, %v1638_v34, %v1639_v17  ;;  %v1641_v6 = vrot.slane %v1576_v29, 4  ;;  %v1642_v30 = vrot.slane %v1280_v11, 4  ;;  %v3051_v19 = vld [vmem:[#allocation2 + $0xa8] sm:$0x1f]  ;;  %v12557_v52 = vld [vmem:[#allocation2 + $0xd8] sm:$0xf] }
 0x24e   : > { %v3028_v22 = vrot.slane %v12542_v13, 4  ;;  %3345 = vrot.lane.b32.xlu1 %v1640_v46, %s11309_s16  ;;  %v3018_v31 = vsel %vm1616_vm6, %v3016_v40, %v3017_v7  ;;  %v3179_v48 = vshrl.u32 %v2954_v63, 16  ;;  %v3182_v25 = vshll.u32 %v2954_v63, 16  ;;  %v2660_v0 = vld [vmem:[#allocation2 + $0xa8] sm:$0xf] }
 0x24f   : > { %v3177_v61 = vsel %vm1681_vm7, %v3168_v26, %v3176_v35  ;;  %v1643_v32 = vsel %vm1616_vm6, %v1641_v6, %v1642_v30  ;;  %v3187_v41 = vshrl.u32 %v3050_v16, 16  ;;  %v3190_v28 = vshll.u32 %v3050_v16, 16  ;;  %v1282_v37 = vld [vmem:[#allocation2 + $0x98] sm:$0xf]  ;;  %v1577_v59 = vld [vmem:[#allocation2 + $0x90] sm:$0xf0] }
 0x250   : > { %10640 = vmatprep.mubr.msk.bf16.mxu0 %vm823_vm4, %v3177_v61  ;;  %v3196_v38 = vshrl.u32 %v2955_v10, 16  ;;  %v3181_v33 = vrot.slane %v3179_v48, 4  ;;  %v3184_v53 = vrot.slane %v3182_v25, 5  ;;  %v3199_v42 = vshll.u32 %v2955_v10, 16  ;;  %v2956_v62 = vld [vmem:[#allocation2 + $0xb0] sm:$0xf0] }
 0x251   : > { %3505 = vrot.lane.b32.xlu0 %v3018_v31, %s11311_s30  ;;  %v3204_v20 = vshrl.u32 %v3051_v19, 16  ;;  %v3189_v44 = vrot.slane %v3187_v41, 4  ;;  %v3192_v2 = vrot.slane %v3190_v28, 5  ;;  %v3207_v3 = vshll.u32 %v3051_v19, 16  ;;  %v2662_v34 = vld [vmem:[#allocation2 + $0xb8] sm:$0xf] }
 0x252   : > { %v3198_v49 = vrot.slane %v3196_v38, 4  ;;  %3347 = vrot.lane.b32.xlu1 %v1643_v32, %s11309_s16  ;;  %v3185_v8 = vor.u32 %v3184_v53, %v3181_v33  ;;  %v3201_v27 = vrot.slane %v3199_v42, 5  ;;  %v3019_v56 = vrot.slane %v2955_v10, 4  ;;  %v1284_v17 = vld [vmem:[#allocation2 + $0xa8] sm:$0xf] }
 0x253   : > { %v3206_v50 = vrot.slane %v3204_v20, 4  ;;  %v3193_v18 = vor.u32 %v3192_v2, %v3189_v44  ;;  %v3209_v63 = vrot.slane %v3207_v3, 5  ;;  %v3020_v60 = vrot.slane %v2660_v0, 4  ;;  %v1578_v29 = vld [vmem:[#allocation2 + $0xa0] sm:$0xf0] }
 0x254   : > { %v3029_v11 = vrot.slane %v12557_v52, 4  ;;  %v3202_v24 = vor.u32 %v3201_v27, %v3198_v49  ;;  %v1644_v26 = vrot.slane %v1577_v59, 4  ;;  %v1645_v5 = vrot.slane %v1282_v37, 4  ;;  %v3052_v46 = vld [vmem:[#allocation2 + $0xb8] sm:$0x1f] }
 0x255   : > { %v3236_v35 = vor.u32 %v12536_v12, %v12534_v15  ;;  %v3194_v40 = vsel %vm1681_vm7, %v3185_v8, %v3193_v18  ;;  %v3210_v7 = vor.u32 %v3209_v63, %v3206_v50  ;;  %v3021_v16 = vsel %vm1616_vm6, %v3019_v56, %v3020_v60  ;;  %v12568_v6 = vld [vmem:[#allocation2 + $0xc0] sm:$0xf0]  ;;  %v12580_v12 = vld [vmem:[#allocation2 + $0xc8] sm:$0xf]  ;;  %v3054_v31 = vld [vmem:[#allocation2 + $0xd8] sm:$0x1f] }
 0x256   : > { %v3022_v10 = vrot.slane %v2956_v62, 4  ;;  %10641 = vmatmul.mubr.msk.bf16.gmra.mrb[16].mxu0 %vm823_vm4, %v3194_v40  ;;  %3507 = vrot.lane.b32.xlu0 %v3021_v16, %s11311_s30  ;;  %v1646_v30 = vsel %vm1616_vm6, %v1644_v26, %v1645_v5  ;;  %v3023_v19 = vrot.slane %v2662_v34, 4  ;;  %v3244_v61 = vor.u32 %v12546_v36, %v12544_v58  ;;  %v1579_v28 = vld [vmem:[#allocation2 + $0xb0] sm:$0xf0]  ;;  %v1286_v38 = vld [vmem:[#allocation2 + $0xb8] sm:$0xf] }
 0x257   : > { %v3027_v15 = vsel %vm1616_vm6, %v3025_v47, %v3026_v43  ;;  %v3211_v48 = vsel %vm1681_vm7, %v3202_v24, %v3210_v7  ;;  %3349 = vrot.lane.b32.xlu1 %v1646_v30, %s11309_s16  ;;  %v1647_v25 = vrot.slane %v1578_v29, 4  ;;  %v1648_v32 = vrot.slane %v1284_v17, 4  ;;  %v2959_v53 = vld [vmem:[#allocation2 + $0xe0] sm:$0xf0]  ;;  %v3055_v56 = vld [vmem:[#allocation2 + $0xe8] sm:$0x1f] }
 0x258   : > { %v3213_v41 = vshrl.u32 %v2956_v62, 16  ;;  %10644 = vmatprep.mubr.msk.bf16.mxu0 %vm823_vm4, %v3211_v48  ;;  %v3216_v58 = vshll.u32 %v2956_v62, 16  ;;  %v3221_v36 = vshrl.u32 %v3052_v46, 16  ;;  %v3224_v14 = vshll.u32 %v3052_v46, 16  ;;  %v2668_v24 = vld [vmem:[#allocation2 + $0xe8] sm:$0xf] }
 0x259   : > { %v1653_v4 = vrot.slane %v12568_v6, 4  ;;  %v3024_v47 = vsel %vm1616_vm6, %v3022_v10, %v3023_v19  ;;  %v1649_v43 = vsel %vm1616_vm6, %v1647_v25, %v1648_v32  ;;  %v1654_v33 = vrot.slane %v12580_v12, 4  ;;  %v1581_v40 = vld [vmem:[#allocation2 + $0xd0] sm:$0xf0]  ;;  %v1290_v6 = vld [vmem:[#allocation2 + $0xd8] sm:$0xf] }
 0x25a   : > { %v3215_v0 = vrot.slane %v3213_v41, 4  ;;  %3509 = vrot.lane.b32.xlu0 %v3024_v47, %s11311_s30  ;;  %v3218_v42 = vrot.slane %v3216_v58, 5  ;;  %v3223_v20 = vrot.slane %v3221_v36, 4  ;;  %v3226_v37 = vrot.slane %v3224_v14, 5  ;;  %v2670_v30 = vld [vmem:[#allocation2 + $0xf8] sm:$0xf] }
 0x25b   : > { %v1650_v44 = vrot.slane %v1579_v28, 4  ;;  %3351 = vrot.lane.b32.xlu1 %v1649_v43, %s11309_s16  ;;  %v1651_v2 = vrot.slane %v1286_v38, 4  ;;  %v3247_v49 = vshrl.u32 %v12542_v13, 16  ;;  %v3250_v3 = vshll.u32 %v12542_v13, 16  ;;  %v2960_v48 = vld [vmem:[#allocation2 + $0xf0] sm:$0xf0] }
 0x25c   : > { %v3255_v59 = vshrl.u32 %v3054_v31, 16  ;;  %v3219_v8 = vor.u32 %v3218_v42, %v3215_v0  ;;  %v3227_v27 = vor.u32 %v3226_v37, %v3223_v20  ;;  %v3258_v50 = vshll.u32 %v3054_v31, 16  ;;  %v1582_v41 = vld [vmem:[#allocation2 + $0xe0] sm:$0xf0]  ;;  %v1292_v14 = vld [vmem:[#allocation2 + $0xe8] sm:$0xf] }
 0x25d   : > { %v3264_v62 = vshrl.u32 %v2959_v53, 16  ;;  %v1652_v18 = vsel %vm1616_vm6, %v1650_v44, %v1651_v2  ;;  %v3249_v63 = vrot.slane %v3247_v49, 4  ;;  %v3252_v60 = vrot.slane %v3250_v3, 5  ;;  %v3056_v43 = vld [vmem:[#allocation2 + $0xf8] sm:$0x1f] }
 0x25e   : > { %v3257_v34 = vrot.slane %v3255_v59, 4  ;;  %v3228_v26 = vsel %vm1681_vm7, %v3219_v8, %v3227_v27  ;;  %3511 = vrot.lane.b32.xlu0 %v3027_v15, %s11311_s30  ;;  %v3260_v5 = vrot.slane %v3258_v50, 5  ;;  %v3267_v29 = vshll.u32 %v2959_v53, 16  ;;  %v2961_v13 = vld [vmem:[#allocation2 + $0x100] sm:$0xf0] }
 0x25f   : > { %v3266_v17 = vrot.slane %v3264_v62, 4  ;;  %10645 = vmatmul.mubr.msk.bf16.gmra.mrb[20].mxu0 %vm823_vm4, %v3228_v26  ;;  %v3245_v7 = vsel %vm1681_vm7, %v3236_v35, %v3244_v61  ;;  %3353 = vrot.lane.b32.xlu1 %v1652_v18, %s11309_s16  ;;  %v3253_v16 = vor.u32 %v3252_v60, %v3249_v63  ;;  %v3272_v10 = vshrl.u32 %v3055_v56, 16  ;;  %v3057_v42 = vld [vmem:[#allocation2 + $0x108] sm:$0x1f]  ;;  %v1294_v62 = vld [vmem:[#allocation2 + $0xf8] sm:$0xf] }
 0x260   : > { %v3275_v46 = vshll.u32 %v3055_v56, 16  ;;  %10648 = vmatprep.mubr.msk.bf16.mxu0 %vm823_vm4, %v3245_v7  ;;  %v3261_v19 = vor.u32 %v3260_v5, %v3257_v34  ;;  %v3269_v12 = vrot.slane %v3267_v29, 5  ;;  %v3031_v15 = vrot.slane %v2959_v53, 4  ;;  %v2672_v59 = vld [vmem:[#allocation2 + $0x108] sm:$0xf] }
 0x261   : > { %v3032_v31 = vrot.slane %v2668_v24, 4  ;;  %v3030_v35 = vsel %vm1616_vm6, %v3028_v22, %v3029_v11  ;;  %v3274_v61 = vrot.slane %v3272_v10, 4  ;;  %v1656_v32 = vrot.slane %v1581_v40, 4  ;;  %v1583_v24 = vld [vmem:[#allocation2 + $0xf0] sm:$0xf0] }
 0x262   : > { %v3277_v25 = vrot.slane %v3275_v46, 5  ;;  %3513 = vrot.lane.b32.xlu0 %v3030_v35, %s11311_s30  ;;  %v1655_v28 = vsel %vm1616_vm6, %v1653_v4, %v1654_v33  ;;  %v3270_v58 = vor.u32 %v3269_v12, %v3266_v17  ;;  %v1657_v36 = vrot.slane %v1290_v6, 4  ;;  %v2258_v40 = vld [vmem:[#allocation2 + $0x10] sm:$0xf0]  ;;  %v2354_v6 = vld [vmem:[#allocation2 + $0x18] sm:$0x1f] }
 0x263   : > { %3355 = vrot.lane.b32.xlu1 %v1655_v28, %s11309_s16  ;;  %v3034_v47 = vrot.slane %v2960_v48, 4  ;;  %v3035_v52 = vrot.slane %v2670_v30, 4  ;;  %v3262_v22 = vsel %vm1681_vm7, %v3253_v16, %v3261_v19  ;;  %v3033_v11 = vsel %vm1616_vm6, %v3031_v15, %v3032_v31  ;;  %v2643_v15 = vld [vmem:[#allocation2 + $0x20] sm:$0xf8] }
 0x264   : > { %v3278_v38 = vor.u32 %v3277_v25, %v3274_v61  ;;  %v1658_v0 = vsel %vm1616_vm6, %v1656_v32, %v1657_v36  ;;  %v1659_v53 = vrot.slane %v1582_v41, 4  ;;  %v1660_v33 = vrot.slane %v1292_v14, 4 }
 0x265   : > { %v3281_v20 = vshrl.u32 %v2960_v48, 16  ;;  %v3284_v37 = vshll.u32 %v2960_v48, 16  ;;  %v3036_v44 = vsel %vm1616_vm6, %v3034_v47, %v3035_v52  ;;  %v3289_v2 = vshrl.u32 %v3056_v43, 16 }
 0x266   : > { %v3279_v4 = vsel %vm1681_vm7, %v3270_v58, %v3278_v38  ;;  %3515 = vrot.lane.b32.xlu0 %v3033_v11, %s11311_s30  ;;  %v3292_v49 = vshll.u32 %v3056_v43, 16  ;;  %v3298_v3 = vshrl.u32 %v2961_v13, 16  ;;  %v3301_v50 = vshll.u32 %v2961_v13, 16  ;;  %v2259_v58 = vld [vmem:[#allocation2 + $0x20] sm:$0xf0] }
 0x267   : > { %10649 = vmatmul.mubr.msk.bf16.gmra.mrb[24].mxu0 %vm823_vm4, %v3262_v22  ;;  %3357 = vrot.lane.b32.xlu1 %v1658_v0, %s11309_s16  ;;  %v3283_v8 = vrot.slane %v3281_v20, 4  ;;  %v3286_v27 = vrot.slane %v3284_v37, 5  ;;  %v3306_v56 = vshrl.u32 %v3057_v42, 16  ;;  %v3291_v18 = vrot.slane %v3289_v2, 4  ;;  %v2355_v11 = vld [vmem:[#allocation2 + $0x28] sm:$0x1f] }
 0x268   : > { %10652 = vmatprep.mubr.msk.bf16.mxu0 %vm823_vm4, %v3279_v4  ;;  %v3294_v63 = vrot.slane %v3292_v49, 5  ;;  %v3300_v60 = vrot.slane %v3298_v3, 4  ;;  %v3309_v34 = vshll.u32 %v3057_v42, 16  ;;  %v3303_v5 = vrot.slane %v3301_v50, 5  ;;  %v1955_v49 = vld [vmem:[#allocation2 + $0x18] sm:$0xf] }
 0x269   : > { %v3287_v26 = vor.u32 %v3286_v27, %v3283_v8  ;;  %v3308_v17 = vrot.slane %v3306_v56, 4  ;;  %v3037_v29 = vrot.slane %v2961_v13, 4  ;;  %v1661_v7 = vsel %vm1616_vm6, %v1659_v53, %v1660_v33  ;;  %v1954_v33 = vld [vmem:[#allocation2 + $0x10] sm:$0xf8] }
 0x26a   : > { %3517 = vrot.lane.b32.xlu0 %v3036_v44, %s11311_s30  ;;  %v3295_v16 = vor.u32 %v3294_v63, %v3291_v18  ;;  %v3311_v10 = vrot.slane %v3309_v34, 5  ;;  %v3038_v46 = vrot.slane %v2672_v59, 4  ;;  %v3304_v30 = vor.u32 %v3303_v5, %v3300_v60  ;;  %v2645_v63 = vld [vmem:[#allocation2 + $0x30] sm:$0xf8] }
 0x26b   : > { %3359 = vrot.lane.b32.xlu1 %v1661_v7, %s11309_s16  ;;  %v1662_v19 = vrot.slane %v1583_v24, 4  ;;  %v1663_v12 = vrot.slane %v1294_v62, 4  ;;  %v2371_v61 = vshrl.u32 %v2258_v40, 16  ;;  %v2374_v32 = vshll.u32 %v2258_v40, 16 }
 0x26c   : > { %v3296_v31 = vsel %vm1681_vm7, %v3287_v26, %v3295_v16  ;;  %v3312_v48 = vor.u32 %v3311_v10, %v3308_v17  ;;  %v3039_v35 = vsel %vm1616_vm6, %v3037_v29, %v3038_v46  ;;  %v2379_v41 = vshrl.u32 %v2354_v6, 16 }
 0x26d   : > { %v1664_v25 = vsel %vm1616_vm6, %v1662_v19, %v1663_v12  ;;  %v2382_v28 = vshll.u32 %v2354_v6, 16  ;;  %v2373_v14 = vrot.slane %v2371_v61, 4  ;;  %v2676_v38 = vshrl.u32 %v2643_v15, 16  ;;  %v1666_v12 = vld [vmem:[#allocation2 + $0x18] sm:$0x1f] }
 0x26e   : > { %v3313_v36 = vsel %vm1681_vm7, %v3304_v30, %v3312_v48  ;;  %3519 = vrot.lane.b32.xlu0 %v3039_v35, %s11311_s30  ;;  %v2679_v47 = vshll.u32 %v2643_v15, 16  ;;  %v2376_v52 = vrot.slane %v2374_v32, 5  ;;  %v2381_v43 = vrot.slane %v2379_v41, 4  ;;  %v2260_v61 = vld [vmem:[#allocation2 + $0x30] sm:$0xf0] }
 0x26f   : > { %10653 = vmatmul.mubr.msk.bf16.gmra.mrb[28].mxu0 %vm823_vm4, %v3296_v31  ;;  %3361 = vrot.lane.b32.xlu1 %v1664_v25, %s11309_s16  ;;  %v2384_v13 = vrot.slane %v2382_v28, 5  ;;  %v2684_v22 = vshrl.u32 %v12412_v39, 16  ;;  %v2678_v0 = vrot.slane %v2676_v38, 3  ;;  %v2687_v42 = vshll.u32 %v12412_v39, 16 }
 0x270   : > { %10656 = vmatprep.mubr.msk.bf16.mxu0 %vm823_vm4, %v3313_v36  ;;  %v2681_v53 = vrot.slane %v2679_v47, 4  ;;  %v2388_v4 = vshrl.u32 %v2259_v58, 16  ;;  %v2377_v20 = vor.u32 %v2376_v52, %v2373_v14  ;;  %v2391_v2 = vshll.u32 %v2259_v58, 16  ;;  %v2356_v47 = vld [vmem:[#allocation2 + $0x38] sm:$0x1f] }
 0x271   : > { %v2385_v37 = vor.u32 %v2384_v13, %v2381_v43  ;;  %v2686_v44 = vrot.slane %v2684_v22, 3  ;;  %v2689_v59 = vrot.slane %v2687_v42, 4  ;;  %v2396_v27 = vshrl.u32 %v2355_v11, 16  ;;  %v1956_v22 = vld [vmem:[#allocation2 + $0x20] sm:$0xf8] }
 0x272   : > { %v2682_v3 = vor.u32 %v2681_v53, %v2678_v0  ;;  %v2390_v8 = vrot.slane %v2388_v4, 4  ;;  %v2393_v56 = vrot.slane %v2391_v2, 5  ;;  %v2399_v62 = vshll.u32 %v2355_v11, 16 }
 0x273   : > { %v2386_v50 = vsel %vm1681_vm7, %v2377_v20, %v2385_v37  ;;  %v1987_v18 = vshrl.u32 %v1954_v33, 16  ;;  %v2690_v39 = vor.u32 %v2689_v59, %v2686_v44  ;;  %v2398_v60 = vrot.slane %v2396_v27, 4  ;;  %v1957_v44 = vld [vmem:[#allocation2 + $0x28] sm:$0xf]  ;;  %v2647_v59 = vld [vmem:[#allocation2 + $0x40] sm:$0xf8] }
 0x274   : > { %3427 = vrot.lane.b32.xlu0 %v2386_v50, %s11309_s16  ;;  %v1990_v34 = vshll.u32 %v1954_v33, 16  ;;  %v1995_v24 = vshrl.u32 %v1955_v49, 16  ;;  %v2394_v26 = vor.u32 %v2393_v56, %v2390_v8  ;;  %v2401_v5 = vrot.slane %v2399_v62, 5 }
 0x275   : > { %v1989_v17 = vrot.slane %v1987_v18, 3  ;;  %v1998_v29 = vshll.u32 %v1955_v49, 16  ;;  %v2691_v40 = vsel %vm1295_vm10, %v2682_v3, %v2690_v39  ;;  %v2693_v10 = vshrl.u32 %v2645_v63, 16 }
 0x276   : > { %v1992_v7 = vrot.slane %v1990_v34, 4  ;;  %v1997_v16 = vrot.slane %v1995_v24, 3  ;;  %3459 = vrot.lane.b32.xlu1 %v2691_v40, %s15853_s9  ;;  %v2402_v46 = vor.u32 %v2401_v5, %v2398_v60  ;;  %v2696_v30 = vshll.u32 %v2645_v63, 16 }
 0x277   : > { %v2000_v6 = vrot.slane %v1998_v29, 4  ;;  %v2701_v19 = vshrl.u32 %v12438_v51, 16  ;;  %v2695_v31 = vrot.slane %v2693_v10, 3  ;;  %v2704_v48 = vshll.u32 %v12438_v51, 16 }
 0x278   : > { %v1993_v15 = vor.u32 %v1992_v7, %v1989_v17  ;;  %v1700_v35 = vshrl.u32 %v12429_v45, 16  ;;  %v2403_v25 = vsel %vm1681_vm7, %v2394_v26, %v2402_v46  ;;  %v2698_v41 = vrot.slane %v2696_v30, 4  ;;  %v1667_v7 = vld [vmem:[#allocation2 + $0x28] sm:$0x1f]  ;;  %v2261_v30 = vld [vmem:[#allocation2 + $0x40] sm:$0xf0] }
 0x279   : > { %v2001_v32 = vor.u32 %v2000_v6, %v1997_v16  ;;  %v2703_v28 = vrot.slane %v2701_v19, 3  ;;  %3429 = vrot.lane.b32.xlu0 %v2403_v25, %s11309_s16  ;;  %v2706_v58 = vrot.slane %v2704_v48, 4  ;;  %v1703_v14 = vshll.u32 %v12429_v45, 16  ;;  %v10896_v48 = vld [vmem:[%s15798_s5 + $0x40] sm:$0xff]  }
 0x27a   : > { %v1702_v36 = vrot.slane %v1700_v35, 4  ;;  %v1708_v38 = vshrl.u32 %v1666_v12, 16  ;;  %v2699_v43 = vor.u32 %v2698_v41, %v2695_v31  ;;  %v1711_v51 = vshll.u32 %v1666_v12, 16  ;;  %v2357_v41 = vld [vmem:[#allocation2 + $0x48] sm:$0x1f]  ;;  %10207 = vmatprep.subr.bf16.mxu1 %v10896_v48 }
 0x27b   : > { %v2002_v52 = vsel %vm1295_vm10, %v1993_v15, %v2001_v32  ;;  %v2405_v13 = vshrl.u32 %v2260_v61, 16  ;;  %v2707_v11 = vor.u32 %v2706_v58, %v2703_v28  ;;  %v1705_v0 = vrot.slane %v1703_v14, 5  ;;  %v1958_v14 = vld [vmem:[#allocation2 + $0x30] sm:$0xf8] }
 0x27c   : > { %3395 = vrot.lane.b32.xlu1 %v2002_v52, %s11311_s30  ;;  %v1710_v53 = vrot.slane %v1708_v38, 4  ;;  %v2408_v42 = vshll.u32 %v2260_v61, 16  ;;  %v1713_v4 = vrot.slane %v1711_v51, 5  ;;  %v2413_v20 = vshrl.u32 %v2356_v47, 16 }
 0x27d   : > { %v2407_v33 = vrot.slane %v2405_v13, 4  ;;  %v2416_v37 = vshll.u32 %v2356_v47, 16  ;;  %v2708_v45 = vsel %vm1295_vm10, %v2699_v43, %v2707_v11  ;;  %v1706_v2 = vor.u32 %v1705_v0, %v1702_v36  ;;  %v1959_v11 = vld [vmem:[#allocation2 + $0x38] sm:$0xf] }
 0x27e   : > { %v2410_v49 = vrot.slane %v2408_v42, 5  ;;  %v2004_v3 = vshrl.u32 %v1956_v22, 16  ;;  %3461 = vrot.lane.b32.xlu0 %v2708_v45, %s15853_s9  ;;  %v1714_v8 = vor.u32 %v1713_v4, %v1710_v53  ;;  %v2415_v27 = vrot.slane %v2413_v20, 4  ;;  %v10897_v20 = vld [vmem:[%s15798_s5] sm:$0xff]  }
 0x27f   : > { %v2418_v50 = vrot.slane %v2416_v37, 5  ;;  %v2007_v56 = vshll.u32 %v1956_v22, 16  ;;  %v2012_v63 = vshrl.u32 %v1957_v44, 16  ;;  %v2015_v39 = vshll.u32 %v1957_v44, 16  ;;  %10208 = vmatpush3.bf16.msra.mxu1 %v10897_v20 }
 0x280   : > { %v2411_v62 = vor.u32 %v2410_v49, %v2407_v33  ;;  %v2006_v18 = vrot.slane %v2004_v3, 3  ;;  %v1715_v60 = vsel %vm1681_vm7, %v1706_v2, %v1714_v8  ;;  %v2710_v26 = vshrl.u32 %v2647_v59, 16  ;;  %v2649_v33 = vld [vmem:[#allocation2 + $0x50] sm:$0xf8] }
 0x281   : > { %v2419_v34 = vor.u32 %v2418_v50, %v2415_v27  ;;  %v2009_v24 = vrot.slane %v2007_v56, 4  ;;  %3365 = vrot.lane.b32.xlu1 %v1715_v60, %s15853_s9  ;;  %v2014_v5 = vrot.slane %v2012_v63, 3  ;;  %v2017_v17 = vrot.slane %v2015_v39, 4  ;;  %v10898_v27 = vld [vmem:[%s15798_s5 + $0x48] sm:$0xff]  }
 0x282   : > { %v2713_v29 = vshll.u32 %v2647_v59, 16  ;;  %v2718_v40 = vshrl.u32 %v12461_v23, 16  ;;  %v2712_v46 = vrot.slane %v2710_v26, 3  ;;  %v2721_v6 = vshll.u32 %v12461_v23, 16  ;;  %10209 = vmatprep.subr.bf16.mxu1 %v10898_v27 }
 0x283   : > { %v2420_v16 = vsel %vm1681_vm7, %v2411_v62, %v2419_v34  ;;  %v2010_v10 = vor.u32 %v2009_v24, %v2006_v18  ;;  %v2018_v19 = vor.u32 %v2017_v17, %v2014_v5  ;;  %v1717_v31 = vshrl.u32 %v12448_v55, 16  ;;  %v1668_v24 = vld [vmem:[#allocation2 + $0x38] sm:$0x1f] }
 0x284   : > { %3431 = vrot.lane.b32.xlu0 %v2420_v16, %s11309_s16  ;;  %v2715_v12 = vrot.slane %v2713_v29, 4  ;;  %v2720_v15 = vrot.slane %v2718_v40, 3  ;;  %v2723_v35 = vrot.slane %v2721_v6, 4  ;;  %v1720_v61 = vshll.u32 %v12448_v55, 16  ;;  %v2262_v40 = vld [vmem:[#allocation2 + $0x50] sm:$0xf0] }
 0x285   : > { %v1725_v25 = vshrl.u32 %v1667_v7, 16  ;;  %v1728_v32 = vshll.u32 %v1667_v7, 16  ;;  %v2019_v23 = vsel %vm1295_vm10, %v2010_v10, %v2018_v19  ;;  %v1719_v58 = vrot.slane %v1717_v31, 4  ;;  %v2358_v31 = vld [vmem:[#allocation2 + $0x58] sm:$0x1f] }
 0x286   : > { %v2716_v28 = vor.u32 %v2715_v12, %v2712_v46  ;;  %v2422_v36 = vshrl.u32 %v2261_v30, 16  ;;  %3397 = vrot.lane.b32.xlu1 %v2019_v23, %s11311_s30  ;;  %v2724_v38 = vor.u32 %v2723_v35, %v2720_v15  ;;  %v1722_v47 = vrot.slane %v1720_v61, 5  ;;  %v10958_v46 = vld [vmem:[#allocation2 + $0x30] sm:$0xf0] }
 0x287   : > { %v1727_v52 = vrot.slane %v1725_v25, 4  ;;  %v1730_v43 = vrot.slane %v1728_v32, 5  ;;  %v2425_v13 = vshll.u32 %v2261_v30, 16  ;;  %v2430_v22 = vshrl.u32 %v2357_v41, 16  ;;  %v1960_v32 = vld [vmem:[#allocation2 + $0x40] sm:$0xf8] }
 0x288   : > { %v2424_v51 = vrot.slane %v2422_v36, 4  ;;  %v2433_v55 = vshll.u32 %v2357_v41, 16  ;;  %v2725_v0 = vsel %vm1295_vm10, %v2716_v28, %v2724_v38  ;;  %v1723_v53 = vor.u32 %v1722_v47, %v1719_v58  ;;  %v10899_v58 = vld [vmem:[%s15798_s5 + $0x8] sm:$0xff]  }
 0x289   : > { %v1731_v42 = vor.u32 %v1730_v43, %v1727_v52  ;;  %v2021_v4 = vshrl.u32 %v1958_v14, 16  ;;  %3463 = vrot.lane.b32.xlu0 %v2725_v0, %s15853_s9  ;;  %v2427_v37 = vrot.slane %v2425_v13, 5  ;;  %v2432_v44 = vrot.slane %v2430_v22, 4  ;;  %v1961_v52 = vld [vmem:[#allocation2 + $0x48] sm:$0xf]  ;;  %10210 = vmatpush3.bf16.msra.mxu1 %v10899_v58 }
 0x28a   : > { %v2435_v45 = vrot.slane %v2433_v55, 5  ;;  %v2024_v2 = vshll.u32 %v1958_v14, 16  ;;  %v2029_v59 = vshrl.u32 %v1959_v11, 16  ;;  %v2032_v8 = vshll.u32 %v1959_v11, 16  ;;  %v2651_v55 = vld [vmem:[#allocation2 + $0x60] sm:$0xf8] }
 0x28b   : > { %v1732_v49 = vsel %vm1681_vm7, %v1723_v53, %v1731_v42  ;;  %v2023_v3 = vrot.slane %v2021_v4, 3  ;;  %v2428_v50 = vor.u32 %v2427_v37, %v2424_v51  ;;  %v2727_v18 = vshrl.u32 %v2649_v33, 16  ;;  %v10900_v11 = vld [vmem:[%s15798_s5 + $0x50] sm:$0xff]   ;;  %v1963_v58 = vld [vmem:[#allocation2 + $0x58] sm:$0xf] }
 0x28c   : > { %3367 = vrot.lane.b32.xlu1 %v1732_v49, %s15853_s9  ;;  %v2436_v56 = vor.u32 %v2435_v45, %v2432_v44  ;;  %v2026_v62 = vrot.slane %v2024_v2, 4  ;;  %v2031_v63 = vrot.slane %v2029_v59, 3  ;;  %v2034_v39 = vrot.slane %v2032_v8, 4  ;;  %10211 = vmatprep.subr.bf16.mxu1 %v10900_v11 }
 0x28d   : > { %v2730_v60 = vshll.u32 %v2649_v33, 16  ;;  %v2735_v34 = vshrl.u32 %v12467_v21, 16  ;;  %v2729_v17 = vrot.slane %v2727_v18, 3  ;;  %v2738_v29 = vshll.u32 %v12467_v21, 16 }
 0x28e   : > { %v2437_v26 = vsel %vm1681_vm7, %v2428_v50, %v2436_v56  ;;  %v2027_v5 = vor.u32 %v2026_v62, %v2023_v3  ;;  %v2035_v7 = vor.u32 %v2034_v39, %v2031_v63  ;;  %v1734_v6 = vshrl.u32 %v10958_v46, 16  ;;  %v10959_v50 = vld [vmem:[#allocation2 + $0x68] sm:$0xf] }
 0x28f   : > { %3433 = vrot.lane.b32.xlu0 %v2437_v26, %s11309_s16  ;;  %v2732_v16 = vrot.slane %v2730_v60, 4  ;;  %v2737_v10 = vrot.slane %v2735_v34, 3  ;;  %v2740_v30 = vrot.slane %v2738_v29, 4  ;;  %v1737_v19 = vshll.u32 %v10958_v46, 16  ;;  %v1669_v62 = vld [vmem:[#allocation2 + $0x48] sm:$0x1f] }
 0x290   : > { %v1742_v12 = vshrl.u32 %v1668_v24, 16  ;;  %v1745_v15 = vshll.u32 %v1668_v24, 16  ;;  %v2036_v48 = vsel %vm1295_vm10, %v2027_v5, %v2035_v7  ;;  %v1736_v61 = vrot.slane %v1734_v6, 4  ;;  %v2263_v34 = vld [vmem:[#allocation2 + $0x60] sm:$0xf0]  ;;  %v10901_v24 = vld [vmem:[%s15798_s5 + $0x10] sm:$0xff]  }
 0x291   : > { %v2733_v35 = vor.u32 %v2732_v16, %v2729_v17  ;;  %v2439_v25 = vshrl.u32 %v2262_v40, 16  ;;  %3399 = vrot.lane.b32.xlu1 %v2036_v48, %s11311_s30  ;;  %v2741_v21 = vor.u32 %v2740_v30, %v2737_v10  ;;  %v1739_v41 = vrot.slane %v1737_v19, 5  ;;  %v10902_v26 = vld [vmem:[%s15798_s5 + $0x58] sm:$0xff]   ;;  %v2359_v30 = vld [vmem:[#allocation2 + $0x68] sm:$0x1f]  ;;  %10212 = vmatpush3.bf16.msra.mxu1 %v10901_v24 }
 0x292   : > { %v1744_v23 = vrot.slane %v1742_v12, 4  ;;  %v1747_v28 = vrot.slane %v1745_v15, 5  ;;  %v2442_v14 = vshll.u32 %v2262_v40, 16  ;;  %v2447_v38 = vshrl.u32 %v2358_v31, 16  ;;  %v10960_v40 = vld [vmem:[#allocation2 + $0x40] sm:$0xf0]  ;;  %10213 = vmatprep.subr.bf16.mxu1 %v10902_v26 }
 0x293   : > { %v2441_v36 = vrot.slane %v2439_v25, 4  ;;  %v2450_v47 = vshll.u32 %v2358_v31, 16  ;;  %v2742_v43 = vsel %vm1295_vm10, %v2733_v35, %v2741_v21  ;;  %v1740_v51 = vor.u32 %v1739_v41, %v1736_v61  ;;  %v1962_v48 = vld [vmem:[#allocation2 + $0x50] sm:$0xf8] }
 0x294   : > { %v1748_v13 = vor.u32 %v1747_v28, %v1744_v23  ;;  %v2038_v22 = vshrl.u32 %v1960_v32, 16  ;;  %3465 = vrot.lane.b32.xlu0 %v2742_v43, %s15853_s9  ;;  %v2444_v0 = vrot.slane %v2442_v14, 5  ;;  %v2449_v53 = vrot.slane %v2447_v38, 4  ;;  %v12694_v43 = vpop.permute.xlu0 %3331  ;;  %v10962_v26 = vld [vmem:[#allocation2 + $0x50] sm:$0xf0] }
 0x295   : > { %v2452_v42 = vrot.slane %v2450_v47, 5  ;;  %v2041_v4 = vshll.u32 %v1960_v32, 16  ;;  %v2046_v37 = vshrl.u32 %v1961_v52, 16  ;;  %v2049_v44 = vshll.u32 %v1961_v52, 16  ;;  %v2653_v52 = vld [vmem:[#allocation2 + $0x70] sm:$0xf8] }
 0x296   : > { %v1749_v33 = vsel %vm1681_vm7, %v1740_v51, %v1748_v13  ;;  %v2040_v20 = vrot.slane %v2038_v22, 3  ;;  %v2445_v45 = vor.u32 %v2444_v0, %v2441_v36  ;;  %v2744_v3 = vshrl.u32 %v2651_v55, 16 }
 0x297   : > { %3369 = vrot.lane.b32.xlu1 %v1749_v33, %s15853_s9  ;;  %v2453_v2 = vor.u32 %v2452_v42, %v2449_v53  ;;  %v2043_v49 = vrot.slane %v2041_v4, 4  ;;  %v2048_v59 = vrot.slane %v2046_v37, 3  ;;  %v2051_v8 = vrot.slane %v2049_v44, 4  ;;  %v10903_v4 = vld [vmem:[%s15798_s5 + $0x18] sm:$0xff]   ;;  %v10904_v33 = vld [vmem:[%s15798_s5 + $0x60] sm:$0xff]  }
 0x298   : > { %v2747_v27 = vshll.u32 %v2651_v55, 16  ;;  %v2752_v56 = vshrl.u32 %v10959_v50, 16  ;;  %v2746_v39 = vrot.slane %v2744_v3, 3  ;;  %v2755_v60 = vshll.u32 %v10959_v50, 16  ;;  %10214 = vmatpush3.bf16.msra.mxu1 %v10903_v4 }
 0x299   : > { %v2454_v18 = vsel %vm1681_vm7, %v2445_v45, %v2453_v2  ;;  %v2044_v63 = vor.u32 %v2043_v49, %v2040_v20  ;;  %v2052_v5 = vor.u32 %v2051_v8, %v2048_v59  ;;  %v1751_v7 = vshrl.u32 %v10960_v40, 16  ;;  %v10961_v59 = vld [vmem:[#allocation2 + $0x78] sm:$0xf]  ;;  %10215 = vmatprep.subr.bf16.mxu1 %v10904_v33 }
 0x29a   : > { %3435 = vrot.lane.b32.xlu0 %v2454_v18, %s11309_s16  ;;  %v2749_v17 = vrot.slane %v2747_v27, 4  ;;  %v2754_v29 = vrot.slane %v2752_v56, 3  ;;  %v2757_v16 = vrot.slane %v2755_v60, 4  ;;  %v1754_v10 = vshll.u32 %v10960_v40, 16  ;;  %v1670_v27 = vld [vmem:[#allocation2 + $0x58] sm:$0x1f] }
 0x29b   : > { %v1759_v46 = vshrl.u32 %v1669_v62, 16  ;;  %v1762_v6 = vshll.u32 %v1669_v62, 16  ;;  %v2053_v19 = vsel %vm1295_vm10, %v2044_v63, %v2052_v5  ;;  %v1753_v15 = vrot.slane %v1751_v7, 4  ;;  %v2264_v63 = vld [vmem:[#allocation2 + $0x70] sm:$0xf0] }
 0x29c   : > { %v2750_v12 = vor.u32 %v2749_v17, %v2746_v39  ;;  %v2456_v31 = vshrl.u32 %v2263_v34, 16  ;;  %3401 = vrot.lane.b32.xlu1 %v2053_v19, %s11311_s30  ;;  %v2758_v35 = vor.u32 %v2757_v16, %v2754_v29  ;;  %v1756_v61 = vrot.slane %v1754_v10, 5  ;;  %v12706_v39 = vpop.permute.xlu1 %3363  ;;  %v12709_v17 = vpop.permute.xlu0 %3491  ;;  %v2360_v10 = vld [vmem:[#allocation2 + $0x78] sm:$0x1f] }
 0x29d   : > { %v1761_v25 = vrot.slane %v1759_v46, 4  ;;  %v1764_v32 = vrot.slane %v1762_v6, 5  ;;  %v2459_v41 = vshll.u32 %v2263_v34, 16  ;;  %v2464_v23 = vshrl.u32 %v2359_v30, 16 }
 0x29e   : > { %v2458_v21 = vrot.slane %v2456_v31, 4  ;;  %v2467_v28 = vshll.u32 %v2359_v30, 16  ;;  %v2759_v36 = vsel %vm1295_vm10, %v2750_v12, %v2758_v35  ;;  %v1757_v14 = vor.u32 %v1756_v61, %v1753_v15  ;;  %v1964_v12 = vld [vmem:[#allocation2 + $0x60] sm:$0xf8]  ;;  %v1965_v61 = vld [vmem:[#allocation2 + $0x68] sm:$0xf] }
 0x29f   : > { %v1765_v38 = vor.u32 %v1764_v32, %v1761_v25  ;;  %v2055_v47 = vshrl.u32 %v1962_v48, 16  ;;  %3467 = vrot.lane.b32.xlu0 %v2759_v36, %s15853_s9  ;;  %v2461_v51 = vrot.slane %v2459_v41, 5  ;;  %v2466_v13 = vrot.slane %v2464_v23, 4  ;;  %v10905_v23 = vld [vmem:[%s15798_s5 + $0x20] sm:$0xff]  }
 0x2a0   : > { %v2469_v22 = vrot.slane %v2467_v28, 5  ;;  %v2058_v55 = vshll.u32 %v1962_v48, 16  ;;  %v2063_v53 = vshrl.u32 %v1963_v58, 16  ;;  %v2066_v42 = vshll.u32 %v1963_v58, 16  ;;  %v10906_v28 = vld [vmem:[%s15798_s5 + $0x68] sm:$0xff]   ;;  %10216 = vmatpush3.bf16.msra.mxu1 %v10905_v23 }
 0x2a1   : > { %v1766_v11 = vsel %vm1681_vm7, %v1757_v14, %v1765_v38  ;;  %v2057_v0 = vrot.slane %v2055_v47, 3  ;;  %v2462_v20 = vor.u32 %v2461_v51, %v2458_v21  ;;  %v2761_v45 = vshrl.u32 %v2653_v52, 16  ;;  %v2655_v47 = vld [vmem:[#allocation2 + $0x80] sm:$0xf8]  ;;  %10217 = vmatprep.subr.bf16.mxu1 %v10906_v28  ;;  %v1966_v23 = vld [vmem:[#allocation2 + $0x70] sm:$0xf8] }
 0x2a2   : > { %3371 = vrot.lane.b32.xlu1 %v1766_v11, %s15853_s9  ;;  %v2470_v37 = vor.u32 %v2469_v22, %v2466_v13  ;;  %v2060_v44 = vrot.slane %v2058_v55, 4  ;;  %v2065_v2 = vrot.slane %v2063_v53, 3  ;;  %v2068_v49 = vrot.slane %v2066_v42, 4  ;;  %v10907_v51 = vld [vmem:[%s15800_s7] sm:$0xff]  }
 0x2a3   : > { %v2764_v3 = vshll.u32 %v2653_v52, 16  ;;  %v2769_v8 = vshrl.u32 %v10961_v59, 16  ;;  %v2763_v62 = vrot.slane %v2761_v45, 3  ;;  %v2772_v18 = vshll.u32 %v10961_v59, 16  ;;  %v12720_v52 = vpop.permute.xlu1 %3333  ;;  %10661 = vmatpush3.bf16.msra.mxu0 %v10907_v51  ;;  %v10963_v59 = vld [vmem:[#allocation2 + $0x88] sm:$0xf] }
 0x2a4   : > { %v2471_v50 = vsel %vm1681_vm7, %v2462_v20, %v2470_v37  ;;  %v2061_v56 = vor.u32 %v2060_v44, %v2057_v0  ;;  %v2069_v60 = vor.u32 %v2068_v49, %v2065_v2  ;;  %v1768_v5 = vshrl.u32 %v10962_v26, 16  ;;  %v12726_v0 = vpop.permute.xlu0 %3493  ;;  %10662 = vmatprep.subr.bf16.mxu0 %v15893_v9 }
 0x2a5   : > { %3437 = vrot.lane.b32.xlu0 %v2471_v50, %s11309_s16  ;;  %v2766_v34 = vrot.slane %v2764_v3, 4  ;;  %v2771_v24 = vrot.slane %v2769_v8, 3  ;;  %v2774_v29 = vrot.slane %v2772_v18, 4  ;;  %v1771_v40 = vshll.u32 %v10962_v26, 16 }
 0x2a6   : > { %v1776_v7 = vshrl.u32 %v1670_v27, 16  ;;  %v1779_v16 = vshll.u32 %v1670_v27, 16  ;;  %v2070_v46 = vsel %vm1295_vm10, %v2061_v56, %v2069_v60  ;;  %v1770_v30 = vrot.slane %v1768_v5, 4  ;;  %v1671_v27 = vld [vmem:[#allocation2 + $0x68] sm:$0x1f] }
 0x2a7   : > { %v2767_v6 = vor.u32 %v2766_v34, %v2763_v62  ;;  %v2473_v19 = vshrl.u32 %v2264_v63, 16  ;;  %3403 = vrot.lane.b32.xlu1 %v2070_v46, %s11311_s30  ;;  %v2775_v15 = vor.u32 %v2774_v29, %v2771_v24  ;;  %v1773_v31 = vrot.slane %v1771_v40, 5  ;;  %v10964_v24 = vld [vmem:[#allocation2 + $0x60] sm:$0xf0]  ;;  %v12733_v29 = vpop.permute.xlu1 %3335 }
 0x2a8   : > { %v1778_v48 = vrot.slane %v1776_v7, 4  ;;  %v1781_v35 = vrot.slane %v1779_v16, 5  ;;  %v2476_v32 = vshll.u32 %v2264_v63, 16  ;;  %v2481_v21 = vshrl.u32 %v2360_v10, 16  ;;  %v2265_v5 = vld [vmem:[#allocation2 + $0x80] sm:$0xf0]  ;;  %v12735_v46 = vpop.permute.xlu0 %3495 }
 0x2a9   : > { %v2475_v25 = vrot.slane %v2473_v19, 4  ;;  %v2484_v41 = vshll.u32 %v2360_v10, 16  ;;  %v2776_v58 = vsel %vm1295_vm10, %v2767_v6, %v2775_v15  ;;  %v1774_v36 = vor.u32 %v1773_v31, %v1770_v30  ;;  %v10908_v6 = vld [vmem:[%s15798_s5 + $0x28] sm:$0xff]   ;;  %v10909_v30 = vld [vmem:[%s15798_s5 + $0x70] sm:$0xff]  }
 0x2aa   : > { %v1782_v14 = vor.u32 %v1781_v35, %v1778_v48  ;;  %v2072_v38 = vshrl.u32 %v1964_v12, 16  ;;  %3469 = vrot.lane.b32.xlu0 %v2776_v58, %s15853_s9  ;;  %v2478_v13 = vrot.slane %v2476_v32, 5  ;;  %v2483_v22 = vrot.slane %v2481_v21, 4  ;;  %v2361_v31 = vld [vmem:[#allocation2 + $0x88] sm:$0x1f]  ;;  %10218 = vmatpush3.bf16.msra.mxu1 %v10908_v6 }
 0x2ab   : > { %v2486_v55 = vrot.slane %v2484_v41, 5  ;;  %v2075_v11 = vshll.u32 %v1964_v12, 16  ;;  %v2080_v4 = vshrl.u32 %v1965_v61, 16  ;;  %v2083_v33 = vshll.u32 %v1965_v61, 16  ;;  %v10910_v48 = vld [vmem:[%s15800_s7 + $0x8] sm:$0xff]   ;;  %10219 = vmatprep.subr.bf16.mxu1 %v10909_v30 }
 0x2ac   : > { %v1783_v53 = vsel %vm1681_vm7, %v1774_v36, %v1782_v14  ;;  %v2074_v42 = vrot.slane %v2072_v38, 3  ;;  %v2479_v20 = vor.u32 %v2478_v13, %v2475_v25  ;;  %v2778_v45 = vshrl.u32 %v2655_v47, 16  ;;  %10663 = vmatpush3.bf16.msra.mxu0 %v10910_v48  ;;  %v1967_v38 = vld [vmem:[#allocation2 + $0x78] sm:$0xf]  ;;  %v10966_v6 = vld [vmem:[#allocation2 + $0x70] sm:$0xf0] }
 0x2ad   : > { %3373 = vrot.lane.b32.xlu1 %v1783_v53, %s15853_s9  ;;  %v2487_v37 = vor.u32 %v2486_v55, %v2483_v22  ;;  %v2077_v44 = vrot.slane %v2075_v11, 4  ;;  %v2082_v2 = vrot.slane %v2080_v4, 3  ;;  %v2085_v49 = vrot.slane %v2083_v33, 4  ;;  %10664 = vmatprep.subr.bf16.mxu0 %v15893_v9  ;;  %v12751_v22 = vpop.permute.xlu1 %3337  ;;  %v12754_v4 = vpop.permute.xlu0 %3497 }
 0x2ae   : > { %v2781_v3 = vshll.u32 %v2655_v47, 16  ;;  %v2786_v8 = vshrl.u32 %v10963_v59, 16  ;;  %v2780_v62 = vrot.slane %v2778_v45, 3  ;;  %v2789_v18 = vshll.u32 %v10963_v59, 16 }
 0x2af   : > { %v2488_v50 = vsel %vm1681_vm7, %v2479_v20, %v2487_v37  ;;  %v2078_v56 = vor.u32 %v2077_v44, %v2074_v42  ;;  %v2086_v63 = vor.u32 %v2085_v49, %v2082_v2  ;;  %v1785_v26 = vshrl.u32 %v10964_v24, 16  ;;  %v2657_v49 = vld [vmem:[#allocation2 + $0x90] sm:$0xf8] }
 0x2b0   : > { %3439 = vrot.lane.b32.xlu0 %v2488_v50, %s11309_s16  ;;  %v2783_v60 = vrot.slane %v2781_v3, 4  ;;  %v2788_v34 = vrot.slane %v2786_v8, 3  ;;  %v2791_v40 = vrot.slane %v2789_v18, 4  ;;  %v1788_v7 = vshll.u32 %v10964_v24, 16  ;;  %v10911_v3 = vld [vmem:[%s15798_s5 + $0x30] sm:$0xff]  }
 0x2b1   : > { %v1793_v16 = vshrl.u32 %v1671_v27, 16  ;;  %v1796_v10 = vshll.u32 %v1671_v27, 16  ;;  %v2087_v19 = vsel %vm1295_vm10, %v2078_v56, %v2086_v63  ;;  %v1787_v15 = vrot.slane %v1785_v26, 4  ;;  %10220 = vmatpush3.bf16.msra.mxu1 %v10911_v3  ;;  %v12761_v18 = vpop.permute.xlu1 %3339  ;;  %v10912_v63 = vld [vmem:[%s15798_s5 + $0x78] sm:$0xff]  }
 0x2b2   : > { %v2784_v12 = vor.u32 %v2783_v60, %v2780_v62  ;;  %3405 = vrot.lane.b32.xlu1 %v2087_v19, %s11311_s30  ;;  %v2792_v35 = vor.u32 %v2791_v40, %v2788_v34  ;;  %v1790_v61 = vrot.slane %v1788_v7, 5  ;;  %v2490_v21 = vshrl.u32 %v2265_v5, 16  ;;  %v10913_v60 = vld [vmem:[%s15800_s7 + $0x10] sm:$0xff]   ;;  %v10965_v26 = vld [vmem:[#allocation2 + $0x98] sm:$0xf]  ;;  %v12770_v7 = vpop.permute.xlu0 %3499  ;;  %10221 = vmatprep.subr.bf16.mxu1 %v10912_v63 }
 0x2b3   : > { %v1795_v25 = vrot.slane %v1793_v16, 4  ;;  %v1798_v32 = vrot.slane %v1796_v10, 5  ;;  %v2493_v41 = vshll.u32 %v2265_v5, 16  ;;  %v2498_v14 = vshrl.u32 %v2361_v31, 16  ;;  %v1672_v40 = vld [vmem:[#allocation2 + $0x78] sm:$0x1f]  ;;  %10665 = vmatpush3.bf16.msra.mxu0 %v10913_v60 }
 0x2b4   : > { %v2793_v28 = vsel %vm1295_vm10, %v2784_v12, %v2792_v35  ;;  %v1791_v58 = vor.u32 %v1790_v61, %v1787_v15  ;;  %v2492_v47 = vrot.slane %v2490_v21, 4  ;;  %v2501_v13 = vshll.u32 %v2361_v31, 16  ;;  %10666 = vmatprep.subr.bf16.mxu0 %v15893_v9 }
 0x2b5   : > { %v1799_v36 = vor.u32 %v1798_v32, %v1795_v25  ;;  %3471 = vrot.lane.b32.xlu0 %v2793_v28, %s15853_s9  ;;  %v2495_v51 = vrot.slane %v2493_v41, 5  ;;  %v2500_v11 = vrot.slane %v2498_v14, 4  ;;  %v2089_v53 = vshrl.u32 %v1966_v23, 16  ;;  %v10914_v41 = vld [vmem:[%s15798_s5 + $0x38] sm:$0xff]  }
 0x2b6   : > { %v2092_v42 = vshll.u32 %v1966_v23, 16  ;;  %v2503_v20 = vrot.slane %v2501_v13, 5  ;;  %v2097_v37 = vshrl.u32 %v1967_v38, 16  ;;  %v2100_v2 = vshll.u32 %v1967_v38, 16  ;;  %v10915_v23 = vld [vmem:[%s15800_s7 + $0x18] sm:$0xff]   ;;  %v12781_v38 = vpop.permute.xlu1 %3341  ;;  %10222 = vmatpush3.bf16.msra.mxu1 %v10914_v41 }
 0x2b7   : > { %v1800_v55 = vsel %vm1681_vm7, %v1791_v58, %v1799_v36  ;;  %v2496_v33 = vor.u32 %v2495_v51, %v2492_v47  ;;  %v2091_v44 = vrot.slane %v2089_v53, 3  ;;  %v2795_v62 = vshrl.u32 %v2657_v49, 16  ;;  %v2266_v36 = vld [vmem:[#allocation2 + $0x90] sm:$0xf0]  ;;  %v2362_v14 = vld [vmem:[#allocation2 + $0x98] sm:$0x1f]  ;;  %10667 = vmatpush3.bf16.msra.mxu0 %v10915_v23 }
 0x2b8   : > { %3375 = vrot.lane.b32.xlu1 %v1800_v55, %s15853_s9  ;;  %v2094_v45 = vrot.slane %v2092_v42, 4  ;;  %v2504_v59 = vor.u32 %v2503_v20, %v2500_v11  ;;  %v2099_v8 = vrot.slane %v2097_v37, 3  ;;  %v2102_v50 = vrot.slane %v2100_v2, 4  ;;  %15912 = vst [vmem:[#allocation20_spill] sm:$0xff] %v12781_v38  ;;  %v1968_v13 = vld [vmem:[#allocation2 + $0x80] sm:$0xf8] }
 0x2b9   : > { %v2798_v24 = vshll.u32 %v2657_v49, 16  ;;  %v2803_v5 = vshrl.u32 %v10965_v26, 16  ;;  %v2797_v16 = vrot.slane %v2795_v62, 3  ;;  %v2806_v10 = vshll.u32 %v10965_v26, 16 }
 0x2ba   : > { %v2095_v27 = vor.u32 %v2094_v45, %v2091_v44  ;;  %v2505_v56 = vsel %vm1681_vm7, %v2496_v33, %v2504_v59  ;;  %v2103_v34 = vor.u32 %v2102_v50, %v2099_v8  ;;  %v1802_v30 = vshrl.u32 %v10966_v6, 16  ;;  %v12783_v55 = vpop.permute.xlu0 %3501  ;;  %v1969_v45 = vld [vmem:[#allocation2 + $0x88] sm:$0xf]  ;;  %v12790_v62 = vpop.permute.xlu1 %3343 }
 0x2bb   : > { %3441 = vrot.lane.b32.xlu0 %v2505_v56, %s11309_s16  ;;  %v2800_v12 = vrot.slane %v2798_v24, 4  ;;  %v2805_v15 = vrot.slane %v2803_v5, 3  ;;  %v1805_v31 = vshll.u32 %v10966_v6, 16  ;;  %v2808_v48 = vrot.slane %v2806_v10, 4  ;;  %15913 = vst [vmem:[#allocation21_spill] sm:$0xff] %v12783_v55  ;;  %15915 = vst [vmem:[#allocation22_spill] sm:$0xff] %v12790_v62 }
 0x2bc   : > { %v2104_v19 = vsel %vm1295_vm10, %v2095_v27, %v2103_v34  ;;  %v1804_v35 = vrot.slane %v1802_v30, 4  ;;  %v1810_v61 = vshrl.u32 %v1672_v40, 16  ;;  %v1813_v21 = vshll.u32 %v1672_v40, 16  ;;  %v2659_v40 = vld [vmem:[#allocation2 + $0xa0] sm:$0xf8] }
 0x2bd   : > { %3407 = vrot.lane.b32.xlu1 %v2104_v19, %s11311_s30  ;;  %v2801_v25 = vor.u32 %v2800_v12, %v2797_v16  ;;  %v1807_v32 = vrot.slane %v1805_v31, 5  ;;  %v2809_v28 = vor.u32 %v2808_v48, %v2805_v15  ;;  %v15914_v53 = vmov 0.0|0.0   ;;  %v10967_v31 = vld [vmem:[#allocation2 + $0xa8] sm:$0xf] }
 0x2be   : > { %v1812_v58 = vrot.slane %v1810_v61, 4  ;;  %v1815_v51 = vrot.slane %v1813_v21, 5  ;;  %10773 = vmatprep.subr.bf16.mxu0 %v15914_v53  ;;  %v2507_v33 = vshrl.u32 %v2266_v36, 16  ;;  %v2510_v20 = vshll.u32 %v2266_v36, 16  ;;  %v1673_v61 = vld [vmem:[#allocation2 + $0x88] sm:$0x1f] }
 0x2bf   : > { %v1808_v47 = vor.u32 %v1807_v32, %v1804_v35  ;;  %v2810_v11 = vsel %vm1295_vm10, %v2801_v25, %v2809_v28  ;;  %v2515_v37 = vshrl.u32 %v2362_v14, 16  ;;  %v2518_v44 = vshll.u32 %v2362_v14, 16  ;;  %v12792_v24 = vpop.permute.xlu0 %3503  ;;  %v10968_v25 = vld [vmem:[#allocation2 + $0x80] sm:$0xf0]  ;;  %v2369_v55 = vld [vmem:[#allocation2 + $0x108] sm:$0x1f] }
 0x2c0   : > { %3473 = vrot.lane.b32.xlu0 %v2810_v11, %s15853_s9  ;;  %v1816_v42 = vor.u32 %v1815_v51, %v1812_v58  ;;  %v2106_v2 = vshrl.u32 %v1968_v13, 16  ;;  %v2509_v3 = vrot.slane %v2507_v33, 4  ;;  %v2512_v59 = vrot.slane %v2510_v20, 5  ;;  %15916 = vst [vmem:[#allocation23_spill] sm:$0xff] %v12792_v24  ;;  %v12796_v21 = vpop.permute.xlu1 %3345  ;;  %v1263_v53 = vld [vmem:[#allocation2] sm:$0xf8] }
 0x2c1   : > { %v2517_v8 = vrot.slane %v2515_v37, 4  ;;  %v2520_v27 = vrot.slane %v2518_v44, 5  ;;  %v2109_v56 = vshll.u32 %v1968_v13, 16  ;;  %v2114_v60 = vshrl.u32 %v1969_v45, 16  ;;  %15917 = vst [vmem:[#allocation24_spill] sm:$0xff] %v12796_v21 }
 0x2c2   : > { %v1817_v49 = vsel %vm1681_vm7, %v1808_v47, %v1816_v42  ;;  %v2108_v50 = vrot.slane %v2106_v2, 3  ;;  %v2513_v63 = vor.u32 %v2512_v59, %v2509_v3  ;;  %v2117_v34 = vshll.u32 %v1969_v45, 16  ;;  %v2267_v37 = vld [vmem:[#allocation2 + $0xa0] sm:$0xf0]  ;;  %v2363_v44 = vld [vmem:[#allocation2 + $0xa8] sm:$0x1f] }
 0x2c3   : > { %3377 = vrot.lane.b32.xlu1 %v1817_v49, %s15853_s9  ;;  %v2521_v26 = vor.u32 %v2520_v27, %v2517_v8  ;;  %v2111_v5 = vrot.slane %v2109_v56, 4  ;;  %v2116_v16 = vrot.slane %v2114_v60, 3  ;;  %v2812_v12 = vshrl.u32 %v2659_v40, 16  ;;  %v12799_v36 = vpop.permute.xlu0 %3505  ;;  %v1970_v2 = vld [vmem:[#allocation2 + $0x90] sm:$0xf8] }
 0x2c4   : > { %v2119_v10 = vrot.slane %v2117_v34, 4  ;;  %v2815_v15 = vshll.u32 %v2659_v40, 16  ;;  %v2820_v48 = vshrl.u32 %v10967_v31, 16  ;;  %v2823_v35 = vshll.u32 %v10967_v31, 16  ;;  %15918 = vst [vmem:[#allocation25_spill] sm:$0xff] %v12799_v36  ;;  %v12803_v8 = vpop.permute.xlu1 %3347 }
 0x2c5   : > { %v2522_v6 = vsel %vm1681_vm7, %v2513_v63, %v2521_v26  ;;  %v2112_v30 = vor.u32 %v2111_v5, %v2108_v50  ;;  %v1819_v32 = vshrl.u32 %v10968_v25, 16  ;;  %v2814_v23 = vrot.slane %v2812_v12, 3  ;;  %15919 = vst [vmem:[#allocation26_spill] sm:$0xff] %v12803_v8  ;;  %v1971_v26 = vld [vmem:[#allocation2 + $0x98] sm:$0xf] }
 0x2c6   : > { %3443 = vrot.lane.b32.xlu0 %v2522_v6, %s11309_s16  ;;  %v2120_v19 = vor.u32 %v2119_v10, %v2116_v16  ;;  %v2817_v28 = vrot.slane %v2815_v15, 4  ;;  %v1822_v58 = vshll.u32 %v10968_v25, 16  ;;  %v2822_v14 = vrot.slane %v2820_v48, 3  ;;  %v2661_v25 = vld [vmem:[#allocation2 + $0xb0] sm:$0xf8] }
 0x2c7   : > { %v2825_v47 = vrot.slane %v2823_v35, 4  ;;  %v1821_v51 = vrot.slane %v1819_v32, 4  ;;  %v1827_v42 = vshrl.u32 %v1673_v61, 16  ;;  %v1830_v20 = vshll.u32 %v1673_v61, 16  ;;  %v3058_v21 = vld [vmem:[#allocation2 + $0x118] sm:$0x1f] }
 0x2c8   : > { %v2121_v41 = vsel %vm1295_vm10, %v2112_v30, %v2120_v19  ;;  %v2818_v13 = vor.u32 %v2817_v28, %v2814_v23  ;;  %v1824_v11 = vrot.slane %v1822_v58, 5  ;;  %v2524_v27 = vshrl.u32 %v2267_v37, 16  ;;  %v12806_v63 = vpop.permute.xlu0 %3507 }
 0x2c9   : > { %3409 = vrot.lane.b32.xlu1 %v2121_v41, %s11311_s30  ;;  %v2826_v33 = vor.u32 %v2825_v47, %v2822_v14  ;;  %v1829_v45 = vrot.slane %v1827_v42, 4  ;;  %v1832_v59 = vrot.slane %v1830_v20, 5  ;;  %v2527_v50 = vshll.u32 %v2267_v37, 16  ;;  %15920 = vst [vmem:[#allocation32_spill] sm:$0xff] %v12806_v63  ;;  %v12810_v32 = vpop.permute.xlu1 %3349  ;;  %v1674_v20 = vld [vmem:[#allocation2 + $0x98] sm:$0x1f] }
 0x2ca   : > { %v1825_v3 = vor.u32 %v1824_v11, %v1821_v51  ;;  %v2532_v56 = vshrl.u32 %v2363_v44, 16  ;;  %v2535_v34 = vshll.u32 %v2363_v44, 16  ;;  %v2123_v5 = vshrl.u32 %v1970_v2, 16  ;;  %15921 = vst [vmem:[#allocation27_spill] sm:$0xff] %v12810_v32  ;;  %v10970_v37 = vld [vmem:[#allocation2 + $0x90] sm:$0xf0] }
 0x2cb   : > { %v2827_v49 = vsel %vm1295_vm10, %v2818_v13, %v2826_v33  ;;  %v1833_v60 = vor.u32 %v1832_v59, %v1829_v45  ;;  %v2526_v40 = vrot.slane %v2524_v27, 4  ;;  %v2529_v16 = vrot.slane %v2527_v50, 5  ;;  %v10969_v13 = vld [vmem:[#allocation2 + $0xb8] sm:$0xf]  ;;  %v10986_v63 = vld [vmem:[#allocation2 + $0x10] sm:$0xf0] }
 0x2cc   : > { %3475 = vrot.lane.b32.xlu0 %v2827_v49, %s15853_s9  ;;  %v2534_v10 = vrot.slane %v2532_v56, 4  ;;  %v2126_v6 = vshll.u32 %v1970_v2, 16  ;;  %v2537_v19 = vrot.slane %v2535_v34, 5  ;;  %v2125_v12 = vrot.slane %v2123_v5, 3  ;;  %v12812_v23 = vpop.permute.xlu0 %3509 }
 0x2cd   : > { %v1834_v30 = vsel %vm1681_vm7, %v1825_v3, %v1833_v60  ;;  %v2530_v15 = vor.u32 %v2529_v16, %v2526_v40  ;;  %v2131_v48 = vshrl.u32 %v1971_v26, 16  ;;  %v2134_v61 = vshll.u32 %v1971_v26, 16  ;;  %15922 = vst [vmem:[#allocation28_spill] sm:$0xff] %v12812_v23  ;;  %v12817_v56 = vpop.permute.xlu1 %3351  ;;  %v12958_v23 = vld [vmem:[#allocation2 + $0x38] sm:$0xf] }
 0x2ce   : > { %3379 = vrot.lane.b32.xlu1 %v1834_v30, %s15853_s9  ;;  %v2128_v31 = vrot.slane %v2126_v6, 4  ;;  %v2538_v35 = vor.u32 %v2537_v19, %v2534_v10  ;;  %v2829_v47 = vshrl.u32 %v2661_v25, 16  ;;  %v2832_v51 = vshll.u32 %v2661_v25, 16  ;;  %15923 = vst [vmem:[#allocation33_spill] sm:$0xff] %v12817_v56  ;;  %v2268_v10 = vld [vmem:[#allocation2 + $0xb0] sm:$0xf0] }
 0x2cf   : > { %v2133_v41 = vrot.slane %v2131_v48, 3  ;;  %v2136_v14 = vrot.slane %v2134_v61, 4  ;;  %v2837_v11 = vshrl.u32 %v10969_v13, 16  ;;  %v2840_v33 = vshll.u32 %v10969_v13, 16  ;;  %v2364_v6 = vld [vmem:[#allocation2 + $0xb8] sm:$0x1f] }
 0x2d0   : > { %v2539_v28 = vsel %vm1681_vm7, %v2530_v15, %v2538_v35  ;;  %v2129_v58 = vor.u32 %v2128_v31, %v2125_v12  ;;  %v1836_v44 = vshrl.u32 %v10970_v37, 16  ;;  %v2831_v45 = vrot.slane %v2829_v47, 3  ;;  %v12820_v5 = vpop.permute.xlu0 %3511  ;;  %v1972_v19 = vld [vmem:[#allocation2 + $0xa0] sm:$0xf8]  ;;  %v12953_v56 = vld [vmem:[#allocation2 + $0xe8] sm:$0xf] }
 0x2d1   : > { %3445 = vrot.lane.b32.xlu0 %v2539_v28, %s11309_s16  ;;  %v2137_v42 = vor.u32 %v2136_v14, %v2133_v41  ;;  %v2834_v2 = vrot.slane %v2832_v51, 4  ;;  %v2839_v49 = vrot.slane %v2837_v11, 3  ;;  %v1839_v3 = vshll.u32 %v10970_v37, 16  ;;  %15924 = vst [vmem:[#allocation29_spill] sm:$0xff] %v12820_v5  ;;  %v1973_v28 = vld [vmem:[#allocation2 + $0xa8] sm:$0xf]  ;;  %v12824_v14 = vpop.permute.xlu1 %3353 }
 0x2d2   : > { %v2842_v27 = vrot.slane %v2840_v33, 4  ;;  %v1838_v50 = vrot.slane %v1836_v44, 4  ;;  %v1844_v26 = vshrl.u32 %v1674_v20, 16  ;;  %v1847_v16 = vshll.u32 %v1674_v20, 16  ;;  %15925 = vst [vmem:[#allocation30_spill] sm:$0xff] %v12824_v14  ;;  %15946 = vst [vmem:[#allocation55_spill] sm:$0xff] %v12953_v56 }
 0x2d3   : > { %v2138_v59 = vsel %vm1295_vm10, %v2129_v58, %v2137_v42  ;;  %v2835_v60 = vor.u32 %v2834_v2, %v2831_v45  ;;  %v1841_v34 = vrot.slane %v1839_v3, 5  ;;  %v2541_v48 = vshrl.u32 %v2268_v10, 16 }
 0x2d4   : > { %3411 = vrot.lane.b32.xlu1 %v2138_v59, %s11311_s30  ;;  %v2843_v40 = vor.u32 %v2842_v27, %v2839_v49  ;;  %v1846_v30 = vrot.slane %v1844_v26, 4  ;;  %v1849_v31 = vrot.slane %v1847_v16, 5  ;;  %v2544_v35 = vshll.u32 %v2268_v10, 16  ;;  %v12826_v42 = vpop.permute.xlu0 %3513  ;;  %v2663_v59 = vld [vmem:[#allocation2 + $0xc0] sm:$0xf8] }
 0x2d5   : > { %v1842_v15 = vor.u32 %v1841_v34, %v1838_v50  ;;  %v2549_v61 = vshrl.u32 %v2364_v6, 16  ;;  %v2552_v41 = vshll.u32 %v2364_v6, 16  ;;  %v2140_v58 = vshrl.u32 %v1972_v19, 16  ;;  %15926 = vst [vmem:[#allocation31_spill] sm:$0xff] %v12826_v42  ;;  %v12831_v26 = vpop.permute.xlu1 %3355  ;;  %v10971_v10 = vld [vmem:[#allocation2 + $0xc8] sm:$0xf] }
 0x2d6   : > { %v2844_v12 = vsel %vm1295_vm10, %v2835_v60, %v2843_v40  ;;  %v1850_v25 = vor.u32 %v1849_v31, %v1846_v30  ;;  %v2543_v47 = vrot.slane %v2541_v48, 4  ;;  %v2546_v51 = vrot.slane %v2544_v35, 5  ;;  %15927 = vst [vmem:[#allocation36_spill] sm:$0xff] %v12831_v26  ;;  %v10972_v31 = vld [vmem:[#allocation2 + $0xa0] sm:$0xf0] }
 0x2d7   : > { %3477 = vrot.lane.b32.xlu0 %v2844_v12, %s15853_s9  ;;  %v2551_v13 = vrot.slane %v2549_v61, 4  ;;  %v2143_v11 = vshll.u32 %v1972_v19, 16  ;;  %v2554_v20 = vrot.slane %v2552_v41, 5  ;;  %v2142_v37 = vrot.slane %v2140_v58, 3  ;;  %v2669_v42 = vld [vmem:[#allocation2 + $0xf0] sm:$0xf8] }
 0x2d8   : > { %v1851_v33 = vsel %vm1681_vm7, %v1842_v15, %v1850_v25  ;;  %v2547_v44 = vor.u32 %v2546_v51, %v2543_v47  ;;  %v2148_v2 = vshrl.u32 %v1973_v28, 16  ;;  %v2151_v3 = vshll.u32 %v1973_v28, 16  ;;  %v12834_v30 = vpop.permute.xlu0 %3515  ;;  %v1675_v15 = vld [vmem:[#allocation2 + $0xa8] sm:$0x1f] }
 0x2d9   : > { %3381 = vrot.lane.b32.xlu1 %v1851_v33, %s15853_s9  ;;  %v2145_v45 = vrot.slane %v2143_v11, 4  ;;  %v2555_v49 = vor.u32 %v2554_v20, %v2551_v13  ;;  %v2846_v40 = vshrl.u32 %v2663_v59, 16  ;;  %v2849_v16 = vshll.u32 %v2663_v59, 16  ;;  %15928 = vst [vmem:[#allocation37_spill] sm:$0xff] %v12834_v30 }
 0x2da   : > { %v2150_v27 = vrot.slane %v2148_v2, 3  ;;  %v2153_v34 = vrot.slane %v2151_v3, 4  ;;  %v2854_v6 = vshrl.u32 %v10971_v10, 16  ;;  %v2857_v12 = vshll.u32 %v10971_v10, 16 }
 0x2db   : > { %v2556_v50 = vsel %vm1681_vm7, %v2547_v44, %v2555_v49  ;;  %v2146_v60 = vor.u32 %v2145_v45, %v2142_v37  ;;  %v1853_v48 = vshrl.u32 %v10972_v31, 16  ;;  %v2848_v35 = vrot.slane %v2846_v40, 3  ;;  %v2269_v37 = vld [vmem:[#allocation2 + $0xc0] sm:$0xf0]  ;;  %v2365_v44 = vld [vmem:[#allocation2 + $0xc8] sm:$0x1f]  ;;  %v12838_v45 = vpop.permute.xlu1 %3357 }
 0x2dc   : > { %3447 = vrot.lane.b32.xlu0 %v2556_v50, %s11309_s16  ;;  %v2154_v19 = vor.u32 %v2153_v34, %v2150_v27  ;;  %v2851_v61 = vrot.slane %v2849_v16, 4  ;;  %v2856_v25 = vrot.slane %v2854_v6, 3  ;;  %v1856_v41 = vshll.u32 %v10972_v31, 16  ;;  %15929 = vst [vmem:[#allocation38_spill] sm:$0xff] %v12838_v45  ;;  %v1974_v49 = vld [vmem:[#allocation2 + $0xb0] sm:$0xf8]  ;;  %v12840_v3 = vpop.permute.xlu0 %3517 }
 0x2dd   : > { %v2859_v58 = vrot.slane %v2857_v12, 4  ;;  %v1855_v47 = vrot.slane %v1853_v48, 4  ;;  %v1861_v11 = vshrl.u32 %v1675_v15, 16  ;;  %v1864_v20 = vshll.u32 %v1675_v15, 16  ;;  %15930 = vst [vmem:[#allocation39_spill] sm:$0xff] %v12840_v3 }
 0x2de   : > { %v2155_v28 = vsel %vm1295_vm10, %v2146_v60, %v2154_v19  ;;  %v2852_v51 = vor.u32 %v2851_v61, %v2848_v35  ;;  %v1858_v13 = vrot.slane %v1856_v41, 5  ;;  %v2558_v60 = vshrl.u32 %v2269_v37, 16  ;;  %v1975_v6 = vld [vmem:[#allocation2 + $0xb8] sm:$0xf]  ;;  %v1265_v3 = vld [vmem:[#allocation2 + $0x10] sm:$0xf8] }
 0x2df   : > { %3413 = vrot.lane.b32.xlu1 %v2155_v28, %s11311_s30  ;;  %v2860_v33 = vor.u32 %v2859_v58, %v2856_v25  ;;  %v1863_v2 = vrot.slane %v1861_v11, 4  ;;  %v1866_v50 = vrot.slane %v1864_v20, 5  ;;  %v2561_v34 = vshll.u32 %v2269_v37, 16  ;;  %v12845_v41 = vpop.permute.xlu1 %3359 }
 0x2e0   : > { %v1859_v27 = vor.u32 %v1858_v13, %v1855_v47  ;;  %v2566_v40 = vshrl.u32 %v2365_v44, 16  ;;  %v2569_v10 = vshll.u32 %v2365_v44, 16  ;;  %v2157_v19 = vshrl.u32 %v1974_v49, 16  ;;  %15931 = vst [vmem:[#allocation40_spill] sm:$0xff] %v12845_v41  ;;  %v10978_v41 = vld [vmem:[#allocation2 + $0x18] sm:$0xf] }
 0x2e1   : > { %v2861_v59 = vsel %vm1295_vm10, %v2852_v51, %v2860_v33  ;;  %v1867_v16 = vor.u32 %v1866_v50, %v1863_v2  ;;  %v2560_v12 = vrot.slane %v2558_v60, 4  ;;  %v2563_v15 = vrot.slane %v2561_v34, 5  ;;  %v12848_v51 = vpop.permute.xlu0 %3519  ;;  %v2665_v33 = vld [vmem:[#allocation2 + $0xd0] sm:$0xf8] }
 0x2e2   : > { %3479 = vrot.lane.b32.xlu0 %v2861_v59, %s15853_s9  ;;  %v2568_v31 = vrot.slane %v2566_v40, 4  ;;  %v2160_v48 = vshll.u32 %v1974_v49, 16  ;;  %v2571_v61 = vrot.slane %v2569_v10, 5  ;;  %v2159_v25 = vrot.slane %v2157_v19, 3  ;;  %15932 = vst [vmem:[#allocation41_spill] sm:$0xff] %v12848_v51 }
 0x2e3   : > { %v1868_v35 = vsel %vm1681_vm7, %v1859_v27, %v1867_v16  ;;  %v2564_v28 = vor.u32 %v2563_v15, %v2560_v12  ;;  %v2165_v47 = vshrl.u32 %v1975_v6, 16  ;;  %v2168_v11 = vshll.u32 %v1975_v6, 16  ;;  %v10973_v27 = vld [vmem:[#allocation2 + $0xd8] sm:$0xf]  ;;  %v10974_v16 = vld [vmem:[#allocation2 + $0xb0] sm:$0xf0]  ;;  %v12852_v19 = vpop.permute.xlu1 %3361 }
 0x2e4   : > { %3383 = vrot.lane.b32.xlu1 %v1868_v35, %s15853_s9  ;;  %v2162_v58 = vrot.slane %v2160_v48, 4  ;;  %v2572_v13 = vor.u32 %v2571_v61, %v2568_v31  ;;  %v2863_v49 = vshrl.u32 %v2665_v33, 16  ;;  %v2866_v59 = vshll.u32 %v2665_v33, 16  ;;  %v1676_v40 = vld [vmem:[#allocation2 + $0xb8] sm:$0x1f]  ;;  %15933 = vst [vmem:[#allocation42_spill] sm:$0xff] %v12852_v19 }
 0x2e5   : > { %v2167_v20 = vrot.slane %v2165_v47, 3  ;;  %v2170_v2 = vrot.slane %v2168_v11, 4  ;;  %v2871_v50 = vshrl.u32 %v10973_v27, 16  ;;  %v2874_v34 = vshll.u32 %v10973_v27, 16  ;;  %v2270_v33 = vld [vmem:[#allocation2 + $0xd0] sm:$0xf0] }
 0x2e6   : > { %v2573_v37 = vsel %vm1681_vm7, %v2564_v28, %v2572_v13  ;;  %v2163_v44 = vor.u32 %v2162_v58, %v2159_v25  ;;  %v1870_v10 = vshrl.u32 %v10974_v16, 16  ;;  %v2865_v6 = vrot.slane %v2863_v49, 3  ;;  %v12854_v48 = vpop.permute.xlu0 %3427  ;;  %v1978_v19 = vld [vmem:[#allocation2 + $0xd0] sm:$0xf8] }
 0x2e7   : > { %3449 = vrot.lane.b32.xlu0 %v2573_v37, %s11309_s16  ;;  %v2171_v60 = vor.u32 %v2170_v2, %v2167_v20  ;;  %v2868_v12 = vrot.slane %v2866_v59, 4  ;;  %v2873_v15 = vrot.slane %v2871_v50, 3  ;;  %v1873_v31 = vshll.u32 %v10974_v16, 16  ;;  %v2366_v20 = vld [vmem:[#allocation2 + $0xd8] sm:$0x1f] }
 0x2e8   : > { %v2876_v61 = vrot.slane %v2874_v34, 4  ;;  %v1872_v25 = vrot.slane %v1870_v10, 4  ;;  %v1878_v47 = vshrl.u32 %v1676_v40, 16  ;;  %v1881_v11 = vshll.u32 %v1676_v40, 16  ;;  %v1976_v2 = vld [vmem:[#allocation2 + $0xc0] sm:$0xf8]  ;;  %v12859_v50 = vpop.permute.xlu1 %3459 }
 0x2e9   : > { %v2172_v35 = vsel %vm1295_vm10, %v2163_v44, %v2171_v60  ;;  %v2869_v28 = vor.u32 %v2868_v12, %v2865_v6  ;;  %v1875_v58 = vrot.slane %v1873_v31, 5  ;;  %v2575_v44 = vshrl.u32 %v2270_v33, 16  ;;  %v1977_v12 = vld [vmem:[#allocation2 + $0xc8] sm:$0xf] }
 0x2ea   : > { %3415 = vrot.lane.b32.xlu1 %v2172_v35, %s11311_s30  ;;  %v2877_v13 = vor.u32 %v2876_v61, %v2873_v15  ;;  %v1880_v37 = vrot.slane %v1878_v47, 4  ;;  %v1883_v27 = vrot.slane %v1881_v11, 5  ;;  %v2578_v60 = vshll.u32 %v2270_v33, 16 }
 0x2eb   : > { %v1876_v59 = vor.u32 %v1875_v58, %v1872_v25  ;;  %v2583_v34 = vshrl.u32 %v2366_v20, 16  ;;  %v12862_v16 = vpop.permute.xlu0 %3429  ;;  %v2586_v6 = vshll.u32 %v2366_v20, 16  ;;  %v2174_v15 = vshrl.u32 %v1976_v2, 16 }
 0x2ec   : > { %v2878_v49 = vsel %vm1295_vm10, %v2869_v28, %v2877_v13  ;;  %v1884_v40 = vor.u32 %v1883_v27, %v1880_v37  ;;  %v2577_v35 = vrot.slane %v2575_v44, 4  ;;  %v2580_v61 = vrot.slane %v2578_v60, 5 }
 0x2ed   : > { %3481 = vrot.lane.b32.xlu0 %v2878_v49, %s15853_s9  ;;  %v2585_v25 = vrot.slane %v2583_v34, 4  ;;  %v2177_v28 = vshll.u32 %v1976_v2, 16  ;;  %v2588_v13 = vrot.slane %v2586_v6, 5  ;;  %v2176_v11 = vrot.slane %v2174_v15, 3  ;;  %v10975_v6 = vld [vmem:[#allocation2 + $0x8] sm:$0xf] }
 0x2ee   : > { %v1885_v47 = vsel %vm1681_vm7, %v1876_v59, %v1884_v40  ;;  %v2581_v37 = vor.u32 %v2580_v61, %v2577_v35  ;;  %v2182_v49 = vshrl.u32 %v1977_v12, 16  ;;  %v2185_v57 = vshll.u32 %v1977_v12, 16  ;;  %v12874_v44 = vpop.permute.xlu1 %3395 }
 0x2ef   : > { %3385 = vrot.lane.b32.xlu1 %v1885_v47, %s15853_s9  ;;  %v2179_v20 = vrot.slane %v2177_v28, 4  ;;  %v2589_v27 = vor.u32 %v2588_v13, %v2585_v25  ;;  %v1305_v15 = vshrl.u32 %v10975_v6, 16  ;;  %v2880_v35 = vshrl.u32 %v2667_v54, 16  ;;  %v10976_v28 = vld [vmem:[#allocation2 + $0xe8] sm:$0xf] }
 0x2f0   : > { %v2184_v60 = vrot.slane %v2182_v49, 3  ;;  %v12876_v2 = vpop.permute.xlu0 %3461  ;;  %v2187_v40 = vrot.slane %v2185_v57, 4  ;;  %v2883_v61 = vshll.u32 %v2667_v54, 16  ;;  %v2888_v25 = vshrl.u32 %v10976_v28, 16  ;;  %v10977_v49 = vld [vmem:[#allocation2 + $0xc0] sm:$0xf0] }
 0x2f1   : > { %v2590_v34 = vsel %vm1681_vm7, %v2581_v37, %v2589_v27  ;;  %v2180_v59 = vor.u32 %v2179_v20, %v2176_v11  ;;  %v1308_v12 = vshll.u32 %v10975_v6, 16  ;;  %v2891_v13 = vshll.u32 %v10976_v28, 16 }
 0x2f2   : > { %3451 = vrot.lane.b32.xlu0 %v2590_v34, %s11309_s16  ;;  %v2188_v47 = vor.u32 %v2187_v40, %v2184_v60  ;;  %v2882_v37 = vrot.slane %v2880_v35, 3  ;;  %v2885_v11 = vrot.slane %v2883_v61, 4  ;;  %v2890_v57 = vrot.slane %v2888_v25, 3 }
 0x2f3   : > { %v1890_v20 = vshll.u32 %v10977_v49, 16  ;;  %v1297_v60 = vshrl.u32 %v1263_v53, 16  ;;  %v1300_v25 = vshll.u32 %v1263_v53, 16 }
 0x2f4   : > { %v2189_v34 = vsel %vm1295_vm10, %v2180_v59, %v2188_v47  ;;  %v2886_v40 = vor.u32 %v2885_v11, %v2882_v37  ;;  %v2271_v59 = vld [vmem:[#allocation2 + $0xe0] sm:$0xf0]  ;;  %v2367_v47 = vld [vmem:[#allocation2 + $0xe8] sm:$0x1f] }
 0x2f5   : > { %3417 = vrot.lane.b32.xlu1 %v2189_v34, %s11311_s30  ;;  %v1892_v28 = vrot.slane %v1890_v20, 5  ;;  %v1322_v34 = vshrl.u32 %v10978_v41, 16  ;;  %v12899_v51 = vrot.slane %v1297_v60, 3  ;;  %v2592_v53 = vshrl.u32 %v2271_v59, 16 }
 0x2f6   : > { %v12890_v35 = vpop.permute.xlu0 %3431 }
 0x2f7   : > { %v2594_v26 = vrot.slane %v2592_v53, 4 }
 0x2fb   : > { %v12906_v60 = vpop.permute.xlu0 %3463 }
 0x304   : > { %v12864_v10 = vpop.f32.mrb[4].mxu0 }
 0x305   : > { %15934 = vst [vmem:[#allocation43_spill] sm:$0xff] %v12864_v10  ;;  %v12866_v31 = vpop.f32.mrb[5].mxu0 }
 0x306   : > { %15935 = vst [vmem:[#allocation44_spill] sm:$0xff] %v12866_v31  ;;  %v12868_v58 = vpop.f32.mrb[6].mxu0  ;;  %v12885_v31 = vpop.permute.xlu1 %3365 }
 0x307   : > { %15936 = vst [vmem:[#allocation45_spill] sm:$0xff] %v12868_v58  ;;  %v12871_v33 = vpop.f32.mrb[7].mxu0  ;;  %v1887_v58 = vshrl.u32 %v10977_v49, 16 }
 0x308   : > { %15937 = vst [vmem:[#allocation46_spill] sm:$0xff] %v12871_v33  ;;  %v2893_v33 = vrot.slane %v2891_v13, 4  ;;  %v12896_v13 = vrot.slane %v1308_v12, 4  ;;  %v2603_v12 = vshll.u32 %v2367_v47, 16 }
 0x309   : > { %v1889_v54 = vrot.slane %v1887_v58, 4  ;;  %v12894_v58 = vrot.slane %v1305_v15, 3 }
 0x30a   : > { %v2894_v49 = vor.u32 %v2893_v33, %v2890_v57  ;;  %v2600_v33 = vshrl.u32 %v2367_v47, 16  ;;  %v12902_v57 = vrot.slane %v1300_v25, 4  ;;  %v12904_v45 = vpop.permute.xlu1 %3397 }
 0x30b   : > { %v1893_v11 = vor.u32 %v1892_v28, %v1889_v54 }
 0x30c   : > { %v2895_v37 = vsel %vm1295_vm10, %v2886_v40, %v2894_v49  ;;  %v2602_v54 = vrot.slane %v2600_v33, 4  ;;  %v2605_v49 = vrot.slane %v2603_v12, 5  ;;  %v1303_v53 = vor.u32 %v12902_v57, %v12899_v51  ;;  %v10979_v51 = vld [vmem:[#allocation2 + $0xf8] sm:$0xf] }
 0x30d   : > { %v12880_v10 = vpop.f32.mrb[8].mxu0  ;;  %3483 = vrot.lane.b32.xlu0 %v2895_v37, %s15853_s9  ;;  %v1325_v37 = vshll.u32 %v10978_v41, 16  ;;  %v1317_v33 = vshll.u32 %v1265_v3, 16  ;;  %v2905_v57 = vshrl.u32 %v10979_v51, 16 }
 0x30e   : > { %15938 = vst [vmem:[#allocation47_spill] sm:$0xff] %v12880_v10  ;;  %v12882_v27 = vpop.f32.mrb[9].mxu0  ;;  %v1895_v10 = vshrl.u32 %v1677_v1, 16  ;;  %v2606_v30 = vor.u32 %v2605_v49, %v2602_v54  ;;  %v12917_v12 = vpop.permute.xlu1 %3367 }
 0x30f   : > { %15939 = vst [vmem:[#allocation48_spill] sm:$0xff] %v12882_v27  ;;  %v12887_v6 = vpop.f32.mrb[10].mxu0  ;;  %v1898_v27 = vshll.u32 %v1677_v1, 16  ;;  %v2595_v1 = vshll.u32 %v2271_v59, 16  ;;  %v12922_v54 = vpop.permute.xlu0 %3433  ;;  %v2907_v49 = vrot.slane %v2905_v57, 3 }
 0x310   : > { %15940 = vst [vmem:[#allocation49_spill] sm:$0xff] %v12887_v6  ;;  %v12892_v61 = vpop.f32.mrb[11].mxu0  ;;  %v1897_v6 = vrot.slane %v1895_v10, 4  ;;  %v2191_v10 = vshrl.u32 %v1978_v19, 16 }
 0x311   : > { %15941 = vst [vmem:[#allocation50_spill] sm:$0xff] %v12892_v61  ;;  %v1900_v20 = vrot.slane %v1898_v27, 5  ;;  %v1979_v61 = vld [vmem:[#allocation2 + $0xd8] sm:$0xf]  ;;  %v2597_v40 = vrot.slane %v2595_v1, 5  ;;  %v2194_v27 = vshll.u32 %v1978_v19, 16  ;;  %v1311_v19 = vor.u32 %v12896_v13, %v12894_v58 }
 0x312   : > { %v2193_v59 = vrot.slane %v2191_v10, 3  ;;  %v2199_v47 = vshrl.u32 %v1979_v61, 16  ;;  %v2202_v14 = vshll.u32 %v1979_v61, 16  ;;  %v12914_v1 = vrot.slane %v1322_v34, 3  ;;  %v1678_v34 = vld [vmem:[#allocation2 + $0xd8] sm:$0x1f] }
 0x313   : > { %v1901_v15 = vor.u32 %v1900_v20, %v1897_v6  ;;  %v2598_v6 = vor.u32 %v2597_v40, %v2594_v26  ;;  %v2196_v25 = vrot.slane %v2194_v27, 4  ;;  %v1314_v20 = vshrl.u32 %v1265_v3, 16 }
 0x314   : > { %v2204_v26 = vrot.slane %v2202_v14, 4  ;;  %v12919_v10 = vrot.slane %v1325_v37, 4  ;;  %v2897_v61 = vshrl.u32 %v2669_v42, 16  ;;  %v2900_v40 = vshll.u32 %v2669_v42, 16 }
 0x315   : > { %v1902_v28 = vsel %vm1681_vm7, %v1893_v11, %v1901_v15  ;;  %v2201_v11 = vrot.slane %v2199_v47, 3  ;;  %v2607_v41 = vsel %vm1681_vm7, %v2598_v6, %v2606_v30  ;;  %v2197_v15 = vor.u32 %v2196_v25, %v2193_v59  ;;  %v10980_v30 = vld [vmem:[#allocation2 + $0xd0] sm:$0xf0] }
 0x316   : > { %3387 = vrot.lane.b32.xlu1 %v1902_v28, %s15853_s9  ;;  %3453 = vrot.lane.b32.xlu0 %v2607_v41, %s11309_s16  ;;  %v12924_v58 = vrot.slane %v1314_v20, 3  ;;  %v2908_v3 = vshll.u32 %v10979_v51, 16  ;;  %v1904_v27 = vshrl.u32 %v10980_v30, 16  ;;  %v2899_v14 = vrot.slane %v2897_v61, 3  ;;  %v1267_v20 = vld [vmem:[#allocation2 + $0x20] sm:$0xf8] }
 0x317   : > { %v2205_v13 = vor.u32 %v2204_v26, %v2201_v11  ;;  %v2902_v28 = vrot.slane %v2900_v40, 4  ;;  %v1907_v59 = vshll.u32 %v10980_v30, 16  ;;  %v12928_v6 = vrot.slane %v1317_v33, 4  ;;  %v12936_v30 = vld [vmem:[#allocation2 + $0xf0] sm:$0xf0] }
 0x318   : > { %v2910_v25 = vrot.slane %v2908_v3, 4  ;;  %v1906_v47 = vrot.slane %v1904_v27, 4  ;;  %v1912_v51 = vshrl.u32 %v1678_v34, 16  ;;  %v1915_v57 = vshll.u32 %v1678_v34, 16  ;;  %v2368_v33 = vld [vmem:[#allocation2 + $0xf8] sm:$0x1f] }
 0x319   : > { %v2206_v42 = vsel %vm1295_vm10, %v2197_v15, %v2205_v13  ;;  %v2903_v11 = vor.u32 %v2902_v28, %v2899_v14  ;;  %v1909_v26 = vrot.slane %v1907_v59, 5  ;;  %v10981_v13 = vld [vmem:[#allocation2 + $0x28] sm:$0xf]  ;;  %v1312_v27 = vsel %vm1295_vm10, %v1303_v53, %v1311_v19  ;;  %v1980_v59 = vld [vmem:[#allocation2 + $0xe0] sm:$0xf8] }
 0x31a   : > { %3419 = vrot.lane.b32.xlu1 %v2206_v42, %s11311_s30  ;;  %v2911_v40 = vor.u32 %v2910_v25, %v2907_v49  ;;  %v1339_v3 = vshrl.u32 %v10981_v13, 16  ;;  %v1328_v14 = vor.u32 %v12919_v10, %v12914_v1  ;;  %v1914_v28 = vrot.slane %v1912_v51, 4  ;;  %v12945_v42 = vpop.permute.xlu0 %3465 }
 0x31b   : > { %v1320_v34 = vor.u32 %v12928_v6, %v12924_v58  ;;  %v1910_v25 = vor.u32 %v1909_v26, %v1906_v47  ;;  %v2612_v53 = vshll.u32 %v12936_v30, 16  ;;  %v2617_v19 = vshrl.u32 %v2368_v33, 16 }
 0x31c   : > { %v2912_v49 = vsel %vm1295_vm10, %v2903_v11, %v2911_v40  ;;  %v1334_v1 = vshll.u32 %v1267_v20, 16  ;;  %v2620_v51 = vshll.u32 %v2368_v33, 16  ;;  %v2208_v5 = vshrl.u32 %v1980_v59, 16 }
 0x31d   : > { %3485 = vrot.lane.b32.xlu0 %v2912_v49, %s15853_s9  ;;  %v2614_v58 = vrot.slane %v2612_v53, 5  ;;  %v2619_v6 = vrot.slane %v2617_v19, 4  ;;  %v2211_v11 = vshll.u32 %v1980_v59, 16  ;;  %v1342_v47 = vshll.u32 %v10981_v13, 16  ;;  %v2671_v19 = vld [vmem:[#allocation2 + $0x100] sm:$0xf8] }
 0x31e   : > { %v2622_v40 = vrot.slane %v2620_v51, 5  ;;  %v2219_v53 = vshll.u32 %v12953_v56, 16  ;;  %v12982_v13 = vrot.slane %v1339_v3, 3 }
 0x31f   : > { %v2213_v33 = vrot.slane %v2211_v11, 4 }
 0x320   : > { %v12926_v37 = vpop.f32.mrb[12].mxu0 }
 0x321   : > { %15942 = vst [vmem:[#allocation51_spill] sm:$0xff] %v12926_v37  ;;  %v12931_v41 = vpop.f32.mrb[13].mxu0  ;;  %v12938_v37 = vpop.permute.xlu1 %3399 }
 0x322   : > { %15943 = vst [vmem:[#allocation52_spill] sm:$0xff] %v12931_v41  ;;  %v12934_v61 = vpop.f32.mrb[14].mxu0  ;;  %v1331_v41 = vshrl.u32 %v1267_v20, 16  ;;  %v12987_v20 = vrot.slane %v1342_v47, 4 }
 0x323   : > { %15944 = vst [vmem:[#allocation53_spill] sm:$0xff] %v12934_v61  ;;  %v12940_v15 = vpop.f32.mrb[15].mxu0  ;;  %v1917_v61 = vrot.slane %v1915_v57, 5  ;;  %v2210_v57 = vrot.slane %v2208_v5, 3  ;;  %v12970_v5 = vsel %vm823_vm4, %v1312_v27, %v12694_v43 }
 0x324   : > { %15945 = vst [vmem:[#allocation54_spill] sm:$0xff] %v12940_v15  ;;  %v2609_v15 = vshrl.u32 %v12936_v30, 16  ;;  %v12976_v51 = vrot.slane %v1331_v41, 3  ;;  %v2917_v41 = vshll.u32 %v2671_v19, 16 }
 0x325   : > { %v1918_v10 = vor.u32 %v1917_v61, %v1914_v28  ;;  %v12956_v49 = vpop.permute.xlu1 %3369  ;;  %v12963_v28 = vpop.permute.xlu0 %3435  ;;  %v2214_v27 = vor.u32 %v2213_v33, %v2210_v57 }
 0x326   : > { %v2611_v32 = vrot.slane %v2609_v15, 4  ;;  %v2216_v15 = vshrl.u32 %v12953_v56, 16  ;;  %v2919_v47 = vrot.slane %v2917_v41, 4  ;;  %v10985_v56 = vld [vmem:[#allocation2 + $0x18] sm:$0xf] }
 0x327   : > { %v1919_v26 = vsel %vm1681_vm7, %v1910_v25, %v1918_v10  ;;  %v2623_v25 = vor.u32 %v2622_v40, %v2619_v6  ;;  %v2221_v6 = vrot.slane %v2219_v53, 4  ;;  %v2307_v8 = vrot.slane %v10985_v56, 4 }
 0x328   : > { %3389 = vrot.lane.b32.xlu1 %v1919_v26, %s15853_s9  ;;  %v2615_v61 = vor.u32 %v2614_v58, %v2611_v32  ;;  %v1329_v32 = vsel %vm1295_vm10, %v1320_v34, %v1328_v14  ;;  %v12978_v58 = vrot.slane %v1334_v1, 4  ;;  %v2218_v11 = vrot.slane %v2216_v15, 3  ;;  %v10983_v34 = vld [vmem:[#allocation2 + $0x108] sm:$0xf] }
 0x329   : > { %v12965_v59 = vpop.f32.mrb[16].mxu0  ;;  %v2914_v14 = vshrl.u32 %v2671_v19, 16  ;;  %v2922_v1 = vshrl.u32 %v10983_v34, 16  ;;  %v12992_v15 = vsel %vm823_vm4, %v1329_v32, %v12720_v52  ;;  %v12994_v33 = vpop.permute.xlu1 %3401  ;;  %v2306_v19 = vrot.slane %v10986_v63, 4 }
 0x32a   : > { %15947 = vst [vmem:[#allocation56_spill] sm:$0xff] %v12965_v59  ;;  %v12973_v10 = vpop.f32.mrb[17].mxu0  ;;  %v2624_v43 = vsel %vm1681_vm7, %v2615_v61, %v2623_v25  ;;  %v2222_v3 = vor.u32 %v2221_v6, %v2218_v11  ;;  %v1679_v59 = vld [vmem:[#allocation2 + $0xe8] sm:$0x1f]  ;;  %v10984_v61 = vld [vmem:[#allocation2 + $0xe0] sm:$0xf0] }
 0x32b   : > { %15948 = vst [vmem:[#allocation57_spill] sm:$0xff] %v12973_v10  ;;  %v12980_v26 = vpop.f32.mrb[18].mxu0  ;;  %3455 = vrot.lane.b32.xlu0 %v2624_v43, %s11309_s16  ;;  %v1921_v57 = vshrl.u32 %v10984_v61, 16  ;;  %v2916_v25 = vrot.slane %v2914_v14, 3  ;;  %v2924_v53 = vrot.slane %v2922_v1, 3  ;;  %v12996_v43 = vpop.permute.xlu0 %3467 }
 0x32c   : > { %15949 = vst [vmem:[#allocation58_spill] sm:$0xff] %v12980_v26  ;;  %v12985_v40 = vpop.f32.mrb[19].mxu0  ;;  %v2925_v26 = vshll.u32 %v10983_v34, 16  ;;  %v2223_v10 = vsel %vm1295_vm10, %v2214_v27, %v2222_v3  ;;  %v13001_v11 = vld [vmem:[#allocation2 + $0x110] sm:$0xf0]  ;;  %v1929_v34 = vshrl.u32 %v1679_v59, 16 }
 0x32d   : > { %15950 = vst [vmem:[#allocation59_spill] sm:$0xff] %v12985_v40  ;;  %v1924_v40 = vshll.u32 %v10984_v61, 16  ;;  %v1923_v32 = vrot.slane %v1921_v57, 4  ;;  %3421 = vrot.lane.b32.xlu1 %v2223_v10, %s11311_s30  ;;  %v2920_v14 = vor.u32 %v2919_v47, %v2916_v25  ;;  %v1932_v61 = vshll.u32 %v1679_v59, 16  ;;  %v2673_v6 = vld [vmem:[#allocation2 + $0x110] sm:$0xf8]  ;;  %v13016_v63 = vpop.permute.xlu1 %3371 }
 0x32e   : > { %v2927_v52 = vrot.slane %v2925_v26, 4  ;;  %v1931_v3 = vrot.slane %v1929_v34, 4  ;;  %v3315_v57 = vshrl.u32 %v13001_v11, 16  ;;  %v2308_v59 = vsel %vm1616_vm6, %v2306_v19, %v2307_v8  ;;  %v13014_v25 = vld [vmem:[#allocation2 + $0x118] sm:$0xf] }
 0x32f   : > { %v1926_v41 = vrot.slane %v1924_v40, 5  ;;  %v1934_v40 = vrot.slane %v1932_v61, 5  ;;  %v3318_v56 = vshll.u32 %v13001_v11, 16  ;;  %v2931_v61 = vshrl.u32 %v2673_v6, 16 }
 0x330   : > { %v2928_v1 = vor.u32 %v2927_v52, %v2924_v53  ;;  %v3655_v53 = vsel %vm823_vm4, %v2308_v59, %v12854_v48  ;;  %v3317_v52 = vrot.slane %v3315_v57, 4  ;;  %v2939_v62 = vshrl.u32 %v13014_v25, 16  ;;  %v13030_v48 = vld [vmem:[#allocation2 + $0xf8] sm:$0xf] }
 0x331   : > { %v1927_v26 = vor.u32 %v1926_v41, %v1923_v32  ;;  %v3323_v32 = vshrl.u32 %v3058_v21, 16  ;;  %v3326_v41 = vshll.u32 %v3058_v21, 16  ;;  %v1935_v8 = vor.u32 %v1934_v40, %v1931_v3  ;;  %v13039_v38 = vpop.permute.xlu1 %3403 }
 0x332   : > { %v13006_v27 = vpop.f32.mrb[20].mxu0  ;;  %v2929_v10 = vsel %vm1295_vm10, %v2920_v14, %v2928_v1  ;;  %v13023_v14 = vpop.permute.xlu0 %3437  ;;  %v3702_v19 = vsel %vm3571_vm11, %v3655_v53, %v12859_v50  ;;  %v3320_v1 = vrot.slane %v3318_v56, 5  ;;  %v2933_v59 = vrot.slane %v2931_v61, 3  ;;  %v13035_v53 = vld [vmem:[#allocation2 + $0x100] sm:$0xf0] }
 0x333   : > { %15951 = vst [vmem:[#allocation60_spill] sm:$0xff] %v13006_v27  ;;  %v13009_v36 = vpop.f32.mrb[21].mxu0  ;;  %3487 = vrot.lane.b32.xlu0 %v2929_v10, %s15853_s9  ;;  %v1982_v27 = vld [vmem:[#allocation2 + $0xf0] sm:$0xf8]  ;;  %v2934_v10 = vshll.u32 %v2673_v6, 16  ;;  %v1936_v21 = vsel %vm1681_vm7, %v1927_v26, %v1935_v8  ;;  %v2941_v40 = vrot.slane %v2939_v62, 3 }
 0x334   : > { %15952 = vst [vmem:[#allocation61_spill] sm:$0xff] %v13009_v36  ;;  %v13018_v47 = vpop.f32.mrb[22].mxu0  ;;  %v3328_v36 = vrot.slane %v3326_v41, 5  ;;  %v3321_v57 = vor.u32 %v3320_v1, %v3317_v52  ;;  %3391 = vrot.lane.b32.xlu1 %v1936_v21, %s15853_s9  ;;  %v2225_v56 = vshrl.u32 %v1982_v27, 16  ;;  %v2228_v6 = vshll.u32 %v1982_v27, 16 }
 0x335   : > { %15953 = vst [vmem:[#allocation62_spill] sm:$0xff] %v13018_v47  ;;  %v13025_v34 = vpop.f32.mrb[23].mxu0  ;;  %v3325_v47 = vrot.slane %v3323_v32, 4  ;;  %v2936_v50 = vrot.slane %v2934_v10, 4  ;;  %v2233_v41 = vshrl.u32 %v13030_v48, 16  ;;  %v2236_v24 = vshll.u32 %v13030_v48, 16 }
 0x336   : > { %15954 = vst [vmem:[#allocation63_spill] sm:$0xff] %v13025_v34  ;;  %v2942_v34 = vshll.u32 %v13014_v25, 16  ;;  %v2227_v1 = vrot.slane %v2225_v56, 3  ;;  %v13044_v62 = vpop.permute.xlu0 %3469 }
 0x337   : > { %v3329_v3 = vor.u32 %v3328_v36, %v3325_v47  ;;  %v2937_v8 = vor.u32 %v2936_v50, %v2933_v59  ;;  %v10987_v36 = vld [vmem:[#allocation2 + $0x20] sm:$0xf0]  ;;  %v2235_v10 = vrot.slane %v2233_v41, 3  ;;  %v2238_v21 = vrot.slane %v2236_v24, 4  ;;  %v1680_v41 = vld [vmem:[#allocation2 + $0xf8] sm:$0x1f] }
 0x338   : > { %v2944_v32 = vrot.slane %v2942_v34, 4  ;;  %v2309_v47 = vrot.slane %v10987_v36, 4  ;;  %v2230_v34 = vrot.slane %v2228_v6, 4  ;;  %v2629_v50 = vshll.u32 %v13035_v53, 16 }
 0x339   : > { %v3330_v52 = vsel %vm1681_vm7, %v3321_v57, %v3329_v3  ;;  %v10988_v57 = vld [vmem:[#allocation2 + $0x28] sm:$0xf]  ;;  %v2626_v3 = vshrl.u32 %v13035_v53, 16  ;;  %v2239_v6 = vor.u32 %v2238_v21, %v2235_v10  ;;  %v3734_v24 = vsel %vm3604_vm12, %v3702_v19, %v12709_v17  ;;  %v13067_v10 = vpop.permute.xlu1 %3373 }
 0x33a   : > { %v13041_v26 = vpop.f32.mrb[24].mxu0  ;;  %10657 = vmatmul.mubr.msk.bf16.gmra.mrb[32].mxu0 %vm823_vm4, %v3330_v52  ;;  %v2945_v27 = vor.u32 %v2944_v32, %v2941_v40  ;;  %v2310_v59 = vrot.slane %v10988_v57, 4  ;;  %v2231_v32 = vor.u32 %v2230_v34, %v2227_v1  ;;  %4012 = vmatprep.mubr.bf16.mxu1 %v3734_v24  ;;  %v2631_v57 = vrot.slane %v2629_v50, 5 }
 0x33b   : > { %15955 = vst [vmem:[#allocation64_spill] sm:$0xff] %v13041_v26  ;;  %v13046_v61 = vpop.f32.mrb[25].mxu0  ;;  %10668 = vmatprep.mubr.msk.bf16.mxu0 %vm11307_vm3, %v15893_v9  ;;  %v2628_v36 = vrot.slane %v2626_v3, 4  ;;  %v2637_v1 = vshll.u32 %v2369_v55, 16  ;;  %v13070_v3 = vpop.permute.xlu0 %3439 }
 0x33c   : > { %15956 = vst [vmem:[#allocation65_spill] sm:$0xff] %v13046_v61  ;;  %v13049_v26 = vpop.f32.mrb[26].mxu0  ;;  %v2946_v40 = vsel %vm1295_vm10, %v2937_v8, %v2945_v27  ;;  %v2311_v52 = vsel %vm1616_vm6, %v2309_v47, %v2310_v59  ;;  %v2240_v61 = vsel %vm1295_vm10, %v2231_v32, %v2239_v6  ;;  %v10989_v27 = vld [vmem:[#allocation2 + $0xf0] sm:$0xf0]  ;;  %v1946_v47 = vshrl.u32 %v1680_v41, 16 }
 0x33d   : > { %15957 = vst [vmem:[#allocation66_spill] sm:$0xff] %v13049_v26  ;;  %v13055_v56 = vpop.f32.mrb[27].mxu0  ;;  %3489 = vrot.lane.b32.xlu0 %v2946_v40, %s15853_s9  ;;  %v2634_v26 = vshrl.u32 %v2369_v55, 16  ;;  %v3658_v8 = vsel %vm823_vm4, %v2311_v52, %v12862_v16  ;;  %v1938_v34 = vshrl.u32 %v10989_v27, 16  ;;  %3423 = vrot.lane.b32.xlu1 %v2240_v61, %s11311_s30  ;;  %v2632_v17 = vor.u32 %v2631_v57, %v2628_v36  ;;  %v4975_v59 = vld [vmem:[%s4974_s6] sm:$0x1] }
 0x33e   : > { %v1941_v21 = vshll.u32 %v10989_v27, 16  ;;  %v2639_v50 = vrot.slane %v2637_v1, 5  ;;  %v1949_v32 = vshll.u32 %v1680_v41, 16  ;;  %v3573_v55 = vsel %vm3571_vm11, %v12970_v5, %v12706_v39  ;;  %v1984_v16 = vld [vmem:[#allocation2 + $0x100] sm:$0xf8]  ;;  %s16020_s6 = sld [smem:[#allocation75_spill]] }
 0x33f   : > { %v2636_v19 = vrot.slane %v2634_v26, 4  ;;  %v1940_v40 = vrot.slane %v1938_v34, 4  ;;  %v1948_v52 = vrot.slane %v1946_v47, 4  ;;  %v3606_v26 = vsel %vm3604_vm12, %v3573_v55, %v12874_v44  ;;  %v13081_v36 = vld [vmem:[#allocation2 + $0x108] sm:$0xf]  ;;  %v13104_v55 = vpop.permute.xlu0 %3471 }
 0x340   : > { %v1943_v24 = vrot.slane %v1941_v21, 5  ;;  %v3704_v61 = vsel %vm3571_vm11, %v3658_v8, %v12876_v2  ;;  %v1951_v1 = vrot.slane %v1949_v32, 5  ;;  %4013 = vmatmul.mubr.bf16.vlgmr.msra.gmra.mrb[0].mxu1 %v3606_v26  ;;  %v3575_v39 = vsel %vm3571_vm11, %v12992_v15, %v12885_v31  ;;  %v1269_v47 = vld [vmem:[#allocation2 + $0x30] sm:$0xf8]  ;;  %v13097_v15 = vpop.permute.xlu1 %3405 }
 0x341   : > { %v2640_v41 = vor.u32 %v2639_v50, %v2636_v19  ;;  %v4976_v5 = vpack.c.bf16 %v4975_v59, %v4975_v59  ;;  %v3040_v44 = vrot.slane %v13001_v11, 4  ;;  %v3041_v21 = vrot.slane %v13014_v25, 4 }
 0x342   : > { %v13075_v6 = vpop.f32.mrb[28].mxu0  ;;  %v1944_v34 = vor.u32 %v1943_v24, %v1940_v40  ;;  %v2242_v2 = vshrl.u32 %v1984_v16, 16  ;;  %v1952_v50 = vor.u32 %v1951_v1, %v1948_v52  ;;  %v2245_v32 = vshll.u32 %v1984_v16, 16  ;;  %v10990_v52 = vld [vmem:[#allocation2 + $0x30] sm:$0xf0] }
 0x343   : > { %v13083_v57 = vpop.f32.mrb[29].mxu0  ;;  %v2641_v19 = vsel %vm1681_vm7, %v2632_v17, %v2640_v41  ;;  %10669 = vmatmul.mubr.msk.bf16.vlgmr.msra.gmra.mrb[36].mxu0 %vm3571_vm11, %v4976_v5  ;;  %v2250_v31 = vshrl.u32 %v13081_v36, 16  ;;  %v3042_v11 = vsel %vm1616_vm6, %v3040_v44, %v3041_v21  ;;  %v2253_v25 = vshll.u32 %v13081_v36, 16  ;;  %v10991_v5 = vld [vmem:[#allocation2 + $0x38] sm:$0xf] }
 0x344   : > { %v13088_v27 = vpop.f32.mrb[30].mxu0  ;;  %3457 = vrot.lane.b32.xlu0 %v2641_v19, %s11309_s16  ;;  %v2244_v59 = vrot.slane %v2242_v2, 3  ;;  %v3737_v40 = vsel %vm3604_vm12, %v3704_v61, %v12726_v0  ;;  %10688 = vmatprep.mubr.msk.f32.mxu0 %vm11307_vm3, %v15893_v9  ;;  %v1953_v17 = vsel %vm1681_vm7, %v1944_v34, %v1952_v50  ;;  %v2247_v16 = vrot.slane %v2245_v32, 4  ;;  %v10992_v2 = vld [vmem:[#allocation2 + $0x40] sm:$0xf0]  ;;  %s10802_s16 = smul.u32 96, %s11286_s25 }
 0x345   : > { %15958 = vst [vmem:[#allocation67_spill] sm:$0xff] %v13088_v27  ;;  %v13092_v8 = vpop.f32.mrb[31].mxu0  ;;  %v2252_v24 = vrot.slane %v2250_v31, 3  ;;  %4020 = vmatprep.mubr.bf16.mxu1 %v3737_v40  ;;  %v2312_v26 = vrot.slane %v10990_v52, 4  ;;  %v1348_v41 = vshrl.u32 %v1269_v47, 16  ;;  %3393 = vrot.lane.b32.xlu1 %v1953_v17, %s15853_s9  ;;  %v2255_v1 = vrot.slane %v2253_v25, 4 }
 0x346   : > { %v2313_v44 = vrot.slane %v10991_v5, 4  ;;  %v3609_v0 = vsel %vm3604_vm12, %v3575_v39, %v12904_v45  ;;  %v1351_v61 = vshll.u32 %v1269_v47, 16  ;;  %v2248_v21 = vor.u32 %v2247_v16, %v2244_v59  ;;  %v10993_v27 = vld [vmem:[#allocation2 + $0x48] sm:$0xf]  ;;  %v1271_v17 = vld [vmem:[#allocation2 + $0x40] sm:$0xf8] }
 0x347   : > { %v2315_v19 = vrot.slane %v10992_v2, 4  ;;  %v2316_v34 = vrot.slane %v10993_v27, 4  ;;  %v2256_v50 = vor.u32 %v2255_v1, %v2252_v24  ;;  %v15959_v31 = vor.u32 %v12987_v20, %v12982_v13  ;;  %v13125_v27 = vpop.permute.xlu1 %3375  ;;  %v10994_v52 = vld [vmem:[#allocation2 + $0x48] sm:$0xf]  ;;  %s9836_s25 = sshll.u32 %s11543_s19, 4  ;;  %s15728_s25 = int_to_ptr.vmem [resolvable:$true] %s9836_s25 }
 0x348   : > { %3521 = vrot.lane.b32.xlu0 %v3042_v11, %s11311_s30  ;;  %v2314_v32 = vsel %vm1616_vm6, %v2312_v26, %v2313_v44  ;;  %v15960_v25 = vor.u32 %v12978_v58, %v12976_v51  ;;  %v15961_v45 = vshrl.u32 %v12958_v23, 16  ;;  %4021 = vmatmul.mubr.bf16.gmra.mrb[4].mxu1 %v3609_v0  ;;  %v15962_v11 = vshll.u32 %v12958_v23, 16  ;;  %v13133_v58 = vpop.permute.xlu0 %3441  ;;  %s11200_s2 = scalar_lea.vmem %s15728_s25, 4096 }
 0x349   : > { %v3661_v47 = vsel %vm823_vm4, %v2314_v32, %v12890_v35  ;;  %v2257_v20 = vsel %vm1295_vm10, %v2248_v21, %v2256_v50  ;;  %v2317_v51 = vsel %vm1616_vm6, %v2315_v19, %v2316_v34  ;;  %v1350_v16 = vrot.slane %v1348_v41, 3  ;;  %v10996_v21 = vld [vmem:[#allocation2 + $0x58] sm:$0xf]  ;;  %p11201_p8 = scmp.ne.s32.totalorder %s15728_s25, %s11200_s2 }
 0x34a   : > { %v1346_v40 = vsel %vm1295_vm10, %v15960_v25, %v15959_v31  ;;  %v1358_v39 = vrot.slane %v15961_v45, 3  ;;  %v1361_v59 = vrot.slane %v15962_v11, 4  ;;  %v3706_v13 = vsel %vm3571_vm11, %v3661_v47, %v12906_v60  ;;  %3425 = vrot.lane.b32.xlu1 %v2257_v20, %s11311_s30  ;;  %v10997_v11 = vld [vmem:[#allocation2 + $0x58] sm:$0xf]  ;;  %s10198_s30 = sshll.u32 %s11282_s24, 5 }
 0x34b   : > { %v1353_v24 = vrot.slane %v1351_v61, 4  ;;  %v3740_v35 = vsel %vm3604_vm12, %v3706_v13, %v12735_v46  ;;  %v3664_v23 = vsel %vm823_vm4, %v2317_v51, %v12922_v54  ;;  %v1373_v26 = vshrl.u32 %v10994_v52, 16  ;;  %v10995_v61 = vld [vmem:[#allocation2 + $0x50] sm:$0xf0]  ;;  %v13150_v50 = vpop.permute.xlu1 %3407  ;;  %s9833_s24 = sadd.s32 %s10802_s16, %s10198_s30  ;;  %p11202_p11 = pnand %p11201_p8, %p16088_p0 }
 0x34c   : > { %v3531_v1 = vsel %vm823_vm4, %v1346_v40, %v12733_v29  ;;  %4028 = vmatprep.mubr.bf16.mxu1 %v3740_v35  ;;  %v3708_v60 = vsel %vm3571_vm11, %v3664_v23, %v12945_v42  ;;  %v1376_v5 = vshll.u32 %v10994_v52, 16  ;;  %v1365_v41 = vshrl.u32 %v1271_v17, 16  ;;  %v13152_v42 = vpop.permute.xlu0 %3473  ;;  %s10199_s1 = sshll.u32 %s9833_s24, 7  ;;  %s11204_s16 = sshll.u32 %s11312_s13, 4  ;;  %s11205_s16 = int_to_ptr.vmem [resolvable:$false] %s11204_s16 }
 0x34d   : > { %v1368_v44 = vshll.u32 %v1271_v17, 16  ;;  %v3577_v0 = vsel %vm3571_vm11, %v3531_v1, %v12917_v12  ;;  %v2318_v54 = vrot.slane %v10995_v61, 4  ;;  %v2319_v2 = vrot.slane %v10996_v21, 4  ;;  %p11203_p13 = pneg %p11202_p11  ;;  %s11206_s30 = scalar_lea.vmem %s11205_s16, 8192 }
 0x34e   : > { %v3612_v46 = vsel %vm3604_vm12, %v3577_v0, %v12938_v37  ;;  %v1354_v19 = vor.u32 %v1353_v24, %v1350_v16  ;;  %v1362_v34 = vor.u32 %v1361_v59, %v1358_v39  ;;  %v3743_v29 = vsel %vm3604_vm12, %v3708_v60, %v12754_v4  ;;  %v1273_v39 = vld [vmem:[#allocation2 + $0x50] sm:$0xf8]  ;;  %v10998_v24 = vld [vmem:[#allocation2 + $0x60] sm:$0xf0]  ;;  %p11207_p1 = scmp.lt.s32.totalorder %s15728_s25, %s11205_s16  ;;  %p11208_p3 = scmp.lt.s32.totalorder %s11206_s30, %s11200_s2 }
 0x34f   : > { %v1367_v32 = vrot.slane %v1365_v41, 3  ;;  %v1370_v31 = vrot.slane %v1368_v44, 4  ;;  %v1375_v25 = vrot.slane %v1373_v26, 3  ;;  %v1378_v12 = vrot.slane %v1376_v5, 4  ;;  %v13164_v51 = vpop.permute.xlu1 %3377  ;;  %v1275_v44 = vld [vmem:[#allocation2 + $0x60] sm:$0xf8] }
 0x350   : > { %4029 = vmatmul.mubr.bf16.gmra.mrb[8].mxu1 %v3612_v46  ;;  %v2320_v37 = vsel %vm1616_vm6, %v2318_v54, %v2319_v2  ;;  %v1363_v40 = vsel %vm1295_vm10, %v1354_v19, %v1362_v34  ;;  %v1390_v59 = vshrl.u32 %v10997_v11, 16  ;;  %v1393_v16 = vshll.u32 %v10997_v11, 16  ;;  %v13168_v52 = vpop.permute.xlu0 %3443  ;;  %p11209_p5 = por %p11208_p3, %p11207_p1 }
 0x351   : > { %4036 = vmatprep.mubr.bf16.mxu1 %v3743_v29  ;;  %v3667_v45 = vsel %vm823_vm4, %v2320_v37, %v12963_v28  ;;  %v3534_v4 = vsel %vm823_vm4, %v1363_v40, %v12751_v22  ;;  %v1371_v17 = vor.u32 %v1370_v31, %v1367_v32  ;;  %v1379_v20 = vor.u32 %v1378_v12, %v1375_v25  ;;  %v10999_v22 = vld [vmem:[#allocation2 + $0x68] sm:$0xf]  ;;  %v11002_v40 = vld [vmem:[#allocation2 + $0x78] sm:$0xf] }
 0x352   : > { %v3710_v47 = vsel %vm3571_vm11, %v3667_v45, %v12996_v43  ;;  %v3579_v13 = vsel %vm3571_vm11, %v3534_v4, %v12956_v49  ;;  %v2321_v35 = vrot.slane %v10998_v24, 4  ;;  %v2322_v23 = vrot.slane %v10999_v22, 4  ;;  %v15964_v24 = vld [vmem:[#allocation20_spill] sm:$0xff]  ;;  %v1277_v22 = vld [vmem:[#allocation2 + $0x70] sm:$0xf8]  ;;  %p11210_p6 = pnand %p11209_p5, %p11203_p13 }
 0x353   : > { %v3615_v28 = vsel %vm3604_vm12, %v3579_v13, %v12994_v33  ;;  %v1382_v43 = vshrl.u32 %v1273_v39, 16  ;;  %v1385_v26 = vshll.u32 %v1273_v39, 16  ;;  %v3746_v1 = vsel %vm3604_vm12, %v3710_v47, %v12770_v7  ;;  %v13180_v2 = vpop.permute.xlu1 %3409  ;;  %v15963_v39 = vld [vmem:[#allocation21_spill] sm:$0xff] }
 0x354   : > { %v1380_v60 = vsel %vm1295_vm10, %v1371_v17, %v1379_v20  ;;  %v1392_v49 = vrot.slane %v1390_v59, 3  ;;  %v2348_v5 = vrot.slane %v12936_v30, 4  ;;  %v2349_v41 = vrot.slane %v13030_v48, 4  ;;  %v13189_v34 = vpop.permute.xlu0 %3475 }
 0x355   : > { %v1395_v33 = vrot.slane %v1393_v16, 4  ;;  %v2323_v0 = vsel %vm1616_vm6, %v2321_v35, %v2322_v23  ;;  %v2351_v46 = vrot.slane %v13035_v53, 4  ;;  %v2352_v61 = vrot.slane %v13081_v36, 4  ;;  %v11000_v36 = vld [vmem:[#allocation2 + $0x68] sm:$0xf] }
 0x356   : > { %v1384_v54 = vrot.slane %v1382_v43, 3  ;;  %v1387_v21 = vrot.slane %v1385_v26, 4  ;;  %v3670_v7 = vsel %vm823_vm4, %v2323_v0, %v13023_v14  ;;  %v13183_v30 = vsel %vm1616_vm6, %v2348_v5, %v2349_v41  ;;  %v11003_v43 = vld [vmem:[#allocation2 + $0x78] sm:$0xf]  ;;  %v11004_v41 = vld [vmem:[#allocation2 + $0x80] sm:$0xf0] }
 0x357   : > { %v3537_v48 = vsel %vm823_vm4, %v1380_v60, %v12761_v18  ;;  %v3712_v19 = vsel %vm3571_vm11, %v3670_v7, %v13044_v62  ;;  %v13192_v53 = vsel %vm1616_vm6, %v2351_v46, %v2352_v61  ;;  %v1407_v29 = vshrl.u32 %v11000_v36, 16  ;;  %v11001_v18 = vld [vmem:[#allocation2 + $0x70] sm:$0xf0]  ;;  %v13200_v17 = vpop.permute.xlu1 %3379 }
 0x358   : > { %4037 = vmatmul.mubr.bf16.gmra.mrb[12].mxu1 %v3615_v28  ;;  %v1410_v32 = vshll.u32 %v11000_v36, 16  ;;  %v1399_v14 = vshrl.u32 %v1275_v44, 16  ;;  %v3581_v31 = vsel %vm3571_vm11, %v3537_v48, %v13016_v63  ;;  %v1402_v25 = vshll.u32 %v1275_v44, 16 }
 0x359   : > { %4044 = vmatprep.mubr.bf16.mxu1 %v3746_v1  ;;  %v3618_v12 = vsel %vm3604_vm12, %v3581_v31, %v13039_v38  ;;  %v2324_v37 = vrot.slane %v11001_v18, 4  ;;  %v2325_v62 = vrot.slane %v11002_v40, 4  ;;  %v1388_v45 = vor.u32 %v1387_v21, %v1384_v54  ;;  %v13203_v38 = vpop.permute.xlu0 %3445  ;;  %v15965_v54 = vld [vmem:[#allocation23_spill] sm:$0xff]  ;;  %v15966_v31 = vld [vmem:[#allocation22_spill] sm:$0xff]  ;;  %v11006_v18 = vld [vmem:[#allocation2 + $0x88] sm:$0xf] }
 0x35a   : > { %v1396_v4 = vor.u32 %v1395_v33, %v1392_v49  ;;  %v3749_v47 = vsel %vm3604_vm12, %v3712_v19, %v15963_v39  ;;  %v1409_v11 = vrot.slane %v1407_v29, 3  ;;  %v1412_v59 = vrot.slane %v1410_v32, 4  ;;  %v1279_v19 = vld [vmem:[#allocation2 + $0x80] sm:$0xf8] }
 0x35b   : > { %v1401_v20 = vrot.slane %v1399_v14, 3  ;;  %v1404_v63 = vrot.slane %v1402_v25, 4  ;;  %v2326_v13 = vsel %vm1616_vm6, %v2324_v37, %v2325_v62  ;;  %v1424_v26 = vshrl.u32 %v11003_v43, 16  ;;  %v13218_v21 = vpop.permute.xlu1 %3411 }
 0x35c   : > { %v1397_v16 = vsel %vm1295_vm10, %v1388_v45, %v1396_v4  ;;  %v3673_v28 = vsel %vm823_vm4, %v2326_v13, %v13070_v3  ;;  %v1413_v1 = vor.u32 %v1412_v59, %v1409_v11  ;;  %v2327_v33 = vrot.slane %v11004_v41, 4  ;;  %v11005_v3 = vld [vmem:[#allocation2 + $0x88] sm:$0xf]  ;;  %v11008_v59 = vld [vmem:[#allocation2 + $0x98] sm:$0xf] }
 0x35d   : > { %v3540_v35 = vsel %vm823_vm4, %v1397_v16, %v15964_v24  ;;  %v3714_v23 = vsel %vm3571_vm11, %v3673_v28, %v13104_v55  ;;  %v1405_v49 = vor.u32 %v1404_v63, %v1401_v20  ;;  %v2328_v44 = vrot.slane %v11005_v3, 4  ;;  %v13220_v7 = vpop.permute.xlu0 %3477  ;;  %v15967_v16 = vld [vmem:[#allocation25_spill] sm:$0xff] }
 0x35e   : > { %v3583_v60 = vsel %vm3571_vm11, %v3540_v35, %v13067_v10  ;;  %v1427_v0 = vshll.u32 %v11003_v43, 16  ;;  %v1416_v46 = vshrl.u32 %v1277_v22, 16  ;;  %v1419_v61 = vshll.u32 %v1277_v22, 16 }
 0x35f   : > { %v3621_v5 = vsel %vm3604_vm12, %v3583_v60, %v13097_v15  ;;  %v3752_v55 = vsel %vm3604_vm12, %v3714_v23, %v15965_v54  ;;  %v1414_v10 = vsel %vm1295_vm10, %v1405_v49, %v1413_v1  ;;  %v1426_v48 = vrot.slane %v1424_v26, 3  ;;  %v13232_v4 = vpop.permute.xlu1 %3381  ;;  %v15968_v1 = vld [vmem:[#allocation24_spill] sm:$0xff]  ;;  %v1281_v49 = vld [vmem:[#allocation2 + $0x90] sm:$0xf8] }
 0x360   : > { %4045 = vmatmul.mubr.bf16.gmra.mrb[16].mxu1 %v3618_v12  ;;  %v2329_v15 = vsel %vm1616_vm6, %v2327_v33, %v2328_v44  ;;  %v1418_v36 = vrot.slane %v1416_v46, 3  ;;  %v1421_v29 = vrot.slane %v1419_v61, 4  ;;  %v1429_v32 = vrot.slane %v1427_v0, 4  ;;  %v11009_v33 = vld [vmem:[#allocation2 + $0x98] sm:$0xf] }
 0x361   : > { %4052 = vmatprep.mubr.bf16.mxu1 %v3749_v47  ;;  %v3676_v14 = vsel %vm823_vm4, %v2329_v15, %v13133_v58  ;;  %v3543_v25 = vsel %vm823_vm4, %v1414_v10, %v15966_v31  ;;  %v1441_v37 = vshrl.u32 %v11006_v18, 16  ;;  %v1444_v40 = vshll.u32 %v11006_v18, 16  ;;  %v11007_v58 = vld [vmem:[#allocation2 + $0x90] sm:$0xf0]  ;;  %v13236_v63 = vpop.permute.xlu0 %3447  ;;  %v11010_v61 = vld [vmem:[#allocation2 + $0xa0] sm:$0xf0] }
 0x362   : > { %v3716_v12 = vsel %vm3571_vm11, %v3676_v14, %v13152_v42  ;;  %v1433_v62 = vshrl.u32 %v1279_v19, 16  ;;  %v3585_v45 = vsel %vm3571_vm11, %v3543_v25, %v13125_v27  ;;  %v1436_v39 = vshll.u32 %v1279_v19, 16  ;;  %v1283_v14 = vld [vmem:[#allocation2 + $0xa0] sm:$0xf8] }
 0x363   : > { %v3624_v47 = vsel %vm3604_vm12, %v3585_v45, %v13150_v50  ;;  %v2330_v11 = vrot.slane %v11007_v58, 4  ;;  %v2331_v20 = vrot.slane %v11008_v59, 4  ;;  %v1422_v42 = vor.u32 %v1421_v29, %v1418_v36  ;;  %v13244_v26 = vpop.permute.xlu1 %3413  ;;  %v15969_v36 = vld [vmem:[#allocation32_spill] sm:$0xff] }
 0x364   : > { %v1430_v13 = vor.u32 %v1429_v32, %v1426_v48  ;;  %v3755_v28 = vsel %vm3604_vm12, %v3716_v12, %v15967_v16  ;;  %v1443_v24 = vrot.slane %v1441_v37, 3  ;;  %v1446_v35 = vrot.slane %v1444_v40, 4  ;;  %v15970_v40 = vld [vmem:[#allocation26_spill] sm:$0xff] }
 0x365   : > { %v1435_v27 = vrot.slane %v1433_v62, 3  ;;  %v1438_v22 = vrot.slane %v1436_v39, 4  ;;  %v2332_v23 = vsel %vm1616_vm6, %v2330_v11, %v2331_v20  ;;  %v3480_v41 = vpop.permute.xlu0 %3479  ;;  %v1458_v3 = vshrl.u32 %v11009_v33, 16  ;;  %v11012_v39 = vld [vmem:[#allocation2 + $0xa8] sm:$0xf] }
 0x366   : > { %v1431_v50 = vsel %vm1295_vm10, %v1422_v42, %v1430_v13  ;;  %v3679_v43 = vsel %vm823_vm4, %v2332_v23, %v13168_v52  ;;  %v1447_v44 = vor.u32 %v1446_v35, %v1443_v24  ;;  %v2333_v54 = vrot.slane %v11010_v61, 4  ;;  %v11013_v13 = vld [vmem:[#allocation2 + $0xb0] sm:$0xf0] }
 0x367   : > { %v3546_v60 = vsel %vm823_vm4, %v1431_v50, %v15968_v1  ;;  %v1439_v46 = vor.u32 %v1438_v22, %v1435_v27  ;;  %v1461_v48 = vshll.u32 %v11009_v33, 16  ;;  %v1450_v19 = vshrl.u32 %v1281_v49, 16  ;;  %v13256_v29 = vpop.permute.xlu1 %3383  ;;  %v15971_v27 = vld [vmem:[#allocation28_spill] sm:$0xff] }
 0x368   : > { %4053 = vmatmul.mubr.bf16.gmra.mrb[20].mxu1 %v3621_v5  ;;  %v3718_v5 = vsel %vm3571_vm11, %v3679_v43, %v13189_v34  ;;  %v3587_v0 = vsel %vm3571_vm11, %v3546_v60, %v13164_v51  ;;  %v1453_v15 = vshll.u32 %v1281_v49, 16  ;;  %v1460_v51 = vrot.slane %v1458_v3, 3  ;;  %v1285_v3 = vld [vmem:[#allocation2 + $0xb0] sm:$0xf8] }
 0x369   : > { %4060 = vmatprep.mubr.bf16.mxu1 %v3752_v55  ;;  %v3627_v52 = vsel %vm3604_vm12, %v3587_v0, %v13180_v2  ;;  %v11011_v55 = vld [vmem:[#allocation2 + $0xa8] sm:$0xf]  ;;  %v3758_v34 = vsel %vm3604_vm12, %v3718_v5, %v15969_v36  ;;  %v1448_v32 = vsel %vm1295_vm10, %v1439_v46, %v1447_v44  ;;  %v3450_v31 = vpop.permute.xlu0 %3449  ;;  %v1452_v25 = vrot.slane %v1450_v19, 3  ;;  %v15972_v5 = vld [vmem:[#allocation27_spill] sm:$0xff] }
 0x36a   : > { %v2334_v10 = vrot.slane %v11011_v55, 4  ;;  %v1455_v12 = vrot.slane %v1453_v15, 4  ;;  %v1463_v18 = vrot.slane %v1461_v48, 4  ;;  %v3549_v62 = vsel %vm823_vm4, %v1448_v32, %v15970_v40  ;;  %v11015_v0 = vld [vmem:[#allocation2 + $0xb8] sm:$0xf] }
 0x36b   : > { %v1478_v58 = vshll.u32 %v11012_v39, 16  ;;  %v1467_v11 = vshrl.u32 %v1283_v14, 16  ;;  %v3589_v59 = vsel %vm3571_vm11, %v3549_v62, %v13200_v17  ;;  %v1470_v20 = vshll.u32 %v1283_v14, 16  ;;  %v3416_v22 = vpop.permute.xlu1 %3415  ;;  %v11016_v48 = vld [vmem:[#allocation2 + $0xc0] sm:$0xf0] }
 0x36c   : > { %v2335_v2 = vsel %vm1616_vm6, %v2333_v54, %v2334_v10  ;;  %v3630_v42 = vsel %vm3604_vm12, %v3589_v59, %v13218_v21  ;;  %v2336_v16 = vrot.slane %v11013_v13, 4  ;;  %v1456_v24 = vor.u32 %v1455_v12, %v1452_v25  ;;  %v1287_v25 = vld [vmem:[#allocation2 + $0xc0] sm:$0xf8] }
 0x36d   : > { %v3682_v37 = vsel %vm823_vm4, %v2335_v2, %v13203_v38  ;;  %v11014_v38 = vld [vmem:[#allocation2 + $0xb8] sm:$0xf]  ;;  %v1464_v35 = vor.u32 %v1463_v18, %v1460_v51  ;;  %v3482_v23 = vpop.permute.xlu0 %3481  ;;  %v1480_v43 = vrot.slane %v1478_v58, 4  ;;  %v1469_v1 = vrot.slane %v1467_v11, 3  ;;  %v11018_v11 = vld [vmem:[#allocation2 + $0xc8] sm:$0xf] }
 0x36e   : > { %v3720_v45 = vsel %vm3571_vm11, %v3682_v37, %v13220_v7  ;;  %v1472_v17 = vrot.slane %v1470_v20, 4  ;;  %v1492_v46 = vshrl.u32 %v11015_v0, 16  ;;  %v2339_v19 = vrot.slane %v11016_v48, 4 }
 0x36f   : > { %v3761_v7 = vsel %vm3604_vm12, %v3720_v45, %v15971_v27  ;;  %v1465_v21 = vsel %vm1295_vm10, %v1456_v24, %v1464_v35  ;;  %v3386_v54 = vpop.permute.xlu1 %3385  ;;  %v1484_v32 = vshrl.u32 %v1285_v3, 16  ;;  %v1487_v51 = vshll.u32 %v1285_v3, 16  ;;  %v15974_v45 = vld [vmem:[#allocation33_spill] sm:$0xff] }
 0x370   : > { %4061 = vmatmul.mubr.bf16.gmra.mrb[24].mxu1 %v3624_v47  ;;  %v1475_v47 = vshrl.u32 %v11012_v39, 16  ;;  %v3552_v33 = vsel %vm823_vm4, %v1465_v21, %v15972_v5  ;;  %v1473_v55 = vor.u32 %v1472_v17, %v1469_v1  ;;  %v1509_v59 = vshrl.u32 %v11018_v11, 16 }
 0x371   : > { %4068 = vmatprep.mubr.bf16.mxu1 %v3755_v28  ;;  %v2337_v28 = vrot.slane %v11014_v38, 4  ;;  %v3591_v61 = vsel %vm3571_vm11, %v3552_v33, %v13232_v4  ;;  %v3452_v36 = vpop.permute.xlu0 %3451  ;;  %v1494_v4 = vrot.slane %v1492_v46, 3  ;;  %v1489_v18 = vrot.slane %v1487_v51, 4  ;;  %v15976_v33 = vld [vmem:[#allocation30_spill] sm:$0xff] }
 0x372   : > { %v1477_v50 = vrot.slane %v1475_v47, 3  ;;  %v3633_v10 = vsel %vm3604_vm12, %v3591_v61, %v13244_v26  ;;  %v1486_v26 = vrot.slane %v1484_v32, 3  ;;  %v1512_v20 = vshll.u32 %v11018_v11, 16  ;;  %v11021_v46 = vld [vmem:[#allocation2 + $0xd8] sm:$0xf] }
 0x373   : > { %v2338_v60 = vsel %vm1616_vm6, %v2336_v16, %v2337_v28  ;;  %v3418_v62 = vpop.permute.xlu1 %3417  ;;  %v1504_v16 = vshll.u32 %v1287_v25, 16  ;;  %v11019_v28 = vld [vmem:[#allocation2 + $0xd0] sm:$0xf0]  ;;  %v1529_v32 = vshll.u32 %v11021_v46, 16  ;;  %vm5069_vm3 = vcmask 516096  }
 0x374   : > { %v3685_v49 = vsel %vm823_vm4, %v2338_v60, %v13236_v63  ;;  %v11017_v63 = vld [vmem:[#allocation2 + $0xc8] sm:$0xf]  ;;  %v2342_v24 = vrot.slane %v11019_v28, 4  ;;  %v1490_v27 = vor.u32 %v1489_v18, %v1486_v26  ;;  %v1514_v1 = vrot.slane %v1512_v20, 4 }
 0x375   : > { %v3722_v44 = vsel %vm3571_vm11, %v3685_v49, %v3480_v41  ;;  %v2340_v15 = vrot.slane %v11017_v63, 4  ;;  %v15973_v41 = vld [vmem:[#allocation29_spill] sm:$0xff]  ;;  %v1506_v21 = vrot.slane %v1504_v16, 4  ;;  %v15980_v16 = vld [vmem:[#allocation39_spill] sm:$0xff] }
 0x376   : > { %v3764_v14 = vsel %vm3604_vm12, %v3722_v44, %v15973_v41  ;;  %v1289_v44 = vld [vmem:[#allocation2 + $0xd0] sm:$0xf8]  ;;  %v15978_v41 = vld [vmem:[#allocation37_spill] sm:$0xff] }
 0x377   : > { %v2341_v12 = vsel %vm1616_vm6, %v2339_v19, %v2340_v15  ;;  %v11022_v19 = vld [vmem:[#allocation2 + $0xe0] sm:$0xf0]  ;;  %v15977_v15 = vld [vmem:[#allocation55_spill] sm:$0xff]  ;;  %v1521_v51 = vshll.u32 %v1289_v44, 16  ;;  %v11023_v28 = vld [vmem:[#allocation2 + $0xe8] sm:$0xf] }
 0x378   : > { %4069 = vmatmul.mubr.bf16.gmra.mrb[28].mxu1 %v3627_v52  ;;  %v1481_v52 = vor.u32 %v1480_v43, %v1477_v50  ;;  %v3688_v40 = vsel %vm823_vm4, %v2341_v12, %v3450_v31  ;;  %v11020_v31 = vld [vmem:[#allocation2 + $0xd8] sm:$0xf]  ;;  %v1511_v43 = vrot.slane %v1509_v59, 3  ;;  %v2345_v63 = vrot.slane %v11022_v19, 4  ;;  %v15983_v19 = vld [vmem:[#allocation40_spill] sm:$0xff] }
 0x379   : > { %4076 = vmatprep.mubr.bf16.mxu1 %v3758_v34  ;;  %v1495_v34 = vshll.u32 %v11015_v0, 16  ;;  %v3724_v47 = vsel %vm3571_vm11, %v3688_v40, %v3482_v23  ;;  %v2343_v35 = vrot.slane %v11020_v31, 4  ;;  %v15975_v50 = vld [vmem:[#allocation31_spill] sm:$0xff]  ;;  %v1523_v18 = vrot.slane %v1521_v51, 4 }
 0x37a   : > { %v1482_v2 = vsel %vm1295_vm10, %v1473_v55, %v1481_v52  ;;  %v3767_v23 = vsel %vm3604_vm12, %v3724_v47, %v15975_v50  ;;  %v1526_v52 = vshrl.u32 %v11021_v46, 16  ;;  %v1515_v61 = vor.u32 %v1514_v1, %v1511_v43 }
 0x37b   : > { %v1497_v37 = vrot.slane %v1495_v34, 4  ;;  %v3555_v39 = vsel %vm823_vm4, %v1482_v2, %v15974_v45  ;;  %v2346_v34 = vrot.slane %v15977_v15, 4  ;;  %v1546_v31 = vshll.u32 %v11023_v28, 16 }
 0x37c   : > { %v3593_v13 = vsel %vm3571_vm11, %v3555_v39, %v13256_v29  ;;  %v2344_v29 = vsel %vm1616_vm6, %v2342_v24, %v2343_v35  ;;  %v1528_v12 = vrot.slane %v1526_v52, 3  ;;  %v1543_v24 = vshrl.u32 %v11023_v28, 16  ;;  %v4985_v28 = vld [vmem:[%s15801_s8] sm:$0x1] }
 0x37d   : > { %v3636_v38 = vsel %vm3604_vm12, %v3593_v13, %v3416_v22  ;;  %v3691_v5 = vsel %vm823_vm4, %v2344_v29, %v3452_v36  ;;  %v1518_v36 = vshrl.u32 %v1289_v44, 16  ;;  %v1291_v13 = vld [vmem:[#allocation2 + $0xe0] sm:$0xf8] }
 0x37e   : > { %v1535_v35 = vshrl.u32 %v1291_v13, 16 }
 0x37f   : > { %v3484_v58 = vpop.permute.xlu0 %3483  ;;  %v1520_v26 = vrot.slane %v1518_v36, 3 }
 0x380   : > { %4077 = vmatmul.mubr.bf16.gmra.mrb[32].mxu1 %v3630_v42  ;;  %v1501_v42 = vshrl.u32 %v1287_v25, 16  ;;  %v3726_v0 = vsel %vm3571_vm11, %v3691_v5, %v3484_v58  ;;  %v1548_v5 = vrot.slane %v1546_v31, 4 }
 0x381   : > { %4084 = vmatprep.mubr.bf16.mxu1 %v3761_v7  ;;  %v1498_v7 = vor.u32 %v1497_v37, %v1494_v4  ;;  %v1531_v37 = vrot.slane %v1529_v32, 4  ;;  %v1524_v20 = vor.u32 %v1523_v18, %v1520_v26 }
 0x382   : > { %v1503_v60 = vrot.slane %v1501_v42, 3 }
 0x383   : > { %v1499_v22 = vsel %vm1295_vm10, %v1490_v27, %v1498_v7  ;;  %v1532_v42 = vor.u32 %v1531_v37, %v1528_v12  ;;  %v1538_v27 = vshll.u32 %v1291_v13, 16 }
 0x384   : > { %v3558_v3 = vsel %vm823_vm4, %v1499_v22, %v15976_v33 }
 0x385   : > { %v3595_v55 = vsel %vm3571_vm11, %v3558_v3, %v3386_v54  ;;  %v2347_v54 = vsel %vm1616_vm6, %v2345_v63, %v2346_v34  ;;  %v1533_v7 = vsel %vm1295_vm10, %v1524_v20, %v1532_v42  ;;  %v1540_v22 = vrot.slane %v1538_v27, 4  ;;  %v15982_v3 = vld [vmem:[#allocation41_spill] sm:$0xff] }
 0x386   : > { %v3639_v48 = vsel %vm3604_vm12, %v3595_v55, %v3418_v62  ;;  %v15979_v62 = vld [vmem:[#allocation36_spill] sm:$0xff] }
 0x388   : > { %4085 = vmatmul.mubr.bf16.gmra.mrb[36].mxu1 %v3633_v10  ;;  %v3388_v17 = vpop.permute.xlu1 %3387  ;;  %v3454_v49 = vpop.permute.xlu0 %3453  ;;  %v1507_v10 = vor.u32 %v1506_v21, %v1503_v60  ;;  %v1545_v60 = vrot.slane %v1543_v24, 3  ;;  %v13355_v24 = vld [vmem:[%s15985_s10] ss:$0 sm:$0xff] }
 0x389   : > { %4092 = vmatprep.mubr.bf16.mxu1 %v3764_v14  ;;  %v3770_v14 = vsel %vm3604_vm12, %v3726_v0, %v15978_v41  ;;  %v3694_v40 = vsel %vm823_vm4, %v2347_v54, %v3454_v49  ;;  %v1537_v49 = vrot.slane %v1535_v35, 3 }
 0x38a   : > { %v1516_v25 = vsel %vm1295_vm10, %v1507_v10, %v1515_v61  ;;  %v1549_v46 = vor.u32 %v1548_v5, %v1545_v60  ;;  %v11024_v61 = vld [vmem:[#allocation2 + $0xf8] sm:$0xf]  ;;  %v15986_v5 = vld [vmem:[#allocation44_spill] sm:$0xff] }
 0x38b   : > { %v3561_v45 = vsel %vm823_vm4, %v1516_v25, %v15979_v62  ;;  %v1541_v0 = vor.u32 %v1540_v22, %v1537_v49  ;;  %v1560_v55 = vshrl.u32 %v11024_v61, 16 }
 0x38c   : > { %v3420_v2 = vpop.permute.xlu1 %3419  ;;  %v3597_v47 = vsel %vm3571_vm11, %v3561_v45, %v3388_v17 }
 0x38d   : > { %v3642_v11 = vsel %vm3604_vm12, %v3597_v47, %v3420_v2  ;;  %v1550_v10 = vsel %vm1295_vm10, %v1541_v0, %v1549_v46  ;;  %v15984_v47 = vld [vmem:[#allocation42_spill] sm:$0xff]  ;;  %v4303_v0 = vld [vmem:[#allocation4 + $0x8] sm:$0xff] }
 0x38e   : > { %v3567_v63 = vsel %vm823_vm4, %v1550_v10, %v15983_v19  ;;  %v4526_v10 = vld [vmem:[#allocation5] sm:$0xff] }
 0x38f   : > { %v3486_v4 = vpop.permute.xlu0 %3485 }
 0x390   : > { %4093 = vmatmul.mubr.bf16.gmra.mrb[40].mxu1 %v3636_v38  ;;  %v3728_v39 = vsel %vm3571_vm11, %v3694_v40, %v3486_v4  ;;  %v1562_v4 = vrot.slane %v1560_v55, 3 }
 0x391   : > { %4100 = vmatprep.mubr.bf16.mxu1 %v3767_v23  ;;  %v3773_v38 = vsel %vm3604_vm12, %v3728_v39, %v15980_v16  ;;  %v15981_v23 = vld [vmem:[#allocation38_spill] sm:$0xff] }
 0x392   : > { %v3564_v43 = vsel %vm823_vm4, %v1533_v7, %v15981_v23 }
 0x398   : > { %4101 = vmatmul.mubr.bf16.gmra.mrb[44].mxu1 %v3639_v48  ;;  %v1563_v48 = vshll.u32 %v11024_v61, 16 }
 0x399   : > { %4108 = vmatprep.mubr.bf16.mxu1 %v3770_v14 }
 0x39a   : > { %v3390_v58 = vpop.permute.xlu1 %3389  ;;  %v1565_v25 = vrot.slane %v1563_v48, 4 }
 0x39b   : > { %v3599_v21 = vsel %vm3571_vm11, %v3564_v43, %v3390_v58 }
 0x39c   : > { %v1566_v26 = vor.u32 %v1565_v25, %v1562_v4 }
 0x39d   : > { %v3456_v59 = vpop.permute.xlu0 %3455 }
 0x39e   : > { %v3697_v1 = vsel %vm823_vm4, %v13183_v30, %v3456_v59  ;;  %v1293_v30 = vld [vmem:[#allocation2 + $0xf0] sm:$0xf8] }
 0x39f   : > { %v3422_v50 = vpop.permute.xlu1 %3421  ;;  %v1552_v15 = vshrl.u32 %v1293_v30, 16  ;;  %v1555_v34 = vshll.u32 %v1293_v30, 16 }
 0x3a0   : > { %4109 = vmatmul.mubr.bf16.gmra.mrb[48].mxu1 %v3642_v11  ;;  %v3645_v33 = vsel %vm3604_vm12, %v3599_v21, %v3422_v50  ;;  %v5053_v50 = vld [vmem:[#allocation6] sm:$0x1] }
 0x3a1   : > { %4116 = vmatprep.mubr.bf16.mxu1 %v3773_v38  ;;  %v1554_v14 = vrot.slane %v1552_v15, 3  ;;  %v1557_v2 = vrot.slane %v1555_v34, 4 }
 0x3a3   : > { %v1558_v54 = vor.u32 %v1557_v2, %v1554_v14 }
 0x3a5   : > { %v3488_v17 = vpop.permute.xlu0 %3487  ;;  %v1567_v45 = vsel %vm1295_vm10, %v1558_v54, %v1566_v26 }
 0x3a6   : > { %v3730_v29 = vsel %vm3571_vm11, %v3697_v1, %v3488_v17  ;;  %v3392_v52 = vpop.permute.xlu1 %3391  ;;  %v3570_v58 = vsel %vm823_vm4, %v1567_v45, %v15984_v47  ;;  %v15988_v45 = vld [vmem:[#allocation43_spill] sm:$0xff] }
 0x3a7   : > { %v3776_v44 = vsel %vm3604_vm12, %v3730_v29, %v15982_v3  ;;  %v3601_v32 = vsel %vm3571_vm11, %v3567_v63, %v3392_v52  ;;  %v4302_v29 = vld [vmem:[#allocation4] sm:$0xff]  ;;  %v15987_v52 = vld [vmem:[#allocation46_spill] sm:$0xff] }
 0x3a8   : > { %4117 = vmatmul.mubr.bf16.gmra.mrb[52].mxu1 %v3645_v33 }
 0x3a9   : > { %4124 = vmatprep.mubr.bf16.mxu1 %v3776_v44  ;;  %v5060_v44 = vld [vmem:[#allocation7] sm:$0x1] }
 0x3af   : > { %v3490_v36 = vpop.permute.xlu0 %3489  ;;  %v3424_v51 = vpop.permute.xlu1 %3423 }
 0x3b0   : > { %v3648_v41 = vsel %vm3604_vm12, %v3601_v32, %v3424_v51  ;;  %v4527_v51 = vld [vmem:[#allocation5 + $0x8] sm:$0xff] }
 0x3b1   : > { %4125 = vmatmul.mubr.bf16.gmra.mrb[56].mxu1 %v3648_v41 }
 0x3b6   : > { %v3458_v12 = vpop.permute.xlu0 %3457 }
 0x3b7   : > { %v3700_v18 = vsel %vm823_vm4, %v13192_v53, %v3458_v12  ;;  %v3394_v37 = vpop.permute.xlu1 %3393 }
 0x3b8   : > { %v3732_v62 = vsel %vm3571_vm11, %v3700_v18, %v3490_v36  ;;  %v3603_v11 = vsel %vm3571_vm11, %v3570_v58, %v3394_v37 }
 0x3ba   : > { %v3522_v40 = vpop.permute.xlu0 %3521 }
 0x3bb   : > { %v3779_v39 = vsel %vm3604_vm12, %v3732_v62, %v3522_v40  ;;  %v4304_v40 = vld [vmem:[#allocation4 + $0x10] sm:$0xff] }
 0x3bc   : > { %4132 = vmatprep.mubr.bf16.mxu1 %v3779_v39  ;;  %v3426_v59 = vpop.permute.xlu1 %3425 }
 0x3bd   : > { %v3651_v20 = vsel %vm3604_vm12, %v3603_v11, %v3426_v59 }
 0x3be   : > { %4133 = vmatmul.mubr.bf16.gmra.mrb[60].mxu1 %v3651_v20 }
 0x40d   : > { %v13341_v42 = vpop.f32.mrb[32].mxu0 }
 0x40e   : > { %v13343_v53 = vpop.f32.mrb[33].mxu0 }
 0x40f   : > { %v13345_v13 = vpop.f32.mrb[34].mxu0 }
 0x410   : > { %v13347_v16 = vpop.f32.mrb[35].mxu0 }
 0x413   : > { %v10223_v38 = vpop.f32.mrb[0].mxu1 }
 0x414   : > { %v10224_v31 = vpop.f32.mrb[1].mxu1 }
 0x415   : > { %v10225_v35 = vadd.f32 %v10224_v31, %v10223_v38  ;;  %v10226_v27 = vpop.f32.mrb[2].mxu1  ;;  %v15989_v31 = vld [vmem:[#allocation45_spill] sm:$0xff] }
 0x416   : > { %v5047_v7 = vpop.f32.mrb[36].mxu0  ;;  %v10227_v23 = vpop.f32.mrb[3].mxu1 }
 0x417   : > { %v5048_v43 = vadd.f32 %v5047_v7, %v4985_v28  ;;  %v10670_v1 = vpop.f32.mrb[37].mxu0  ;;  %v4015_v17 = vadd.f32 %v10225_v35, %v13355_v24  ;;  %v10228_v60 = vadd.f32 %v10227_v23, %v10226_v27  ;;  %v4305_v27 = vld [vmem:[#allocation4 + $0x18] sm:$0xff] }
 0x418   : > { %v5050_v21 = vpop.f32.mrb[38].mxu0 }
 0x419   : > { %v5054_v49 = vadd.f32 %v5053_v50, %v5048_v43  ;;  %v10671_v22 = vpop.f32.mrb[39].mxu0  ;;  %v4176_v33 = vadd.f32 %v15986_v5, %v4015_v17  ;;  %v4018_v3 = vadd.f32 %v10228_v60, %v13355_v24  ;;  %v4528_v5 = vld [vmem:[#allocation5 + $0x10] sm:$0xff] }
 0x41b   : > { %vm5055_vm13 = vcmp.ge.f32.partialorder %v5054_v49, 4.0  ;;  %v4334_v46 = vadd.f32 %v4302_v29, %v4176_v33  ;;  %v4179_v30 = vadd.f32 %v15987_v52, %v4018_v3  ;;  %v10229_v55 = vpop.f32.mrb[4].mxu1 }
 0x41c   : > { %v10057_v61 = vsel %vm5055_vm13, 1.0, %v15893_v9  ;;  %v10230_v63 = vpop.f32.mrb[5].mxu1 }
 0x41d   : > { %v5058_v48 = vmul.f32 4.0, %v10057_v61  ;;  %v5061_v19 = vadd.f32 %v10057_v61, %v5060_v44  ;;  %vm4366_vm14 = vcmp.ge.f32.partialorder %v4334_v46, 4.0  ;;  %v4335_v15 = vadd.f32 %v4303_v0, %v4179_v30  ;;  %v10232_v32 = vpop.f32.mrb[6].mxu1  ;;  %v4529_v30 = vld [vmem:[#allocation5 + $0x18] sm:$0xff] }
 0x41e   : > { %v10231_v34 = vadd.f32 %v10230_v63, %v10229_v55  ;;  %v9988_v36 = vsel %vm4366_vm14, 1.0, %v15893_v9  ;;  %v10233_v14 = vpop.f32.mrb[7].mxu1  ;;  %v15990_v55 = vld [vmem:[#allocation35_spill] sm:$0xff] }
 0x41f   : > { %v5059_v41 = vsub.f32 %v5054_v49, %v5058_v48  ;;  %vm5063_vm15 = vcmp.gt.f32.partialorder %v5061_v19, 0.0  ;;  %v4462_v2 = vmul.f32 4.0, %v9988_v36  ;;  %v4558_v4 = vadd.f32 %v9988_v36, %v4526_v10 }
 0x420   : > { %vm4367_vm0 = vcmp.ge.f32.partialorder %v4335_v15, 4.0  ;;  %v4023_v25 = vadd.f32 %v10231_v34, %v13355_v24  ;;  %v10234_v54 = vadd.f32 %v10233_v14, %v10232_v32  ;;  %v4306_v14 = vld [vmem:[#allocation4 + $0x20] sm:$0xff] }
 0x421   : > { %v9989_v12 = vsel %vm4367_vm0, 1.0, %v15893_v9  ;;  %vm5062_vm1 = vcmp.le.f32.partialorder %v5059_v41, -0.001  ;;  %v4494_v26 = vsub.f32 %v4334_v46, %v4462_v2  ;;  %vm4622_vm8 = vcmp.gt.f32.partialorder %v4558_v4, 0.0 }
 0x422   : > { %v4463_v18 = vmul.f32 4.0, %v9989_v12  ;;  %v4559_v37 = vadd.f32 %v9989_v12, %v4527_v51  ;;  %vm5064_vm2 = vmand %vm5062_vm1, %vm5063_vm15  ;;  %v4184_v39 = vadd.f32 %v15988_v45, %v4023_v25  ;;  %v4026_v47 = vadd.f32 %v10234_v54, %v13355_v24  ;;  %v15991_v25 = vld [vmem:[#allocation48_spill] sm:$0xff] }
 0x423   : > { %v10058_v62 = vsel %vm5064_vm2, 1.0, %v15893_v9  ;;  %vm4590_vm9 = vcmp.le.f32.partialorder %v4494_v26, -0.001  ;;  %v10235_v59 = vpop.f32.mrb[8].mxu1 }
 0x424   : > { %v4495_v58 = vsub.f32 %v4335_v15, %v4463_v18  ;;  %vm4623_vm12 = vcmp.gt.f32.partialorder %v4559_v37, 0.0  ;;  %v5067_v11 = vmul.f32 4.0, %v10058_v62  ;;  %vm4654_vm13 = vmand %vm4590_vm9, %vm4622_vm8  ;;  %v5071_v20 = vsub.f32 %v5061_v19, %v10058_v62  ;;  %v10236_v7 = vpop.f32.mrb[9].mxu1 }
 0x425   : > { %v5073_v38 = vsub.f32 %v10057_v61, %v10058_v62  ;;  %v4336_v28 = vadd.f32 %v4304_v40, %v4184_v39  ;;  %v4187_v35 = vadd.f32 %v15989_v31, %v4026_v47  ;;  %v10020_v50 = vsel %vm4654_vm13, 1.0, %v15893_v9  ;;  %v10238_v1 = vpop.f32.mrb[10].mxu1 }
 0x426   : > { %vm4591_vm14 = vcmp.le.f32.partialorder %v4495_v58, -0.001  ;;  %v5068_v23 = vadd.f32 %v5067_v11, %v5059_v41  ;;  %v10237_v43 = vadd.f32 %v10236_v7, %v10235_v59  ;;  %v4750_v17 = vmul.f32 4.0, %v10020_v50  ;;  %5072 = vst.msk [vmem:[#allocation7] sm:$0x1] %vm5069_vm3, %v5071_v20  ;;  %v10239_v49 = vpop.f32.mrb[11].mxu1 }
 0x427   : > { %v4846_v60 = vsub.f32 %v4558_v4, %v10020_v50  ;;  %v4910_v21 = vsub.f32 %v9988_v36, %v10020_v50  ;;  %vm4655_vm15 = vmand %vm4591_vm14, %vm4623_vm12  ;;  %v5074_v29 = vmul.f32 4.0, %v5073_v38  ;;  %vm4368_vm0 = vcmp.ge.f32.partialorder %v4336_v28, 4.0  ;;  %v4307_v38 = vld [vmem:[#allocation4 + $0x28] sm:$0xff] }
 0x428   : > { %v10021_v22 = vsel %vm4655_vm15, 1.0, %v15893_v9  ;;  %5070 = vst.msk [vmem:[#allocation6] sm:$0x1] %vm5069_vm3, %v5068_v23  ;;  %v4337_v33 = vadd.f32 %v4305_v27, %v4187_v35  ;;  %v4031_v3 = vadd.f32 %v10237_v43, %v13355_v24  ;;  %v4782_v44 = vadd.f32 %v4750_v17, %v4494_v26  ;;  %v15992_v35 = vld [vmem:[#allocation50_spill] sm:$0xff] }
 0x429   : > { %4878 = vst.msk [vmem:[#allocation5] sm:$0xff] %vm3571_vm11, %v4846_v60  ;;  %v4942_v0 = vmul.f32 4.0, %v4910_v21  ;;  %v4751_v46 = vmul.f32 4.0, %v10021_v22  ;;  %v4847_v52 = vsub.f32 %v4559_v37, %v10021_v22  ;;  %v4911_v61 = vsub.f32 %v9989_v12, %v10021_v22 }
 0x42a   : > { %v13377_v10 = vrot.slane %v5074_v29, %v15990_v55  ;;  %v9990_v48 = vsel %vm4368_vm0, 1.0, %v15893_v9  ;;  %vm4369_vm1 = vcmp.ge.f32.partialorder %v4337_v33, 4.0  ;;  %4814 = vst.msk [vmem:[#allocation4] sm:$0xff] %vm3571_vm11, %v4782_v44  ;;  %v4192_v12 = vadd.f32 %v15991_v25, %v4031_v3 }
 0x42b   : > { %v4783_v19 = vadd.f32 %v4751_v46, %v4495_v58  ;;  %4879 = vst.msk [vmem:[#allocation5 + $0x8] sm:$0xff] %vm3571_vm11, %v4847_v52  ;;  %v4464_v63 = vmul.f32 4.0, %v9990_v48  ;;  %v4560_v15 = vadd.f32 %v9990_v48, %v4528_v5  ;;  %v9991_v34 = vsel %vm4369_vm1, 1.0, %v15893_v9  ;;  %v10241_v2 = vpop.f32.mrb[12].mxu1  ;;  %v4531_v52 = vld [vmem:[#allocation5 + $0x28] sm:$0xff] }
 0x42c   : > { %v4943_v32 = vmul.f32 4.0, %v4911_v61  ;;  %v13384_v36 = vadd.f32 %v13377_v10, %v4942_v0  ;;  %v4465_v51 = vmul.f32 4.0, %v9991_v34  ;;  %v4561_v41 = vadd.f32 %v9991_v34, %v4529_v30  ;;  %v10242_v26 = vpop.f32.mrb[13].mxu1 }
 0x42d   : > { %4815 = vst.msk [vmem:[#allocation4 + $0x8] sm:$0xff] %vm3571_vm11, %v4783_v19  ;;  %v4496_v4 = vsub.f32 %v4336_v28, %v4464_v63  ;;  %vm4624_vm2 = vcmp.gt.f32.partialorder %v4560_v15, 0.0  ;;  %v10240_v54 = vadd.f32 %v10239_v49, %v10238_v1  ;;  %v13395_v45 = vpop.f32.mrb[14].mxu1  ;;  %v4338_v39 = vadd.f32 %v4306_v14, %v4192_v12  ;;  %v4530_v1 = vld [vmem:[#allocation5 + $0x20] sm:$0xff] }
 0x42e   : > { %v13389_v18 = vadd.f32 %v13377_v10, %v4943_v32  ;;  %v5123_v37 = vsel %vm3571_vm11, %v13384_v36, 0.0  ;;  %v5192_v40 = vmul.f32 %v13384_v36, %v13384_v36  ;;  %v4497_v62 = vsub.f32 %v4337_v33, %v4465_v51  ;;  %v10245_v58 = vpop.f32.mrb[15].mxu1 }
 0x42f   : > { %vm4592_vm3 = vcmp.le.f32.partialorder %v4496_v4, -0.001  ;;  %vm4625_vm8 = vcmp.gt.f32.partialorder %v4561_v41, 0.0  ;;  %v4034_v47 = vadd.f32 %v10240_v54, %v13355_v24  ;;  %vm4370_vm14 = vcmp.ge.f32.partialorder %v4338_v39, 4.0 }
 0x430   : > { %v5124_v11 = vsel %vm3571_vm11, %v13389_v18, 0.0  ;;  %v5193_v59 = vmul.f32 %v13389_v18, %v13389_v18  ;;  %vm4656_vm9 = vmand %vm4592_vm3, %vm4624_vm2  ;;  %v5224_v20 = vsel %vm3571_vm11, %v5192_v40, 0.0  ;;  %vm4593_vm12 = vcmp.le.f32.partialorder %v4497_v62, -0.001  ;;  %v15993_v40 = vld [vmem:[#allocation47_spill] sm:$0xff] }
 0x431   : > { %v10022_v28 = vsel %vm4656_vm9, 1.0, %v15893_v9  ;;  %v5125_v31 = vadd.f32 %v5124_v11, %v5123_v37  ;;  %vm4657_vm13 = vmand %vm4593_vm12, %vm4625_vm8  ;;  %v4195_v27 = vadd.f32 %v15992_v35, %v4034_v47  ;;  %v9992_v21 = vsel %vm4370_vm14, 1.0, %v15893_v9 }
 0x432   : > { %v4752_v7 = vmul.f32 4.0, %v10022_v28  ;;  %v4848_v50 = vsub.f32 %v4560_v15, %v10022_v28  ;;  %v4912_v23 = vsub.f32 %v9990_v48, %v10022_v28  ;;  %v5225_v43 = vsel %vm3571_vm11, %v5193_v59, 0.0 }
 0x433   : > { %v5226_v17 = vadd.f32 %v5225_v43, %v5224_v20  ;;  %v10023_v60 = vsel %vm4657_vm13, 1.0, %v15893_v9  ;;  %v4339_v29 = vadd.f32 %v4307_v38, %v4195_v27  ;;  %v10247_v3 = vpop.f32.mrb[16].mxu1  ;;  %v4466_v0 = vmul.f32 4.0, %v9992_v21 }
 0x434   : > { %v4784_v49 = vadd.f32 %v4752_v7, %v4496_v4  ;;  %4880 = vst.msk [vmem:[#allocation5 + $0x10] sm:$0xff] %vm3571_vm11, %v4848_v50  ;;  %v4944_v22 = vmul.f32 4.0, %v4912_v23  ;;  %v4753_v5 = vmul.f32 4.0, %v10023_v60  ;;  %v4849_v33 = vsub.f32 %v4561_v41, %v10023_v60  ;;  %v10248_v30 = vpop.f32.mrb[17].mxu1 }
 0x435   : > { %v4913_v44 = vsub.f32 %v9991_v34, %v10023_v60  ;;  %v4562_v46 = vadd.f32 %v9992_v21, %v4530_v1  ;;  %vm4371_vm15 = vcmp.ge.f32.partialorder %v4339_v29, 4.0  ;;  %v10243_v63 = vadd.f32 %v10242_v26, %v10241_v2  ;;  %v10250_v15 = vpop.f32.mrb[18].mxu1  ;;  %v4309_v60 = vld [vmem:[#allocation4 + $0x38] sm:$0xff] }
 0x436   : > { %4816 = vst.msk [vmem:[#allocation4 + $0x10] sm:$0xff] %vm3571_vm11, %v4784_v49  ;;  %v13412_v61 = vadd.f32 %v13377_v10, %v4944_v22  ;;  %v4785_v48 = vadd.f32 %v4753_v5, %v4497_v62  ;;  %4881 = vst.msk [vmem:[#allocation5 + $0x18] sm:$0xff] %vm3571_vm11, %v4849_v33  ;;  %v13416_v19 = vsel %vm4371_vm15, 1.0, %v15893_v9  ;;  %v4498_v34 = vsub.f32 %v4338_v39, %v4466_v0  ;;  %v10251_v41 = vpop.f32.mrb[19].mxu1  ;;  %v4308_v39 = vld [vmem:[#allocation4 + $0x30] sm:$0xff] }
 0x437   : > { %v4945_v32 = vmul.f32 4.0, %v4913_v44  ;;  %vm4626_vm0 = vcmp.gt.f32.partialorder %v4562_v46, 0.0  ;;  %v4467_v51 = vmul.f32 4.0, %v13416_v19  ;;  %v4563_v25 = vadd.f32 %v13416_v19, %v4531_v52  ;;  %v15994_v22 = vld [vmem:[#allocation49_spill] sm:$0xff] }
 0x438   : > { %v5126_v14 = vsel %vm3571_vm11, %v13412_v61, 0.0  ;;  %v5194_v4 = vmul.f32 %v13412_v61, %v13412_v61  ;;  %4817 = vst.msk [vmem:[#allocation4 + $0x18] sm:$0xff] %vm3571_vm11, %v4785_v48  ;;  %v4039_v12 = vadd.f32 %v10243_v63, %v13355_v24  ;;  %vm4594_vm1 = vcmp.le.f32.partialorder %v4498_v34, -0.001 }
 0x439   : > { %v5127_v2 = vadd.f32 %v5126_v14, %v5125_v31  ;;  %v13427_v54 = vadd.f32 %v13377_v10, %v4945_v32  ;;  %v4499_v26 = vsub.f32 %v4339_v29, %v4467_v51  ;;  %vm4658_vm2 = vmand %vm4594_vm1, %vm4626_vm0  ;;  %vm4627_vm3 = vcmp.gt.f32.partialorder %v4563_v25, 0.0 }
 0x43a   : > { %v5227_v37 = vsel %vm3571_vm11, %v5194_v4, 0.0  ;;  %v4200_v62 = vadd.f32 %v15993_v40, %v4039_v12  ;;  %v10246_v47 = vadd.f32 %v10245_v58, %v13395_v45  ;;  %v10024_v38 = vsel %vm4658_vm2, 1.0, %v15893_v9  ;;  %v4533_v12 = vld [vmem:[#allocation5 + $0x38] sm:$0xff] }
 0x43b   : > { %v5228_v11 = vadd.f32 %v5227_v37, %v5226_v17  ;;  %v5128_v59 = vsel %vm3571_vm11, %v13427_v54, 0.0  ;;  %v5195_v20 = vmul.f32 %v13427_v54, %v13427_v54  ;;  %v4754_v31 = vmul.f32 4.0, %v10024_v38  ;;  %v13437_v7 = vpop.f32.mrb[20].mxu1 }
 0x43c   : > { %v5129_v28 = vadd.f32 %v5128_v59, %v5127_v2  ;;  %v4850_v35 = vsub.f32 %v4562_v46, %v10024_v38  ;;  %v4914_v27 = vsub.f32 %v9992_v21, %v10024_v38  ;;  %vm4595_vm8 = vcmp.le.f32.partialorder %v4499_v26, -0.001  ;;  %v10254_v58 = vpop.f32.mrb[21].mxu1  ;;  %v4310_v2 = vld [vmem:[#allocation4 + $0x40] sm:$0xff] }
 0x43d   : > { %v5229_v50 = vsel %vm3571_vm11, %v5195_v20, 0.0  ;;  %v4340_v23 = vadd.f32 %v4308_v39, %v4200_v62  ;;  %v4042_v45 = vadd.f32 %v10246_v47, %v13355_v24  ;;  %v4786_v1 = vadd.f32 %v4754_v31, %v4498_v34  ;;  %vm4659_vm9 = vmand %vm4595_vm8, %vm4627_vm3  ;;  %v13443_v49 = vpop.f32.mrb[22].mxu1  ;;  %v15995_v39 = vld [vmem:[#allocation52_spill] sm:$0xff] }
 0x43e   : > { %v5230_v43 = vadd.f32 %v5229_v50, %v5228_v11  ;;  %4882 = vst.msk [vmem:[#allocation5 + $0x20] sm:$0xff] %vm3571_vm11, %v4850_v35  ;;  %v4946_v17 = vmul.f32 4.0, %v4914_v27  ;;  %v10249_v29 = vadd.f32 %v10248_v30, %v10247_v3  ;;  %v10025_v21 = vsel %vm4659_vm9, 1.0, %v15893_v9  ;;  %v13447_v44 = vpop.f32.mrb[23].mxu1  ;;  %v4532_v3 = vld [vmem:[#allocation5 + $0x30] sm:$0xff] }
 0x43f   : > { %vm4372_vm12 = vcmp.ge.f32.partialorder %v4340_v23, 4.0  ;;  %v4203_v5 = vadd.f32 %v15994_v22, %v4042_v45  ;;  %v10252_v33 = vadd.f32 %v10251_v41, %v10250_v15  ;;  %4818 = vst.msk [vmem:[#allocation4 + $0x20] sm:$0xff] %vm3571_vm11, %v4786_v1  ;;  %v4755_v46 = vmul.f32 4.0, %v10025_v21  ;;  %v15996_v1 = vld [vmem:[#allocation54_spill] sm:$0xff] }
 0x440   : > { %v13451_v0 = vadd.f32 %v13377_v10, %v4946_v17  ;;  %v4851_v52 = vsub.f32 %v4563_v25, %v10025_v21  ;;  %v4915_v48 = vsub.f32 %v13416_v19, %v10025_v21  ;;  %v9994_v30 = vsel %vm4372_vm12, 1.0, %v15893_v9  ;;  %v4311_v21 = vld [vmem:[#allocation4 + $0x48] sm:$0xff] }
 0x441   : > { %v4341_v63 = vadd.f32 %v4309_v60, %v4203_v5  ;;  %v4047_v32 = vadd.f32 %v10249_v29, %v13355_v24  ;;  %v4050_v34 = vadd.f32 %v10252_v33, %v13355_v24  ;;  %v4787_v41 = vadd.f32 %v4755_v46, %v4499_v26  ;;  %v4534_v29 = vld [vmem:[#allocation5 + $0x40] sm:$0xff] }
 0x442   : > { %v5130_v15 = vsel %vm3571_vm11, %v13451_v0, 0.0  ;;  %v5196_v51 = vmul.f32 %v13451_v0, %v13451_v0  ;;  %4883 = vst.msk [vmem:[#allocation5 + $0x28] sm:$0xff] %vm3571_vm11, %v4851_v52  ;;  %v4947_v14 = vmul.f32 4.0, %v4915_v48  ;;  %v4468_v19 = vmul.f32 4.0, %v9994_v30 }
 0x443   : > { %v5131_v4 = vadd.f32 %v5130_v15, %v5129_v28  ;;  %v4564_v25 = vadd.f32 %v9994_v30, %v4532_v3  ;;  %vm4373_vm13 = vcmp.ge.f32.partialorder %v4341_v63, 4.0  ;;  %4819 = vst.msk [vmem:[#allocation4 + $0x28] sm:$0xff] %vm3571_vm11, %v4787_v41  ;;  %v4208_v26 = vadd.f32 %v15995_v39, %v4047_v32  ;;  %v13469_v47 = vpop.f32.mrb[24].mxu1 }
 0x444   : > { %v5231_v37 = vsel %vm3571_vm11, %v5196_v51, 0.0  ;;  %v13465_v40 = vadd.f32 %v13377_v10, %v4947_v14  ;;  %v9995_v62 = vsel %vm4373_vm13, 1.0, %v15893_v9  ;;  %v4500_v59 = vsub.f32 %v4340_v23, %v4468_v19  ;;  %v13471_v38 = vpop.f32.mrb[25].mxu1 }
 0x445   : > { %v5232_v11 = vadd.f32 %v5231_v37, %v5230_v43  ;;  %v4469_v20 = vmul.f32 4.0, %v9995_v62  ;;  %v4565_v35 = vadd.f32 %v9995_v62, %v4533_v12  ;;  %v4342_v27 = vadd.f32 %v4310_v2, %v4208_v26  ;;  %v13477_v50 = vpop.f32.mrb[26].mxu1  ;;  %v15997_v26 = vld [vmem:[#allocation51_spill] sm:$0xff] }
 0x446   : > { %v5132_v28 = vsel %vm3571_vm11, %v13465_v40, 0.0  ;;  %v5197_v31 = vmul.f32 %v13465_v40, %v13465_v40  ;;  %vm4596_vm14 = vcmp.le.f32.partialorder %v4500_v59, -0.001  ;;  %vm4628_vm15 = vcmp.gt.f32.partialorder %v4564_v25, 0.0  ;;  %v13480_v43 = vpop.f32.mrb[27].mxu1 }
 0x447   : > { %v4501_v45 = vsub.f32 %v4341_v63, %v4469_v20  ;;  %v4211_v17 = vadd.f32 %v15996_v1, %v4050_v34  ;;  %v5133_v23 = vadd.f32 %v5132_v28, %v5131_v4  ;;  %vm4660_vm0 = vmand %vm4596_vm14, %vm4628_vm15  ;;  %vm4374_vm1 = vcmp.ge.f32.partialorder %v4342_v27, 4.0  ;;  %v4312_v20 = vld [vmem:[#allocation4 + $0x50] sm:$0xff] }
 0x448   : > { %v5233_v60 = vsel %vm3571_vm11, %v5197_v31, 0.0  ;;  %v10255_v22 = vadd.f32 %v10254_v58, %v13437_v7  ;;  %v10026_v5 = vsel %vm4660_vm0, 1.0, %v15893_v9  ;;  %vm4629_vm3 = vcmp.gt.f32.partialorder %v4565_v35, 0.0 }
 0x449   : > { %vm4597_vm2 = vcmp.le.f32.partialorder %v4501_v45, -0.001  ;;  %v9996_v33 = vsel %vm4374_vm1, 1.0, %v15893_v9  ;;  %v4756_v46 = vmul.f32 4.0, %v10026_v5  ;;  %v4852_v52 = vsub.f32 %v4564_v25, %v10026_v5 }
 0x44a   : > { %v4916_v48 = vsub.f32 %v9994_v30, %v10026_v5  ;;  %vm4661_vm8 = vmand %vm4597_vm2, %vm4629_vm3  ;;  %v4470_v3 = vmul.f32 4.0, %v9996_v33  ;;  %v4566_v32 = vadd.f32 %v9996_v33, %v4534_v29  ;;  %v4343_v34 = vadd.f32 %v4311_v21, %v4211_v17  ;;  %v4535_v30 = vld [vmem:[#allocation5 + $0x48] sm:$0xff] }
 0x44b   : > { %v10027_v63 = vsel %vm4661_vm8, 1.0, %v15893_v9  ;;  %v4055_v15 = vadd.f32 %v10255_v22, %v13355_v24  ;;  %v4788_v51 = vadd.f32 %v4756_v46, %v4500_v59  ;;  %4884 = vst.msk [vmem:[#allocation5 + $0x30] sm:$0xff] %vm3571_vm11, %v4852_v52  ;;  %v13489_v14 = vpop.f32.mrb[28].mxu1  ;;  %v5234_v4 = vadd.f32 %v5233_v60, %v5232_v11 }
 0x44c   : > { %v4948_v7 = vmul.f32 4.0, %v4916_v48  ;;  %v4757_v58 = vmul.f32 4.0, %v10027_v63  ;;  %v4853_v41 = vsub.f32 %v4565_v35, %v10027_v63  ;;  %v4917_v19 = vsub.f32 %v9995_v62, %v10027_v63  ;;  %v13491_v12 = vpop.f32.mrb[29].mxu1 }
 0x44d   : > { %v4502_v25 = vsub.f32 %v4342_v27, %v4470_v3  ;;  %vm4375_vm9 = vcmp.ge.f32.partialorder %v4343_v34, 4.0  ;;  %4820 = vst.msk [vmem:[#allocation4 + $0x30] sm:$0xff] %vm3571_vm11, %v4788_v51  ;;  %v4216_v59 = vadd.f32 %v15997_v26, %v4055_v15  ;;  %v13500_v11 = vpop.f32.mrb[30].mxu1  ;;  %vm4630_vm13 = vcmp.gt.f32.partialorder %v4566_v32, 0.0 }
 0x44e   : > { %v13495_v2 = vadd.f32 %v13377_v10, %v4948_v7  ;;  %v4789_v37 = vadd.f32 %v4757_v58, %v4501_v45  ;;  %4885 = vst.msk [vmem:[#allocation5 + $0x38] sm:$0xff] %vm3571_vm11, %v4853_v41  ;;  %v9997_v39 = vsel %vm4375_vm9, 1.0, %v15893_v9  ;;  %v4949_v62 = vmul.f32 4.0, %v4917_v19  ;;  %v13502_v31 = vpop.f32.mrb[31].mxu1 }
 0x44f   : > { %vm4598_vm12 = vcmp.le.f32.partialorder %v4502_v25, -0.001  ;;  %v4471_v28 = vmul.f32 4.0, %v9997_v39  ;;  %v4567_v45 = vadd.f32 %v9997_v39, %v4535_v30  ;;  %v10258_v1 = vadd.f32 %v13447_v44, %v13443_v49 }
 0x450   : > { %v5134_v35 = vsel %vm3571_vm11, %v13495_v2, 0.0  ;;  %v5198_v27 = vmul.f32 %v13495_v2, %v13495_v2  ;;  %4821 = vst.msk [vmem:[#allocation4 + $0x38] sm:$0xff] %vm3571_vm11, %v4789_v37  ;;  %vm4662_vm14 = vmand %vm4598_vm12, %vm4630_vm13  ;;  %v13512_v17 = vadd.f32 %v13377_v10, %v4949_v62  ;;  %v4344_v21 = vadd.f32 %v4312_v20, %v4216_v59 }
 0x451   : > { %v10028_v60 = vsel %vm4662_vm14, 1.0, %v15893_v9  ;;  %v4503_v29 = vsub.f32 %v4343_v34, %v4471_v28  ;;  %v5135_v48 = vadd.f32 %v5134_v35, %v5133_v23  ;;  %vm4631_vm0 = vcmp.gt.f32.partialorder %v4567_v45, 0.0  ;;  %v15999_v28 = vld [vmem:[#allocation53_spill] sm:$0xff] }
 0x452   : > { %v5235_v22 = vsel %vm3571_vm11, %v5198_v27, 0.0  ;;  %v4758_v5 = vmul.f32 4.0, %v10028_v60  ;;  %v4854_v46 = vsub.f32 %v4566_v32, %v10028_v60  ;;  %v4918_v52 = vsub.f32 %v9996_v33, %v10028_v60  ;;  %v4536_v32 = vld [vmem:[#allocation5 + $0x50] sm:$0xff] }
 0x453   : > { %v5199_v3 = vmul.f32 %v13512_v17, %v13512_v17  ;;  %vm4599_vm15 = vcmp.le.f32.partialorder %v4503_v29, -0.001  ;;  %v5236_v63 = vadd.f32 %v5235_v22, %v5234_v4  ;;  %v13519_v44 = vpop.f32.mrb[32].mxu1  ;;  %v5136_v34 = vsel %vm3571_vm11, %v13512_v17, 0.0 }
 0x454   : > { %v4790_v15 = vadd.f32 %v4758_v5, %v4502_v25  ;;  %4886 = vst.msk [vmem:[#allocation5 + $0x40] sm:$0xff] %vm3571_vm11, %v4854_v46  ;;  %v4950_v49 = vmul.f32 4.0, %v4918_v52  ;;  %vm4663_vm1 = vmand %vm4599_vm15, %vm4631_vm0  ;;  %vm4376_vm2 = vcmp.ge.f32.partialorder %v4344_v21, 4.0  ;;  %v4058_v23 = vadd.f32 %v10258_v1, %v13355_v24  ;;  %v13526_v51 = vpop.f32.mrb[33].mxu1 }
 0x455   : > { %v10261_v33 = vadd.f32 %v13471_v38, %v13469_v47  ;;  %v5237_v7 = vsel %vm3571_vm11, %v5199_v3, 0.0  ;;  %v10029_v41 = vsel %vm4663_vm1, 1.0, %v15893_v9  ;;  %v9998_v4 = vsel %vm4376_vm2, 1.0, %v15893_v9  ;;  %v13535_v19 = vpop.f32.mrb[34].mxu1  ;;  %v4313_v47 = vld [vmem:[#allocation4 + $0x58] sm:$0xff] }
 0x456   : > { %4822 = vst.msk [vmem:[#allocation4 + $0x40] sm:$0xff] %vm3571_vm11, %v4790_v15  ;;  %v13531_v58 = vadd.f32 %v13377_v10, %v4950_v49  ;;  %v4759_v25 = vmul.f32 4.0, %v10029_v41  ;;  %v4855_v30 = vsub.f32 %v4567_v45, %v10029_v41  ;;  %v4919_v37 = vsub.f32 %v9997_v39, %v10029_v41  ;;  %v13537_v38 = vpop.f32.mrb[35].mxu1 }
 0x457   : > { %v4472_v26 = vmul.f32 4.0, %v9998_v4  ;;  %v5137_v59 = vadd.f32 %v5136_v34, %v5135_v48  ;;  %v4568_v62 = vadd.f32 %v9998_v4, %v4536_v32  ;;  %v4219_v35 = vadd.f32 %v15999_v28, %v4058_v23  ;;  %v16001_v48 = vld [vmem:[#allocation57_spill] sm:$0xff]  ;;  %v4538_v28 = vld [vmem:[#allocation5 + $0x60] sm:$0xff] }
 0x458   : > { %15998 = vst [vmem:[#allocation21_spill] sm:$0xff] %v13531_v58  ;;  %v5200_v20 = vmul.f32 %v13531_v58, %v13531_v58  ;;  %v5238_v27 = vadd.f32 %v5237_v7, %v5236_v63  ;;  %v4791_v1 = vadd.f32 %v4759_v25, %v4503_v29  ;;  %4887 = vst.msk [vmem:[#allocation5 + $0x48] sm:$0xff] %vm3571_vm11, %v4855_v30  ;;  %v4951_v60 = vmul.f32 4.0, %v4919_v37  ;;  %v4314_v63 = vld [vmem:[#allocation4 + $0x60] sm:$0xff] }
 0x459   : > { %v4504_v22 = vsub.f32 %v4344_v21, %v4472_v26  ;;  %v5138_v39 = vsel %vm3571_vm11, %v13531_v58, 0.0  ;;  %v4345_v5 = vadd.f32 %v4313_v47, %v4219_v35  ;;  %v4063_v46 = vadd.f32 %v10261_v33, %v13355_v24  ;;  %v4537_v21 = vld [vmem:[#allocation5 + $0x58] sm:$0xff]  ;;  %v4315_v35 = vld [vmem:[#allocation4 + $0x68] sm:$0xff] }
 0x45a   : > { %v5239_v45 = vsel %vm3571_vm11, %v5200_v20, 0.0  ;;  %4823 = vst.msk [vmem:[#allocation4 + $0x48] sm:$0xff] %vm3571_vm11, %v4791_v1  ;;  %v13549_v52 = vadd.f32 %v13377_v10, %v4951_v60  ;;  %vm4632_vm8 = vcmp.gt.f32.partialorder %v4568_v62, 0.0  ;;  %v10264_v29 = vadd.f32 %v13480_v43, %v13477_v50 }
 0x45b   : > { %vm4600_vm3 = vcmp.le.f32.partialorder %v4504_v22, -0.001  ;;  %vm4377_vm12 = vcmp.ge.f32.partialorder %v4345_v5, 4.0  ;;  %v4224_v3 = vadd.f32 %v16001_v48, %v4063_v46  ;;  %v10267_v15 = vadd.f32 %v13491_v12, %v13489_v14  ;;  %v13558_v34 = vpop.f32.mrb[36].mxu1 }
 0x45c   : > { %16000 = vst [vmem:[#allocation20_spill] sm:$0xff] %v13549_v52  ;;  %vm4664_vm9 = vmand %vm4600_vm3, %vm4632_vm8  ;;  %v10270_v49 = vadd.f32 %v13502_v31, %v13500_v11  ;;  %v5139_v32 = vadd.f32 %v5138_v39, %v5137_v59  ;;  %v5201_v23 = vmul.f32 %v13549_v52, %v13549_v52  ;;  %v9999_v43 = vsel %vm4377_vm12, 1.0, %v15893_v9  ;;  %v13564_v33 = vpop.f32.mrb[37].mxu1 }
 0x45d   : > { %v10030_v50 = vsel %vm4664_vm9, 1.0, %v15893_v9  ;;  %v5240_v7 = vadd.f32 %v5239_v45, %v5238_v27  ;;  %v13566_v14 = vpop.f32.mrb[38].mxu1  ;;  %v5140_v12 = vsel %vm3571_vm11, %v13549_v52, 0.0  ;;  %v4473_v11 = vmul.f32 4.0, %v9999_v43 }
 0x45e   : > { %v4760_v41 = vmul.f32 4.0, %v10030_v50  ;;  %v4856_v25 = vsub.f32 %v4568_v62, %v10030_v50  ;;  %v4920_v30 = vsub.f32 %v9998_v4, %v10030_v50  ;;  %v4569_v31 = vadd.f32 %v9999_v43, %v4537_v21  ;;  %v13570_v26 = vpop.f32.mrb[39].mxu1 }
 0x45f   : > { %v4346_v37 = vadd.f32 %v4314_v63, %v4224_v3  ;;  %v5241_v47 = vsel %vm3571_vm11, %v5201_v23, 0.0  ;;  %v4066_v62 = vadd.f32 %v10264_v29, %v13355_v24  ;;  %v4505_v4 = vsub.f32 %v4345_v5, %v4473_v11  ;;  %v16004_v5 = vld [vmem:[#allocation56_spill] sm:$0xff]  ;;  %v16005_v23 = vld [vmem:[#allocation58_spill] sm:$0xff] }
 0x460   : > { %v4792_v59 = vadd.f32 %v4760_v41, %v4504_v22  ;;  %4888 = vst.msk [vmem:[#allocation5 + $0x50] sm:$0xff] %vm3571_vm11, %v4856_v25  ;;  %v4952_v20 = vmul.f32 4.0, %v4920_v30  ;;  %vm4633_vm13 = vcmp.gt.f32.partialorder %v4569_v31, 0.0  ;;  %v4071_v27 = vadd.f32 %v10267_v15, %v13355_v24  ;;  %v16003_v22 = vld [vmem:[#allocation59_spill] sm:$0xff]  ;;  %v4316_v15 = vld [vmem:[#allocation4 + $0x70] sm:$0xff] }
 0x461   : > { %vm4378_vm14 = vcmp.ge.f32.partialorder %v4346_v37, 4.0  ;;  %v4227_v39 = vadd.f32 %v16003_v22, %v4066_v62  ;;  %v4074_v45 = vadd.f32 %v10270_v49, %v13355_v24  ;;  %vm4601_vm15 = vcmp.le.f32.partialorder %v4505_v4, -0.001 }
 0x462   : > { %4824 = vst.msk [vmem:[#allocation4 + $0x50] sm:$0xff] %vm3571_vm11, %v4792_v59  ;;  %v13578_v1 = vadd.f32 %v13377_v10, %v4952_v20  ;;  %v10000_v60 = vsel %vm4378_vm14, 1.0, %v15893_v9  ;;  %v4232_v21 = vadd.f32 %v16004_v5, %v4071_v27  ;;  %v5141_v48 = vadd.f32 %v5140_v12, %v5139_v32  ;;  %vm4665_vm0 = vmand %vm4601_vm15, %vm4633_vm13  ;;  %v4317_v59 = vld [vmem:[#allocation4 + $0x78] sm:$0xff] }
 0x463   : > { %v4474_v46 = vmul.f32 4.0, %v10000_v60  ;;  %v4570_v29 = vadd.f32 %v10000_v60, %v4538_v28  ;;  %v4347_v63 = vadd.f32 %v4315_v35, %v4227_v39  ;;  %v4235_v50 = vadd.f32 %v16005_v23, %v4074_v45  ;;  %v13588_v41 = vpop.f32.mrb[40].mxu1  ;;  %v4539_v35 = vld [vmem:[#allocation5 + $0x68] sm:$0xff] }
 0x464   : > { %16002 = vst [vmem:[#allocation23_spill] sm:$0xff] %v13578_v1  ;;  %v5142_v3 = vsel %vm3571_vm11, %v13578_v1, 0.0  ;;  %v5242_v25 = vadd.f32 %v5241_v47, %v5240_v7  ;;  %v5202_v49 = vmul.f32 %v13578_v1, %v13578_v1  ;;  %v10031_v30 = vsel %vm4665_vm0, 1.0, %v15893_v9  ;;  %v13593_v32 = vpop.f32.mrb[41].mxu1  ;;  %v4544_v1 = vld [vmem:[#allocation5 + $0x90] sm:$0xff] }
 0x465   : > { %v4506_v11 = vsub.f32 %v4346_v37, %v4474_v46  ;;  %v5143_v12 = vadd.f32 %v5142_v3, %v5141_v48  ;;  %v4761_v20 = vmul.f32 4.0, %v10031_v30  ;;  %v4857_v28 = vsub.f32 %v4569_v31, %v10031_v30  ;;  %v13595_v27 = vpop.f32.mrb[42].mxu1  ;;  %v4540_v3 = vld [vmem:[#allocation5 + $0x70] sm:$0xff] }
 0x466   : > { %v4921_v62 = vsub.f32 %v9999_v43, %v10031_v30  ;;  %vm4634_vm2 = vcmp.gt.f32.partialorder %v4570_v29, 0.0  ;;  %vm4379_vm3 = vcmp.ge.f32.partialorder %v4347_v63, 4.0  ;;  %v4348_v7 = vadd.f32 %v4316_v15, %v4232_v21  ;;  %v13597_v47 = vpop.f32.mrb[43].mxu1 }
 0x467   : > { %vm4602_vm1 = vcmp.le.f32.partialorder %v4506_v11, -0.001  ;;  %v4793_v22 = vadd.f32 %v4761_v20, %v4505_v4  ;;  %4889 = vst.msk [vmem:[#allocation5 + $0x58] sm:$0xff] %vm3571_vm11, %v4857_v28  ;;  %v10001_v39 = vsel %vm4379_vm3, 1.0, %v15893_v9  ;;  %v4349_v45 = vadd.f32 %v4317_v59, %v4235_v50 }
 0x468   : > { %v4953_v37 = vmul.f32 4.0, %v4921_v62  ;;  %vm4666_vm8 = vmand %vm4602_vm1, %vm4634_vm2  ;;  %v4475_v43 = vmul.f32 4.0, %v10001_v39  ;;  %v4571_v46 = vadd.f32 %v10001_v39, %v4539_v35  ;;  %vm4380_vm9 = vcmp.ge.f32.partialorder %v4348_v7, 4.0 }
 0x469   : > { %v10032_v31 = vsel %vm4666_vm8, 1.0, %v15893_v9  ;;  %4825 = vst.msk [vmem:[#allocation4 + $0x58] sm:$0xff] %vm3571_vm11, %v4793_v22  ;;  %v5243_v15 = vsel %vm3571_vm11, %v5202_v49, 0.0  ;;  %v10002_v30 = vsel %vm4380_vm9, 1.0, %v15893_v9  ;;  %vm4381_vm12 = vcmp.ge.f32.partialorder %v4349_v45, 4.0 }
 0x46a   : > { %v13604_v5 = vadd.f32 %v13377_v10, %v4953_v37  ;;  %v4762_v21 = vmul.f32 4.0, %v10032_v31  ;;  %v4858_v48 = vsub.f32 %v4570_v29, %v10032_v31  ;;  %v4922_v4 = vsub.f32 %v10000_v60, %v10032_v31 }
 0x46b   : > { %v4507_v23 = vsub.f32 %v4347_v63, %v4475_v43  ;;  %vm4635_vm13 = vcmp.gt.f32.partialorder %v4571_v46, 0.0  ;;  %v13611_v28 = vpop.f32.mrb[44].mxu1  ;;  %v4476_v29 = vmul.f32 4.0, %v10002_v30  ;;  %v4572_v49 = vadd.f32 %v10002_v30, %v4540_v3 }
 0x46c   : > { %16006 = vst [vmem:[#allocation22_spill] sm:$0xff] %v13604_v5  ;;  %v5203_v50 = vmul.f32 %v13604_v5, %v13604_v5  ;;  %v4794_v59 = vadd.f32 %v4762_v21, %v4506_v11  ;;  %4890 = vst.msk [vmem:[#allocation5 + $0x60] sm:$0xff] %vm3571_vm11, %v4858_v48  ;;  %v4954_v20 = vmul.f32 4.0, %v4922_v4  ;;  %v5144_v60 = vsel %vm3571_vm11, %v13604_v5, 0.0  ;;  %v13615_v63 = vpop.f32.mrb[45].mxu1  ;;  %v4541_v21 = vld [vmem:[#allocation5 + $0x78] sm:$0xff] }
 0x46d   : > { %vm4603_vm14 = vcmp.le.f32.partialorder %v4507_v23, -0.001  ;;  %v5244_v62 = vadd.f32 %v5243_v15, %v5242_v25  ;;  %v13623_v11 = vsel %vm4381_vm12, 1.0, %v15893_v9  ;;  %v10273_v22 = vadd.f32 %v13526_v51, %v13519_v44  ;;  %v13627_v37 = vpop.f32.mrb[46].mxu1 }
 0x46e   : > { %4826 = vst.msk [vmem:[#allocation4 + $0x60] sm:$0xff] %vm3571_vm11, %v4794_v59  ;;  %v13619_v35 = vadd.f32 %v13377_v10, %v4954_v20  ;;  %vm4667_vm15 = vmand %vm4603_vm14, %vm4635_vm13  ;;  %v5245_v31 = vsel %vm3571_vm11, %v5203_v50, 0.0  ;;  %v4508_v25 = vsub.f32 %v4348_v7, %v4476_v29  ;;  %v13631_v48 = vpop.f32.mrb[47].mxu1  ;;  %v5145_v4 = vadd.f32 %v5144_v60, %v5143_v12 }
 0x46f   : > { %v10033_v43 = vsel %vm4667_vm15, 1.0, %v15893_v9  ;;  %vm4636_vm1 = vcmp.gt.f32.partialorder %v4572_v49, 0.0  ;;  %v4477_v20 = vmul.f32 4.0, %v13623_v11  ;;  %v5246_v55 = vadd.f32 %v5245_v31, %v5244_v62 }
 0x470   : > { %16007 = vst [vmem:[#allocation25_spill] sm:$0xff] %v13619_v35  ;;  %v4763_v3 = vmul.f32 4.0, %v10033_v43  ;;  %v4859_v15 = vsub.f32 %v4571_v46, %v10033_v43  ;;  %v4923_v59 = vsub.f32 %v10001_v39, %v10033_v43  ;;  %vm4604_vm0 = vcmp.le.f32.partialorder %v4508_v25, -0.001 }
 0x471   : > { %vm4668_vm2 = vmand %vm4604_vm0, %vm4636_vm1  ;;  %v4573_v51 = vadd.f32 %v13623_v11, %v4541_v21  ;;  %v4079_v7 = vadd.f32 %v10273_v22, %v13355_v24  ;;  %v5204_v50 = vmul.f32 %v13619_v35, %v13619_v35  ;;  %v4509_v39 = vsub.f32 %v4349_v45, %v4477_v20  ;;  %v16009_v24 = vld [vmem:[#allocation61_spill] sm:$0xff] }
 0x472   : > { %v4795_v44 = vadd.f32 %v4763_v3, %v4507_v23  ;;  %4891 = vst.msk [vmem:[#allocation5 + $0x68] sm:$0xff] %vm3571_vm11, %v4859_v15  ;;  %v4955_v12 = vmul.f32 4.0, %v4923_v59  ;;  %v10034_v46 = vsel %vm4668_vm2, 1.0, %v15893_v9  ;;  %v4318_v23 = vld [vmem:[#allocation4 + $0x80] sm:$0xff]  ;;  %v10276_v21 = vadd.f32 %v13537_v38, %v13535_v19 }
 0x473   : > { %v4764_v60 = vmul.f32 4.0, %v10034_v46  ;;  %v4860_v29 = vsub.f32 %v4572_v49, %v10034_v46  ;;  %v4924_v62 = vsub.f32 %v10002_v30, %v10034_v46  ;;  %vm4637_vm3 = vcmp.gt.f32.partialorder %v4573_v51, 0.0  ;;  %v13641_v31 = vpop.f32.mrb[48].mxu1 }
 0x474   : > { %4827 = vst.msk [vmem:[#allocation4 + $0x68] sm:$0xff] %vm3571_vm11, %v4795_v44  ;;  %v13644_v43 = vadd.f32 %v13377_v10, %v4955_v12  ;;  %vm4605_vm8 = vcmp.le.f32.partialorder %v4509_v39, -0.001  ;;  %v4240_v22 = vadd.f32 %v16009_v24, %v4079_v7  ;;  %v13649_v3 = vpop.f32.mrb[49].mxu1  ;;  %v10279_v30 = vadd.f32 %v13564_v33, %v13558_v34  ;;  %v4542_v12 = vld [vmem:[#allocation5 + $0x80] sm:$0xff] }
 0x475   : > { %v4796_v45 = vadd.f32 %v4764_v60, %v4508_v25  ;;  %4892 = vst.msk [vmem:[#allocation5 + $0x70] sm:$0xff] %vm3571_vm11, %v4860_v29  ;;  %v4956_v49 = vmul.f32 4.0, %v4924_v62  ;;  %vm4669_vm9 = vmand %vm4605_vm8, %vm4637_vm3  ;;  %v10282_v15 = vadd.f32 %v13570_v26, %v13566_v14  ;;  %v13656_v59 = vpop.f32.mrb[50].mxu1  ;;  %v5146_v20 = vsel %vm3571_vm11, %v13619_v35, 0.0 }
 0x476   : > { %16008 = vst [vmem:[#allocation24_spill] sm:$0xff] %v13644_v43  ;;  %v5247_v19 = vsel %vm3571_vm11, %v5204_v50, 0.0  ;;  %v10035_v38 = vsel %vm4669_vm9, 1.0, %v15893_v9  ;;  %v4350_v25 = vadd.f32 %v4318_v23, %v4240_v22  ;;  %v13662_v44 = vpop.f32.mrb[51].mxu1  ;;  %v5205_v7 = vmul.f32 %v13644_v43, %v13644_v43  ;;  %v13674_v50 = vld [vmem:[%s15985_s10] ss:$0 sm:$0xff] }
 0x477   : > { %4828 = vst.msk [vmem:[#allocation4 + $0x70] sm:$0xff] %vm3571_vm11, %v4796_v45  ;;  %v13668_v34 = vadd.f32 %v13377_v10, %v4956_v49  ;;  %v4765_v33 = vmul.f32 4.0, %v10035_v38  ;;  %v4861_v14 = vsub.f32 %v4573_v51, %v10035_v38  ;;  %v4925_v26 = vsub.f32 %v13623_v11, %v10035_v38  ;;  %v4319_v23 = vld [vmem:[#allocation4 + $0x88] sm:$0xff]  ;;  %v16011_v22 = vld [vmem:[#allocation63_spill] sm:$0xff] }
 0x478   : > { %vm4382_vm12 = vcmp.ge.f32.partialorder %v4350_v25, 4.0  ;;  %v4082_v46 = vadd.f32 %v13674_v50, %v10276_v21  ;;  %v5147_v60 = vadd.f32 %v5146_v20, %v5145_v4  ;;  %v5248_v29 = vadd.f32 %v5247_v19, %v5246_v55  ;;  %v4320_v19 = vld [vmem:[#allocation4 + $0x90] sm:$0xff] }
 0x479   : > { %16010 = vst [vmem:[#allocation32_spill] sm:$0xff] %v13668_v34  ;;  %v4797_v62 = vadd.f32 %v4765_v33, %v4509_v39  ;;  %4893 = vst.msk [vmem:[#allocation5 + $0x78] sm:$0xff] %vm3571_vm11, %v4861_v14  ;;  %v5148_v51 = vsel %vm3571_vm11, %v13644_v43, 0.0  ;;  %v4957_v24 = vmul.f32 4.0, %v4925_v26  ;;  %v10004_v11 = vsel %vm4382_vm12, 1.0, %v15893_v9 }
 0x47a   : > { %v4243_v45 = vadd.f32 %v16011_v22, %v4082_v46  ;;  %v5249_v49 = vsel %vm3571_vm11, %v5205_v7, 0.0  ;;  %v4478_v38 = vmul.f32 4.0, %v10004_v11  ;;  %v4574_v21 = vadd.f32 %v10004_v11, %v4542_v12  ;;  %v4543_v46 = vld [vmem:[#allocation5 + $0x88] sm:$0xff]  ;;  %v4321_v22 = vld [vmem:[#allocation4 + $0x98] sm:$0xff] }
 0x47b   : > { %4829 = vst.msk [vmem:[#allocation4 + $0x78] sm:$0xff] %vm3571_vm11, %v4797_v62  ;;  %v4087_v55 = vadd.f32 %v13674_v50, %v10279_v30  ;;  %v13685_v4 = vpop.f32.mrb[52].mxu1  ;;  %v13688_v39 = vadd.f32 %v13377_v10, %v4957_v24  ;;  %v4090_v33 = vadd.f32 %v13674_v50, %v10282_v15  ;;  %v5206_v7 = vmul.f32 %v13668_v34, %v13668_v34  ;;  %v16013_v62 = vld [vmem:[#allocation60_spill] sm:$0xff] }
 0x47c   : > { %v4351_v20 = vadd.f32 %v4319_v23, %v4243_v45  ;;  %v13691_v14 = vpop.f32.mrb[53].mxu1  ;;  %v4510_v26 = vsub.f32 %v4350_v25, %v4478_v38  ;;  %v10285_v30 = vadd.f32 %v13593_v32, %v13588_v41  ;;  %v5149_v24 = vadd.f32 %v5148_v51, %v5147_v60  ;;  %v16014_v45 = vld [vmem:[#allocation62_spill] sm:$0xff] }
 0x47d   : > { %16012 = vst [vmem:[#allocation26_spill] sm:$0xff] %v13688_v39  ;;  %v4248_v12 = vadd.f32 %v16013_v62, %v4087_v55  ;;  %v13698_v43 = vpop.f32.mrb[54].mxu1  ;;  %v5250_v23 = vadd.f32 %v5249_v49, %v5248_v29  ;;  %v4251_v15 = vadd.f32 %v16014_v45, %v4090_v33  ;;  %vm4638_vm15 = vcmp.gt.f32.partialorder %v4574_v21, 0.0 }
 0x47e   : > { %vm4383_vm13 = vcmp.ge.f32.partialorder %v4351_v20, 4.0  ;;  %v13701_v35 = vpop.f32.mrb[55].mxu1  ;;  %vm4606_vm14 = vcmp.le.f32.partialorder %v4510_v26, -0.001  ;;  %v5150_v55 = vsel %vm3571_vm11, %v13668_v34, 0.0  ;;  %v5251_v60 = vsel %vm3571_vm11, %v5206_v7, 0.0 }
 0x47f   : > { %v10005_v25 = vsel %vm4383_vm13, 1.0, %v15893_v9  ;;  %v4352_v38 = vadd.f32 %v4320_v19, %v4248_v12  ;;  %vm4670_vm0 = vmand %vm4606_vm14, %vm4638_vm15  ;;  %v4353_v32 = vadd.f32 %v4321_v22, %v4251_v15  ;;  %v4095_v51 = vadd.f32 %v13674_v50, %v10285_v30  ;;  %v4322_v19 = vld [vmem:[#allocation4 + $0xa0] sm:$0xff]  ;;  %v16015_v34 = vld [vmem:[#allocation65_spill] sm:$0xff] }
 0x480   : > { %v4479_v62 = vmul.f32 4.0, %v10005_v25  ;;  %v4575_v41 = vadd.f32 %v10005_v25, %v4543_v46  ;;  %v10036_v29 = vsel %vm4670_vm0, 1.0, %v15893_v9  ;;  %v10288_v30 = vadd.f32 %v13597_v47, %v13595_v27 }
 0x481   : > { %vm4384_vm1 = vcmp.ge.f32.partialorder %v4352_v38, 4.0  ;;  %v4766_v49 = vmul.f32 4.0, %v10036_v29  ;;  %v4862_v33 = vsub.f32 %v4574_v21, %v10036_v29  ;;  %v4926_v45 = vsub.f32 %v10004_v11, %v10036_v29 }
 0x482   : > { %v4511_v5 = vsub.f32 %v4351_v20, %v4479_v62  ;;  %vm4639_vm2 = vcmp.gt.f32.partialorder %v4575_v41, 0.0  ;;  %v10006_v12 = vsel %vm4384_vm1, 1.0, %v15893_v9  ;;  %vm4385_vm3 = vcmp.ge.f32.partialorder %v4353_v32, 4.0 }
 0x483   : > { %v4256_v46 = vadd.f32 %v16015_v34, %v4095_v51  ;;  %v4798_v22 = vadd.f32 %v4766_v49, %v4510_v26  ;;  %4894 = vst.msk [vmem:[#allocation5 + $0x80] sm:$0xff] %vm3571_vm11, %v4862_v33  ;;  %v4958_v7 = vmul.f32 4.0, %v4926_v45  ;;  %v4480_v15 = vmul.f32 4.0, %v10006_v12  ;;  %v4545_v49 = vld [vmem:[#allocation5 + $0x98] sm:$0xff] }
 0x484   : > { %vm4607_vm8 = vcmp.le.f32.partialorder %v4511_v5, -0.001  ;;  %v13712_v52 = vpop.f32.mrb[56].mxu1  ;;  %v4576_v21 = vadd.f32 %v10006_v12, %v4544_v1  ;;  %v10007_v11 = vsel %vm4385_vm3, 1.0, %v15893_v9  ;;  %v5151_v1 = vadd.f32 %v5150_v55, %v5149_v24 }
 0x485   : > { %vm4671_vm9 = vmand %vm4607_vm8, %vm4639_vm2  ;;  %v4354_v20 = vadd.f32 %v4322_v19, %v4256_v46  ;;  %v13717_v62 = vpop.f32.mrb[57].mxu1  ;;  %4830 = vst.msk [vmem:[#allocation4 + $0x80] sm:$0xff] %vm3571_vm11, %v4798_v22  ;;  %v13721_v34 = vadd.f32 %v13377_v10, %v4958_v7  ;;  %v4512_v29 = vsub.f32 %v4352_v38, %v4480_v15  ;;  %v4481_v51 = vmul.f32 4.0, %v10007_v11 }
 0x486   : > { %v10037_v26 = vsel %vm4671_vm9, 1.0, %v15893_v9  ;;  %v13724_v33 = vpop.f32.mrb[58].mxu1  ;;  %v5252_v27 = vadd.f32 %v5251_v60, %v5250_v23  ;;  %vm4640_vm13 = vcmp.gt.f32.partialorder %v4576_v21, 0.0  ;;  %v5152_v22 = vsel %vm3571_vm11, %v13688_v39, 0.0 }
 0x487   : > { %16016 = vst [vmem:[#allocation28_spill] sm:$0xff] %v13721_v34  ;;  %v4767_v45 = vmul.f32 4.0, %v10037_v26  ;;  %v4863_v19 = vsub.f32 %v4575_v41, %v10037_v26  ;;  %v4927_v46 = vsub.f32 %v10005_v25, %v10037_v26  ;;  %v13726_v58 = vpop.f32.mrb[59].mxu1  ;;  %vm4608_vm12 = vcmp.le.f32.partialorder %v4512_v29, -0.001 }
 0x488   : > { %v4513_v47 = vsub.f32 %v4353_v32, %v4481_v51  ;;  %vm4672_vm14 = vmand %vm4608_vm12, %vm4640_vm13  ;;  %v4577_v15 = vadd.f32 %v10007_v11, %v4545_v49  ;;  %v5207_v24 = vmul.f32 %v13688_v39, %v13688_v39  ;;  %vm4386_vm0 = vcmp.ge.f32.partialorder %v4354_v20, 4.0  ;;  %v4546_v32 = vld [vmem:[#allocation5 + $0xa0] sm:$0xff] }
 0x489   : > { %v4799_v7 = vadd.f32 %v4767_v45, %v4511_v5  ;;  %4895 = vst.msk [vmem:[#allocation5 + $0x88] sm:$0xff] %vm3571_vm11, %v4863_v19  ;;  %v4959_v38 = vmul.f32 4.0, %v4927_v46  ;;  %v10038_v25 = vsel %vm4672_vm14, 1.0, %v15893_v9  ;;  %v5154_v23 = vsel %vm3571_vm11, %v13721_v34, 0.0 }
 0x48a   : > { %vm4609_vm15 = vcmp.le.f32.partialorder %v4513_v47, -0.001  ;;  %v4768_v5 = vmul.f32 4.0, %v10038_v25  ;;  %v4864_v41 = vsub.f32 %v4576_v21, %v10038_v25  ;;  %v5208_v60 = vmul.f32 %v13721_v34, %v13721_v34 }
 0x48b   : > { %4831 = vst.msk [vmem:[#allocation4 + $0x88] sm:$0xff] %vm3571_vm11, %v4799_v7  ;;  %v13738_v55 = vadd.f32 %v13377_v10, %v4959_v38  ;;  %v4928_v26 = vsub.f32 %v10006_v12, %v10038_v25  ;;  %vm4641_vm1 = vcmp.gt.f32.partialorder %v4577_v15, 0.0  ;;  %v10008_v51 = vsel %vm4386_vm0, 1.0, %v15893_v9 }
 0x48c   : > { %v5153_v49 = vadd.f32 %v5152_v22, %v5151_v1  ;;  %v4800_v45 = vadd.f32 %v4768_v5, %v4512_v29  ;;  %4896 = vst.msk [vmem:[#allocation5 + $0x90] sm:$0xff] %vm3571_vm11, %v4864_v41  ;;  %vm4673_vm2 = vmand %vm4609_vm15, %vm4641_vm1  ;;  %v4482_v19 = vmul.f32 4.0, %v10008_v51  ;;  %v4098_v46 = vadd.f32 %v13674_v50, %v10288_v30 }
 0x48d   : > { %v5253_v7 = vsel %vm3571_vm11, %v5207_v24, 0.0  ;;  %v4960_v21 = vmul.f32 4.0, %v4928_v26  ;;  %v10039_v38 = vsel %vm4673_vm2, 1.0, %v15893_v9  ;;  %v4578_v39 = vadd.f32 %v10008_v51, %v4546_v32  ;;  %v4323_v24 = vld [vmem:[#allocation4 + $0xa8] sm:$0xff] }
 0x48e   : > { %v5155_v34 = vadd.f32 %v5154_v23, %v5153_v49  ;;  %4832 = vst.msk [vmem:[#allocation4 + $0x90] sm:$0xff] %vm3571_vm11, %v4800_v45  ;;  %v4769_v12 = vmul.f32 4.0, %v10039_v38  ;;  %v4865_v25 = vsub.f32 %v4577_v15, %v10039_v38  ;;  %v4929_v1 = vsub.f32 %v10007_v11, %v10039_v38 }
 0x48f   : > { %v5255_v29 = vsel %vm3571_vm11, %v5208_v60, 0.0  ;;  %v5156_v22 = vsel %vm3571_vm11, %v13738_v55, 0.0  ;;  %v13753_v5 = vadd.f32 %v13377_v10, %v4960_v21  ;;  %v4514_v30 = vsub.f32 %v4354_v20, %v4482_v19  ;;  %v4547_v21 = vld [vmem:[#allocation5 + $0xa8] sm:$0xff] }
 0x490   : > { %v4801_v41 = vadd.f32 %v4769_v12, %v4513_v47  ;;  %4897 = vst.msk [vmem:[#allocation5 + $0x98] sm:$0xff] %vm3571_vm11, %v4865_v25  ;;  %v4961_v32 = vmul.f32 4.0, %v4929_v1  ;;  %v4259_v23 = vadd.f32 %v13055_v56, %v4098_v46  ;;  %v10291_v15 = vadd.f32 %v13615_v63, %v13611_v28 }
 0x491   : > { %v13759_v11 = vpop.f32.mrb[60].mxu1  ;;  %v5209_v60 = vmul.f32 %v13738_v55, %v13738_v55  ;;  %vm4610_vm3 = vcmp.le.f32.partialorder %v4514_v30, -0.001  ;;  %vm4642_vm8 = vcmp.gt.f32.partialorder %v4578_v39, 0.0  ;;  %v10294_v20 = vadd.f32 %v13631_v48, %v13627_v37 }
 0x492   : > { %v13765_v26 = vpop.f32.mrb[61].mxu1  ;;  %v5254_v47 = vadd.f32 %v5253_v7, %v5252_v27  ;;  %4833 = vst.msk [vmem:[#allocation4 + $0x98] sm:$0xff] %vm3571_vm11, %v4801_v41  ;;  %v13769_v56 = vadd.f32 %v13377_v10, %v4961_v32  ;;  %vm4674_vm9 = vmand %vm4610_vm3, %vm4642_vm8  ;;  %v4355_v28 = vadd.f32 %v4323_v24, %v4259_v23  ;;  %v4103_v63 = vadd.f32 %v13674_v50, %v10291_v15  ;;  %v4324_v24 = vld [vmem:[#allocation4 + $0xb0] sm:$0xff] }
 0x493   : > { %v13772_v49 = vpop.f32.mrb[62].mxu1  ;;  %v5210_v45 = vmul.f32 %v13753_v5, %v13753_v5  ;;  %v10040_v19 = vsel %vm4674_vm9, 1.0, %v15893_v9  ;;  %v10297_v37 = vadd.f32 %v13649_v3, %v13641_v31  ;;  %v5157_v46 = vadd.f32 %v5156_v22, %v5155_v34  ;;  %v16017_v3 = vld [vmem:[#allocation64_spill] sm:$0xff] }
 0x494   : > { %v13779_v48 = vpop.f32.mrb[63].mxu1  ;;  %v5256_v27 = vadd.f32 %v5255_v29, %v5254_v47  ;;  %v4770_v7 = vmul.f32 4.0, %v10040_v19  ;;  %v4106_v38 = vadd.f32 %v13674_v50, %v10294_v20  ;;  %v5257_v12 = vsel %vm3571_vm11, %v5209_v60, 0.0  ;;  %v4325_v60 = vld [vmem:[#allocation4 + $0xb8] sm:$0xff] }
 0x495   : > { %v4866_v25 = vsub.f32 %v4578_v39, %v10040_v19  ;;  %v4930_v1 = vsub.f32 %v10008_v51, %v10040_v19  ;;  %vm4387_vm12 = vcmp.ge.f32.partialorder %v4355_v28, 4.0  ;;  %v5158_v41 = vsel %vm3571_vm11, %v13753_v5, 0.0  ;;  %v16018_v51 = vld [vmem:[#allocation66_spill] sm:$0xff] }
 0x496   : > { %v4802_v32 = vadd.f32 %v4770_v7, %v4514_v30  ;;  %v10009_v31 = vsel %vm4387_vm12, 1.0, %v15893_v9  ;;  %v4264_v23 = vadd.f32 %v16017_v3, %v4103_v63  ;;  %v5259_v34 = vsel %vm3571_vm11, %v5210_v45, 0.0 }
 0x497   : > { %4898 = vst.msk [vmem:[#allocation5 + $0xa0] sm:$0xff] %vm3571_vm11, %v4866_v25  ;;  %v4962_v29 = vmul.f32 4.0, %v4930_v1  ;;  %v4483_v22 = vmul.f32 4.0, %v10009_v31  ;;  %v4579_v15 = vadd.f32 %v10009_v31, %v4547_v21  ;;  %v4267_v20 = vadd.f32 %v16018_v51, %v4106_v38  ;;  %v4548_v25 = vld [vmem:[#allocation5 + $0xb0] sm:$0xff]  ;;  %v4326_v38 = vld [vmem:[#allocation4 + $0xc0] sm:$0xff] }
 0x498   : > { %4834 = vst.msk [vmem:[#allocation4 + $0xa0] sm:$0xff] %vm3571_vm11, %v4802_v32  ;;  %v4356_v39 = vadd.f32 %v4324_v24, %v4264_v23  ;;  %v4111_v47 = vadd.f32 %v13674_v50, %v10297_v37  ;;  %v10300_v30 = vadd.f32 %v13662_v44, %v13656_v59  ;;  %v5258_v19 = vadd.f32 %v5257_v12, %v5256_v27  ;;  %v4549_v37 = vld [vmem:[#allocation5 + $0xb8] sm:$0xff] }
 0x499   : > { %v13795_v63 = vadd.f32 %v13377_v10, %v4962_v29  ;;  %v4515_v45 = vsub.f32 %v4355_v28, %v4483_v22  ;;  %v10303_v7 = vadd.f32 %v13691_v14, %v13685_v4  ;;  %v5159_v21 = vadd.f32 %v5158_v41, %v5157_v46 }
 0x49a   : > { %vm4388_vm13 = vcmp.ge.f32.partialorder %v4356_v39, 4.0  ;;  %v4357_v1 = vadd.f32 %v4325_v60, %v4267_v20  ;;  %v4272_v24 = vadd.f32 %v13083_v57, %v4111_v47  ;;  %v5260_v32 = vadd.f32 %v5259_v34, %v5258_v19  ;;  %v4550_v47 = vld [vmem:[#allocation5 + $0xc0] sm:$0xff] }
 0x49b   : > { %vm4611_vm14 = vcmp.le.f32.partialorder %v4515_v45, -0.001  ;;  %vm4643_vm15 = vcmp.gt.f32.partialorder %v4579_v15, 0.0  ;;  %v10010_v59 = vsel %vm4388_vm13, 1.0, %v15893_v9  ;;  %v5160_v44 = vsel %vm3571_vm11, %v13769_v56, 0.0 }
 0x49c   : > { %vm4675_vm0 = vmand %vm4611_vm14, %vm4643_vm15  ;;  %v4484_v28 = vmul.f32 4.0, %v10010_v59  ;;  %vm4389_vm1 = vcmp.ge.f32.partialorder %v4357_v1, 4.0  ;;  %v4114_v4 = vadd.f32 %v13674_v50, %v10300_v30  ;;  %v4580_v27 = vadd.f32 %v10010_v59, %v4548_v25 }
 0x49d   : > { %v10041_v14 = vsel %vm4675_vm0, 1.0, %v15893_v9  ;;  %v10011_v57 = vsel %vm4389_vm1, 1.0, %v15893_v9  ;;  %v4358_v46 = vadd.f32 %v4326_v38, %v4272_v24  ;;  %v5211_v12 = vmul.f32 %v13769_v56, %v13769_v56 }
 0x49e   : > { %v4771_v41 = vmul.f32 4.0, %v10041_v14  ;;  %v4867_v3 = vsub.f32 %v4579_v15, %v10041_v14  ;;  %v4931_v23 = vsub.f32 %v10009_v31, %v10041_v14  ;;  %v13808_v34 = vadd.f32 %v5160_v44, %v5159_v21  ;;  %v4327_v15 = vld [vmem:[#allocation4 + $0xc8] sm:$0xff] }
 0x49f   : > { %v4516_v29 = vsub.f32 %v4356_v39, %v4484_v28  ;;  %v4485_v22 = vmul.f32 4.0, %v10011_v57  ;;  %v4581_v60 = vadd.f32 %v10011_v57, %v4549_v37  ;;  %vm4390_vm2 = vcmp.ge.f32.partialorder %v4358_v46, 4.0 }
 0x4a0   : > { %v4803_v51 = vadd.f32 %v4771_v41, %v4515_v45  ;;  %4899 = vst.msk [vmem:[#allocation5 + $0xa8] sm:$0xff] %vm3571_vm11, %v4867_v3  ;;  %v4963_v20 = vmul.f32 4.0, %v4931_v23  ;;  %v4275_v30 = vadd.f32 %v13092_v8, %v4114_v4  ;;  %vm4644_vm8 = vcmp.gt.f32.partialorder %v4580_v27, 0.0 }
 0x4a1   : > { %vm4612_vm3 = vcmp.le.f32.partialorder %v4516_v29, -0.001  ;;  %v4517_v19 = vsub.f32 %v4357_v1, %v4485_v22  ;;  %v10012_v25 = vsel %vm4390_vm2, 1.0, %v15893_v9  ;;  %v5261_v31 = vsel %vm3571_vm11, %v5211_v12, 0.0 }
 0x4a2   : > { %4835 = vst.msk [vmem:[#allocation4 + $0xa8] sm:$0xff] %vm3571_vm11, %v4803_v51  ;;  %v13816_v39 = vadd.f32 %v13377_v10, %v4963_v20  ;;  %vm4676_vm9 = vmand %vm4612_vm3, %vm4644_vm8  ;;  %vm4645_vm12 = vcmp.gt.f32.partialorder %v4581_v60, 0.0  ;;  %v4486_v45 = vmul.f32 4.0, %v10012_v25  ;;  %v4582_v8 = vadd.f32 %v10012_v25, %v4550_v47 }
 0x4a3   : > { %v10042_v21 = vsel %vm4676_vm9, 1.0, %v15893_v9  ;;  %vm4613_vm13 = vcmp.le.f32.partialorder %v4517_v19, -0.001  ;;  %v10306_v1 = vadd.f32 %v13701_v35, %v13698_v43  ;;  %v4359_v44 = vadd.f32 %v4327_v15, %v4275_v30 }
 0x4a4   : > { %v4772_v24 = vmul.f32 4.0, %v10042_v21  ;;  %v4868_v38 = vsub.f32 %v4580_v27, %v10042_v21  ;;  %vm4677_vm14 = vmand %vm4613_vm13, %vm4645_vm12  ;;  %v4119_v28 = vadd.f32 %v13674_v50, %v10303_v7  ;;  %v5212_v37 = vmul.f32 %v13795_v63, %v13795_v63 }
 0x4a5   : > { %v4932_v4 = vsub.f32 %v10010_v59, %v10042_v21  ;;  %v10043_v14 = vsel %vm4677_vm14, 1.0, %v15893_v9  ;;  %v4518_v12 = vsub.f32 %v4358_v46, %v4486_v45  ;;  %v5262_v41 = vadd.f32 %v5261_v31, %v5260_v32  ;;  %v4551_v59 = vld [vmem:[#allocation5 + $0xc8] sm:$0xff]  ;;  %v4328_v46 = vld [vmem:[#allocation4 + $0xd0] sm:$0xff] }
 0x4a6   : > { %v4804_v3 = vadd.f32 %v4772_v24, %v4516_v29  ;;  %4900 = vst.msk [vmem:[#allocation5 + $0xb0] sm:$0xff] %vm3571_vm11, %v4868_v38  ;;  %v4773_v23 = vmul.f32 4.0, %v10043_v14  ;;  %v4869_v22 = vsub.f32 %v4581_v60, %v10043_v14  ;;  %v5162_v35 = vsel %vm3571_vm11, %v13795_v63, 0.0 }
 0x4a7   : > { %v4964_v43 = vmul.f32 4.0, %v4932_v4  ;;  %v4933_v27 = vsub.f32 %v10011_v57, %v10043_v14  ;;  %vm4614_vm15 = vcmp.le.f32.partialorder %v4518_v12, -0.001  ;;  %vm4646_vm0 = vcmp.gt.f32.partialorder %v4582_v8, 0.0  ;;  %v4552_v14 = vld [vmem:[#allocation5 + $0xd0] sm:$0xff] }
 0x4a8   : > { %4836 = vst.msk [vmem:[#allocation4 + $0xb0] sm:$0xff] %vm3571_vm11, %v4804_v3  ;;  %v4805_v7 = vadd.f32 %v4773_v23, %v4517_v19  ;;  %4901 = vst.msk [vmem:[#allocation5 + $0xb8] sm:$0xff] %vm3571_vm11, %v4869_v22  ;;  %vm4391_vm1 = vcmp.ge.f32.partialorder %v4359_v44, 4.0  ;;  %v4280_v32 = vadd.f32 %v13075_v6, %v4119_v28  ;;  %v5263_v29 = vsel %vm3571_vm11, %v5212_v37, 0.0  ;;  %v4329_v22 = vld [vmem:[#allocation4 + $0xd8] sm:$0xff] }
 0x4a9   : > { %v13833_v60 = vadd.f32 %v13377_v10, %v4964_v43  ;;  %v4965_v51 = vmul.f32 4.0, %v4933_v27  ;;  %vm4678_vm2 = vmand %vm4614_vm15, %vm4646_vm0  ;;  %v10013_v57 = vsel %vm4391_vm1, 1.0, %v15893_v9  ;;  %v5213_v20 = vmul.f32 %v13816_v39, %v13816_v39 }
 0x4aa   : > { %4837 = vst.msk [vmem:[#allocation4 + $0xb8] sm:$0xff] %vm3571_vm11, %v4805_v7  ;;  %v10044_v47 = vsel %vm4678_vm2, 1.0, %v15893_v9  ;;  %v4487_v30 = vmul.f32 4.0, %v10013_v57  ;;  %v4122_v6 = vadd.f32 %v13674_v50, %v10306_v1  ;;  %v4583_v31 = vadd.f32 %v10013_v57, %v4551_v59 }
 0x4ab   : > { %v13842_v19 = vadd.f32 %v13377_v10, %v4965_v51  ;;  %v4774_v15 = vmul.f32 4.0, %v10044_v47  ;;  %v4360_v45 = vadd.f32 %v4328_v46, %v4280_v32  ;;  %v4870_v21 = vsub.f32 %v4582_v8, %v10044_v47 }
 0x4ac   : > { %v4934_v24 = vsub.f32 %v10012_v25, %v10044_v47  ;;  %v4519_v38 = vsub.f32 %v4359_v44, %v4487_v30  ;;  %v5163_v28 = vadd.f32 %v5162_v35, %v13808_v34  ;;  %v5264_v37 = vadd.f32 %v5263_v29, %v5262_v41  ;;  %v16019_v34 = vld [vmem:[#allocation67_spill] sm:$0xff] }
 0x4ad   : > { %v4806_v4 = vadd.f32 %v4774_v15, %v4518_v12  ;;  %v5164_v3 = vsel %vm3571_vm11, %v13816_v39, 0.0  ;;  %v5265_v23 = vsel %vm3571_vm11, %v5213_v20, 0.0  ;;  %4902 = vst.msk [vmem:[#allocation5 + $0xc0] sm:$0xff] %vm3571_vm11, %v4870_v21  ;;  %v5214_v8 = vmul.f32 %v13833_v60, %v13833_v60 }
 0x4ae   : > { %v4966_v1 = vmul.f32 4.0, %v4934_v24  ;;  %vm4615_vm3 = vcmp.le.f32.partialorder %v4519_v38, -0.001  ;;  %vm4647_vm8 = vcmp.gt.f32.partialorder %v4583_v31, 0.0  ;;  %vm4392_vm9 = vcmp.ge.f32.partialorder %v4360_v45, 4.0 }
 0x4af   : > { %4838 = vst.msk [vmem:[#allocation4 + $0xc0] sm:$0xff] %vm3571_vm11, %v4806_v4  ;;  %v4283_v25 = vadd.f32 %v16019_v34, %v4122_v6  ;;  %vm4679_vm12 = vmand %vm4615_vm3, %vm4647_vm8  ;;  %v10014_v12 = vsel %vm4392_vm9, 1.0, %v15893_v9  ;;  %v10309_v41 = vadd.f32 %v13717_v62, %v13712_v52  ;;  %v5165_v59 = vadd.f32 %v5164_v3, %v5163_v28  ;;  %v4553_v6 = vld [vmem:[#allocation5 + $0xd8] sm:$0xff]  ;;  %v4330_v28 = vld [vmem:[#allocation4 + $0xe0] sm:$0xff] }
 0x4b0   : > { %v13854_v44 = vadd.f32 %v13377_v10, %v4966_v1  ;;  %v10045_v35 = vsel %vm4679_vm12, 1.0, %v15893_v9  ;;  %v4488_v43 = vmul.f32 4.0, %v10014_v12  ;;  %v4584_v27 = vadd.f32 %v10014_v12, %v4552_v14 }
 0x4b1   : > { %v4361_v7 = vadd.f32 %v4329_v22, %v4283_v25  ;;  %v5266_v32 = vadd.f32 %v5265_v23, %v5264_v37  ;;  %v4775_v46 = vmul.f32 4.0, %v10045_v35  ;;  %v4871_v29 = vsub.f32 %v4583_v31, %v10045_v35 }
 0x4b2   : > { %v5166_v51 = vsel %vm3571_vm11, %v13833_v60, 0.0  ;;  %v5267_v20 = vsel %vm3571_vm11, %v5214_v8, 0.0  ;;  %v4935_v47 = vsub.f32 %v10013_v57, %v10045_v35  ;;  %v4520_v30 = vsub.f32 %v4360_v45, %v4488_v43 }
 0x4b3   : > { %v5215_v52 = vmul.f32 %v13842_v19, %v13842_v19  ;;  %v4807_v62 = vadd.f32 %v4775_v46, %v4519_v38  ;;  %4903 = vst.msk [vmem:[#allocation5 + $0xc8] sm:$0xff] %vm3571_vm11, %v4871_v29  ;;  %vm4393_vm13 = vcmp.ge.f32.partialorder %v4361_v7, 4.0  ;;  %v4127_v15 = vadd.f32 %v13674_v50, %v10309_v41  ;;  %v4331_v29 = vld [vmem:[#allocation4 + $0xe8] sm:$0xff] }
 0x4b4   : > { %v4967_v21 = vmul.f32 4.0, %v4935_v47  ;;  %vm4616_vm14 = vcmp.le.f32.partialorder %v4520_v30, -0.001  ;;  %vm4648_vm15 = vcmp.gt.f32.partialorder %v4584_v27, 0.0  ;;  %v10015_v31 = vsel %vm4393_vm13, 1.0, %v15893_v9 }
 0x4b5   : > { %4839 = vst.msk [vmem:[#allocation4 + $0xc8] sm:$0xff] %vm3571_vm11, %v4807_v62  ;;  %vm4680_vm0 = vmand %vm4616_vm14, %vm4648_vm15  ;;  %v4489_v57 = vmul.f32 4.0, %v10015_v31  ;;  %v4585_v45 = vadd.f32 %v10015_v31, %v4553_v6  ;;  %v4288_v24 = vadd.f32 %v13343_v53, %v4127_v15  ;;  %v10312_v38 = vadd.f32 %v13726_v58, %v13724_v33 }
 0x4b6   : > { %v13873_v37 = vadd.f32 %v13377_v10, %v4967_v21  ;;  %v10046_v4 = vsel %vm4680_vm0, 1.0, %v15893_v9  ;;  %v10315_v14 = vadd.f32 %v13765_v26, %v13759_v11  ;;  %v10318_v3 = vadd.f32 %v13779_v48, %v13772_v49  ;;  %v4554_v49 = vld [vmem:[#allocation5 + $0xe0] sm:$0xff]  ;;  %v4332_v21 = vld [vmem:[#allocation4 + $0xf0] sm:$0xff] }
 0x4b7   : > { %v4776_v23 = vmul.f32 4.0, %v10046_v4  ;;  %v4872_v1 = vsub.f32 %v4584_v27, %v10046_v4  ;;  %v4936_v22 = vsub.f32 %v10014_v12, %v10046_v4  ;;  %v4521_v8 = vsub.f32 %v4361_v7, %v4489_v57  ;;  %v5116_v57 = vld [vmem:[%s16020_s6 + $0x8] sm:$0xff]  ;;  %v5117_v4 = vld [vmem:[%s16020_s6 + $0x10] sm:$0xff] }
 0x4b8   : > { %v5167_v53 = vadd.f32 %v5166_v51, %v5165_v59  ;;  %v5268_v34 = vadd.f32 %v5267_v20, %v5266_v32  ;;  %v5168_v58 = vsel %vm3571_vm11, %v13842_v19, 0.0  ;;  %v4362_v33 = vadd.f32 %v4330_v28, %v4288_v24 }
 0x4b9   : > { %v4808_v25 = vadd.f32 %v4776_v23, %v4520_v30  ;;  %4904 = vst.msk [vmem:[#allocation5 + $0xd0] sm:$0xff] %vm3571_vm11, %v4872_v1  ;;  %v4968_v41 = vmul.f32 4.0, %v4936_v22  ;;  %vm4617_vm1 = vcmp.le.f32.partialorder %v4521_v8, -0.001  ;;  %vm4649_vm2 = vcmp.gt.f32.partialorder %v4585_v45, 0.0 }
 0x4ba   : > { %v5269_v11 = vsel %vm3571_vm11, %v5215_v52, 0.0  ;;  %v5216_v26 = vmul.f32 %v13854_v44, %v13854_v44  ;;  %vm4681_vm3 = vmand %vm4617_vm1, %vm4649_vm2  ;;  %vm4394_vm8 = vcmp.ge.f32.partialorder %v4362_v33, 4.0  ;;  %v4130_v48 = vadd.f32 %v13674_v50, %v10312_v38 }
 0x4bb   : > { %4840 = vst.msk [vmem:[#allocation4 + $0xd0] sm:$0xff] %vm3571_vm11, %v4808_v25  ;;  %v13889_v12 = vadd.f32 %v13377_v10, %v4968_v41  ;;  %v10047_v35 = vsel %vm4681_vm3, 1.0, %v15893_v9  ;;  %v10016_v43 = vsel %vm4394_vm8, 1.0, %v15893_v9  ;;  %v4135_v27 = vadd.f32 %v13674_v50, %v10315_v14  ;;  %v5118_v14 = vld [vmem:[%s16020_s6 + $0x18] sm:$0xff] }
 0x4bc   : > { %v4777_v7 = vmul.f32 4.0, %v10047_v35  ;;  %v4873_v59 = vsub.f32 %v4585_v45, %v10047_v35  ;;  %v4937_v32 = vsub.f32 %v10015_v31, %v10047_v35  ;;  %v4490_v46 = vmul.f32 4.0, %v10016_v43  ;;  %v5115_v31 = vld [vmem:[%s16020_s6] sm:$0xff] }
 0x4bd   : > { %v5169_v51 = vadd.f32 %v5168_v58, %v5167_v53  ;;  %v5170_v20 = vsel %vm3571_vm11, %v13854_v44, 0.0  ;;  %v4586_v47 = vadd.f32 %v10016_v43, %v4554_v49  ;;  %v4291_v30 = vadd.f32 %v13347_v16, %v4130_v48 }
 0x4be   : > { %v5271_v6 = vsel %vm3571_vm11, %v5216_v26, 0.0  ;;  %v4809_v52 = vadd.f32 %v4777_v7, %v4521_v8  ;;  %4905 = vst.msk [vmem:[#allocation5 + $0xd8] sm:$0xff] %vm3571_vm11, %v4873_v59  ;;  %v4969_v62 = vmul.f32 4.0, %v4937_v32  ;;  %v4522_v15 = vsub.f32 %v4362_v33, %v4490_v46  ;;  %v5119_v7 = vld [vmem:[%s16020_s6 + $0x20] sm:$0xff] }
 0x4bf   : > { %v5270_v45 = vadd.f32 %v5269_v11, %v5268_v34  ;;  %v4363_v24 = vadd.f32 %v4331_v29, %v4291_v30  ;;  %v4296_v16 = vadd.f32 %v13341_v42, %v4135_v27  ;;  %v5171_v28 = vadd.f32 %v5170_v20, %v5169_v51  ;;  %v4555_v42 = vld [vmem:[#allocation5 + $0xe8] sm:$0xff]  ;;  %v4556_v11 = vld [vmem:[#allocation5 + $0xf0] sm:$0xff] }
 0x4c0   : > { %4841 = vst.msk [vmem:[#allocation4 + $0xd8] sm:$0xff] %vm3571_vm11, %v4809_v52  ;;  %v13908_v38 = vadd.f32 %v13377_v10, %v4969_v62  ;;  %vm4618_vm9 = vcmp.le.f32.partialorder %v4522_v15, -0.001  ;;  %vm4650_vm12 = vcmp.gt.f32.partialorder %v4586_v47, 0.0  ;;  %v10774_v22 = vpack.c.bf16 %v5116_v57, %v5115_v31  ;;  %v5121_v31 = vld [vmem:[%s16020_s6 + $0x30] sm:$0xff]  ;;  %v5122_v57 = vld [vmem:[%s16020_s6 + $0x38] sm:$0xff] }
 0x4c1   : > { %v5272_v23 = vadd.f32 %v5271_v6, %v5270_v45  ;;  %vm4682_vm13 = vmand %vm4618_vm9, %vm4650_vm12  ;;  %vm4395_vm14 = vcmp.ge.f32.partialorder %v4363_v24, 4.0  ;;  %v4364_v1 = vadd.f32 %v4332_v21, %v4296_v16  ;;  %v5217_v8 = vmul.f32 %v13873_v37, %v13873_v37 }
 0x4c2   : > { %v10048_v53 = vsel %vm4682_vm13, 1.0, %v15893_v9  ;;  %v10017_v34 = vsel %vm4395_vm14, 1.0, %v15893_v9  ;;  %v4138_v58 = vadd.f32 %v13674_v50, %v10318_v3  ;;  %10775 = vmatpush3.bf16.msra.mxu0 %v10774_v22  ;;  %v10777_v26 = vpack.c.bf16 %v5118_v14, %v5117_v4  ;;  %v5120_v50 = vld [vmem:[%s16020_s6 + $0x28] sm:$0xff] }
 0x4c3   : > { %v4778_v33 = vmul.f32 4.0, %v10048_v53  ;;  %v4874_v25 = vsub.f32 %v4586_v47, %v10048_v53  ;;  %v4938_v41 = vsub.f32 %v10016_v43, %v10048_v53  ;;  %v5172_v49 = vsel %vm3571_vm11, %v13873_v37, 0.0  ;;  %v4333_v47 = vld [vmem:[#allocation4 + $0xf8] sm:$0xff] }
 0x4c4   : > { %v4491_v48 = vmul.f32 4.0, %v10017_v34  ;;  %v4587_v35 = vadd.f32 %v10017_v34, %v4555_v42  ;;  %vm4396_vm15 = vcmp.ge.f32.partialorder %v4364_v1, 4.0  ;;  %v16021_v27 = vmov 0.0|0.0   ;;  %v4557_v53 = vld [vmem:[#allocation5 + $0xf8] sm:$0xff] }
 0x4c5   : > { %10776 = vmatprep.subr.bf16.mxu0 %v16021_v27  ;;  %v5218_v3 = vmul.f32 %v13889_v12, %v13889_v12  ;;  %v4810_v43 = vadd.f32 %v4778_v33, %v4522_v15  ;;  %4906 = vst.msk [vmem:[#allocation5 + $0xe0] sm:$0xff] %vm3571_vm11, %v4874_v25  ;;  %v4970_v59 = vmul.f32 4.0, %v4938_v41  ;;  %v10018_v32 = vsel %vm4396_vm15, 1.0, %v15893_v9 }
 0x4c6   : > { %v5273_v46 = vsel %vm3571_vm11, %v5217_v8, 0.0  ;;  %v4523_v29 = vsub.f32 %v4363_v24, %v4491_v48  ;;  %v4492_v51 = vmul.f32 4.0, %v10018_v32  ;;  %v4588_v20 = vadd.f32 %v10018_v32, %v4556_v11  ;;  %10778 = vmatpush3.bf16.msra.mxu0 %v10777_v26 }
 0x4c7   : > { %v5174_v30 = vsel %vm3571_vm11, %v13889_v12, 0.0  ;;  %4842 = vst.msk [vmem:[#allocation4 + $0xe0] sm:$0xff] %vm3571_vm11, %v4810_v43  ;;  %v13939_v6 = vadd.f32 %v13377_v10, %v4970_v59  ;;  %v4299_v52 = vadd.f32 %v13345_v13, %v4138_v58  ;;  %v10780_v62 = vpack.c.bf16 %v5120_v50, %v5119_v7  ;;  %10779 = vmatprep.subr.bf16.mxu0 %v16021_v27 }
 0x4c8   : > { %v5173_v15 = vadd.f32 %v5172_v49, %v5171_v28  ;;  %vm4619_vm0 = vcmp.le.f32.partialorder %v4523_v29, -0.001  ;;  %vm4651_vm1 = vcmp.gt.f32.partialorder %v4587_v35, 0.0  ;;  %v4524_v21 = vsub.f32 %v4364_v1, %v4492_v51 }
 0x4c9   : > { %v5274_v45 = vadd.f32 %v5273_v46, %v5272_v23  ;;  %v5275_v24 = vsel %vm3571_vm11, %v5218_v3, 0.0  ;;  %vm4683_vm2 = vmand %vm4619_vm0, %vm4651_vm1  ;;  %v4365_v13 = vadd.f32 %v4333_v47, %v4299_v52  ;;  %vm4652_vm8 = vcmp.gt.f32.partialorder %v4588_v20, 0.0 }
 0x4ca   : > { %v5175_v16 = vadd.f32 %v5174_v30, %v5173_v15  ;;  %v10049_v28 = vsel %vm4683_vm2, 1.0, %v15893_v9  ;;  %vm4620_vm3 = vcmp.le.f32.partialorder %v4524_v21, -0.001  ;;  %10781 = vmatpush3.bf16.msra.mxu0 %v10780_v62  ;;  %v10783_v1 = vpack.c.bf16 %v5122_v57, %v5121_v31 }
 0x4cb   : > { %v4779_v4 = vmul.f32 4.0, %v10049_v28  ;;  %v4875_v14 = vsub.f32 %v4587_v35, %v10049_v28  ;;  %v4939_v42 = vsub.f32 %v10017_v34, %v10049_v28  ;;  %vm4684_vm9 = vmand %vm4620_vm3, %vm4652_vm8  ;;  %v5276_v22 = vadd.f32 %v5275_v24, %v5274_v45  ;;  %10782 = vmatprep.subr.bf16.mxu0 %v16021_v27 }
 0x4cc   : > { %v5219_v8 = vmul.f32 %v13908_v38, %v13908_v38  ;;  %v10050_v23 = vsel %vm4684_vm9, 1.0, %v15893_v9  ;;  %vm4397_vm12 = vcmp.ge.f32.partialorder %v4365_v13, 4.0  ;;  %v5176_v34 = vsel %vm3571_vm11, %v13908_v38, 0.0 }
 0x4cd   : > { %v4811_v58 = vadd.f32 %v4779_v4, %v4523_v29  ;;  %4907 = vst.msk [vmem:[#allocation5 + $0xe8] sm:$0xff] %vm3571_vm11, %v4875_v14  ;;  %v4971_v33 = vmul.f32 4.0, %v4939_v42  ;;  %v4780_v25 = vmul.f32 4.0, %v10050_v23  ;;  %v4876_v41 = vsub.f32 %v4588_v20, %v10050_v23 }
 0x4ce   : > { %v5220_v11 = vmul.f32 %v13939_v6, %v13939_v6  ;;  %v4940_v26 = vsub.f32 %v10018_v32, %v10050_v23  ;;  %v10019_v49 = vsel %vm4397_vm12, 1.0, %v15893_v9  ;;  %10784 = vmatpush3.bf16.msra.mxu0 %v10783_v1  ;;  %v5277_v50 = vsel %vm3571_vm11, %v5219_v8, 0.0 }
 0x4cf   : > { %4843 = vst.msk [vmem:[#allocation4 + $0xe8] sm:$0xff] %vm3571_vm11, %v4811_v58  ;;  %v13963_v48 = vadd.f32 %v13377_v10, %v4971_v33  ;;  %v4812_v35 = vadd.f32 %v4780_v25, %v4524_v21  ;;  %4908 = vst.msk [vmem:[#allocation5 + $0xf0] sm:$0xff] %vm3571_vm11, %v4876_v41  ;;  %v4493_v27 = vmul.f32 4.0, %v10019_v49  ;;  %v4589_v7 = vadd.f32 %v10019_v49, %v4557_v53 }
 0x4d0   : > { %v5178_v3 = vsel %vm3571_vm11, %v13939_v6, 0.0  ;;  %v4972_v43 = vmul.f32 4.0, %v4940_v26  ;;  %v5177_v59 = vadd.f32 %v5176_v34, %v5175_v16  ;;  %v5279_v29 = vsel %vm3571_vm11, %v5220_v11, 0.0 }
 0x4d1   : > { %v5221_v32 = vmul.f32 %v13963_v48, %v13963_v48  ;;  %4844 = vst.msk [vmem:[#allocation4 + $0xf0] sm:$0xff] %vm3571_vm11, %v4812_v35  ;;  %v4525_v46 = vsub.f32 %v4365_v13, %v4493_v27  ;;  %v5278_v20 = vadd.f32 %v5277_v50, %v5276_v22  ;;  %vm4653_vm14 = vcmp.gt.f32.partialorder %v4589_v7, 0.0 }
 0x4d2   : > { %v13974_v51 = vadd.f32 %v13377_v10, %v4972_v43  ;;  %v5179_v47 = vadd.f32 %v5178_v3, %v5177_v59  ;;  %v5180_v30 = vsel %vm3571_vm11, %v13963_v48, 0.0  ;;  %v13997_v59 = vld [vmem:[#allocation3 + $0x8] sm:$0xf]  ;;  %vm5529_vm0 = vcmask 519168  }
 0x4d3   : > { %vm4621_vm13 = vcmp.le.f32.partialorder %v4525_v46, -0.001  ;;  %v5280_v62 = vadd.f32 %v5279_v29, %v5278_v20  ;;  %v5281_v15 = vsel %vm3571_vm11, %v5221_v32, 0.0  ;;  %v13999_v32 = vld [vmem:[#allocation3] sm:$0xf0]  ;;  %v5914_v29 = vrot.slane %v13997_v59, 4 }
 0x4d4   : > { %v5222_v52 = vmul.f32 %v13974_v51, %v13974_v51  ;;  %vm4685_vm15 = vmand %vm4621_vm13, %vm4653_vm14  ;;  %v5182_v31 = vsel %vm3571_vm11, %v13974_v51, 0.0  ;;  %v5181_v13 = vadd.f32 %v5180_v30, %v5179_v47  ;;  %v14008_v47 = vld [vmem:[%s16022_s15 + $0xc0] sm:$0xff]  }
 0x4d5   : > { %v10051_v21 = vsel %vm4685_vm15, 1.0, %v15893_v9  ;;  %v5282_v42 = vadd.f32 %v5281_v15, %v5280_v62  ;;  %v10917_v30 = vld [vmem:[%s16022_s15 + $0x80] sm:$0xff]   ;;  %10785 = vmatprep.subr.bf16.mxu1 %v14008_v47  ;;  %v10919_v62 = vld [vmem:[%s16022_s15 + $0x88] sm:$0xff]  }
 0x4d6   : > { %v4781_v57 = vmul.f32 4.0, %v10051_v21  ;;  %v4877_v45 = vsub.f32 %v4589_v7, %v10051_v21  ;;  %v4941_v24 = vsub.f32 %v10019_v49, %v10051_v21  ;;  %v5283_v4 = vsel %vm3571_vm11, %v5222_v52, 0.0  ;;  %10793 = vmatpush3.bf16.msra.mxu1 %v10917_v30  ;;  %v10918_v52 = vld [vmem:[%s16022_s15 + $0xc8] sm:$0xff]  }
 0x4d7   : > { %v5183_v14 = vadd.f32 %v5182_v31, %v5181_v13  ;;  %v5284_v22 = vadd.f32 %v5283_v4, %v5282_v42  ;;  %10786 = vmatprep.subr.bf16.mxu1 %v10918_v52  ;;  %v10923_v42 = vld [vmem:[%s16022_s15 + $0x40] sm:$0xff]  }
 0x4d8   : > { %v4813_v16 = vadd.f32 %v4781_v57, %v4525_v46  ;;  %4909 = vst.msk [vmem:[#allocation5 + $0xf8] sm:$0xff] %vm3571_vm11, %v4877_v45  ;;  %v4973_v28 = vmul.f32 4.0, %v4941_v24  ;;  %v5913_v46 = vrot.slane %v13999_v32, 4  ;;  %v10920_v45 = vld [vmem:[%s16022_s15 + $0xd0] sm:$0xff]   ;;  %10351 = vmatprep.subr.bf16.mxu0 %v10923_v42 }
 0x4d9   : > { %v10921_v24 = vld [vmem:[%s16022_s15 + $0x90] sm:$0xff]  }
 0x4da   : > { %4845 = vst.msk [vmem:[#allocation4 + $0xf8] sm:$0xff] %vm3571_vm11, %v4813_v16  ;;  %v13988_v1 = vadd.f32 %v13377_v10, %v4973_v28  ;;  %v5915_v20 = vsel %vm1616_vm6, %v5913_v46, %v5914_v29  ;;  %10794 = vmatpush3.bf16.msra.mxu1 %v10919_v62 }
 0x4db   : > { %7626 = vrot.lane.b32.xlu1 %v5915_v20, %s15853_s9  ;;  %10787 = vmatprep.subr.bf16.mxu1 %v10920_v45  ;;  %s16023_s9 = sld [smem:[#allocation73_spill]]  ;;  %v16028_v45 = vld [vmem:[#allocation20_spill] sm:$0xff] }
 0x4dc   : > { %v5223_v8 = vmul.f32 %v13988_v1, %v13988_v1  ;;  %v5184_v23 = vsel %vm3571_vm11, %v13988_v1, 0.0 }
 0x4dd   : > { %v5185_v53 = vadd.f32 %v5184_v23, %v5183_v14  ;;  %v10922_v14 = vld [vmem:[%s16022_s15 + $0xd8] sm:$0xff]  }
 0x4de   : > { %v5285_v58 = vsel %vm3571_vm11, %v5223_v8, 0.0  ;;  %10795 = vmatpush3.bf16.msra.mxu1 %v10921_v24 }
 0x4df   : > { %v5186_v33 = vrot.slane %v5185_v53, 4  ;;  %v5286_v25 = vadd.f32 %v5285_v58, %v5284_v22  ;;  %v10924_v22 = vld [vmem:[%s16022_s15 + $0x98] sm:$0xff]   ;;  %10788 = vmatprep.subr.bf16.mxu1 %v10922_v14  ;;  %v10926_v58 = vld [vmem:[%s16022_s15 + $0x48] sm:$0xff]  }
 0x4e0   : > { %v16034_v14 = vld [vmem:[#allocation32_spill] sm:$0xff] }
 0x4e1   : > { %v5187_v41 = vadd.f32 %v5186_v33, %v5185_v53  ;;  %v5287_v34 = vrot.slane %v5286_v25, 4  ;;  %v10060_v8 = vld [vmem:[%s16023_s9] ss:$0 sm:$0xff]  ;;  %s16038_s9 = sld [smem:[#allocation78_spill]] }
 0x4e2   : > { %10796 = vmatpush3.bf16.msra.mxu1 %v10924_v22  ;;  %v10925_v53 = vld [vmem:[%s16022_s15] sm:$0xff]   ;;  %v16035_v22 = vld [vmem:[#allocation26_spill] sm:$0xff] }
 0x4e3   : > { %v5188_v11 = vrot.slane %v5187_v41, 2  ;;  %v5288_v26 = vadd.f32 %v5287_v34, %v5286_v25  ;;  %v5114_v25 = vld [vmem:[%s16024_s20] sm:$0x1]  ;;  %v16025_v34 = vld [vmem:[#allocation34_spill] sm:$0xff]  ;;  %s9821_s20 = scalar_lea.sflag [#allocation12], %s11526_s17 }
 0x4e5   : > { %v5189_v49 = vadd.f32 %v5188_v11, %v5187_v41  ;;  %v5289_v35 = vrot.slane %v5288_v26, 2  ;;  %v16026_v11 = vsub.s32 1, %v16025_v34 }
 0x4e7   : > { %v5190_v10 = vrot.slane %v5189_v49, 1  ;;  %v5290_v27 = vadd.f32 %v5289_v35, %v5288_v26  ;;  %v5605_v35 = vshll.u32 %v13997_v59, 16 }
 0x4e9   : > { %v5291_v7 = vrot.slane %v5290_v27, 1  ;;  %v5191_v50 = vadd.f32 %v5190_v10, %v5189_v49  ;;  %v5602_v49 = vshrl.u32 %v13997_v59, 16  ;;  %v5978_v10 = vshrl.u32 %v13999_v32, 16 }
 0x4eb   : > { %v5292_v3 = vadd.f32 %v5291_v7, %v5290_v27  ;;  %v5981_v27 = vshll.u32 %v13999_v32, 16  ;;  %v10927_v7 = vld [vmem:[%s16022_s15 + $0x8] sm:$0xff]  }
 0x4ed   : > { %v5293_v43 = vsel %vm994_vm5, %v5191_v50, %v5292_v3  ;;  %v10928_v50 = vld [vmem:[%s16022_s15 + $0x50] sm:$0xff]   ;;  %vm5527_vm5 = vcmask 523268  }
 0x4ee   : > { %10689 = vmatmul.mubr.msk.f32.vlgmr.msra.gmra.mrb[2].mxu0 %vm3571_vm11, %v5293_v43 }
 0x4ef   : > { %10352 = vmatpush3.bf16.msra.mxu0 %v10925_v53 }
 0x4f0   : > { %10353 = vmatprep.subr.bf16.mxu0 %v10926_v58 }
 0x4f3   : > { %10354 = vmatpush3.bf16.msra.mxu0 %v10927_v7 }
 0x4f4   : > { %10355 = vmatprep.subr.bf16.mxu0 %v10928_v50 }
 0x5c1   : > { %v5363_v15 = vpop.f32.mrb[2].mxu0 }
 0x5c2   : > { %v5367_v21 = vmul.f32 0.001953125, %v5363_v15  ;;  %v10690_v31 = vpop.f32.mrb[3].mxu0 }
 0x5c4   : > { %v5368_v57 = vmul.f32 %v5367_v21, %v5367_v21 }
 0x5c6   : > { %v5370_v13 = vrot.slane %v5368_v57, 7  ;;  %v16027_v57 = vld [vmem:[#allocation21_spill] sm:$0xff] }
 0x5c8   : > { %v5372_v16 = vsub.f32 %v5367_v21, %v5370_v13 }
 0x5ca   : > { %v5373_v28 = vmax.f32 %v5372_v16, 0.0 }
 0x5cc   : > { %v5374_v4 = vadd.f32 1e-05, %v5373_v28 }
 0x5ce   : > { %10956 = vrsqrt.f32 %v5374_v4 }
 0x5d8   : > { %v10957_v23 = vpop.eup %10956 }
 0x5d9   : > { %v5382_v33 = vmul.f32 %v10957_v23, %v10060_v8  ;;  %v16036_v23 = vld [vmem:[#allocation28_spill] sm:$0xff] }
 0x5db   : > { %v5384_v41 = vrot.slane %v5382_v33, 1  ;;  %v5391_v26 = vrot.slane %v5382_v33, %v16026_v11 }
 0x5dd   : > { %v5386_v3 = vmul.f32 %v5384_v41, %v5367_v21  ;;  %v5392_v43 = vmul.f32 %v5391_v26, %v13384_v36  ;;  %v5393_v46 = vmul.f32 %v5391_v26, %v13389_v18  ;;  %v5394_v29 = vmul.f32 %v5391_v26, %v13412_v61  ;;  %v16029_v18 = vld [vmem:[#allocation23_spill] sm:$0xff]  ;;  %v16030_v61 = vld [vmem:[#allocation22_spill] sm:$0xff] }
 0x5de   : > { %v5395_v20 = vmul.f32 %v5391_v26, %v13427_v54  ;;  %v5396_v30 = vmul.f32 %v5391_v26, %v13451_v0  ;;  %v5397_v52 = vmul.f32 %v5391_v26, %v13465_v40  ;;  %v5398_v62 = vmul.f32 %v5391_v26, %v13495_v2  ;;  %v16031_v54 = vld [vmem:[#allocation25_spill] sm:$0xff]  ;;  %v16032_v0 = vld [vmem:[#allocation24_spill] sm:$0xff]  ;;  %v10930_v2 = vld [vmem:[%s16022_s15 + $0x58] sm:$0xff]  }
 0x5df   : > { %v5387_v15 = vsub.f32 %v5114_v25, %v5386_v3  ;;  %v5399_v31 = vmul.f32 %v5391_v26, %v13512_v17  ;;  %v5400_v21 = vmul.f32 %v5391_v26, %v16027_v57  ;;  %v5401_v36 = vmul.f32 %v5391_v26, %v16028_v45  ;;  %v10929_v40 = vld [vmem:[%s16022_s15 + $0x10] sm:$0xff]   ;;  %v16033_v17 = vld [vmem:[#allocation35_spill] sm:$0xff] }
 0x5e0   : > { %v5402_v24 = vmul.f32 %v5391_v26, %v16029_v18  ;;  %v5403_v13 = vmul.f32 %v5391_v26, %v16030_v61  ;;  %v5404_v16 = vmul.f32 %v5391_v26, %v16031_v54  ;;  %v5405_v28 = vmul.f32 %v5391_v26, %v16032_v0  ;;  %10356 = vmatpush3.bf16.msra.mxu0 %v10929_v40 }
 0x5e1   : > { %v14080_v4 = vrot.slane %v5387_v15, %v16033_v17  ;;  %v5406_v42 = vmul.f32 %v5391_v26, %v16034_v14  ;;  %v5407_v8 = vmul.f32 %v5391_v26, %v16035_v22  ;;  %v5408_v53 = vmul.f32 %v5391_v26, %v16036_v23  ;;  %10357 = vmatprep.subr.bf16.mxu0 %v10930_v2  ;;  %v10938_v22 = vld [vmem:[%s16022_s15 + $0x70] sm:$0xff]  }
 0x5e2   : > { %v5409_v58 = vmul.f32 %v5391_v26, %v13738_v55  ;;  %v5410_v33 = vmul.f32 %v5391_v26, %v13753_v5  ;;  %v5411_v25 = vmul.f32 %v5391_v26, %v13769_v56  ;;  %v5412_v41 = vmul.f32 %v5391_v26, %v13795_v63  ;;  %v10931_v63 = vld [vmem:[%s16022_s15 + $0x18] sm:$0xff]  }
 0x5e3   : > { %v5413_v34 = vmul.f32 %v5391_v26, %v13816_v39  ;;  %v5414_v11 = vmul.f32 %v5391_v26, %v13833_v60  ;;  %v5415_v7 = vmul.f32 %v5391_v26, %v13842_v19  ;;  %v5416_v50 = vmul.f32 %v5391_v26, %v13854_v44  ;;  %v10932_v39 = vld [vmem:[%s16022_s15 + $0xe0] sm:$0xff]  }
 0x5e4   : > { %v5417_v3 = vmul.f32 %v5391_v26, %v13873_v37  ;;  %v5418_v55 = vmul.f32 %v5391_v26, %v13889_v12  ;;  %v5419_v5 = vmul.f32 %v5391_v26, %v13908_v38  ;;  %v5420_v56 = vmul.f32 %v5391_v26, %v13939_v6  ;;  %v10933_v60 = vld [vmem:[%s16022_s15 + $0x60] sm:$0xff]   ;;  %10358 = vmatpush3.bf16.msra.mxu0 %v10931_v63 }
 0x5e5   : > { %v5421_v19 = vmul.f32 %v5391_v26, %v13963_v48  ;;  %v5422_v44 = vmul.f32 %v5391_v26, %v13974_v51  ;;  %v5423_v37 = vmul.f32 %v5391_v26, %v13988_v1  ;;  %v14110_v12 = vadd.f32 %v14080_v4, %v5392_v43  ;;  %v10934_v38 = vld [vmem:[%s16022_s15 + $0xa0] sm:$0xff]   ;;  %10789 = vmatprep.subr.bf16.mxu1 %v10932_v39  ;;  %v10940_v39 = vld [vmem:[%s16022_s15 + $0x78] sm:$0xff]  }
 0x5e6   : > { %v14116_v6 = vadd.f32 %v14080_v4, %v5393_v46  ;;  %v14119_v15 = vadd.f32 %v14080_v4, %v5394_v29  ;;  %v5433_v57 = vadd.f32 %v14080_v4, %v5395_v20  ;;  %v5434_v48 = vadd.f32 %v14080_v4, %v5396_v30  ;;  %10359 = vmatprep.subr.bf16.mxu0 %v10933_v60 }
 0x5e7   : > { %v5435_v51 = vadd.f32 %v14080_v4, %v5397_v52  ;;  %v5436_v1 = vadd.f32 %v14080_v4, %v5398_v62  ;;  %v5437_v26 = vadd.f32 %v14080_v4, %v5399_v31  ;;  %v5438_v43 = vadd.f32 %v14080_v4, %v5400_v21  ;;  %v10935_v52 = vld [vmem:[%s16022_s15 + $0x20] sm:$0xff]   ;;  %v10936_v62 = vld [vmem:[%s16022_s15 + $0x68] sm:$0xff]   ;;  %10797 = vmatpush3.bf16.msra.mxu1 %v10934_v38 }
 0x5e8   : > { %v5439_v46 = vadd.f32 %v14080_v4, %v5401_v36  ;;  %v5440_v29 = vadd.f32 %v14080_v4, %v5402_v24  ;;  %v5441_v20 = vadd.f32 %v14080_v4, %v5403_v13  ;;  %v5442_v30 = vadd.f32 %v14080_v4, %v5404_v16  ;;  %10360 = vmatpush3.bf16.msra.mxu0 %v10935_v52 }
 0x5e9   : > { %v5443_v31 = vadd.f32 %v14080_v4, %v5405_v28  ;;  %v5444_v21 = vadd.f32 %v14080_v4, %v5406_v42  ;;  %v5445_v45 = vadd.f32 %v14080_v4, %v5407_v8  ;;  %v5446_v36 = vadd.f32 %v14080_v4, %v5408_v53  ;;  %10361 = vmatprep.subr.bf16.mxu0 %v10936_v62  ;;  %v10937_v42 = vld [vmem:[%s16022_s15 + $0x28] sm:$0xff]  }
 0x5ea   : > { %v5447_v18 = vadd.f32 %v14080_v4, %v5409_v58  ;;  %v5448_v24 = vadd.f32 %v14080_v4, %v5410_v33  ;;  %v5449_v61 = vadd.f32 %v14080_v4, %v5411_v25  ;;  %v5450_v13 = vadd.f32 %v14080_v4, %v5412_v41 }
 0x5eb   : > { %v5451_v54 = vadd.f32 %v14080_v4, %v5413_v34  ;;  %v5452_v16 = vadd.f32 %v14080_v4, %v5414_v11  ;;  %v5453_v0 = vadd.f32 %v14080_v4, %v5415_v7  ;;  %v5454_v28 = vadd.f32 %v14080_v4, %v5416_v50 }
 0x5ec   : > { %v5455_v40 = vadd.f32 %v14080_v4, %v5417_v3  ;;  %v5456_v2 = vadd.f32 %v14080_v4, %v5418_v55  ;;  %v5457_v17 = vadd.f32 %v14080_v4, %v5419_v5  ;;  %v5458_v14 = vadd.f32 %v14080_v4, %v5420_v56  ;;  %10362 = vmatpush3.bf16.msra.mxu0 %v10937_v42 }
 0x5ed   : > { %v5459_v8 = vadd.f32 %v14080_v4, %v5421_v19  ;;  %v5460_v23 = vadd.f32 %v14080_v4, %v5422_v44  ;;  %v5461_v53 = vadd.f32 %v14080_v4, %v5423_v37  ;;  %v5462_v58 = vpack.c.bf16 %v14116_v6, %v14110_v12  ;;  %10363 = vmatprep.subr.bf16.mxu0 %v10938_v22  ;;  %v10939_v4 = vld [vmem:[%s16022_s15 + $0x30] sm:$0xff]  }
 0x5ee   : > { %v5463_v33 = vpack.c.bf16 %v5433_v57, %v14119_v15  ;;  %v5464_v25 = vpack.c.bf16 %v5435_v51, %v5434_v48  ;;  %v5465_v41 = vpack.c.bf16 %v5437_v26, %v5436_v1  ;;  %v5466_v34 = vpack.c.bf16 %v5439_v46, %v5438_v43  ;;  %v5561_v57 = vld [vmem:[#allocation3] sm:$0xf8] }
 0x5ef   : > { %v5467_v11 = vpack.c.bf16 %v5441_v20, %v5440_v29  ;;  %v5468_v7 = vpack.c.bf16 %v5443_v31, %v5442_v30  ;;  %v5469_v50 = vpack.c.bf16 %v5445_v45, %v5444_v21  ;;  %v5470_v3 = vpack.c.bf16 %v5447_v18, %v5446_v36  ;;  %v10941_v30 = vld [vmem:[%s16022_s15 + $0x38] sm:$0xff]   ;;  %v10942_v45 = vld [vmem:[%s16022_s15 + $0xe8] sm:$0xff]  }
 0x5f0   : > { %v5471_v55 = vpack.c.bf16 %v5449_v61, %v5448_v24  ;;  %v5472_v5 = vpack.c.bf16 %v5451_v54, %v5450_v13  ;;  %v5473_v56 = vpack.c.bf16 %v5453_v0, %v5452_v16  ;;  %v5474_v63 = vpack.c.bf16 %v5455_v40, %v5454_v28  ;;  %10364 = vmatpush3.bf16.msra.mxu0 %v10939_v4  ;;  %v10943_v36 = vld [vmem:[%s16022_s15 + $0xa8] sm:$0xff]  }
 0x5f1   : > { %v5475_v60 = vpack.c.bf16 %v5457_v17, %v5456_v2  ;;  %v5476_v19 = vpack.c.bf16 %v5459_v8, %v5458_v14  ;;  %v5477_v44 = vpack.c.bf16 %v5461_v53, %v5460_v23  ;;  %v5494_v37 = vrot.slane %v5462_v58, 4  ;;  %10365 = vmatprep.subr.bf16.mxu0 %v10940_v39  ;;  %10790 = vmatprep.subr.bf16.mxu1 %v10942_v45  ;;  %v14213_v24 = vld [vmem:[#allocation3 + $0x8] sm:$0x1f] }
 0x5f2   : > { %v5495_v12 = vrot.slane %v5463_v33, 4  ;;  %v5496_v38 = vrot.slane %v5464_v25, 4  ;;  %v5497_v6 = vrot.slane %v5465_v41, 4  ;;  %v5498_v15 = vrot.slane %v5466_v34, 4  ;;  %10798 = vmatpush3.bf16.msra.mxu1 %v10943_v36 }
 0x5f3   : > { %5528 = vst.msk [vmem:[#allocation3 + $0x10] sm:$0xf0] %vm5527_vm5, %v5494_v37  ;;  %v5499_v48 = vrot.slane %v5467_v11, 4  ;;  %v5500_v51 = vrot.slane %v5468_v7, 4  ;;  %v5501_v1 = vrot.slane %v5469_v50, 4  ;;  %v5502_v26 = vrot.slane %v5470_v3, 4 }
 0x5f4   : > { %5530 = vst.msk [vmem:[#allocation3 + $0x18] sm:$0xf] %vm5529_vm0, %v5494_v37  ;;  %v5503_v43 = vrot.slane %v5471_v55, 4  ;;  %v5504_v46 = vrot.slane %v5472_v5, 4  ;;  %v5505_v29 = vrot.slane %v5473_v56, 4  ;;  %v5506_v20 = vrot.slane %v5474_v63, 4  ;;  %10366 = vmatpush3.bf16.msra.mxu0 %v10941_v30 }
 0x5f5   : > { %5531 = vst.msk [vmem:[#allocation3 + $0x20] sm:$0xf0] %vm5527_vm5, %v5495_v12  ;;  %5533 = vst.msk [vmem:[#allocation3 + $0x30] sm:$0xf0] %vm5527_vm5, %v5496_v38  ;;  %v5507_v52 = vrot.slane %v5475_v60, 4  ;;  %v5508_v62 = vrot.slane %v5476_v19, 4  ;;  %10463 = vmatprep.subr.bf16.mxu0 %v14008_v47 }
 0x5f6   : > { %5532 = vst.msk [vmem:[#allocation3 + $0x28] sm:$0xf] %vm5529_vm0, %v5495_v12  ;;  %5534 = vst.msk [vmem:[#allocation3 + $0x38] sm:$0xf] %vm5529_vm0, %v5496_v38  ;;  %v5509_v31 = vrot.slane %v5477_v44, 4  ;;  %v5594_v21 = vshrl.u32 %v5561_v57, 16 }
 0x5f7   : > { %5535 = vst.msk [vmem:[#allocation3 + $0x40] sm:$0xf0] %vm5527_vm5, %v5497_v6  ;;  %5537 = vst.msk [vmem:[#allocation3 + $0x50] sm:$0xf0] %vm5527_vm5, %v5498_v15  ;;  %v5597_v18 = vshll.u32 %v5561_v57, 16  ;;  %v14219_v13 = vrot.slane %v5602_v49, 3 }
 0x5f8   : > { %5536 = vst.msk [vmem:[#allocation3 + $0x48] sm:$0xf] %vm5529_vm0, %v5497_v6  ;;  %5538 = vst.msk [vmem:[#allocation3 + $0x58] sm:$0xf] %vm5529_vm0, %v5498_v15  ;;  %v14215_v61 = vrot.slane %v5594_v21, 3  ;;  %v14223_v54 = vrot.slane %v5605_v35, 4 }
 0x5f9   : > { %5539 = vst.msk [vmem:[#allocation3 + $0x60] sm:$0xf0] %vm5527_vm5, %v5499_v48  ;;  %5541 = vst.msk [vmem:[#allocation3 + $0x70] sm:$0xf0] %vm5527_vm5, %v5500_v51  ;;  %v14225_v16 = vrot.slane %v5597_v18, 4  ;;  %v14229_v0 = vrot.slane %v5978_v10, 4 }
 0x5fa   : > { %5540 = vst.msk [vmem:[#allocation3 + $0x68] sm:$0xf] %vm5529_vm0, %v5499_v48  ;;  %5542 = vst.msk [vmem:[#allocation3 + $0x78] sm:$0xf] %vm5529_vm0, %v5500_v51  ;;  %v14233_v47 = vrot.slane %v5981_v27, 5  ;;  %v5986_v28 = vshrl.u32 %v14213_v24, 16  ;;  %v5608_v10 = vor.u32 %v14223_v54, %v14219_v13 }
 0x5fb   : > { %5543 = vst.msk [vmem:[#allocation3 + $0x80] sm:$0xf0] %vm5527_vm5, %v5501_v1  ;;  %5545 = vst.msk [vmem:[#allocation3 + $0x90] sm:$0xf0] %vm5527_vm5, %v5502_v26  ;;  %v5564_v40 = vld [vmem:[#allocation3 + $0x18] sm:$0xf] }
 0x5fc   : > { %5544 = vst.msk [vmem:[#allocation3 + $0x88] sm:$0xf] %vm5529_vm0, %v5501_v1  ;;  %5546 = vst.msk [vmem:[#allocation3 + $0x98] sm:$0xf] %vm5529_vm0, %v5502_v26  ;;  %v5866_v49 = vld [vmem:[#allocation3 + $0x10] sm:$0xf0] }
 0x5fd   : > { %5547 = vst.msk [vmem:[#allocation3 + $0xa0] sm:$0xf0] %vm5527_vm5, %v5503_v43  ;;  %5549 = vst.msk [vmem:[#allocation3 + $0xb0] sm:$0xf0] %vm5527_vm5, %v5504_v46  ;;  %v6249_v2 = vld [vmem:[#allocation3 + $0x10] sm:$0xf8] }
 0x5fe   : > { %5548 = vst.msk [vmem:[#allocation3 + $0xa8] sm:$0xf] %vm5529_vm0, %v5503_v43  ;;  %5550 = vst.msk [vmem:[#allocation3 + $0xb8] sm:$0xf] %vm5529_vm0, %v5504_v46  ;;  %v5916_v17 = vrot.slane %v5866_v49, 4  ;;  %v5917_v59 = vrot.slane %v5564_v40, 4 }
 0x5ff   : > { %5551 = vst.msk [vmem:[#allocation3 + $0xc0] sm:$0xf0] %vm5527_vm5, %v5505_v29  ;;  %5553 = vst.msk [vmem:[#allocation3 + $0xd0] sm:$0xf0] %vm5527_vm5, %v5506_v20  ;;  %v6250_v35 = vld [vmem:[#allocation3 + $0x18] sm:$0xf] }
 0x600   : > { %5552 = vst.msk [vmem:[#allocation3 + $0xc8] sm:$0xf] %vm5529_vm0, %v5505_v29  ;;  %5554 = vst.msk [vmem:[#allocation3 + $0xd8] sm:$0xf] %vm5529_vm0, %v5506_v20  ;;  %v6282_v14 = vshrl.u32 %v6249_v2, 16  ;;  %v6285_v42 = vshll.u32 %v6249_v2, 16  ;;  %v5918_v32 = vsel %vm1616_vm6, %v5916_v17, %v5917_v59 }
 0x601   : > { %5555 = vst.msk [vmem:[#allocation3 + $0xe0] sm:$0xf0] %vm5527_vm5, %v5507_v52  ;;  %5557 = vst.msk [vmem:[#allocation3 + $0xf0] sm:$0xf0] %vm5527_vm5, %v5508_v62  ;;  %v6290_v22 = vshrl.u32 %v6250_v35, 16  ;;  %v6293_v8 = vshll.u32 %v6250_v35, 16  ;;  %7628 = vrot.lane.b32.xlu1 %v5918_v32, %s16037_s3 }
 0x602   : > { %5556 = vst.msk [vmem:[#allocation3 + $0xe8] sm:$0xf] %vm5529_vm0, %v5507_v52  ;;  %5558 = vst.msk [vmem:[#allocation3 + $0xf8] sm:$0xf] %vm5529_vm0, %v5508_v62  ;;  %v5566_v23 = vld [vmem:[#allocation3 + $0x28] sm:$0xf] }
 0x603   : > { %5559 = vst.msk [vmem:[#allocation3 + $0x100] sm:$0xf0] %vm5527_vm5, %v5509_v31  ;;  %v5867_v53 = vld [vmem:[#allocation3 + $0x20] sm:$0xf0]  ;;  %v6284_v27 = vrot.slane %v6282_v14, 3  ;;  %v6287_v58 = vrot.slane %v6285_v42, 4 }
 0x604   : > { %5560 = vst.msk [vmem:[#allocation3 + $0x108] sm:$0xf] %vm5529_vm0, %v5509_v31  ;;  %v5919_v33 = vrot.slane %v5867_v53, 4  ;;  %v6251_v25 = vld [vmem:[#allocation3 + $0x20] sm:$0xf8]  ;;  %v6292_v41 = vrot.slane %v6290_v22, 3 }
 0x605   : > { %v6295_v34 = vrot.slane %v6293_v8, 4  ;;  %v5920_v11 = vrot.slane %v5566_v23, 4  ;;  %v6252_v7 = vld [vmem:[#allocation3 + $0x28] sm:$0xf]  ;;  %v6299_v50 = vshrl.u32 %v6251_v25, 16  ;;  %v6288_v3 = vor.u32 %v6287_v58, %v6284_v27  ;;  %v10944_v23 = vld [vmem:[%s16022_s15 + $0xf0] sm:$0xff]  }
 0x606   : > { %v6302_v55 = vshll.u32 %v6251_v25, 16  ;;  %v6307_v5 = vshrl.u32 %v6252_v7, 16  ;;  %v6310_v56 = vshll.u32 %v6252_v7, 16  ;;  %v5568_v63 = vld [vmem:[#allocation3 + $0x38] sm:$0xf]  ;;  %10791 = vmatprep.subr.bf16.mxu1 %v10944_v23 }
 0x607   : > { %v6296_v4 = vor.u32 %v6295_v34, %v6292_v41  ;;  %v5921_v39 = vsel %vm1616_vm6, %v5919_v33, %v5920_v11  ;;  %v6301_v60 = vrot.slane %v6299_v50, 3  ;;  %v5868_v19 = vld [vmem:[#allocation3 + $0x30] sm:$0xf0]  ;;  %v5923_v44 = vrot.slane %v5568_v63, 4  ;;  %v6254_v57 = vld [vmem:[#allocation3 + $0x38] sm:$0xf] }
 0x608   : > { %v6253_v37 = vld [vmem:[#allocation3 + $0x30] sm:$0xf8]  ;;  %v6304_v12 = vrot.slane %v6302_v55, 4  ;;  %v6309_v38 = vrot.slane %v6307_v5, 3  ;;  %v6312_v6 = vrot.slane %v6310_v56, 4  ;;  %v5922_v15 = vrot.slane %v5868_v19, 4  ;;  %7630 = vrot.lane.b32.xlu1 %v5921_v39, %s16037_s3 }
 0x609   : > { %v6297_v48 = vsel %vm1295_vm10, %v6288_v3, %v6296_v4  ;;  %v6316_v51 = vshrl.u32 %v6253_v37, 16  ;;  %v6319_v1 = vshll.u32 %v6253_v37, 16  ;;  %v6324_v26 = vshrl.u32 %v6254_v57, 16  ;;  %v5570_v43 = vld [vmem:[#allocation3 + $0x48] sm:$0xf]  ;;  %v10945_v4 = vld [vmem:[%s16022_s15 + $0xb0] sm:$0xff]  }
 0x60a   : > { %7658 = vrot.lane.b32.xlu0 %v6297_v48, %s16037_s3  ;;  %v6305_v46 = vor.u32 %v6304_v12, %v6301_v60  ;;  %v6313_v29 = vor.u32 %v6312_v6, %v6309_v38  ;;  %v5924_v20 = vsel %vm1616_vm6, %v5922_v15, %v5923_v44  ;;  %v6327_v30 = vshll.u32 %v6254_v57, 16  ;;  %v5869_v52 = vld [vmem:[#allocation3 + $0x40] sm:$0xf0]  ;;  %v6256_v18 = vld [vmem:[#allocation3 + $0x48] sm:$0xf]  ;;  %10799 = vmatpush3.bf16.msra.mxu1 %v10945_v4 }
 0x60b   : > { %v6255_v62 = vld [vmem:[#allocation3 + $0x40] sm:$0xf8]  ;;  %v6318_v31 = vrot.slane %v6316_v51, 3  ;;  %v6321_v21 = vrot.slane %v6319_v1, 4  ;;  %v6326_v45 = vrot.slane %v6324_v26, 3  ;;  %v5925_v36 = vrot.slane %v5869_v52, 4 }
 0x60c   : > { %v6314_v40 = vsel %vm1295_vm10, %v6305_v46, %v6313_v29  ;;  %v6329_v49 = vrot.slane %v6327_v30, 4  ;;  %v5926_v2 = vrot.slane %v5570_v43, 4  ;;  %v6333_v17 = vshrl.u32 %v6255_v62, 16  ;;  %v5572_v59 = vld [vmem:[#allocation3 + $0x58] sm:$0xf]  ;;  %7632 = vrot.lane.b32.xlu1 %v5924_v20, %s16037_s3 }
 0x60d   : > { %v6322_v35 = vor.u32 %v6321_v21, %v6318_v31  ;;  %v6336_v14 = vshll.u32 %v6255_v62, 16  ;;  %v6341_v42 = vshrl.u32 %v6256_v18, 16  ;;  %v6344_v22 = vshll.u32 %v6256_v18, 16  ;;  %v5870_v8 = vld [vmem:[#allocation3 + $0x50] sm:$0xf0] }
 0x60e   : > { %7660 = vrot.lane.b32.xlu0 %v6314_v40, %s16037_s3  ;;  %v6330_v53 = vor.u32 %v6329_v49, %v6326_v45  ;;  %v5927_v32 = vsel %vm1616_vm6, %v5925_v36, %v5926_v2  ;;  %v6335_v27 = vrot.slane %v6333_v17, 3  ;;  %v5928_v58 = vrot.slane %v5870_v8, 4  ;;  %v6257_v33 = vld [vmem:[#allocation3 + $0x50] sm:$0xf8]  ;;  %v6258_v25 = vld [vmem:[#allocation3 + $0x58] sm:$0xf] }
 0x60f   : > { %v6338_v41 = vrot.slane %v6336_v14, 4  ;;  %v6343_v34 = vrot.slane %v6341_v42, 3  ;;  %v6346_v11 = vrot.slane %v6344_v22, 4  ;;  %v5929_v7 = vrot.slane %v5572_v59, 4  ;;  %v6261_v50 = vld [vmem:[#allocation3 + $0x70] sm:$0xf8] }
 0x610   : > { %v6331_v3 = vsel %vm1295_vm10, %v6322_v35, %v6330_v53  ;;  %v6350_v55 = vshrl.u32 %v6257_v33, 16  ;;  %v6353_v5 = vshll.u32 %v6257_v33, 16  ;;  %v6358_v56 = vshrl.u32 %v6258_v25, 16  ;;  %v6262_v63 = vld [vmem:[#allocation3 + $0x78] sm:$0xf]  ;;  %7634 = vrot.lane.b32.xlu1 %v5927_v32, %s16037_s3 }
 0x611   : > { %v6339_v39 = vor.u32 %v6338_v41, %v6335_v27  ;;  %v6347_v60 = vor.u32 %v6346_v11, %v6343_v34  ;;  %v5930_v19 = vsel %vm1616_vm6, %v5928_v58, %v5929_v7  ;;  %v6361_v44 = vshll.u32 %v6258_v25, 16  ;;  %v6259_v37 = vld [vmem:[#allocation3 + $0x60] sm:$0xf8]  ;;  %v6260_v26 = vld [vmem:[#allocation3 + $0x68] sm:$0xf]  ;;  %v10946_v36 = vld [vmem:[%s16022_s15 + $0xf8] sm:$0xff]  }
 0x612   : > { %7662 = vrot.lane.b32.xlu0 %v6331_v3, %s16037_s3  ;;  %v6352_v12 = vrot.slane %v6350_v55, 3  ;;  %v6355_v38 = vrot.slane %v6353_v5, 4  ;;  %v6360_v6 = vrot.slane %v6358_v56, 3  ;;  %v6384_v15 = vshrl.u32 %v6261_v50, 16  ;;  %v5574_v30 = vld [vmem:[#allocation3 + $0x68] sm:$0xf]  ;;  %10792 = vmatprep.subr.bf16.mxu1 %v10946_v36 }
 0x613   : > { %v6348_v57 = vsel %vm1295_vm10, %v6339_v39, %v6347_v60  ;;  %v6363_v48 = vrot.slane %v6361_v44, 4  ;;  %v6387_v51 = vshll.u32 %v6261_v50, 16  ;;  %v6392_v1 = vshrl.u32 %v6262_v63, 16  ;;  %v5871_v45 = vld [vmem:[#allocation3 + $0x60] sm:$0xf0]  ;;  %v10947_v33 = vld [vmem:[%s16022_s15 + $0xb8] sm:$0xff]  }
 0x614   : > { %v6356_v43 = vor.u32 %v6355_v38, %v6352_v12  ;;  %v6386_v46 = vrot.slane %v6384_v15, 3  ;;  %v6395_v29 = vshll.u32 %v6262_v63, 16  ;;  %v6367_v20 = vshrl.u32 %v6259_v37, 16  ;;  %7636 = vrot.lane.b32.xlu1 %v5930_v19, %s16037_s3  ;;  %v6263_v17 = vld [vmem:[#allocation3 + $0x80] sm:$0xf8]  ;;  %10800 = vmatpush3.bf16.msra.mxu1 %v10947_v33 }
 0x615   : > { %v6364_v52 = vor.u32 %v6363_v48, %v6360_v6  ;;  %v6389_v62 = vrot.slane %v6387_v51, 4  ;;  %v6394_v31 = vrot.slane %v6392_v1, 3  ;;  %v6370_v21 = vshll.u32 %v6259_v37, 16  ;;  %v6943_v14 = vld [vmem:[#allocation3 + $0x48] sm:$0xf] }
 0x616   : > { %7664 = vrot.lane.b32.xlu0 %v6348_v57, %s16037_s3  ;;  %v6397_v18 = vrot.slane %v6395_v29, 4  ;;  %v6369_v40 = vrot.slane %v6367_v20, 3  ;;  %v6375_v49 = vshrl.u32 %v6260_v26, 16  ;;  %v6378_v2 = vshll.u32 %v6260_v26, 16  ;;  %v7244_v42 = vld [vmem:[#allocation3 + $0x40] sm:$0xf0] }
 0x617   : > { %v6390_v59 = vor.u32 %v6389_v62, %v6386_v46  ;;  %v6372_v35 = vrot.slane %v6370_v21, 4  ;;  %v5984_v22 = vor.u32 %v14233_v47, %v14229_v0  ;;  %v5989_v8 = vshll.u32 %v14213_v24, 16  ;;  %v6264_v58 = vld [vmem:[#allocation3 + $0x88] sm:$0xf]  ;;  %v6555_v7 = vld [vmem:[#allocation3 + $0x30] sm:$0xf0] }
 0x618   : > { %v6365_v23 = vsel %vm1295_vm10, %v6356_v43, %v6364_v52  ;;  %v6398_v53 = vor.u32 %v6397_v18, %v6394_v31  ;;  %v6377_v32 = vrot.slane %v6375_v49, 3  ;;  %v6380_v27 = vrot.slane %v6378_v2, 4  ;;  %v6651_v56 = vld [vmem:[#allocation3 + $0x38] sm:$0x1f]  ;;  %v5872_v6 = vld [vmem:[#allocation3 + $0x70] sm:$0xf0] }
 0x619   : > { %v6373_v25 = vor.u32 %v6372_v35, %v6369_v40  ;;  %v5931_v41 = vrot.slane %v5871_v45, 4  ;;  %v5932_v34 = vrot.slane %v5574_v30, 4  ;;  %v6401_v11 = vshrl.u32 %v6263_v17, 16  ;;  %v5576_v19 = vld [vmem:[#allocation3 + $0x78] sm:$0xf] }
 0x61a   : > { %7666 = vrot.lane.b32.xlu0 %v6365_v23, %s16037_s3  ;;  %v6399_v50 = vsel %vm1295_vm10, %v6390_v59, %v6398_v53  ;;  %v6381_v3 = vor.u32 %v6380_v27, %v6377_v32  ;;  %v7296_v55 = vrot.slane %v7244_v42, 4  ;;  %v6404_v5 = vshll.u32 %v6263_v17, 16  ;;  %v6265_v1 = vld [vmem:[#allocation3 + $0x90] sm:$0xf8]  ;;  %v6945_v31 = vld [vmem:[#allocation3 + $0x58] sm:$0xf] }
 0x61b   : > { %7670 = vrot.lane.b32.xlu1 %v6399_v50, %s16037_s3  ;;  %v7297_v63 = vrot.slane %v6943_v14, 4  ;;  %v6403_v4 = vrot.slane %v6401_v11, 3  ;;  %v6409_v39 = vshrl.u32 %v6264_v58, 16  ;;  %v6412_v60 = vshll.u32 %v6264_v58, 16  ;;  %v7245_v20 = vld [vmem:[#allocation3 + $0x50] sm:$0xf0] }
 0x61c   : > { %v6382_v44 = vsel %vm1295_vm10, %v6373_v25, %v6381_v3  ;;  %v6406_v37 = vrot.slane %v6404_v5, 4  ;;  %v6700_v12 = vshrl.u32 %v6555_v7, 16  ;;  %v6703_v38 = vshll.u32 %v6555_v7, 16  ;;  %v6266_v21 = vld [vmem:[#allocation3 + $0x98] sm:$0xf] }
 0x61d   : > { %v6411_v15 = vrot.slane %v6409_v39, 3  ;;  %v6414_v57 = vrot.slane %v6412_v60, 4  ;;  %v6708_v48 = vshrl.u32 %v6651_v56, 16  ;;  %v6711_v51 = vshll.u32 %v6651_v56, 16  ;;  %v6556_v2 = vld [vmem:[#allocation3 + $0x40] sm:$0xf0] }
 0x61e   : > { %7668 = vrot.lane.b32.xlu0 %v6382_v44, %s16037_s3  ;;  %v5933_v26 = vsel %vm1616_vm6, %v5931_v41, %v5932_v34  ;;  %v6407_v43 = vor.u32 %v6406_v37, %v6403_v4  ;;  %v6702_v46 = vrot.slane %v6700_v12, 4  ;;  %v6705_v29 = vrot.slane %v6703_v38, 5  ;;  %v6652_v42 = vld [vmem:[#allocation3 + $0x48] sm:$0x1f]  ;;  %v5873_v11 = vld [vmem:[#allocation3 + $0x80] sm:$0xf0] }
 0x61f   : > { %7638 = vrot.lane.b32.xlu1 %v5933_v26, %s16037_s3  ;;  %v6415_v30 = vor.u32 %v6414_v57, %v6411_v15  ;;  %v6710_v52 = vrot.slane %v6708_v48, 4  ;;  %v6713_v62 = vrot.slane %v6711_v51, 5  ;;  %v5600_v45 = vor.u32 %v14225_v16, %v14215_v61  ;;  %v5578_v58 = vld [vmem:[#allocation3 + $0x88] sm:$0xf]  ;;  %v6267_v5 = vld [vmem:[#allocation3 + $0xa0] sm:$0xf8] }
 0x620   : > { %v7298_v36 = vsel %vm1616_vm6, %v7296_v55, %v7297_v63  ;;  %v5934_v18 = vrot.slane %v5872_v6, 4  ;;  %v5935_v40 = vrot.slane %v5576_v19, 4  ;;  %v6418_v49 = vshrl.u32 %v6265_v1, 16  ;;  %v6947_v60 = vld [vmem:[#allocation3 + $0x68] sm:$0xf] }
 0x621   : > { %v6706_v17 = vor.u32 %v6705_v29, %v6702_v46  ;;  %v6714_v59 = vor.u32 %v6713_v62, %v6710_v52  ;;  %v7299_v35 = vrot.slane %v7245_v20, 4  ;;  %v6421_v14 = vshll.u32 %v6265_v1, 16  ;;  %v7246_v19 = vld [vmem:[#allocation3 + $0x60] sm:$0xf0]  ;;  %v6268_v6 = vld [vmem:[#allocation3 + $0xa8] sm:$0xf] }
 0x622   : > { %7726 = vrot.lane.b32.xlu0 %v7298_v36, %s16037_s3  ;;  %v6416_v23 = vsel %vm1295_vm10, %v6407_v43, %v6415_v30  ;;  %v6420_v53 = vrot.slane %v6418_v49, 3  ;;  %v6426_v32 = vshrl.u32 %v6266_v21, 16  ;;  %v6429_v27 = vshll.u32 %v6266_v21, 16  ;;  %v6557_v1 = vld [vmem:[#allocation3 + $0x50] sm:$0xf0] }
 0x623   : > { %7672 = vrot.lane.b32.xlu1 %v6416_v23, %s16037_s3  ;;  %v7300_v33 = vrot.slane %v6945_v31, 4  ;;  %v6423_v25 = vrot.slane %v6421_v14, 4  ;;  %v6717_v41 = vshrl.u32 %v6556_v2, 16  ;;  %v6720_v34 = vshll.u32 %v6556_v2, 16  ;;  %v6653_v20 = vld [vmem:[#allocation3 + $0x58] sm:$0x1f] }
 0x624   : > { %v6428_v7 = vrot.slane %v6426_v32, 3  ;;  %v6431_v50 = vrot.slane %v6429_v27, 4  ;;  %v6725_v3 = vshrl.u32 %v6652_v42, 16  ;;  %v6728_v55 = vshll.u32 %v6652_v42, 16  ;;  %v5580_v21 = vld [vmem:[#allocation3 + $0x98] sm:$0xf] }
 0x625   : > { %v6715_v56 = vsel %vm1681_vm7, %v6706_v17, %v6714_v59  ;;  %v5936_v63 = vsel %vm1616_vm6, %v5934_v18, %v5935_v40  ;;  %v6719_v4 = vrot.slane %v6717_v41, 4  ;;  %v6722_v39 = vrot.slane %v6720_v34, 5  ;;  %v5874_v2 = vld [vmem:[#allocation3 + $0x90] sm:$0xf0]  ;;  %v5962_v24 = vld [vmem:[#allocation3 + $0x18] sm:$0x1f] }
 0x626   : > { %7694 = vrot.lane.b32.xlu0 %v6715_v56, %s16037_s3  ;;  %v6424_v44 = vor.u32 %v6423_v25, %v6420_v53  ;;  %v6432_v37 = vor.u32 %v6431_v50, %v6428_v7  ;;  %v6727_v12 = vrot.slane %v6725_v3, 4  ;;  %v6730_v38 = vrot.slane %v6728_v55, 5  ;;  %v6269_v42 = vld [vmem:[#allocation3 + $0xb0] sm:$0xf8]  ;;  %v6270_v7 = vld [vmem:[#allocation3 + $0xb8] sm:$0xf] }
 0x627   : > { %7640 = vrot.lane.b32.xlu1 %v5936_v63, %s16037_s3  ;;  %v7301_v15 = vsel %vm1616_vm6, %v7299_v35, %v7300_v33  ;;  %v5937_v57 = vrot.slane %v5873_v11, 4  ;;  %v5938_v48 = vrot.slane %v5578_v58, 4  ;;  %v6435_v51 = vshrl.u32 %v6267_v5, 16  ;;  %v6949_v58 = vld [vmem:[#allocation3 + $0x78] sm:$0xf]  ;;  %v10948_v50 = vld [vmem:[%s16038_s9] sm:$0xff]  }
 0x628   : > { %v6723_v26 = vor.u32 %v6722_v39, %v6719_v4  ;;  %v7302_v43 = vrot.slane %v7246_v19, 4  ;;  %v7303_v46 = vrot.slane %v6947_v60, 4  ;;  %v6438_v29 = vshll.u32 %v6267_v5, 16  ;;  %v7247_v33 = vld [vmem:[#allocation3 + $0x70] sm:$0xf0]  ;;  %10731 = vmatprep.subr.bf16.mxu1 %v10948_v50 }
 0x629   : > { %v6731_v30 = vor.u32 %v6730_v38, %v6727_v12  ;;  %v6437_v52 = vrot.slane %v6435_v51, 3  ;;  %v6443_v62 = vshrl.u32 %v6268_v6, 16  ;;  %v6446_v31 = vshll.u32 %v6268_v6, 16  ;;  %v6558_v63 = vld [vmem:[#allocation3 + $0x60] sm:$0xf0] }
 0x62a   : > { %7728 = vrot.lane.b32.xlu0 %v7301_v15, %s16037_s3  ;;  %v6433_v36 = vsel %vm1295_vm10, %v6424_v44, %v6432_v37  ;;  %v6440_v18 = vrot.slane %v6438_v29, 4  ;;  %v6734_v40 = vshrl.u32 %v6557_v1, 16  ;;  %v6737_v49 = vshll.u32 %v6557_v1, 16  ;;  %v6654_v44 = vld [vmem:[#allocation3 + $0x68] sm:$0x1f] }
 0x62b   : > { %7674 = vrot.lane.b32.xlu1 %v6433_v36, %s16037_s3  ;;  %v6445_v17 = vrot.slane %v6443_v62, 3  ;;  %v6448_v59 = vrot.slane %v6446_v31, 4  ;;  %v6742_v35 = vshrl.u32 %v6653_v20, 16  ;;  %v6745_v14 = vshll.u32 %v6653_v20, 16  ;;  %v5875_v1 = vld [vmem:[#allocation3 + $0xa0] sm:$0xf0] }
 0x62c   : > { %v5939_v23 = vsel %vm1616_vm6, %v5937_v57, %v5938_v48  ;;  %v6441_v53 = vor.u32 %v6440_v18, %v6437_v52  ;;  %v6736_v32 = vrot.slane %v6734_v40, 4  ;;  %v6739_v27 = vrot.slane %v6737_v49, 5  ;;  %v6271_v20 = vld [vmem:[#allocation3 + $0xc0] sm:$0xf8]  ;;  %v5582_v31 = vld [vmem:[#allocation3 + $0xa8] sm:$0xf] }
 0x62d   : > { %v6732_v25 = vsel %vm1681_vm7, %v6723_v26, %v6731_v30  ;;  %v6449_v41 = vor.u32 %v6448_v59, %v6445_v17  ;;  %v6744_v34 = vrot.slane %v6742_v35, 4  ;;  %v6747_v11 = vrot.slane %v6745_v14, 5  ;;  %v6951_v17 = vld [vmem:[#allocation3 + $0x88] sm:$0xf] }
 0x62e   : > { %7696 = vrot.lane.b32.xlu0 %v6732_v25, %s16037_s3  ;;  %v7304_v3 = vsel %vm1616_vm6, %v7302_v43, %v7303_v46  ;;  %v5940_v55 = vrot.slane %v5874_v2, 4  ;;  %v5941_v5 = vrot.slane %v5580_v21, 4  ;;  %v6452_v56 = vshrl.u32 %v6269_v42, 16  ;;  %v7248_v21 = vld [vmem:[#allocation3 + $0x80] sm:$0xf0] }
 0x62f   : > { %7642 = vrot.lane.b32.xlu1 %v5939_v23, %s16037_s3  ;;  %v6740_v4 = vor.u32 %v6739_v27, %v6736_v32  ;;  %v7305_v39 = vrot.slane %v7247_v33, 4  ;;  %v7306_v60 = vrot.slane %v6949_v58, 4  ;;  %v6455_v19 = vshll.u32 %v6269_v42, 16  ;;  %v6272_v59 = vld [vmem:[#allocation3 + $0xc8] sm:$0xf] }
 0x630   : > { %v6450_v37 = vsel %vm1295_vm10, %v6441_v53, %v6449_v41  ;;  %v6748_v12 = vor.u32 %v6747_v11, %v6744_v34  ;;  %v6460_v38 = vshrl.u32 %v6270_v7, 16  ;;  %v6463_v6 = vshll.u32 %v6270_v7, 16  ;;  %v6559_v53 = vld [vmem:[#allocation3 + $0x70] sm:$0xf0] }
 0x631   : > { %v6454_v15 = vrot.slane %v6452_v56, 3  ;;  %v6457_v57 = vrot.slane %v6455_v19, 4  ;;  %v6751_v48 = vshrl.u32 %v6558_v63, 16  ;;  %v6754_v51 = vshll.u32 %v6558_v63, 16  ;;  %v5876_v11 = vld [vmem:[#allocation3 + $0xb0] sm:$0xf0] }
 0x632   : > { %7730 = vrot.lane.b32.xlu0 %v7304_v3, %s16037_s3  ;;  %v6462_v26 = vrot.slane %v6460_v38, 3  ;;  %v6465_v43 = vrot.slane %v6463_v6, 4  ;;  %v6759_v46 = vshrl.u32 %v6654_v44, 16  ;;  %v6762_v29 = vshll.u32 %v6654_v44, 16  ;;  %v14321_v19 = vld [vmem:[#allocation3 + $0x90] sm:$0xf0] }
 0x633   : > { %7676 = vrot.lane.b32.xlu1 %v6450_v37, %s16037_s3  ;;  %v5942_v30 = vsel %vm1616_vm6, %v5940_v55, %v5941_v5  ;;  %v6753_v52 = vrot.slane %v6751_v48, 4  ;;  %v6756_v62 = vrot.slane %v6754_v51, 5  ;;  %v14312_v36 = vsel %vm1295_vm10, %v5600_v45, %v5608_v10  ;;  %v6655_v10 = vld [vmem:[#allocation3 + $0x78] sm:$0x1f]  ;;  %v6273_v5 = vld [vmem:[#allocation3 + $0xd0] sm:$0xf8] }
 0x634   : > { %v6749_v18 = vsel %vm1681_vm7, %v6740_v4, %v6748_v12  ;;  %v7307_v40 = vsel %vm1616_vm6, %v7305_v39, %v7306_v60  ;;  %v6761_v49 = vrot.slane %v6759_v46, 4  ;;  %v6764_v2 = vrot.slane %v6762_v29, 5  ;;  %v5584_v60 = vld [vmem:[#allocation3 + $0xb8] sm:$0xf] }
 0x635   : > { %v6458_v35 = vor.u32 %v6457_v57, %v6454_v15  ;;  %v6466_v14 = vor.u32 %v6465_v43, %v6462_v26  ;;  %v5943_v42 = vrot.slane %v5875_v1, 4  ;;  %v6469_v23 = vshrl.u32 %v6271_v20, 16  ;;  %v6274_v6 = vld [vmem:[#allocation3 + $0xd8] sm:$0xf]  ;;  %v6560_v26 = vld [vmem:[#allocation3 + $0x80] sm:$0xf0] }
 0x636   : > { %7698 = vrot.lane.b32.xlu0 %v6749_v18, %s16037_s3  ;;  %v6757_v13 = vor.u32 %v6756_v62, %v6753_v52  ;;  %v5944_v61 = vrot.slane %v5582_v31, 4  ;;  %v7308_v54 = vrot.slane %v7248_v21, 4  ;;  %v6472_v16 = vshll.u32 %v6271_v20, 16  ;;  %v6953_v51 = vld [vmem:[#allocation3 + $0x98] sm:$0xf] }
 0x637   : > { %7644 = vrot.lane.b32.xlu1 %v5942_v30, %s16037_s3  ;;  %v6765_v45 = vor.u32 %v6764_v2, %v6761_v49  ;;  %v7309_v32 = vrot.slane %v6951_v17, 4  ;;  %v6477_v27 = vshrl.u32 %v6272_v59, 16  ;;  %v6480_v58 = vshll.u32 %v6272_v59, 16  ;;  %v6656_v30 = vld [vmem:[#allocation3 + $0x88] sm:$0x1f] }
 0x638   : > { %v6471_v33 = vrot.slane %v6469_v23, 3  ;;  %v6474_v25 = vrot.slane %v6472_v16, 4  ;;  %v6768_v41 = vshrl.u32 %v6559_v53, 16  ;;  %v6771_v34 = vshll.u32 %v6559_v53, 16  ;;  %v5586_v18 = vld [vmem:[#allocation3 + $0xc8] sm:$0xf] }
 0x639   : > { %v6479_v7 = vrot.slane %v6477_v27, 3  ;;  %v6482_v50 = vrot.slane %v6480_v58, 4  ;;  %v6776_v3 = vshrl.u32 %v6655_v10, 16  ;;  %v6779_v55 = vshll.u32 %v6655_v10, 16  ;;  %v5877_v59 = vld [vmem:[#allocation3 + $0xc0] sm:$0xf0] }
 0x63a   : > { %7732 = vrot.lane.b32.xlu0 %v7307_v40, %s16037_s3  ;;  %v6467_v56 = vsel %vm1295_vm10, %v6458_v35, %v6466_v14  ;;  %v5945_v63 = vsel %vm1616_vm6, %v5943_v42, %v5944_v61  ;;  %v6770_v4 = vrot.slane %v6768_v41, 4  ;;  %v6773_v39 = vrot.slane %v6771_v34, 5  ;;  %v6275_v53 = vld [vmem:[#allocation3 + $0xe0] sm:$0xf8]  ;;  %v6955_v10 = vld [vmem:[#allocation3 + $0xa8] sm:$0xf] }
 0x63b   : > { %7678 = vrot.lane.b32.xlu1 %v6467_v56, %s16037_s3  ;;  %v6766_v44 = vsel %vm1681_vm7, %v6757_v13, %v6765_v45  ;;  %v7310_v37 = vsel %vm1616_vm6, %v7308_v54, %v7309_v32  ;;  %v6778_v12 = vrot.slane %v6776_v3, 4  ;;  %v6781_v38 = vrot.slane %v6779_v55, 5  ;;  %v7250_v45 = vld [vmem:[#allocation3 + $0xa0] sm:$0xf0] }
 0x63c   : > { %v6475_v15 = vor.u32 %v6474_v25, %v6471_v33  ;;  %v6483_v57 = vor.u32 %v6482_v50, %v6479_v7  ;;  %v5946_v48 = vrot.slane %v5876_v11, 4  ;;  %v6486_v1 = vshrl.u32 %v6273_v5, 16  ;;  %v6276_v25 = vld [vmem:[#allocation3 + $0xe8] sm:$0xf]  ;;  %v6561_v50 = vld [vmem:[#allocation3 + $0x90] sm:$0xf0] }
 0x63d   : > { %v6774_v43 = vor.u32 %v6773_v39, %v6770_v4  ;;  %v5947_v46 = vrot.slane %v5584_v60, 4  ;;  %v7311_v29 = vrot.slane %v14321_v19, 4  ;;  %v6489_v20 = vshll.u32 %v6273_v5, 16 }
 0x63e   : > { %7700 = vrot.lane.b32.xlu0 %v6766_v44, %s16037_s3  ;;  %v6782_v52 = vor.u32 %v6781_v38, %v6778_v12  ;;  %v6488_v62 = vrot.slane %v6486_v1, 3  ;;  %v6494_v31 = vshrl.u32 %v6274_v6, 16  ;;  %v6497_v21 = vshll.u32 %v6274_v6, 16  ;;  %v5878_v6 = vld [vmem:[#allocation3 + $0xd0] sm:$0xf0] }
 0x63f   : > { %7646 = vrot.lane.b32.xlu1 %v5945_v63, %s16037_s3  ;;  %v7312_v40 = vrot.slane %v6953_v51, 4  ;;  %v6491_v49 = vrot.slane %v6489_v20, 4  ;;  %v6785_v2 = vshrl.u32 %v6560_v26, 16  ;;  %v6788_v17 = vshll.u32 %v6560_v26, 16  ;;  %v6657_v63 = vld [vmem:[#allocation3 + $0x98] sm:$0x1f] }
 0x640   : > { %v6496_v35 = vrot.slane %v6494_v31, 3  ;;  %v6499_v14 = vrot.slane %v6497_v21, 4  ;;  %v6793_v42 = vshrl.u32 %v6656_v30, 16  ;;  %v6796_v23 = vshll.u32 %v6656_v30, 16  ;;  %v6277_v1 = vld [vmem:[#allocation3 + $0xf0] sm:$0xf8] }
 0x641   : > { %v6484_v13 = vsel %vm1295_vm10, %v6475_v15, %v6483_v57  ;;  %v5948_v61 = vsel %vm1616_vm6, %v5946_v48, %v5947_v46  ;;  %v6787_v54 = vrot.slane %v6785_v2, 4  ;;  %v6790_v16 = vrot.slane %v6788_v17, 5  ;;  %v7251_v30 = vld [vmem:[#allocation3 + $0xb0] sm:$0xf0] }
 0x642   : > { %7734 = vrot.lane.b32.xlu0 %v7310_v37, %s16037_s3  ;;  %v6783_v32 = vsel %vm1681_vm7, %v6774_v43, %v6782_v52  ;;  %v6492_v27 = vor.u32 %v6491_v49, %v6488_v62  ;;  %v6795_v58 = vrot.slane %v6793_v42, 4  ;;  %v6798_v33 = vrot.slane %v6796_v23, 5 }
 0x643   : > { %7680 = vrot.lane.b32.xlu1 %v6484_v13, %s16037_s3  ;;  %v6500_v41 = vor.u32 %v6499_v14, %v6496_v35  ;;  %v5949_v34 = vrot.slane %v5877_v59, 4  ;;  %v5950_v11 = vrot.slane %v5586_v18, 4  ;;  %v6503_v7 = vshrl.u32 %v6275_v53, 16  ;;  %v6957_v18 = vld [vmem:[#allocation3 + $0xb8] sm:$0xf] }
 0x644   : > { %v6791_v3 = vor.u32 %v6790_v16, %v6787_v54  ;;  %v7314_v55 = vrot.slane %v7250_v45, 4  ;;  %v7315_v5 = vrot.slane %v6955_v10, 4  ;;  %v6506_v56 = vshll.u32 %v6275_v53, 16  ;;  %v6562_v35 = vld [vmem:[#allocation3 + $0xa0] sm:$0xf0] }
 0x645   : > { %v6799_v4 = vor.u32 %v6798_v33, %v6795_v58  ;;  %v6505_v39 = vrot.slane %v6503_v7, 3  ;;  %v6511_v60 = vshrl.u32 %v6276_v25, 16  ;;  %v6514_v19 = vshll.u32 %v6276_v25, 16  ;;  %v6658_v13 = vld [vmem:[#allocation3 + $0xa8] sm:$0x1f] }
 0x646   : > { %7702 = vrot.lane.b32.xlu0 %v6783_v32, %s16037_s3  ;;  %v7313_v44 = vsel %vm1616_vm6, %v7311_v29, %v7312_v40  ;;  %v6508_v37 = vrot.slane %v6506_v56, 4  ;;  %v6802_v12 = vshrl.u32 %v6561_v50, 16  ;;  %v6805_v38 = vshll.u32 %v6561_v50, 16  ;;  %v5588_v29 = vld [vmem:[#allocation3 + $0xd8] sm:$0xf] }
 0x647   : > { %7648 = vrot.lane.b32.xlu1 %v5948_v61, %s16037_s3  ;;  %v6513_v15 = vrot.slane %v6511_v60, 3  ;;  %v6516_v57 = vrot.slane %v6514_v19, 4  ;;  %v6810_v48 = vshrl.u32 %v6657_v63, 16  ;;  %v6813_v51 = vshll.u32 %v6657_v63, 16  ;;  %v6278_v40 = vld [vmem:[#allocation3 + $0xf8] sm:$0xf] }
 0x648   : > { %v6501_v26 = vsel %vm1295_vm10, %v6492_v27, %v6500_v41  ;;  %v5951_v43 = vsel %vm1616_vm6, %v5949_v34, %v5950_v11  ;;  %v14339_v46 = vrot.slane %v6802_v12, 4  ;;  %v14341_v20 = vrot.slane %v6805_v38, 5  ;;  %v5590_v45 = vld [vmem:[#allocation3 + $0xe8] sm:$0xf]  ;;  %v5879_v25 = vld [vmem:[#allocation3 + $0xe0] sm:$0xf0] }
 0x649   : > { %v6800_v52 = vsel %vm1681_vm7, %v6791_v3, %v6799_v4  ;;  %v7316_v62 = vsel %vm1616_vm6, %v7314_v55, %v7315_v5  ;;  %v6509_v31 = vor.u32 %v6508_v37, %v6505_v39  ;;  %v6517_v21 = vor.u32 %v6516_v57, %v6513_v15  ;;  %v6279_v50 = vld [vmem:[#allocation3 + $0x100] sm:$0xf8]  ;;  %v6959_v63 = vld [vmem:[#allocation3 + $0xc8] sm:$0xf]  ;;  %v6563_v57 = vld [vmem:[#allocation3 + $0xb0] sm:$0xf0] }
 0x64a   : > { %7736 = vrot.lane.b32.xlu0 %v7313_v44, %s16037_s3  ;;  %v6812_v49 = vrot.slane %v6810_v48, 4  ;;  %v6815_v2 = vrot.slane %v6813_v51, 5  ;;  %v5952_v17 = vrot.slane %v5878_v6, 4  ;;  %v6520_v59 = vshrl.u32 %v6277_v1, 16  ;;  %v7252_v4 = vld [vmem:[#allocation3 + $0xc0] sm:$0xf0] }
 0x64b   : > { %7682 = vrot.lane.b32.xlu1 %v6501_v26, %s16037_s3  ;;  %v6808_v14 = vor.u32 %v14341_v20, %v14339_v46  ;;  %v5953_v42 = vrot.slane %v5588_v29, 4  ;;  %v7317_v23 = vrot.slane %v7251_v30, 4  ;;  %v6523_v53 = vshll.u32 %v6277_v1, 16  ;;  %v6280_v37 = vld [vmem:[#allocation3 + $0x108] sm:$0xf] }
 0x64c   : > { %v7318_v61 = vrot.slane %v6957_v18, 4  ;;  %v6522_v54 = vrot.slane %v6520_v59, 3  ;;  %v6528_v16 = vshrl.u32 %v6278_v40, 16  ;;  %v6531_v10 = vshll.u32 %v6278_v40, 16  ;;  %v14357_v40 = vld [vmem:[#allocation3 + $0xf0] sm:$0xf0] }
 0x64d   : > { %v6518_v32 = vsel %vm1295_vm10, %v6509_v31, %v6517_v21  ;;  %v6525_v27 = vrot.slane %v6523_v53, 4  ;;  %v6819_v58 = vshrl.u32 %v6562_v35, 16  ;;  %v6822_v33 = vshll.u32 %v6562_v35, 16  ;;  %v6565_v59 = vld [vmem:[#allocation3 + $0xd0] sm:$0xf0] }
 0x64e   : > { %7704 = vrot.lane.b32.xlu0 %v6800_v52, %s16037_s3  ;;  %v6530_v41 = vrot.slane %v6528_v16, 3  ;;  %v6533_v34 = vrot.slane %v6531_v10, 4  ;;  %v6827_v11 = vshrl.u32 %v6658_v13, 16  ;;  %v6830_v7 = vshll.u32 %v6658_v13, 16  ;;  %v14368_v13 = vld [vmem:[#allocation3 + $0xd0] sm:$0xf0] }
 0x64f   : > { %7650 = vrot.lane.b32.xlu1 %v5951_v43, %s16037_s3  ;;  %v6816_v3 = vor.u32 %v6815_v2, %v6812_v49  ;;  %v5954_v55 = vsel %vm1616_vm6, %v5952_v17, %v5953_v42  ;;  %v6821_v5 = vrot.slane %v6819_v58, 4  ;;  %v6824_v56 = vrot.slane %v6822_v33, 5  ;;  %v6659_v43 = vld [vmem:[#allocation3 + $0xb8] sm:$0x1f] }
 0x650   : > { %v7319_v39 = vsel %vm1616_vm6, %v7317_v23, %v7318_v61  ;;  %v6526_v60 = vor.u32 %v6525_v27, %v6522_v54  ;;  %v6829_v19 = vrot.slane %v6827_v11, 4  ;;  %v6832_v44 = vrot.slane %v6830_v7, 5 }
 0x651   : > { %v6534_v12 = vor.u32 %v6533_v34, %v6530_v41  ;;  %v5955_v38 = vrot.slane %v5879_v25, 4  ;;  %v5956_v6 = vrot.slane %v5590_v45, 4  ;;  %v6537_v15 = vshrl.u32 %v6279_v50, 16  ;;  %v6961_v45 = vld [vmem:[#allocation3 + $0xd8] sm:$0xf] }
 0x652   : > { %7738 = vrot.lane.b32.xlu0 %v7316_v62, %s16037_s3  ;;  %v6825_v48 = vor.u32 %v6824_v56, %v6821_v5  ;;  %v7320_v51 = vrot.slane %v7252_v4, 4  ;;  %v7321_v1 = vrot.slane %v6959_v63, 4  ;;  %v6540_v26 = vshll.u32 %v6279_v50, 16  ;;  %v6564_v41 = vld [vmem:[#allocation3 + $0xc0] sm:$0xf0] }
 0x653   : > { %7684 = vrot.lane.b32.xlu1 %v6518_v32, %s16037_s3  ;;  %v6833_v46 = vor.u32 %v6832_v44, %v6829_v19  ;;  %v6539_v20 = vrot.slane %v6537_v15, 3  ;;  %v6545_v29 = vshrl.u32 %v6280_v37, 16  ;;  %v6548_v30 = vshll.u32 %v6280_v37, 16  ;;  %v6661_v32 = vld [vmem:[#allocation3 + $0xd8] sm:$0x1f] }
 0x654   : > { %v6817_v52 = vsel %vm1681_vm7, %v6808_v14, %v6816_v3  ;;  %v6542_v31 = vrot.slane %v6540_v26, 4  ;;  %v6836_v21 = vshrl.u32 %v6563_v57, 16  ;;  %v6839_v18 = vshll.u32 %v6563_v57, 16  ;;  %v14366_v14 = vld [vmem:[#allocation3 + $0xf8] sm:$0xf] }
 0x655   : > { %v6547_v49 = vrot.slane %v6545_v29, 3  ;;  %v6550_v62 = vrot.slane %v6548_v30, 4  ;;  %v6844_v2 = vshrl.u32 %v6659_v43, 16  ;;  %v6847_v17 = vshll.u32 %v6659_v43, 16  ;;  %v6660_v3 = vld [vmem:[#allocation3 + $0xc8] sm:$0x1f] }
 0x656   : > { %7706 = vrot.lane.b32.xlu0 %v6817_v52, %s16037_s3  ;;  %v6535_v35 = vsel %vm1295_vm10, %v6526_v60, %v6534_v12  ;;  %v5957_v42 = vsel %vm1616_vm6, %v5955_v38, %v5956_v6  ;;  %v14362_v23 = vrot.slane %v6836_v21, 4  ;;  %v14364_v53 = vrot.slane %v6839_v18, 5  ;;  %v6553_v4 = vld [vmem:[#allocation3 + $0x10] sm:$0xf0]  ;;  %v6649_v12 = vld [vmem:[#allocation3 + $0x18] sm:$0x1f] }
 0x657   : > { %7652 = vrot.lane.b32.xlu1 %v5954_v55, %s16037_s3  ;;  %v6834_v61 = vsel %vm1681_vm7, %v6825_v48, %v6833_v46  ;;  %v7322_v54 = vsel %vm1616_vm6, %v7320_v51, %v7321_v1  ;;  %v6543_v16 = vor.u32 %v6542_v31, %v6539_v20  ;;  %v6551_v10 = vor.u32 %v6550_v62, %v6547_v49  ;;  %v6963_v48 = vld [vmem:[#allocation3 + $0xe8] sm:$0xf]  ;;  %v7254_v43 = vld [vmem:[#allocation3 + $0xe0] sm:$0xf0] }
 0x658   : > { %v6846_v27 = vrot.slane %v6844_v2, 4  ;;  %v6849_v58 = vrot.slane %v6847_v17, 5  ;;  %v5958_v33 = vrot.slane %v14357_v40, 4  ;;  %v6870_v25 = vshrl.u32 %v6565_v59, 16  ;;  %v6566_v52 = vld [vmem:[#allocation3 + $0xe0] sm:$0xf0] }
 0x659   : > { %v6842_v34 = vor.u32 %v14364_v53, %v14362_v23  ;;  %v5959_v11 = vrot.slane %v14366_v14, 4  ;;  %v7323_v7 = vrot.slane %v14368_v13, 4  ;;  %v6873_v50 = vshll.u32 %v6565_v59, 16  ;;  %v6662_v49 = vld [vmem:[#allocation3 + $0xe8] sm:$0x1f] }
 0x65a   : > { %7740 = vrot.lane.b32.xlu0 %v7319_v39, %s16037_s3  ;;  %v7324_v55 = vrot.slane %v6961_v45, 4  ;;  %v6872_v5 = vrot.slane %v6870_v25, 4  ;;  %v6878_v56 = vshrl.u32 %v6661_v32, 16  ;;  %v6881_v63 = vshll.u32 %v6661_v32, 16  ;;  %v6650_v25 = vld [vmem:[#allocation3 + $0x28] sm:$0x1f] }
 0x65b   : > { %7686 = vrot.lane.b32.xlu1 %v6535_v35, %s16037_s3  ;;  %v6552_v60 = vsel %vm1295_vm10, %v6543_v16, %v6551_v10  ;;  %v6875_v19 = vrot.slane %v6873_v50, 5  ;;  %v6853_v44 = vshrl.u32 %v6564_v41, 16  ;;  %v6856_v37 = vshll.u32 %v6564_v41, 16  ;;  %v6554_v10 = vld [vmem:[#allocation3 + $0x20] sm:$0xf0] }
 0x65c   : > { %v6880_v38 = vrot.slane %v6878_v56, 4  ;;  %v6883_v6 = vrot.slane %v6881_v63, 5  ;;  %v6861_v15 = vshrl.u32 %v6660_v3, 16  ;;  %v6864_v57 = vshll.u32 %v6660_v3, 16  ;;  %v7242_v50 = vld [vmem:[#allocation3 + $0x20] sm:$0xf0] }
 0x65d   : > { %v6850_v51 = vor.u32 %v6849_v58, %v6846_v27  ;;  %v6855_v39 = vrot.slane %v6853_v44, 4  ;;  %v6858_v1 = vrot.slane %v6856_v37, 5  ;;  %v6666_v26 = vshrl.u32 %v6553_v4, 16  ;;  %v7255_v63 = vld [vmem:[#allocation3 + $0xf0] sm:$0xf0] }
 0x65e   : > { %7708 = vrot.lane.b32.xlu0 %v6834_v61, %s16037_s3  ;;  %v6876_v46 = vor.u32 %v6875_v19, %v6872_v5  ;;  %v6863_v20 = vrot.slane %v6861_v15, 4  ;;  %v6866_v29 = vrot.slane %v6864_v57, 5  ;;  %v6669_v30 = vshll.u32 %v6553_v4, 16  ;;  %v7627_v5 = vpop.permute.xlu1 %7626  ;;  %v6567_v4 = vld [vmem:[#allocation3 + $0xf0] sm:$0xf0] }
 0x65f   : > { %7654 = vrot.lane.b32.xlu1 %v5957_v42, %s16037_s3  ;;  %v6884_v31 = vor.u32 %v6883_v6, %v6880_v38  ;;  %v6859_v21 = vor.u32 %v6858_v1, %v6855_v39  ;;  %v6674_v18 = vshrl.u32 %v6649_v12, 16  ;;  %v6677_v40 = vshll.u32 %v6649_v12, 16  ;;  %v6663_v12 = vld [vmem:[#allocation3 + $0xf8] sm:$0x1f] }
 0x660   : > { %v6867_v62 = vor.u32 %v6866_v29, %v6863_v20  ;;  %v14383_v2 = vrot.slane %v6666_v26, 4  ;;  %v14385_v17 = vrot.slane %v6669_v30, 5  ;;  %v7326_v59 = vrot.slane %v7254_v43, 4  ;;  %v7243_v43 = vld [vmem:[#allocation3 + $0x30] sm:$0xf0] }
 0x661   : > { %v14387_v35 = vrot.slane %v6674_v18, 4  ;;  %v14389_v23 = vrot.slane %v6677_v40, 5  ;;  %v7327_v53 = vrot.slane %v6963_v48, 4  ;;  %v6887_v14 = vshrl.u32 %v6566_v52, 16  ;;  %v6965_v48 = vld [vmem:[#allocation3 + $0xf8] sm:$0xf] }
 0x662   : > { %7742 = vrot.lane.b32.xlu0 %v7322_v54, %s16037_s3  ;;  %v5960_v42 = vsel %vm1616_vm6, %v5958_v33, %v5959_v11  ;;  %v7325_v13 = vsel %vm1616_vm6, %v7323_v7, %v7324_v55  ;;  %v6890_v61 = vshll.u32 %v6566_v52, 16  ;;  %v6895_v16 = vshrl.u32 %v6662_v49, 16  ;;  %v6939_v7 = vld [vmem:[#allocation3 + $0x28] sm:$0xf]  ;;  %v6941_v30 = vld [vmem:[#allocation3 + $0x38] sm:$0xf] }
 0x663   : > { %7688 = vrot.lane.b32.xlu1 %v6552_v60, %s16037_s3  ;;  %v6851_v45 = vsel %vm1681_vm7, %v6842_v34, %v6850_v51  ;;  %v6885_v32 = vsel %vm1681_vm7, %v6876_v46, %v6884_v31  ;;  %v6889_v27 = vrot.slane %v6887_v14, 4  ;;  %v6898_v58 = vshll.u32 %v6662_v49, 16  ;;  %v6664_v14 = vld [vmem:[#allocation3 + $0x108] sm:$0x1f] }
 0x664   : > { %v6868_v41 = vsel %vm1681_vm7, %v6859_v21, %v6867_v62  ;;  %v6672_v54 = vor.u32 %v14385_v17, %v14383_v2  ;;  %v6892_v33 = vrot.slane %v6890_v61, 5  ;;  %v6897_v11 = vrot.slane %v6895_v16, 4  ;;  %v6568_v17 = vld [vmem:[#allocation3 + $0x100] sm:$0xf0] }
 0x665   : > { %v6680_v3 = vor.u32 %v14389_v23, %v14387_v35  ;;  %v14403_v55 = vsel %vm1616_vm6, %v7326_v59, %v7327_v53  ;;  %v6900_v34 = vrot.slane %v6898_v58, 5  ;;  %v6683_v56 = vshrl.u32 %v6554_v10, 16 }
 0x666   : > { %7710 = vrot.lane.b32.xlu0 %v6851_v45, %s16037_s3  ;;  %v14408_v60 = vsel %vm3571_vm11, %v14312_v36, %v7627_v5  ;;  %v6686_v19 = vshll.u32 %v6554_v10, 16  ;;  %v6691_v44 = vshrl.u32 %v6650_v25, 16  ;;  %v6694_v37 = vshll.u32 %v6650_v25, 16  ;;  %v7256_v10 = vld [vmem:[#allocation3 + $0x100] sm:$0xf0] }
 0x667   : > { %7656 = vrot.lane.b32.xlu1 %v5960_v42, %s16037_s3  ;;  %v6893_v38 = vor.u32 %v6892_v33, %v6889_v27  ;;  %v7290_v6 = vrot.slane %v7242_v50, 4  ;;  %v7291_v15 = vrot.slane %v6939_v7, 4  ;;  %v6685_v57 = vrot.slane %v6683_v56, 4  ;;  %v6967_v25 = vld [vmem:[#allocation3 + $0x108] sm:$0xf] }
 0x668   : > { %v6901_v51 = vor.u32 %v6900_v34, %v6897_v11  ;;  %v6688_v39 = vrot.slane %v6686_v19, 5  ;;  %v6693_v1 = vrot.slane %v6691_v44, 4  ;;  %v6696_v26 = vrot.slane %v6694_v37, 5  ;;  %v11026_v19 = vld [vmem:[#allocation3 + $0x10] sm:$0xf0] }
 0x669   : > { %v7329_v46 = vrot.slane %v7255_v63, 4  ;;  %v6904_v20 = vshrl.u32 %v6567_v4, 16  ;;  %v6907_v36 = vshll.u32 %v6567_v4, 16  ;;  %v6912_v29 = vshrl.u32 %v6663_v12, 16 }
 0x66a   : > { %7744 = vrot.lane.b32.xlu0 %v7325_v13, %s16037_s3  ;;  %v6689_v52 = vor.u32 %v6688_v39, %v6685_v57  ;;  %v6697_v31 = vor.u32 %v6696_v26, %v6693_v1  ;;  %v7330_v21 = vrot.slane %v6965_v48, 4  ;;  %v6915_v18 = vshll.u32 %v6663_v12, 16  ;;  %v11027_v1 = vld [vmem:[#allocation3 + $0x18] sm:$0xf] }
 0x66b   : > { %7714 = vrot.lane.b32.xlu1 %v6885_v32, %s16037_s3  ;;  %v6906_v40 = vrot.slane %v6904_v20, 4  ;;  %v6909_v49 = vrot.slane %v6907_v36, 5  ;;  %v6914_v62 = vrot.slane %v6912_v29, 4  ;;  %v7293_v2 = vrot.slane %v7243_v43, 4  ;;  %v5963_v43 = vld [vmem:[#allocation3 + $0x28] sm:$0x1f] }
 0x66c   : > { %v6681_v59 = vsel %vm1681_vm7, %v6672_v54, %v6680_v3  ;;  %v7292_v35 = vsel %vm1616_vm6, %v7290_v6, %v7291_v15  ;;  %v6917_v23 = vrot.slane %v6915_v18, 5  ;;  %v7294_v53 = vrot.slane %v6941_v30, 4  ;;  %v5563_v3 = vld [vmem:[#allocation3 + $0x10] sm:$0xf8]  ;;  %v11028_v29 = vld [vmem:[#allocation3 + $0x20] sm:$0xf0] }
 0x66d   : > { %v6902_v42 = vsel %vm1681_vm7, %v6893_v38, %v6901_v51  ;;  %v6910_v13 = vor.u32 %v6909_v49, %v6906_v40  ;;  %v5988_v61 = vrot.slane %v5986_v28, 4  ;;  %v5991_v16 = vrot.slane %v5989_v8, 5 }
 0x66e   : > { %7712 = vrot.lane.b32.xlu0 %v6868_v41, %s16037_s3  ;;  %v6698_v45 = vsel %vm1681_vm7, %v6689_v52, %v6697_v31  ;;  %v7331_v32 = vsel %vm1616_vm6, %v7329_v46, %v7330_v21  ;;  %v6918_v27 = vor.u32 %v6917_v23, %v6914_v62  ;;  %v6921_v58 = vshrl.u32 %v6568_v17, 16  ;;  %v7257_v52 = vld [vmem:[#allocation3 + $0x110] sm:$0xf0]  ;;  %v6969_v62 = vld [vmem:[#allocation3 + $0x118] sm:$0xf] }
 0x66f   : > { %7690 = vrot.lane.b32.xlu1 %v6681_v59, %s16037_s3  ;;  %v14425_v54 = vsel %vm1616_vm6, %v7293_v2, %v7294_v53  ;;  %v5992_v33 = vor.u32 %v5991_v16, %v5988_v61  ;;  %v6924_v28 = vshll.u32 %v6568_v17, 16  ;;  %v6929_v11 = vshrl.u32 %v6664_v14, 16 }
 0x670   : > { %v6919_v8 = vsel %vm1681_vm7, %v6910_v13, %v6918_v27  ;;  %v6923_v7 = vrot.slane %v6921_v58, 4  ;;  %v6932_v41 = vshll.u32 %v6664_v14, 16  ;;  %v7332_v50 = vrot.slane %v7256_v10, 4 }
 0x671   : > { %v14432_v34 = vsel %vm1681_vm7, %v5984_v22, %v5992_v33  ;;  %v6926_v5 = vrot.slane %v6924_v28, 5  ;;  %v6931_v56 = vrot.slane %v6929_v11, 4  ;;  %v7333_v63 = vrot.slane %v6967_v25, 4  ;;  %v11029_v28 = vld [vmem:[#allocation3 + $0x28] sm:$0xf] }
 0x672   : > { %7746 = vrot.lane.b32.xlu0 %v14403_v55, %s16037_s3  ;;  %v6934_v4 = vrot.slane %v6932_v41, 5  ;;  %v5995_v44 = vshrl.u32 %v11026_v19, 16  ;;  %v5998_v37 = vshll.u32 %v11026_v19, 16  ;;  %v6003_v12 = vshrl.u32 %v5962_v24, 16 }
 0x673   : > { %7716 = vrot.lane.b32.xlu1 %v6902_v42, %s16037_s3  ;;  %v6927_v38 = vor.u32 %v6926_v5, %v6923_v7  ;;  %v14438_v6 = vsel %vm1616_vm6, %v7332_v50, %v7333_v63  ;;  %v6006_v0 = vshll.u32 %v5962_v24, 16  ;;  %v5611_v47 = vshrl.u32 %v5563_v3, 16  ;;  %v7629_v31 = vpop.permute.xlu1 %7628 }
 0x674   : > { %v6935_v22 = vor.u32 %v6934_v4, %v6931_v56  ;;  %v5997_v15 = vrot.slane %v5995_v44, 4  ;;  %v6000_v57 = vrot.slane %v5998_v37, 5  ;;  %v6005_v48 = vrot.slane %v6003_v12, 4  ;;  %v6942_v4 = vld [vmem:[#allocation3 + $0x40] sm:$0xf8] }
 0x675   : > { %v6008_v51 = vrot.slane %v6006_v0, 5  ;;  %v5613_v39 = vrot.slane %v5611_v47, 3  ;;  %v5614_v55 = vshll.u32 %v5563_v3, 16  ;;  %v5619_v26 = vshrl.u32 %v11027_v1, 16  ;;  %v11030_v12 = vld [vmem:[#allocation3 + $0x30] sm:$0xf0] }
 0x676   : > { %7722 = vrot.lane.b32.xlu0 %v7292_v35, %s16037_s3  ;;  %v6936_v46 = vsel %vm1681_vm7, %v6927_v38, %v6935_v22  ;;  %v6001_v20 = vor.u32 %v6000_v57, %v5997_v15  ;;  %v5622_v36 = vshll.u32 %v11027_v1, 16  ;;  %v6012_v30 = vshrl.u32 %v11028_v29, 16  ;;  %v5565_v35 = vld [vmem:[#allocation3 + $0x20] sm:$0xf8] }
 0x677   : > { %7692 = vrot.lane.b32.xlu1 %v6698_v45, %s16037_s3  ;;  %v6009_v21 = vor.u32 %v6008_v51, %v6005_v48  ;;  %v5616_v18 = vrot.slane %v5614_v55, 4  ;;  %v5621_v40 = vrot.slane %v5619_v26, 3  ;;  %v6015_v49 = vshll.u32 %v11028_v29, 16 }
 0x678   : > { %v5624_v2 = vrot.slane %v5622_v36, 4  ;;  %v6014_v17 = vrot.slane %v6012_v30, 4  ;;  %v6020_v59 = vshrl.u32 %v5963_v43, 16  ;;  %v6023_v23 = vshll.u32 %v5963_v43, 16 }
 0x679   : > { %v6010_v53 = vsel %vm1681_vm7, %v6001_v20, %v6009_v21  ;;  %v5617_v14 = vor.u32 %v5616_v18, %v5613_v39  ;;  %v6017_v42 = vrot.slane %v6015_v49, 5  ;;  %v7335_v13 = vrot.slane %v7257_v52, 4  ;;  %v5567_v20 = vld [vmem:[#allocation3 + $0x30] sm:$0xf8]  ;;  %v11033_v52 = vld [vmem:[#allocation3 + $0x48] sm:$0xf] }
 0x67a   : > { %7748 = vrot.lane.b32.xlu0 %v7331_v32, %s16037_s3  ;;  %v5625_v61 = vor.u32 %v5624_v2, %v5621_v40  ;;  %v6022_v16 = vrot.slane %v6020_v59, 4  ;;  %v6025_v10 = vrot.slane %v6023_v23, 5  ;;  %v7336_v45 = vrot.slane %v6969_v62, 4  ;;  %v7631_v27 = vpop.permute.xlu1 %7630  ;;  %v5964_v32 = vld [vmem:[#allocation3 + $0x38] sm:$0x1f] }
 0x67b   : > { %7718 = vrot.lane.b32.xlu1 %v6919_v8, %s16037_s3  ;;  %v6018_v58 = vor.u32 %v6017_v42, %v6014_v17  ;;  %v5628_v25 = vshrl.u32 %v5565_v35, 16  ;;  %v5631_v33 = vshll.u32 %v5565_v35, 16  ;;  %v5636_v11 = vshrl.u32 %v11029_v28, 16 }
 0x67c   : > { %v7659_v24 = vpop.permute.xlu0 %7658  ;;  %v5626_v7 = vsel %vm1295_vm10, %v5617_v14, %v5625_v61  ;;  %v6026_v41 = vor.u32 %v6025_v10, %v6022_v16  ;;  %v7337_v50 = vsel %vm1616_vm6, %v7335_v13, %v7336_v45  ;;  %v5639_v3 = vshll.u32 %v11029_v28, 16  ;;  %v11035_v13 = vld [vmem:[#allocation3 + $0x38] sm:$0xf]  ;;  %v5965_v16 = vld [vmem:[#allocation3 + $0x48] sm:$0x1f]  ;;  %v11036_v10 = vld [vmem:[%s16022_s15 + $0xd0] sm:$0xff]  }
 0x67d   : > { %v7820_v5 = vsel %vm3571_vm11, %v14432_v34, %v7659_v24  ;;  %v14451_v56 = vsel %vm3571_vm11, %v5626_v7, %v7629_v31  ;;  %v5630_v8 = vrot.slane %v5628_v25, 3  ;;  %v5633_v63 = vrot.slane %v5631_v33, 4  ;;  %v11037_v25 = vld [vmem:[#allocation3 + $0x30] sm:$0xf0]  ;;  %v11038_v7 = vld [vmem:[#allocation3 + $0x38] sm:$0xf] }
 0x67e   : > { %7724 = vrot.lane.b32.xlu0 %v14425_v54, %s16037_s3  ;;  %8385 = vmatprep.mubr.bf16.mxu0 %v7820_v5  ;;  %v6027_v19 = vsel %vm1681_vm7, %v6018_v58, %v6026_v41  ;;  %v5638_v44 = vrot.slane %v5636_v11, 3  ;;  %v5641_v37 = vrot.slane %v5639_v3, 4  ;;  %v6029_v38 = vshrl.u32 %v11030_v12, 16  ;;  %v14458_v34 = vpop.permute.xlu1 %7632  ;;  %v11031_v54 = vld [vmem:[%s16022_s15 + $0x80] sm:$0xff]  }
 0x67f   : > { %7720 = vrot.lane.b32.xlu1 %v6936_v46, %s16037_s3  ;;  %8386 = vmatmul.mubr.bf16.vlgmr.msra.gmra.mrb[40].mxu0 %v14408_v60  ;;  %v5634_v0 = vor.u32 %v5633_v63, %v5630_v8  ;;  %v6032_v47 = vshll.u32 %v11030_v12, 16  ;;  %v6037_v22 = vshrl.u32 %v5964_v32, 16  ;;  %v6040_v15 = vshll.u32 %v5964_v32, 16  ;;  %v11032_v60 = vld [vmem:[%s16022_s15 + $0xc8] sm:$0xff]   ;;  %v11039_v3 = vld [vmem:[#allocation3 + $0x40] sm:$0xf0] }
 0x680   : > { %10464 = vmatpush3.bf16.msra.mxu0 %v11031_v54  ;;  %v7661_v57 = vpop.permute.xlu0 %7660  ;;  %v5642_v48 = vor.u32 %v5641_v37, %v5638_v44  ;;  %v6031_v51 = vrot.slane %v6029_v38, 4  ;;  %v7005_v39 = vshrl.u32 %v6942_v4, 16  ;;  %v7008_v55 = vshll.u32 %v6942_v4, 16  ;;  %v11040_v44 = vld [vmem:[%s16022_s15 + $0x90] sm:$0xff]  }
 0x681   : > { %v7824_v1 = vsel %vm3571_vm11, %v6010_v53, %v7661_v57  ;;  %10465 = vmatprep.subr.bf16.mxu0 %v11032_v60  ;;  %v6034_v26 = vrot.slane %v6032_v47, 5  ;;  %v6039_v43 = vrot.slane %v6037_v22, 4  ;;  %v6042_v46 = vrot.slane %v6040_v15, 5  ;;  %v11041_v47 = vld [vmem:[%s16022_s15 + $0xd8] sm:$0xff]  }
 0x682   : > { %7750 = vrot.lane.b32.xlu0 %v14438_v6, %s16037_s3  ;;  %8393 = vmatprep.mubr.bf16.mxu0 %v7824_v1  ;;  %v5643_v36 = vsel %vm1295_vm10, %v5634_v0, %v5642_v48  ;;  %v7007_v29 = vrot.slane %v7005_v39, 3  ;;  %v7010_v30 = vrot.slane %v7008_v55, 4  ;;  %v7013_v31 = vshrl.u32 %v11033_v52, 16  ;;  %v14470_v21 = vpop.permute.xlu1 %7634  ;;  %v11034_v6 = vld [vmem:[%s16022_s15 + $0x88] sm:$0xff]   ;;  %v5569_v0 = vld [vmem:[#allocation3 + $0x40] sm:$0xf8] }
 0x683   : > { %v14473_v18 = vsel %vm3571_vm11, %v5643_v36, %v7631_v27  ;;  %v6035_v40 = vor.u32 %v6034_v26, %v6031_v51  ;;  %v6043_v49 = vor.u32 %v6042_v46, %v6039_v43  ;;  %v7016_v62 = vshll.u32 %v11033_v52, 16  ;;  %v11042_v39 = vld [vmem:[#allocation3 + $0x58] sm:$0xf] }
 0x684   : > { %v7663_v2 = vpop.permute.xlu0 %7662  ;;  %10466 = vmatpush3.bf16.msra.mxu0 %v11034_v6  ;;  %v7011_v17 = vor.u32 %v7010_v30, %v7007_v29  ;;  %v7015_v59 = vrot.slane %v7013_v31, 3  ;;  %v5645_v23 = vshrl.u32 %v5567_v20, 16  ;;  %v5648_v35 = vshll.u32 %v5567_v20, 16  ;;  %v11043_v36 = vld [vmem:[%s16022_s15 + $0x98] sm:$0xff]  }
 0x685   : > { %v7828_v53 = vsel %vm3571_vm11, %v6027_v19, %v7663_v2  ;;  %v6044_v14 = vsel %vm1681_vm7, %v6035_v40, %v6043_v49  ;;  %v7018_v42 = vrot.slane %v7016_v62, 4  ;;  %v5653_v61 = vshrl.u32 %v11035_v13, 16  ;;  %10467 = vmatprep.subr.bf16.mxu0 %v11036_v10  ;;  %v6944_v19 = vld [vmem:[#allocation3 + $0x50] sm:$0xf8]  ;;  %v11044_v49 = vld [vmem:[%s16022_s15 + $0xe0] sm:$0xff]  }
 0x686   : > { %7752 = vrot.lane.b32.xlu0 %v7337_v50, %s16037_s3  ;;  %v5647_v45 = vrot.slane %v5645_v23, 3  ;;  %v5650_v27 = vrot.slane %v5648_v35, 4  ;;  %v5656_v58 = vshll.u32 %v11035_v13, 16  ;;  %v6607_v33 = vrot.slane %v11037_v25, 4  ;;  %v14485_v28 = vpop.permute.xlu1 %7636  ;;  %v11045_v23 = vld [vmem:[#allocation3 + $0x48] sm:$0xf] }
 0x687   : > { %8394 = vmatmul.mubr.bf16.gmra.mrb[44].mxu0 %v14451_v56  ;;  %v7019_v11 = vor.u32 %v7018_v42, %v7015_v59  ;;  %v5655_v24 = vrot.slane %v5653_v61, 3  ;;  %v6608_v41 = vrot.slane %v11038_v7, 4  ;;  %v6046_v32 = vshrl.u32 %v11039_v3, 16  ;;  %v11048_v7 = vld [vmem:[%s16022_s15 + $0xe8] sm:$0xff]   ;;  %s16051_s3 = sld [smem:[#allocation79_spill]] }
 0x688   : > { %v7665_v5 = vpop.permute.xlu0 %7664  ;;  %8401 = vmatprep.mubr.bf16.mxu0 %v7828_v53  ;;  %v5651_v8 = vor.u32 %v5650_v27, %v5647_v45  ;;  %v5658_v63 = vrot.slane %v5656_v58, 4  ;;  %v6049_v50 = vshll.u32 %v11039_v3, 16  ;;  %v6054_v4 = vshrl.u32 %v5965_v16, 16  ;;  %10468 = vmatpush3.bf16.msra.mxu0 %v11040_v44  ;;  %v11047_v27 = vld [vmem:[%s16022_s15 + $0xa0] sm:$0xff]  }
 0x689   : > { %v7832_v56 = vsel %vm3571_vm11, %v6044_v14, %v7665_v5  ;;  %v14492_v37 = vsel %vm1295_vm10, %v7011_v17, %v7019_v11  ;;  %v14495_v12 = vsel %vm1616_vm6, %v6607_v33, %v6608_v41  ;;  %v6048_v38 = vrot.slane %v6046_v32, 4  ;;  %10469 = vmatprep.subr.bf16.mxu0 %v11041_v47  ;;  %v11046_v14 = vld [vmem:[#allocation3 + $0x50] sm:$0xf0] }
 0x68a   : > { %v5659_v22 = vor.u32 %v5658_v63, %v5655_v24  ;;  %v6051_v15 = vrot.slane %v6049_v50, 5  ;;  %v6056_v54 = vrot.slane %v6054_v4, 4  ;;  %v6057_v57 = vshll.u32 %v5965_v16, 16  ;;  %v6946_v24 = vld [vmem:[#allocation3 + $0x60] sm:$0xf8] }
 0x68b   : > { %v7022_v48 = vshrl.u32 %v6944_v19, 16  ;;  %v7025_v51 = vshll.u32 %v6944_v19, 16  ;;  %v7030_v55 = vshrl.u32 %v11042_v39, 16  ;;  %v7033_v1 = vshll.u32 %v11042_v39, 16  ;;  %v11049_v50 = vld [vmem:[#allocation3 + $0x40] sm:$0xf0] }
 0x68c   : > { %v7667_v60 = vpop.permute.xlu0 %7666  ;;  %v5660_v26 = vsel %vm1295_vm10, %v5651_v8, %v5659_v22  ;;  %v6052_v43 = vor.u32 %v6051_v15, %v6048_v38  ;;  %v6059_v46 = vrot.slane %v6057_v57, 5  ;;  %v5662_v20 = vshrl.u32 %v5569_v0, 16  ;;  %10470 = vmatpush3.bf16.msra.mxu0 %v11043_v36  ;;  %v11050_v19 = vld [vmem:[#allocation3 + $0x48] sm:$0xf]  ;;  %v5571_v15 = vld [vmem:[#allocation3 + $0x50] sm:$0xf8] }
 0x68d   : > { %v14504_v29 = vpop.permute.xlu1 %7670  ;;  %v14508_v30 = vsel %vm3571_vm11, %v5660_v26, %v14458_v34  ;;  %v7024_v52 = vrot.slane %v7022_v48, 3  ;;  %v7027_v31 = vrot.slane %v7025_v51, 4  ;;  %v7032_v40 = vrot.slane %v7030_v55, 3  ;;  %10471 = vmatprep.subr.bf16.mxu0 %v11044_v49  ;;  %v5966_v34 = vld [vmem:[#allocation3 + $0x58] sm:$0x1f] }
 0x68e   : > { %v6060_v62 = vor.u32 %v6059_v46, %v6056_v54  ;;  %v7035_v2 = vrot.slane %v7033_v1, 4  ;;  %v5664_v6 = vrot.slane %v5662_v20, 3  ;;  %v5665_v17 = vshll.u32 %v5569_v0, 16  ;;  %v11051_v54 = vld [vmem:[%s16022_s15 + $0xa8] sm:$0xff]   ;;  %v11052_v1 = vld [vmem:[%s16022_s15 + $0xf0] sm:$0xff]  }
 0x68f   : > { %8402 = vmatmul.mubr.bf16.gmra.mrb[48].mxu0 %v14473_v18  ;;  %v7028_v59 = vor.u32 %v7027_v31, %v7024_v52  ;;  %v5670_v35 = vshrl.u32 %v11045_v23, 16  ;;  %v5673_v53 = vshll.u32 %v11045_v23, 16  ;;  %v6063_v42 = vshrl.u32 %v11046_v14, 16  ;;  %v11053_v46 = vld [vmem:[#allocation3 + $0x68] sm:$0xf] }
 0x690   : > { %v14514_v13 = vpop.permute.xlu0 %7668  ;;  %8409 = vmatprep.mubr.bf16.mxu0 %v7832_v56  ;;  %v6061_v61 = vsel %vm1681_vm7, %v6052_v43, %v6060_v62  ;;  %v7036_v16 = vor.u32 %v7035_v2, %v7032_v40  ;;  %v5667_v10 = vrot.slane %v5665_v17, 4  ;;  %v6066_v45 = vshll.u32 %v11046_v14, 16  ;;  %10472 = vmatpush3.bf16.msra.mxu0 %v11047_v27  ;;  %v11054_v2 = vld [vmem:[#allocation3 + $0x58] sm:$0xf] }
 0x691   : > { %v14520_v18 = vpop.permute.xlu1 %7638  ;;  %v7836_v58 = vsel %vm3571_vm11, %v6061_v61, %v7667_v60  ;;  %v5672_v25 = vrot.slane %v5670_v35, 3  ;;  %v5675_v33 = vrot.slane %v5673_v53, 4  ;;  %v6065_v11 = vrot.slane %v6063_v42, 4  ;;  %10473 = vmatprep.subr.bf16.mxu0 %v11048_v7  ;;  %v11056_v42 = vld [vmem:[%s16022_s15 + $0xf8] sm:$0xff]   ;;  %v10950_v61 = vld [vmem:[%s16022_s15 + $0x100] sm:$0xff]  }
 0x692   : > { %v14527_v41 = vsel %vm1295_vm10, %v7028_v59, %v7036_v16  ;;  %v5668_v3 = vor.u32 %v5667_v10, %v5664_v6  ;;  %v6068_v32 = vrot.slane %v6066_v45, 5  ;;  %v6071_v5 = vshrl.u32 %v5966_v34, 16  ;;  %v5967_v59 = vld [vmem:[#allocation3 + $0x68] sm:$0x1f] }
 0x693   : > { %v5676_v8 = vor.u32 %v5675_v33, %v5672_v25  ;;  %v6074_v63 = vshll.u32 %v5966_v34, 16  ;;  %v6610_v4 = vrot.slane %v11049_v50, 4  ;;  %v6611_v44 = vrot.slane %v11050_v19, 4  ;;  %v11060_v50 = vld [vmem:[%s16022_s15 + $0xb8] sm:$0xff]  }
 0x694   : > { %v7727_v56 = vpop.permute.xlu0 %7726  ;;  %v6069_v38 = vor.u32 %v6068_v32, %v6065_v11  ;;  %v6073_v0 = vrot.slane %v6071_v5, 4  ;;  %v7039_v47 = vshrl.u32 %v6946_v24, 16  ;;  %v7042_v22 = vshll.u32 %v6946_v24, 16  ;;  %10474 = vmatpush3.bf16.msra.mxu0 %v11051_v54  ;;  %v11058_v24 = vld [vmem:[%s16038_s9] sm:$0xff]  }
 0x695   : > { %v14532_v57 = vpop.permute.xlu1 %7672  ;;  %v7956_v48 = vsel %vm3571_vm11, %v14492_v37, %v7727_v56  ;;  %v5677_v51 = vsel %vm1295_vm10, %v5668_v3, %v5676_v8  ;;  %v6076_v39 = vrot.slane %v6074_v63, 5  ;;  %v14538_v55 = vsel %vm1616_vm6, %v6610_v4, %v6611_v44  ;;  %10475 = vmatprep.subr.bf16.mxu0 %v11052_v1  ;;  %v11059_v8 = vld [vmem:[#allocation3 + $0x50] sm:$0xf0] }
 0x696   : > { %8562 = vmatprep.mubr.bf16.mxu1 %v7956_v48  ;;  %v14545_v60 = vsel %vm3571_vm11, %v5677_v51, %v14470_v21  ;;  %v7041_v26 = vrot.slane %v7039_v47, 3  ;;  %v7044_v43 = vrot.slane %v7042_v22, 4  ;;  %v7047_v37 = vshrl.u32 %v11053_v46, 16  ;;  %v11055_v21 = vld [vmem:[%s16022_s15 + $0xb0] sm:$0xff]   ;;  %v5573_v48 = vld [vmem:[#allocation3 + $0x60] sm:$0xf8] }
 0x697   : > { %8410 = vmatmul.mubr.bf16.gmra.mrb[52].mxu0 %v14508_v30  ;;  %v6077_v20 = vor.u32 %v6076_v39, %v6073_v0  ;;  %v7050_v36 = vshll.u32 %v11053_v46, 16  ;;  %v5679_v52 = vshrl.u32 %v5571_v15, 16  ;;  %v5682_v31 = vshll.u32 %v5571_v15, 16  ;;  %v10949_v30 = vld [vmem:[%s16038_s9 + $0x8] sm:$0xff]   ;;  %v11061_v15 = vld [vmem:[#allocation3 + $0x58] sm:$0xf] }
 0x698   : > { %v7695_v40 = vpop.permute.xlu0 %7694  ;;  %8417 = vmatprep.mubr.bf16.mxu0 %v7836_v58  ;;  %v7045_v49 = vor.u32 %v7044_v43, %v7041_v26  ;;  %v7049_v62 = vrot.slane %v7047_v37, 3  ;;  %v5687_v6 = vshrl.u32 %v11054_v2, 16  ;;  %v5690_v17 = vshll.u32 %v11054_v2, 16  ;;  %10476 = vmatpush3.bf16.msra.mxu0 %v11055_v21  ;;  %v11057_v58 = vld [vmem:[#allocation3 + $0x60] sm:$0xf0] }
 0x699   : > { %v7892_v23 = vsel %vm3571_vm11, %v14495_v12, %v7695_v40  ;;  %v14556_v35 = vpop.permute.xlu1 %7640  ;;  %v6078_v53 = vsel %vm1681_vm7, %v6069_v38, %v6077_v20  ;;  %v7052_v34 = vrot.slane %v7050_v36, 4  ;;  %v5681_v14 = vrot.slane %v5679_v52, 3  ;;  %10477 = vmatprep.subr.bf16.mxu0 %v11056_v42  ;;  %v11062_v37 = vld [vmem:[#allocation3 + $0x78] sm:$0xf] }
 0x69a   : > { %8563 = vmatmul.mubr.bf16.vlgmr.msra.gmra.mrb[64].mxu1 %v7892_v23  ;;  %v7840_v16 = vsel %vm3571_vm11, %v6078_v53, %v14514_v13  ;;  %v5684_v12 = vrot.slane %v5682_v31, 4  ;;  %v5689_v10 = vrot.slane %v5687_v6, 3  ;;  %v5692_v45 = vrot.slane %v5690_v17, 4  ;;  %v6948_v13 = vld [vmem:[#allocation3 + $0x70] sm:$0xf8] }
 0x69b   : > { %v7053_v27 = vor.u32 %v7052_v34, %v7049_v62  ;;  %v6080_v25 = vshrl.u32 %v11057_v58, 16  ;;  %v6083_v33 = vshll.u32 %v11057_v58, 16  ;;  %v6088_v11 = vshrl.u32 %v5967_v59, 16  ;;  %10732 = vmatpush3.bf16.msra.mxu1 %v11058_v24  ;;  %v5968_v17 = vld [vmem:[#allocation3 + $0x78] sm:$0x1f] }
 0x69c   : > { %v7729_v7 = vpop.permute.xlu0 %7728  ;;  %v5685_v3 = vor.u32 %v5684_v12, %v5681_v14  ;;  %v5693_v32 = vor.u32 %v5692_v45, %v5689_v10  ;;  %v6091_v5 = vshll.u32 %v5967_v59, 16  ;;  %v6613_v63 = vrot.slane %v11059_v8, 4  ;;  %10733 = vmatprep.subr.bf16.mxu1 %v10949_v30  ;;  %10478 = vmatpush3.bf16.msra.mxu0 %v11060_v50  ;;  %v11063_v23 = vld [vmem:[#allocation3 + $0x68] sm:$0xf] }
 0x69d   : > { %v14573_v4 = vpop.permute.xlu1 %7674  ;;  %v7960_v19 = vsel %vm3571_vm11, %v14527_v41, %v7729_v7  ;;  %v7054_v44 = vsel %vm1295_vm10, %v7045_v49, %v7053_v27  ;;  %v6082_v56 = vrot.slane %v6080_v25, 4  ;;  %v6085_v38 = vrot.slane %v6083_v33, 5  ;;  %10691 = vmatprep.subr.bf16.mxu0 %v10950_v61  ;;  %v11064_v61 = vld [vmem:[#allocation3 + $0x70] sm:$0xf0]  ;;  %v6950_v25 = vld [vmem:[#allocation3 + $0x80] sm:$0xf8] }
 0x69e   : > { %8570 = vmatprep.mubr.bf16.mxu1 %v7960_v19  ;;  %v5694_v0 = vsel %vm1295_vm10, %v5685_v3, %v5693_v32  ;;  %v6090_v47 = vrot.slane %v6088_v11, 4  ;;  %v6093_v22 = vrot.slane %v6091_v5, 5  ;;  %v6614_v54 = vrot.slane %v11061_v15, 4  ;;  %v11065_v5 = vld [vmem:[#allocation3 + $0x60] sm:$0xf0] }
 0x69f   : > { %8418 = vmatmul.mubr.bf16.gmra.mrb[56].mxu0 %v14545_v60  ;;  %v7776_v51 = vsel %vm3571_vm11, %v5694_v0, %v14485_v28  ;;  %v6086_v39 = vor.u32 %v6085_v38, %v6082_v56  ;;  %v7056_v41 = vshrl.u32 %v6948_v13, 16  ;;  %v7059_v1 = vshll.u32 %v6948_v13, 16  ;;  %10734 = vmatpush3.bf16.msra.mxu1 %v10949_v30  ;;  %v11066_v50 = vld [vmem:[#allocation3 + $0x68] sm:$0xf] }
 0x6a0   : > { %v7697_v26 = vpop.permute.xlu0 %7696  ;;  %8425 = vmatprep.mubr.bf16.mxu0 %v7840_v16  ;;  %v6094_v43 = vor.u32 %v6093_v22, %v6090_v47  ;;  %v6615_v46 = vsel %vm1616_vm6, %v6613_v63, %v6614_v54  ;;  %v7064_v20 = vshrl.u32 %v11062_v37, 16  ;;  %v7067_v36 = vshll.u32 %v11062_v37, 16  ;;  %v11067_v15 = vld [vmem:[#allocation3 + $0x88] sm:$0xf] }
 0x6a1   : > { %v14583_v52 = vpop.permute.xlu1 %7642  ;;  %v7896_v60 = vsel %vm3571_vm11, %v14538_v55, %v7697_v26  ;;  %v7058_v31 = vrot.slane %v7056_v41, 3  ;;  %v7061_v40 = vrot.slane %v7059_v1, 4  ;;  %v5696_v28 = vshrl.u32 %v5573_v48, 16 }
 0x6a2   : > { %8571 = vmatmul.mubr.bf16.gmra.mrb[68].mxu1 %v7896_v60  ;;  %v6095_v49 = vsel %vm1681_vm7, %v6086_v39, %v6094_v43  ;;  %v7066_v62 = vrot.slane %v7064_v20, 3  ;;  %v7069_v2 = vrot.slane %v7067_v36, 4  ;;  %v5699_v6 = vshll.u32 %v5573_v48, 16  ;;  %v5575_v48 = vld [vmem:[#allocation3 + $0x70] sm:$0xf8] }
 0x6a3   : > { %v7844_v59 = vsel %vm3571_vm11, %v6095_v49, %v14504_v29  ;;  %v7062_v21 = vor.u32 %v7061_v40, %v7058_v31  ;;  %v5698_v30 = vrot.slane %v5696_v28, 3  ;;  %v5704_v53 = vshrl.u32 %v11063_v23, 16  ;;  %v11068_v40 = vld [vmem:[#allocation3 + $0x78] sm:$0xf] }
 0x6a4   : > { %v7731_v34 = vpop.permute.xlu0 %7730  ;;  %v7070_v14 = vor.u32 %v7069_v2, %v7066_v62  ;;  %v5701_v55 = vrot.slane %v5699_v6, 4  ;;  %v5707_v42 = vshll.u32 %v11063_v23, 16  ;;  %v6097_v16 = vshrl.u32 %v11064_v61, 16 }
 0x6a5   : > { %v14590_v12 = vpop.permute.xlu1 %7676  ;;  %v7964_v10 = vsel %vm3571_vm11, %v7054_v44, %v7731_v34  ;;  %v5706_v45 = vrot.slane %v5704_v53, 3  ;;  %v6100_v27 = vshll.u32 %v11064_v61, 16  ;;  %v6105_v58 = vshrl.u32 %v5968_v17, 16 }
 0x6a6   : > { %8578 = vmatprep.mubr.bf16.mxu1 %v7964_v10  ;;  %v7071_v29 = vsel %vm1295_vm10, %v7062_v21, %v7070_v14  ;;  %v5702_v33 = vor.u32 %v5701_v55, %v5698_v30  ;;  %v5709_v11 = vrot.slane %v5707_v42, 4  ;;  %v6099_v24 = vrot.slane %v6097_v16, 4  ;;  %v11069_v14 = vld [vmem:[#allocation3 + $0x80] sm:$0xf0] }
 0x6a7   : > { %8426 = vmatmul.mubr.bf16.gmra.mrb[60].mxu0 %v7776_v51  ;;  %v6102_v7 = vrot.slane %v6100_v27, 5  ;;  %v6107_v3 = vrot.slane %v6105_v58, 4  ;;  %v6108_v32 = vshll.u32 %v5968_v17, 16  ;;  %v6616_v8 = vrot.slane %v11065_v5, 4  ;;  %v11070_v27 = vld [vmem:[#allocation3 + $0x70] sm:$0xf0] }
 0x6a8   : > { %v7699_v63 = vpop.permute.xlu0 %7698  ;;  %8433 = vmatprep.mubr.bf16.mxu0 %v7844_v59  ;;  %v5710_v13 = vor.u32 %v5709_v11, %v5706_v45  ;;  %v6617_v19 = vrot.slane %v11066_v50, 4  ;;  %v7073_v44 = vshrl.u32 %v6950_v25, 16  ;;  %v7076_v56 = vshll.u32 %v6950_v25, 16  ;;  %v5969_v59 = vld [vmem:[#allocation3 + $0x88] sm:$0x1f] }
 0x6a9   : > { %v14594_v38 = vpop.permute.xlu1 %7644  ;;  %v7900_v0 = vsel %vm3571_vm11, %v6615_v46, %v7699_v63  ;;  %v6103_v47 = vor.u32 %v6102_v7, %v6099_v24  ;;  %v6110_v22 = vrot.slane %v6108_v32, 5  ;;  %v7081_v54 = vshrl.u32 %v11067_v15, 16  ;;  %v6952_v25 = vld [vmem:[#allocation3 + $0x90] sm:$0xf8]  ;;  %v11071_v5 = vld [vmem:[#allocation3 + $0x78] sm:$0xf] }
 0x6aa   : > { %8579 = vmatmul.mubr.bf16.gmra.mrb[72].mxu1 %v7900_v0  ;;  %v5711_v51 = vsel %vm1295_vm10, %v5702_v33, %v5710_v13  ;;  %v6618_v39 = vsel %vm1616_vm6, %v6616_v8, %v6617_v19  ;;  %v7075_v41 = vrot.slane %v7073_v44, 3  ;;  %v7078_v1 = vrot.slane %v7076_v56, 4  ;;  %v11072_v19 = vld [vmem:[#allocation3 + $0x98] sm:$0xf]  ;;  %v5577_v56 = vld [vmem:[#allocation3 + $0x80] sm:$0xf8] }
 0x6ab   : > { %v7780_v26 = vsel %vm3571_vm11, %v5711_v51, %v14520_v18  ;;  %v6111_v43 = vor.u32 %v6110_v22, %v6107_v3  ;;  %v7083_v37 = vrot.slane %v7081_v54, 3  ;;  %v7084_v20 = vshll.u32 %v11067_v15, 16 }
 0x6ac   : > { %v7733_v36 = vpop.permute.xlu0 %7732  ;;  %v7079_v46 = vor.u32 %v7078_v1, %v7075_v41  ;;  %v5713_v60 = vshrl.u32 %v5575_v48, 16  ;;  %v5716_v31 = vshll.u32 %v5575_v48, 16  ;;  %v5721_v28 = vshrl.u32 %v11068_v40, 16 }
 0x6ad   : > { %v14601_v49 = vpop.permute.xlu1 %7678  ;;  %v7968_v62 = vsel %vm3571_vm11, %v7071_v29, %v7733_v36  ;;  %v6112_v2 = vsel %vm1681_vm7, %v6103_v47, %v6111_v43  ;;  %v7086_v6 = vrot.slane %v7084_v20, 4  ;;  %v5724_v17 = vshll.u32 %v11068_v40, 16  ;;  %v5970_v40 = vld [vmem:[#allocation3 + $0x98] sm:$0x1f] }
 0x6ae   : > { %8586 = vmatprep.mubr.bf16.mxu1 %v7968_v62  ;;  %v7848_v18 = vsel %vm3571_vm11, %v6112_v2, %v14532_v57  ;;  %v5715_v21 = vrot.slane %v5713_v60, 3  ;;  %v5718_v30 = vrot.slane %v5716_v31, 4  ;;  %v5723_v23 = vrot.slane %v5721_v28, 3 }
 0x6af   : > { %8434 = vmatmul.mubr.bf16.gmra.mrb[64].mxu0 %v7780_v26  ;;  %v7087_v53 = vor.u32 %v7086_v6, %v7083_v37  ;;  %v5726_v34 = vrot.slane %v5724_v17, 4  ;;  %v6114_v55 = vshrl.u32 %v11069_v14, 16  ;;  %v6117_v42 = vshll.u32 %v11069_v14, 16  ;;  %v11074_v17 = vld [vmem:[#allocation3 + $0x90] sm:$0xf0] }
 0x6b0   : > { %v7701_v61 = vpop.permute.xlu0 %7700  ;;  %8441 = vmatprep.mubr.bf16.mxu0 %v7848_v18  ;;  %v5719_v16 = vor.u32 %v5718_v30, %v5715_v21  ;;  %v6122_v10 = vshrl.u32 %v5969_v59, 16  ;;  %v6125_v45 = vshll.u32 %v5969_v59, 16  ;;  %v6619_v58 = vrot.slane %v11070_v27, 4 }
 0x6b1   : > { %v14607_v29 = vpop.permute.xlu1 %7646  ;;  %v7904_v57 = vsel %vm3571_vm11, %v6618_v39, %v7701_v61  ;;  %v7088_v33 = vsel %vm1295_vm10, %v7079_v46, %v7087_v53  ;;  %v5727_v11 = vor.u32 %v5726_v34, %v5723_v23  ;;  %v6116_v24 = vrot.slane %v6114_v55, 4  ;;  %v11073_v46 = vld [vmem:[#allocation3 + $0x88] sm:$0xf] }
 0x6b2   : > { %8587 = vmatmul.mubr.bf16.gmra.mrb[76].mxu1 %v7904_v57  ;;  %v6119_v7 = vrot.slane %v6117_v42, 5  ;;  %v6124_v3 = vrot.slane %v6122_v10, 4  ;;  %v6127_v32 = vrot.slane %v6125_v45, 5  ;;  %v6620_v8 = vrot.slane %v11071_v5, 4  ;;  %v11075_v45 = vld [vmem:[#allocation3 + $0x80] sm:$0xf0] }
 0x6b3   : > { %v5728_v63 = vsel %vm1295_vm10, %v5719_v16, %v5727_v11  ;;  %v7090_v13 = vshrl.u32 %v6952_v25, 16  ;;  %v7093_v50 = vshll.u32 %v6952_v25, 16  ;;  %v7098_v44 = vshrl.u32 %v11072_v19, 16 }
 0x6b4   : > { %v7735_v0 = vpop.permute.xlu0 %7734  ;;  %v7784_v47 = vsel %vm3571_vm11, %v5728_v63, %v14556_v35  ;;  %v6120_v22 = vor.u32 %v6119_v7, %v6116_v24  ;;  %v6128_v15 = vor.u32 %v6127_v32, %v6124_v3  ;;  %v6621_v54 = vsel %vm1616_vm6, %v6619_v58, %v6620_v8  ;;  %v5579_v7 = vld [vmem:[#allocation3 + $0x90] sm:$0xf8] }
 0x6b5   : > { %v14615_v48 = vpop.permute.xlu1 %7680  ;;  %v7972_v51 = vsel %vm3571_vm11, %v7088_v33, %v7735_v0  ;;  %v7092_v39 = vrot.slane %v7090_v13, 3  ;;  %v7095_v41 = vrot.slane %v7093_v50, 4  ;;  %v7100_v1 = vrot.slane %v7098_v44, 3  ;;  %v11076_v33 = vld [vmem:[#allocation3 + $0x88] sm:$0xf] }
 0x6b6   : > { %8594 = vmatprep.mubr.bf16.mxu1 %v7972_v51  ;;  %v6129_v26 = vsel %vm1681_vm7, %v6120_v22, %v6128_v15  ;;  %v7101_v43 = vshll.u32 %v11072_v19, 16  ;;  %v5730_v37 = vshrl.u32 %v5577_v56, 16  ;;  %v5733_v20 = vshll.u32 %v5577_v56, 16  ;;  %v11077_v0 = vld [vmem:[#allocation3 + $0xa8] sm:$0xf] }
 0x6b7   : > { %8442 = vmatmul.mubr.bf16.gmra.mrb[68].mxu0 %v7784_v47  ;;  %v7852_v35 = vsel %vm3571_vm11, %v6129_v26, %v14573_v4  ;;  %v7096_v36 = vor.u32 %v7095_v41, %v7092_v39  ;;  %v5738_v60 = vshrl.u32 %v11073_v46, 16  ;;  %v5741_v31 = vshll.u32 %v11073_v46, 16  ;;  %v6954_v4 = vld [vmem:[#allocation3 + $0xa0] sm:$0xf8]  ;;  %v11078_v41 = vld [vmem:[#allocation3 + $0x98] sm:$0xf] }
 0x6b8   : > { %v7703_v28 = vpop.permute.xlu0 %7702  ;;  %8449 = vmatprep.mubr.bf16.mxu0 %v7852_v35  ;;  %v7103_v62 = vrot.slane %v7101_v43, 4  ;;  %v5732_v2 = vrot.slane %v5730_v37, 3  ;;  %v5735_v6 = vrot.slane %v5733_v20, 4  ;;  %v6131_v59 = vshrl.u32 %v11074_v17, 16 }
 0x6b9   : > { %v14621_v18 = vpop.permute.xlu1 %7648  ;;  %v7908_v21 = vsel %vm3571_vm11, %v6621_v54, %v7703_v28  ;;  %v5740_v30 = vrot.slane %v5738_v60, 3  ;;  %v5743_v23 = vrot.slane %v5741_v31, 4  ;;  %v6134_v53 = vshll.u32 %v11074_v17, 16 }
 0x6ba   : > { %8595 = vmatmul.mubr.bf16.gmra.mrb[80].mxu1 %v7908_v21  ;;  %v7104_v34 = vor.u32 %v7103_v62, %v7100_v1  ;;  %v5736_v14 = vor.u32 %v5735_v6, %v5732_v2  ;;  %v6133_v55 = vrot.slane %v6131_v59, 4  ;;  %v6139_v42 = vshrl.u32 %v5970_v40, 16  ;;  %v11079_v6 = vld [vmem:[#allocation3 + $0xa0] sm:$0xf0] }
 0x6bb   : > { %v5744_v61 = vor.u32 %v5743_v23, %v5740_v30  ;;  %v6136_v16 = vrot.slane %v6134_v53, 5  ;;  %v6142_v10 = vshll.u32 %v5970_v40, 16  ;;  %v6622_v27 = vrot.slane %v11075_v45, 4 }
 0x6bc   : > { %v7737_v58 = vpop.permute.xlu0 %7736  ;;  %v7105_v25 = vsel %vm1295_vm10, %v7096_v36, %v7104_v34  ;;  %v6141_v57 = vrot.slane %v6139_v42, 4  ;;  %v6623_v11 = vrot.slane %v11076_v33, 4  ;;  %v7107_v24 = vshrl.u32 %v6954_v4, 16  ;;  %v5971_v36 = vld [vmem:[#allocation3 + $0xa8] sm:$0x1f] }
 0x6bd   : > { %v14625_v3 = vpop.permute.xlu1 %7682  ;;  %v7976_v32 = vsel %vm3571_vm11, %v7105_v25, %v7737_v58  ;;  %v5745_v5 = vsel %vm1295_vm10, %v5736_v14, %v5744_v61  ;;  %v6137_v8 = vor.u32 %v6136_v16, %v6133_v55  ;;  %v6144_v63 = vrot.slane %v6142_v10, 5  ;;  %v11080_v55 = vld [vmem:[#allocation3 + $0x90] sm:$0xf0]  ;;  %v11081_v25 = vld [vmem:[#allocation3 + $0x98] sm:$0xf] }
 0x6be   : > { %8602 = vmatprep.mubr.bf16.mxu1 %v7976_v32  ;;  %v7788_v13 = vsel %vm3571_vm11, %v5745_v5, %v14583_v52  ;;  %v6624_v50 = vsel %vm1616_vm6, %v6622_v27, %v6623_v11  ;;  %v7109_v19 = vrot.slane %v7107_v24, 3  ;;  %v7110_v44 = vshll.u32 %v6954_v4, 16  ;;  %v6956_v4 = vld [vmem:[#allocation3 + $0xb0] sm:$0xf8]  ;;  %v5581_v24 = vld [vmem:[#allocation3 + $0xa0] sm:$0xf8] }
 0x6bf   : > { %8450 = vmatmul.mubr.bf16.gmra.mrb[72].mxu0 %v7788_v13  ;;  %v6145_v56 = vor.u32 %v6144_v63, %v6141_v57  ;;  %v7115_v47 = vshrl.u32 %v11077_v0, 16  ;;  %v7118_v22 = vshll.u32 %v11077_v0, 16  ;;  %v5747_v15 = vshrl.u32 %v5579_v7, 16  ;;  %v11082_v63 = vld [vmem:[#allocation3 + $0xb8] sm:$0xf] }
 0x6c0   : > { %v7705_v54 = vpop.permute.xlu0 %7704  ;;  %v7112_v51 = vrot.slane %v7110_v44, 4  ;;  %v5750_v39 = vshll.u32 %v5579_v7, 16  ;;  %v5755_v1 = vshrl.u32 %v11078_v41, 16  ;;  %v5758_v26 = vshll.u32 %v11078_v41, 16 }
 0x6c1   : > { %v14632_v43 = vpop.permute.xlu1 %7650  ;;  %v6146_v52 = vsel %vm1681_vm7, %v6137_v8, %v6145_v56  ;;  %v7912_v37 = vsel %vm3571_vm11, %v6624_v50, %v7705_v54  ;;  %v7117_v20 = vrot.slane %v7115_v47, 3  ;;  %v7120_v35 = vrot.slane %v7118_v22, 4  ;;  %v5972_v54 = vld [vmem:[#allocation3 + $0xb8] sm:$0x1f] }
 0x6c2   : > { %v7856_v46 = vsel %vm3571_vm11, %v6146_v52, %v14590_v12  ;;  %8603 = vmatmul.mubr.bf16.gmra.mrb[84].mxu1 %v7912_v37  ;;  %v7113_v60 = vor.u32 %v7112_v51, %v7109_v19  ;;  %v5749_v31 = vrot.slane %v5747_v15, 3  ;;  %v5752_v40 = vrot.slane %v5750_v39, 4  ;;  %v11083_v52 = vld [vmem:[#allocation3 + $0xa8] sm:$0xf] }
 0x6c3   : > { %8457 = vmatprep.mubr.bf16.mxu0 %v7856_v46  ;;  %v7121_v28 = vor.u32 %v7120_v35, %v7117_v20  ;;  %v5757_v62 = vrot.slane %v5755_v1, 3  ;;  %v5760_v2 = vrot.slane %v5758_v26, 4  ;;  %v6148_v17 = vshrl.u32 %v11079_v6, 16  ;;  %v11084_v35 = vld [vmem:[#allocation3 + $0xb0] sm:$0xf0] }
 0x6c4   : > { %v7739_v59 = vpop.permute.xlu0 %7738  ;;  %v5753_v21 = vor.u32 %v5752_v40, %v5749_v31  ;;  %v6151_v30 = vshll.u32 %v11079_v6, 16  ;;  %v6156_v23 = vshrl.u32 %v5971_v36, 16  ;;  %v6159_v53 = vshll.u32 %v5971_v36, 16 }
 0x6c5   : > { %v7122_v34 = vsel %vm1295_vm10, %v7113_v60, %v7121_v28  ;;  %v5761_v14 = vor.u32 %v5760_v2, %v5757_v62  ;;  %v6150_v12 = vrot.slane %v6148_v17, 4  ;;  %v6625_v42 = vrot.slane %v11080_v55, 4  ;;  %v14640_v27 = vpop.permute.xlu1 %7684  ;;  %v6958_v17 = vld [vmem:[#allocation3 + $0xc0] sm:$0xf8] }
 0x6c6   : > { %v7980_v61 = vsel %vm3571_vm11, %v7122_v34, %v7739_v59  ;;  %v6153_v16 = vrot.slane %v6151_v30, 5  ;;  %v6158_v10 = vrot.slane %v6156_v23, 4  ;;  %v6161_v45 = vrot.slane %v6159_v53, 5 }
 0x6c7   : > { %8610 = vmatprep.mubr.bf16.mxu1 %v7980_v61  ;;  %v5762_v58 = vsel %vm1295_vm10, %v5753_v21, %v5761_v14  ;;  %v6626_v57 = vrot.slane %v11081_v25, 4  ;;  %v7124_v33 = vshrl.u32 %v6956_v4, 16  ;;  %v7127_v11 = vshll.u32 %v6956_v4, 16  ;;  %v11086_v61 = vld [vmem:[#allocation3 + $0xa8] sm:$0xf] }
 0x6c8   : > { %v7792_v7 = vsel %vm3571_vm11, %v5762_v58, %v14594_v38  ;;  %v7707_v32 = vpop.permute.xlu0 %7706  ;;  %v6154_v5 = vor.u32 %v6153_v16, %v6150_v12  ;;  %v6162_v8 = vor.u32 %v6161_v45, %v6158_v10  ;;  %v7132_v13 = vshrl.u32 %v11082_v63, 16  ;;  %v11085_v12 = vld [vmem:[#allocation3 + $0xa0] sm:$0xf0] }
 0x6c9   : > { %8458 = vmatmul.mubr.bf16.gmra.mrb[76].mxu0 %v7792_v7  ;;  %v6627_v50 = vsel %vm1616_vm6, %v6625_v42, %v6626_v57  ;;  %v7126_v19 = vrot.slane %v7124_v33, 3  ;;  %v7129_v44 = vrot.slane %v7127_v11, 4  ;;  %v7135_v56 = vshll.u32 %v11082_v63, 16  ;;  %v14650_v46 = vpop.permute.xlu1 %7652  ;;  %v11087_v57 = vld [vmem:[#allocation3 + $0xc8] sm:$0xf] }
 0x6ca   : > { %v6163_v0 = vsel %vm1681_vm7, %v6154_v5, %v6162_v8  ;;  %v7916_v47 = vsel %vm3571_vm11, %v6627_v50, %v7707_v32  ;;  %v7134_v22 = vrot.slane %v7132_v13, 3  ;;  %v5764_v15 = vshrl.u32 %v5581_v24, 16 }
 0x6cb   : > { %v7860_v38 = vsel %vm3571_vm11, %v6163_v0, %v14601_v49  ;;  %8611 = vmatmul.mubr.bf16.gmra.mrb[88].mxu1 %v7916_v47  ;;  %v7130_v51 = vor.u32 %v7129_v44, %v7126_v19  ;;  %v7137_v39 = vrot.slane %v7135_v56, 4  ;;  %v5767_v41 = vshll.u32 %v5581_v24, 16  ;;  %v5583_v24 = vld [vmem:[#allocation3 + $0xb0] sm:$0xf8]  ;;  %v5973_v0 = vld [vmem:[#allocation3 + $0xc8] sm:$0x1f] }
 0x6cc   : > { %8465 = vmatprep.mubr.bf16.mxu0 %v7860_v38  ;;  %v7741_v1 = vpop.permute.xlu0 %7740  ;;  %v5766_v26 = vrot.slane %v5764_v15, 3  ;;  %v5772_v37 = vshrl.u32 %v11083_v52, 16  ;;  %v5775_v20 = vshll.u32 %v11083_v52, 16  ;;  %v6165_v36 = vshrl.u32 %v11084_v35, 16  ;;  %v11088_v38 = vld [vmem:[#allocation3 + $0xb8] sm:$0xf] }
 0x6cd   : > { %v7138_v60 = vor.u32 %v7137_v39, %v7134_v22  ;;  %v5769_v31 = vrot.slane %v5767_v41, 4  ;;  %v6168_v40 = vshll.u32 %v11084_v35, 16  ;;  %v6173_v28 = vshrl.u32 %v5972_v54, 16  ;;  %v14655_v7 = vpop.permute.xlu1 %7686  ;;  %v11089_v41 = vld [vmem:[#allocation3 + $0xc0] sm:$0xf0] }
 0x6ce   : > { %v5774_v62 = vrot.slane %v5772_v37, 3  ;;  %v5777_v49 = vrot.slane %v5775_v20, 4  ;;  %v6167_v2 = vrot.slane %v6165_v36, 4  ;;  %v6176_v6 = vshll.u32 %v5972_v54, 16 }
 0x6cf   : > { %v7139_v59 = vsel %vm1295_vm10, %v7130_v51, %v7138_v60  ;;  %v5770_v21 = vor.u32 %v5769_v31, %v5766_v26  ;;  %v6170_v30 = vrot.slane %v6168_v40, 5  ;;  %v6175_v23 = vrot.slane %v6173_v28, 4  ;;  %v6960_v40 = vld [vmem:[#allocation3 + $0xd0] sm:$0xf8] }
 0x6d0   : > { %v7984_v53 = vsel %vm3571_vm11, %v7139_v59, %v7741_v1  ;;  %v5778_v4 = vor.u32 %v5777_v49, %v5774_v62  ;;  %v7709_v34 = vpop.permute.xlu0 %7708  ;;  %v6178_v14 = vrot.slane %v6176_v6, 5  ;;  %v6628_v55 = vrot.slane %v11085_v12, 4  ;;  %v11092_v12 = vld [vmem:[#allocation3 + $0xd8] sm:$0xf] }
 0x6d1   : > { %8618 = vmatprep.mubr.bf16.mxu1 %v7984_v53  ;;  %v6171_v42 = vor.u32 %v6170_v30, %v6167_v2  ;;  %v6629_v16 = vrot.slane %v11086_v61, 4  ;;  %v7141_v10 = vshrl.u32 %v6958_v17, 16  ;;  %v7144_v45 = vshll.u32 %v6958_v17, 16  ;;  %v14665_v28 = vpop.permute.xlu1 %7654 }
 0x6d2   : > { %v5779_v58 = vsel %vm1295_vm10, %v5770_v21, %v5778_v4  ;;  %v6179_v25 = vor.u32 %v6178_v14, %v6175_v23  ;;  %v7149_v33 = vshrl.u32 %v11087_v57, 16  ;;  %v7152_v11 = vshll.u32 %v11087_v57, 16  ;;  %v11090_v21 = vld [vmem:[#allocation3 + $0xb0] sm:$0xf0]  ;;  %v11091_v23 = vld [vmem:[#allocation3 + $0xb8] sm:$0xf] }
 0x6d3   : > { %v7796_v32 = vsel %vm3571_vm11, %v5779_v58, %v14607_v29  ;;  %v6630_v5 = vsel %vm1616_vm6, %v6628_v55, %v6629_v16  ;;  %v7143_v8 = vrot.slane %v7141_v10, 3  ;;  %v7146_v63 = vrot.slane %v7144_v45, 4 }
 0x6d4   : > { %8466 = vmatmul.mubr.bf16.gmra.mrb[80].mxu0 %v7796_v32  ;;  %v6180_v13 = vsel %vm1681_vm7, %v6171_v42, %v6179_v25  ;;  %v7920_v50 = vsel %vm3571_vm11, %v6630_v5, %v7709_v34  ;;  %v7743_v19 = vpop.permute.xlu0 %7742  ;;  %v7151_v44 = vrot.slane %v7149_v33, 3  ;;  %v7154_v56 = vrot.slane %v7152_v11, 4  ;;  %v5585_v42 = vld [vmem:[#allocation3 + $0xc0] sm:$0xf8] }
 0x6d5   : > { %v7864_v47 = vsel %vm3571_vm11, %v6180_v13, %v14615_v48  ;;  %8619 = vmatmul.mubr.bf16.gmra.mrb[92].mxu1 %v7920_v50  ;;  %v7147_v22 = vor.u32 %v7146_v63, %v7143_v8  ;;  %v5781_v15 = vshrl.u32 %v5583_v24, 16  ;;  %v5784_v29 = vshll.u32 %v5583_v24, 16  ;;  %v14673_v63 = vpop.permute.xlu1 %7688 }
 0x6d6   : > { %8473 = vmatprep.mubr.bf16.mxu0 %v7864_v47  ;;  %v7155_v54 = vor.u32 %v7154_v56, %v7151_v44  ;;  %v5789_v51 = vshrl.u32 %v11088_v38, 16  ;;  %v5792_v39 = vshll.u32 %v11088_v38, 16  ;;  %v6182_v1 = vshrl.u32 %v11089_v41, 16 }
 0x6d7   : > { %v5783_v26 = vrot.slane %v5781_v15, 3  ;;  %v5786_v52 = vrot.slane %v5784_v29, 4  ;;  %v6185_v37 = vshll.u32 %v11089_v41, 16  ;;  %v6190_v20 = vshrl.u32 %v5973_v0, 16  ;;  %v11094_v41 = vld [vmem:[#allocation3 + $0xd0] sm:$0xf0] }
 0x6d8   : > { %v7156_v35 = vsel %vm1295_vm10, %v7147_v22, %v7155_v54  ;;  %v5791_v36 = vrot.slane %v5789_v51, 3  ;;  %v5794_v60 = vrot.slane %v5792_v39, 4  ;;  %v7711_v48 = vpop.permute.xlu0 %7710  ;;  %v6184_v31 = vrot.slane %v6182_v1, 4  ;;  %v5974_v22 = vld [vmem:[#allocation3 + $0xd8] sm:$0x1f] }
 0x6d9   : > { %v7988_v62 = vsel %vm3571_vm11, %v7156_v35, %v7743_v19  ;;  %v5787_v49 = vor.u32 %v5786_v52, %v5783_v26  ;;  %v6187_v2 = vrot.slane %v6185_v37, 5  ;;  %v6192_v6 = vrot.slane %v6190_v20, 4  ;;  %v11093_v19 = vld [vmem:[#allocation3 + $0xc8] sm:$0xf] }
 0x6da   : > { %8626 = vmatprep.mubr.bf16.mxu1 %v7988_v62  ;;  %v5795_v17 = vor.u32 %v5794_v60, %v5791_v36  ;;  %v6193_v59 = vshll.u32 %v5973_v0, 16  ;;  %v6631_v30 = vrot.slane %v11090_v21, 4  ;;  %v6632_v53 = vrot.slane %v11091_v23, 4  ;;  %v14680_v36 = vld [vmem:[#allocation3 + $0x10] sm:$0xf0]  ;;  %v14683_v62 = vpop.permute.xlu1 %7656 }
 0x6db   : > { %v6188_v4 = vor.u32 %v6187_v2, %v6184_v31  ;;  %v7158_v34 = vshrl.u32 %v6960_v40, 16  ;;  %v7161_v14 = vshll.u32 %v6960_v40, 16  ;;  %v7166_v55 = vshrl.u32 %v11092_v12, 16  ;;  %v6962_v40 = vld [vmem:[#allocation3 + $0xe0] sm:$0xf8] }
 0x6dc   : > { %v5796_v61 = vsel %vm1295_vm10, %v5787_v49, %v5795_v17  ;;  %v6195_v16 = vrot.slane %v6193_v59, 5  ;;  %v6633_v10 = vsel %vm1616_vm6, %v6631_v30, %v6632_v53  ;;  %v7745_v45 = vpop.permute.xlu0 %7744  ;;  %v7169_v58 = vshll.u32 %v11092_v12, 16  ;;  %v14686_v2 = vld [vmem:[#allocation3 + $0x18] sm:$0xf]  ;;  %v11097_v59 = vld [vmem:[#allocation3 + $0xc0] sm:$0xf0] }
 0x6dd   : > { %v7800_v25 = vsel %vm3571_vm11, %v5796_v61, %v14621_v18  ;;  %v7924_v57 = vsel %vm3571_vm11, %v6633_v10, %v7711_v48  ;;  %v7160_v33 = vrot.slane %v7158_v34, 3  ;;  %v7163_v11 = vrot.slane %v7161_v14, 4  ;;  %v5587_v30 = vld [vmem:[#allocation3 + $0xd0] sm:$0xf8]  ;;  %v11098_v34 = vld [vmem:[#allocation3 + $0xc8] sm:$0xf] }
 0x6de   : > { %8474 = vmatmul.mubr.bf16.gmra.mrb[84].mxu0 %v7800_v25  ;;  %v6196_v24 = vor.u32 %v6195_v16, %v6192_v6  ;;  %8627 = vmatmul.mubr.bf16.gmra.mrb[96].mxu1 %v7924_v57  ;;  %v7168_v32 = vrot.slane %v7166_v55, 3  ;;  %v7171_v5 = vrot.slane %v7169_v58, 4  ;;  %v5798_v8 = vshrl.u32 %v5585_v42, 16  ;;  %v11099_v61 = vld [vmem:[#allocation3 + $0xe8] sm:$0xf] }
 0x6df   : > { %v7164_v13 = vor.u32 %v7163_v11, %v7160_v33  ;;  %v5801_v50 = vshll.u32 %v5585_v42, 16  ;;  %v5806_v44 = vshrl.u32 %v11093_v19, 16  ;;  %v5809_v56 = vshll.u32 %v11093_v19, 16  ;;  %v7715_v19 = vpop.permute.xlu1 %7714 }
 0x6e0   : > { %v6197_v0 = vsel %vm1681_vm7, %v6188_v4, %v6196_v24  ;;  %v7172_v18 = vor.u32 %v7171_v5, %v7168_v32  ;;  %v5800_v47 = vrot.slane %v5798_v8, 3  ;;  %v7713_v51 = vpop.permute.xlu0 %7712  ;;  %v6199_v1 = vshrl.u32 %v11094_v41, 16 }
 0x6e1   : > { %v7868_v15 = vsel %vm3571_vm11, %v6197_v0, %v14625_v3  ;;  %v5803_v29 = vrot.slane %v5801_v50, 4  ;;  %v5808_v54 = vrot.slane %v5806_v44, 3  ;;  %v5811_v38 = vrot.slane %v5809_v56, 4  ;;  %v5975_v50 = vld [vmem:[#allocation3 + $0xe8] sm:$0x1f] }
 0x6e2   : > { %8481 = vmatprep.mubr.bf16.mxu0 %v7868_v15  ;;  %v7173_v39 = vsel %vm1295_vm10, %v7164_v13, %v7172_v18  ;;  %v6202_v26 = vshll.u32 %v11094_v41, 16  ;;  %v6207_v35 = vshrl.u32 %v5974_v22, 16  ;;  %v6601_v3 = vrot.slane %v14680_v36, 4  ;;  %v11100_v0 = vld [vmem:[#allocation3 + $0xd8] sm:$0xf] }
 0x6e3   : > { %v7992_v52 = vsel %vm3571_vm11, %v7173_v39, %v7745_v45  ;;  %v5804_v37 = vor.u32 %v5803_v29, %v5800_v47  ;;  %v5812_v20 = vor.u32 %v5811_v38, %v5808_v54  ;;  %v6201_v60 = vrot.slane %v6199_v1, 4  ;;  %v11101_v29 = vld [vmem:[#allocation3 + $0xe0] sm:$0xf0] }
 0x6e4   : > { %8634 = vmatprep.mubr.bf16.mxu1 %v7992_v52  ;;  %v6204_v48 = vrot.slane %v6202_v26, 5  ;;  %v6210_v31 = vshll.u32 %v5974_v22, 16  ;;  %v6602_v6 = vrot.slane %v14686_v2, 4  ;;  %v6209_v17 = vrot.slane %v6207_v35, 4  ;;  %v7747_v12 = vpop.permute.xlu0 %7746  ;;  %v6964_v52 = vld [vmem:[#allocation3 + $0xf0] sm:$0xf8] }
 0x6e5   : > { %v5813_v49 = vsel %vm1295_vm10, %v5804_v37, %v5812_v20  ;;  %v6634_v21 = vrot.slane %v11097_v59, 4  ;;  %v6635_v14 = vrot.slane %v11098_v34, 4  ;;  %v7175_v55 = vshrl.u32 %v6962_v40, 16  ;;  %v11102_v35 = vld [vmem:[#allocation3 + $0xd0] sm:$0xf0] }
 0x6e6   : > { %v7804_v23 = vsel %vm3571_vm11, %v5813_v49, %v14632_v43  ;;  %v6205_v53 = vor.u32 %v6204_v48, %v6201_v60  ;;  %v6212_v4 = vrot.slane %v6210_v31, 5  ;;  %v7178_v42 = vshll.u32 %v6962_v40, 16  ;;  %v11103_v59 = vld [vmem:[#allocation3 + $0xd8] sm:$0xf]  ;;  %v11120_v2 = vld [vmem:[#allocation3 + $0x20] sm:$0xf0] }
 0x6e7   : > { %8482 = vmatmul.mubr.bf16.gmra.mrb[88].mxu0 %v7804_v23  ;;  %v7183_v16 = vshrl.u32 %v11099_v61, 16  ;;  %v7186_v10 = vshll.u32 %v11099_v61, 16  ;;  %v6636_v58 = vsel %vm1616_vm6, %v6634_v21, %v6635_v14  ;;  %v5815_v25 = vshrl.u32 %v5587_v30, 16  ;;  %v11104_v14 = vld [vmem:[#allocation3 + $0xf8] sm:$0xf] }
 0x6e8   : > { %v6213_v45 = vor.u32 %v6212_v4, %v6209_v17  ;;  %v5818_v57 = vshll.u32 %v5587_v30, 16  ;;  %v7928_v33 = vsel %vm3571_vm11, %v6636_v58, %v7713_v51  ;;  %v7177_v11 = vrot.slane %v7175_v55, 3  ;;  %v14696_v41 = vpop.permute.xlu0 %7722  ;;  %v5589_v61 = vld [vmem:[#allocation3 + $0xe0] sm:$0xf8] }
 0x6e9   : > { %v7180_v43 = vrot.slane %v7178_v42, 4  ;;  %v7185_v24 = vrot.slane %v7183_v16, 3  ;;  %8635 = vmatmul.mubr.bf16.gmra.mrb[100].mxu1 %v7928_v33  ;;  %v7188_v5 = vrot.slane %v7186_v10, 4  ;;  %v5817_v8 = vrot.slane %v5815_v25, 3 }
 0x6ea   : > { %v6214_v32 = vsel %vm1681_vm7, %v6205_v53, %v6213_v45  ;;  %v5820_v13 = vrot.slane %v5818_v57, 4  ;;  %v5823_v18 = vshrl.u32 %v11100_v0, 16  ;;  %v5826_v47 = vshll.u32 %v11100_v0, 16  ;;  %v14700_v53 = vpop.permute.xlu1 %7690 }
 0x6eb   : > { %v7872_v44 = vsel %vm3571_vm11, %v6214_v32, %v14640_v27  ;;  %v7181_v56 = vor.u32 %v7180_v43, %v7177_v11  ;;  %v7189_v22 = vor.u32 %v7188_v5, %v7185_v24  ;;  %v6216_v54 = vshrl.u32 %v11101_v29, 16  ;;  %v5976_v43 = vld [vmem:[#allocation3 + $0xf8] sm:$0x1f] }
 0x6ec   : > { %8489 = vmatprep.mubr.bf16.mxu0 %v7872_v44  ;;  %v5821_v15 = vor.u32 %v5820_v13, %v5817_v8  ;;  %v6219_v38 = vshll.u32 %v11101_v29, 16  ;;  %v5825_v51 = vrot.slane %v5823_v18, 3  ;;  %v5828_v39 = vrot.slane %v5826_v47, 4  ;;  %v7749_v57 = vpop.permute.xlu0 %7748  ;;  %v11105_v13 = vld [vmem:[#allocation3 + $0xe8] sm:$0xf] }
 0x6ed   : > { %v6224_v1 = vshrl.u32 %v5975_v50, 16  ;;  %v6227_v26 = vshll.u32 %v5975_v50, 16  ;;  %v7190_v37 = vsel %vm1295_vm10, %v7181_v56, %v7189_v22  ;;  %v6218_v27 = vrot.slane %v6216_v54, 4  ;;  %v11106_v56 = vld [vmem:[#allocation3 + $0xf0] sm:$0xf0] }
 0x6ee   : > { %v6221_v20 = vrot.slane %v6219_v38, 5  ;;  %v6637_v60 = vrot.slane %v11102_v35, 4  ;;  %v7996_v48 = vsel %vm3571_vm11, %v7190_v37, %v7747_v12  ;;  %v5829_v31 = vor.u32 %v5828_v39, %v5825_v51  ;;  %v6966_v51 = vld [vmem:[#allocation3 + $0x100] sm:$0xf8] }
 0x6ef   : > { %v6226_v40 = vrot.slane %v6224_v1, 4  ;;  %v6229_v49 = vrot.slane %v6227_v26, 5  ;;  %8642 = vmatprep.mubr.bf16.mxu1 %v7996_v48  ;;  %v6638_v21 = vrot.slane %v11103_v59, 4  ;;  %v7192_v30 = vshrl.u32 %v6964_v52, 16  ;;  %v11107_v35 = vld [vmem:[#allocation3 + $0xe0] sm:$0xf0] }
 0x6f0   : > { %v6222_v17 = vor.u32 %v6221_v20, %v6218_v27  ;;  %v7195_v23 = vshll.u32 %v6964_v52, 16  ;;  %v5830_v4 = vsel %vm1295_vm10, %v5821_v15, %v5829_v31  ;;  %v7200_v55 = vshrl.u32 %v11104_v14, 16  ;;  %v7717_v15 = vpop.permute.xlu1 %7716  ;;  %v14712_v27 = vpop.permute.xlu0 %7724  ;;  %v11108_v48 = vld [vmem:[#allocation3 + $0xe8] sm:$0xf] }
 0x6f1   : > { %v6230_v34 = vor.u32 %v6229_v49, %v6226_v40  ;;  %v7203_v42 = vshll.u32 %v11104_v14, 16  ;;  %v7808_v12 = vsel %vm3571_vm11, %v5830_v4, %v14650_v46  ;;  %v6639_v16 = vsel %vm1616_vm6, %v6637_v60, %v6638_v21  ;;  %v11109_v59 = vld [vmem:[#allocation3 + $0x108] sm:$0xf] }
 0x6f2   : > { %v7194_v10 = vrot.slane %v7192_v30, 3  ;;  %v7197_v45 = vrot.slane %v7195_v23, 4  ;;  %8490 = vmatmul.mubr.bf16.gmra.mrb[92].mxu0 %v7808_v12  ;;  %v7932_v25 = vsel %vm3571_vm11, %v6639_v16, %v7715_v19  ;;  %v7202_v33 = vrot.slane %v7200_v55, 3  ;;  %v5591_v30 = vld [vmem:[#allocation3 + $0xf0] sm:$0xf8] }
 0x6f3   : > { %v6231_v58 = vsel %vm1681_vm7, %v6222_v17, %v6230_v34  ;;  %v7205_v11 = vrot.slane %v7203_v42, 4  ;;  %8643 = vmatmul.mubr.bf16.gmra.mrb[104].mxu1 %v7932_v25  ;;  %v5832_v5 = vshrl.u32 %v5589_v61, 16  ;;  %v5835_v46 = vshll.u32 %v5589_v61, 16  ;;  %v6938_v16 = vld [vmem:[#allocation3 + $0x20] sm:$0xf8] }
 0x6f4   : > { %v7876_v24 = vsel %vm3571_vm11, %v6231_v58, %v14655_v7  ;;  %v7198_v32 = vor.u32 %v7197_v45, %v7194_v10  ;;  %v5840_v50 = vshrl.u32 %v11105_v13, 16  ;;  %v5843_v44 = vshll.u32 %v11105_v13, 16  ;;  %v14719_v10 = vpop.permute.xlu1 %7692 }
 0x6f5   : > { %8497 = vmatprep.mubr.bf16.mxu0 %v7876_v24  ;;  %v7206_v8 = vor.u32 %v7205_v11, %v7202_v33  ;;  %v6233_v0 = vshrl.u32 %v11106_v56, 16  ;;  %v5834_v18 = vrot.slane %v5832_v5, 3  ;;  %v5837_v19 = vrot.slane %v5835_v46, 4  ;;  %v7751_v5 = vpop.permute.xlu0 %7750 }
 0x6f6   : > { %v6236_v47 = vshll.u32 %v11106_v56, 16  ;;  %v6241_v22 = vshrl.u32 %v5976_v43, 16  ;;  %v5842_v54 = vrot.slane %v5840_v50, 3  ;;  %v5845_v7 = vrot.slane %v5843_v44, 4 }
 0x6f7   : > { %v7207_v29 = vsel %vm1295_vm10, %v7198_v32, %v7206_v8  ;;  %v6235_v38 = vrot.slane %v6233_v0, 4  ;;  %v5838_v1 = vor.u32 %v5837_v19, %v5834_v18  ;;  %v6244_v20 = vshll.u32 %v5976_v43, 16  ;;  %v11110_v43 = vld [vmem:[#allocation3 + $0xf8] sm:$0xf] }
 0x6f8   : > { %v8000_v39 = vsel %vm3571_vm11, %v7207_v29, %v7749_v57  ;;  %v6238_v26 = vrot.slane %v6236_v47, 5  ;;  %v6243_v52 = vrot.slane %v6241_v22, 4  ;;  %v5846_v37 = vor.u32 %v5845_v7, %v5842_v54  ;;  %v11111_v22 = vld [vmem:[#allocation3 + $0x28] sm:$0xf]  ;;  %v6940_v29 = vld [vmem:[#allocation3 + $0x30] sm:$0xf8] }
 0x6f9   : > { %8650 = vmatprep.mubr.bf16.mxu1 %v8000_v39  ;;  %v6640_v60 = vrot.slane %v11107_v35, 4  ;;  %v6641_v31 = vrot.slane %v11108_v48, 4  ;;  %v7209_v49 = vshrl.u32 %v6966_v51, 16  ;;  %v7212_v17 = vshll.u32 %v6966_v51, 16  ;;  %v7719_v39 = vpop.permute.xlu1 %7718 }
 0x6fa   : > { %v6239_v40 = vor.u32 %v6238_v26, %v6235_v38  ;;  %v7217_v21 = vshrl.u32 %v11109_v59, 16  ;;  %v5847_v23 = vsel %vm1295_vm10, %v5838_v1, %v5846_v37  ;;  %v6246_v4 = vrot.slane %v6244_v20, 5  ;;  %v11112_v26 = vld [vmem:[#allocation3 + $0xf0] sm:$0xf0]  ;;  %v11113_v37 = vld [vmem:[#allocation3 + $0xf8] sm:$0xf] }
 0x6fb   : > { %v6642_v34 = vsel %vm1616_vm6, %v6640_v60, %v6641_v31  ;;  %v7220_v14 = vshll.u32 %v11109_v59, 16  ;;  %v7812_v55 = vsel %vm3571_vm11, %v5847_v23, %v14665_v28  ;;  %v7211_v61 = vrot.slane %v7209_v49, 3 }
 0x6fc   : > { %v7936_v42 = vsel %vm3571_vm11, %v6642_v34, %v7717_v15  ;;  %v7214_v12 = vrot.slane %v7212_v17, 4  ;;  %8498 = vmatmul.mubr.bf16.gmra.mrb[96].mxu0 %v7812_v55  ;;  %v6247_v45 = vor.u32 %v6246_v4, %v6243_v52  ;;  %v7219_v58 = vrot.slane %v7217_v21, 3  ;;  %v11114_v21 = vld [vmem:[#allocation3 + $0x38] sm:$0xf] }
 0x6fd   : > { %8651 = vmatmul.mubr.bf16.gmra.mrb[108].mxu1 %v7936_v42  ;;  %v7222_v25 = vrot.slane %v7220_v14, 4  ;;  %v5849_v57 = vshrl.u32 %v5591_v30, 16  ;;  %v5852_v11 = vshll.u32 %v5591_v30, 16  ;;  %v5857_v24 = vshrl.u32 %v11110_v43, 16 }
 0x6fe   : > { %v7215_v33 = vor.u32 %v7214_v12, %v7211_v61  ;;  %v5860_v32 = vshll.u32 %v11110_v43, 16  ;;  %v6248_v28 = vsel %vm1681_vm7, %v6239_v40, %v6247_v45  ;;  %v6971_v13 = vshrl.u32 %v6938_v16, 16  ;;  %v6968_v40 = vld [vmem:[#allocation3 + $0x110] sm:$0xf8] }
 0x6ff   : > { %v7223_v46 = vor.u32 %v7222_v25, %v7219_v58  ;;  %v5851_v8 = vrot.slane %v5849_v57, 3  ;;  %v7880_v50 = vsel %vm3571_vm11, %v6248_v28, %v14673_v63  ;;  %v5854_v44 = vrot.slane %v5852_v11, 4  ;;  %v11116_v28 = vld [vmem:[#allocation3 + $0x100] sm:$0xf0] }
 0x700   : > { %v5859_v56 = vrot.slane %v5857_v24, 3  ;;  %v5862_v0 = vrot.slane %v5860_v32, 4  ;;  %8505 = vmatprep.mubr.bf16.mxu0 %v7880_v50  ;;  %v6973_v19 = vrot.slane %v6971_v13, 3  ;;  %v6974_v47 = vshll.u32 %v6938_v16, 16  ;;  %v7338_v13 = vld [vmem:[#allocation3 + $0x28] sm:$0x1f] }
 0x701   : > { %v7224_v18 = vsel %vm1295_vm10, %v7215_v33, %v7223_v46  ;;  %v6979_v15 = vshrl.u32 %v11111_v22, 16  ;;  %v5855_v7 = vor.u32 %v5854_v44, %v5851_v8  ;;  %v6982_v51 = vshll.u32 %v11111_v22, 16  ;;  %v11117_v46 = vld [vmem:[#allocation3 + $0x108] sm:$0xf]  ;;  %v11118_v50 = vld [vmem:[#allocation3 + $0x30] sm:$0xf0] }
 0x702   : > { %v8004_v54 = vsel %vm3571_vm11, %v7224_v18, %v7751_v5  ;;  %v5863_v38 = vor.u32 %v5862_v0, %v5859_v56  ;;  %v6976_v1 = vrot.slane %v6974_v47, 4  ;;  %v6643_v52 = vrot.slane %v11112_v26, 4  ;;  %v10951_v22 = vld [vmem:[%s16022_s15 + $0x108] sm:$0xff]  }
 0x703   : > { %8658 = vmatprep.mubr.bf16.mxu1 %v8004_v54  ;;  %v6981_v63 = vrot.slane %v6979_v15, 3  ;;  %v6644_v20 = vrot.slane %v11113_v37, 4  ;;  %v6984_v60 = vrot.slane %v6982_v51, 4  ;;  %v6988_v48 = vshrl.u32 %v6940_v29, 16  ;;  %v11119_v15 = vld [vmem:[#allocation3 + $0x20] sm:$0xf0] }
 0x704   : > { %v5864_v35 = vsel %vm1295_vm10, %v5855_v7, %v5863_v38  ;;  %v6991_v31 = vshll.u32 %v6940_v29, 16  ;;  %v6977_v17 = vor.u32 %v6976_v1, %v6973_v19  ;;  %v6996_v30 = vshrl.u32 %v11114_v21, 16  ;;  %v7753_v19 = vpop.permute.xlu0 %7752  ;;  %v7721_v38 = vpop.permute.xlu1 %7720  ;;  %v7339_v1 = vld [vmem:[#allocation3 + $0x38] sm:$0x1f] }
 0x705   : > { %v7816_v49 = vsel %vm3571_vm11, %v5864_v35, %v14683_v62  ;;  %v6645_v59 = vsel %vm1616_vm6, %v6643_v52, %v6644_v20  ;;  %v6985_v23 = vor.u32 %v6984_v60, %v6981_v63  ;;  %v6990_v34 = vrot.slane %v6988_v48, 3  ;;  %v11115_v62 = vld [vmem:[#allocation3 + $0x118] sm:$0xf]  ;;  %v7340_v60 = vld [vmem:[#allocation3 + $0x48] sm:$0x1f]  ;;  %v10952_v48 = vld [vmem:[%s16022_s15 + $0x110] sm:$0xff]  }
 0x706   : > { %8506 = vmatmul.mubr.bf16.gmra.mrb[100].mxu0 %v7816_v49  ;;  %v7940_v4 = vsel %vm3571_vm11, %v6645_v59, %v7719_v39  ;;  %v6993_v14 = vrot.slane %v6991_v31, 4  ;;  %v6998_v55 = vrot.slane %v6996_v30, 3  ;;  %v6999_v42 = vshll.u32 %v11114_v21, 16  ;;  %v11122_v31 = vld [vmem:[#allocation3 + $0x28] sm:$0xf] }
 0x707   : > { %8659 = vmatmul.mubr.bf16.gmra.mrb[112].mxu1 %v7940_v4  ;;  %v7226_v61 = vshrl.u32 %v6968_v40, 16  ;;  %v7229_v12 = vshll.u32 %v6968_v40, 16  ;;  %v6986_v16 = vsel %vm1295_vm10, %v6977_v17, %v6985_v23  ;;  %v7234_v58 = vshrl.u32 %v11115_v62, 16  ;;  %v11123_v21 = vld [vmem:[#allocation3 + $0x40] sm:$0xf0] }
 0x708   : > { %v6994_v45 = vor.u32 %v6993_v14, %v6990_v34  ;;  %v7237_v25 = vshll.u32 %v11115_v62, 16  ;;  %v7948_v57 = vsel %vm3571_vm11, %v6986_v16, %v14696_v41  ;;  %v7001_v33 = vrot.slane %v6999_v42, 4  ;;  %v10953_v16 = vld [vmem:[%s16022_s15 + $0x118] sm:$0xff]  }
 0x709   : > { %v7228_v11 = vrot.slane %v7226_v61, 3  ;;  %v7231_v43 = vrot.slane %v7229_v12, 4  ;;  %8546 = vmatprep.mubr.bf16.mxu0 %v7948_v57  ;;  %v7236_v24 = vrot.slane %v7234_v58, 3  ;;  %v6646_v5 = vrot.slane %v11116_v28, 4  ;;  %v7341_v58 = vld [vmem:[#allocation3 + $0x58] sm:$0x1f] }
 0x70a   : > { %v7239_v32 = vrot.slane %v7237_v25, 4  ;;  %v6647_v8 = vrot.slane %v11117_v46, 4  ;;  %v7372_v44 = vshrl.u32 %v11118_v50, 16  ;;  %v7375_v56 = vshll.u32 %v11118_v50, 16  ;;  %v11124_v28 = vld [vmem:[#allocation3 + $0x50] sm:$0xf0] }
 0x70b   : > { %v7002_v0 = vor.u32 %v7001_v33, %v6998_v55  ;;  %v7232_v18 = vor.u32 %v7231_v43, %v7228_v11  ;;  %v6603_v41 = vsel %vm1616_vm6, %v6601_v3, %v6602_v6  ;;  %v7355_v29 = vshrl.u32 %v11119_v15, 16 }
 0x70c   : > { %v7240_v47 = vor.u32 %v7239_v32, %v7236_v24  ;;  %v7358_v54 = vshll.u32 %v11119_v15, 16  ;;  %v7884_v7 = vsel %vm3571_vm11, %v6603_v41, %v14700_v53  ;;  %v6604_v39 = vrot.slane %v11120_v2, 4  ;;  %v11121_v53 = vld [vmem:[%s16022_s15 + $0x100] sm:$0xff]   ;;  %v7342_v32 = vld [vmem:[#allocation3 + $0x68] sm:$0x1f] }
 0x70d   : > { %v7003_v51 = vsel %vm1295_vm10, %v6994_v45, %v7002_v0  ;;  %v7363_v36 = vshrl.u32 %v7338_v13, 16  ;;  %v6648_v63 = vsel %vm1616_vm6, %v6646_v5, %v6647_v8  ;;  %v7357_v26 = vrot.slane %v7355_v29, 4 }
 0x70e   : > { %8547 = vmatmul.mubr.bf16.vlgmr.msra.gmra.mrb[104].mxu0 %v7884_v7  ;;  %v7952_v3 = vsel %vm3571_vm11, %v7003_v51, %v14712_v27  ;;  %v7241_v6 = vsel %vm1295_vm10, %v7232_v18, %v7240_v47  ;;  %v7360_v37 = vrot.slane %v7358_v54, 5  ;;  %v7366_v35 = vshll.u32 %v7338_v13, 16  ;;  %v11127_v18 = vld [vmem:[#allocation3 + $0x60] sm:$0xf0]  ;;  %v11128_v54 = vld [vmem:[%s11530_s29 + $0x10] sm:$0xff]  ;;  %v11129_v7 = vld [vmem:[%s11530_s29 + $0x18] sm:$0xff] }
 0x70f   : > { %10692 = vmatpush3.bf16.msra.mxu0 %v11121_v53  ;;  %8554 = vmatprep.mubr.bf16.mxu0 %v7952_v3  ;;  %v8008_v52 = vsel %vm3571_vm11, %v7241_v6, %v7753_v19  ;;  %v7365_v20 = vrot.slane %v7363_v36, 4  ;;  %v7944_v27 = vsel %vm3571_vm11, %v6648_v63, %v7721_v38  ;;  %v6605_v40 = vrot.slane %v11122_v31, 4  ;;  %v7343_v53 = vld [vmem:[#allocation3 + $0x78] sm:$0x1f]  ;;  %v11132_v31 = vld [vmem:[#allocation3 + $0x70] sm:$0xf0] }
 0x710   : > { %8666 = vmatprep.mubr.bf16.mxu1 %v8008_v52  ;;  %10693 = vmatprep.subr.bf16.mxu0 %v10951_v22  ;;  %v7380_v49 = vshrl.u32 %v7339_v1, 16  ;;  %v7383_v17 = vshll.u32 %v7339_v1, 16  ;;  %v7368_v59 = vrot.slane %v7366_v35, 5  ;;  %v7389_v30 = vshrl.u32 %v11123_v21, 16  ;;  %v7344_v35 = vld [vmem:[#allocation3 + $0x88] sm:$0x1f] }
 0x711   : > { %8667 = vmatmul.mubr.bf16.gmra.mrb[116].mxu1 %v7944_v27  ;;  %v7361_v23 = vor.u32 %v7360_v37, %v7357_v26  ;;  %v7392_v4 = vshll.u32 %v11123_v21, 16  ;;  %v7397_v34 = vshrl.u32 %v7340_v60, 16  ;;  %v7400_v14 = vshll.u32 %v7340_v60, 16  ;;  %v11130_v60 = vld [vmem:[%s11530_s29 + $0x20] sm:$0xff]  ;;  %v11131_v27 = vld [vmem:[%s11530_s29 + $0x28] sm:$0xff]  ;;  %v11134_v21 = vld [vmem:[%s11530_s29 + $0x38] sm:$0xff] }
 0x712   : > { %v7374_v55 = vrot.slane %v7372_v44, 4  ;;  %v7369_v42 = vor.u32 %v7368_v59, %v7365_v20  ;;  %v7377_v61 = vrot.slane %v7375_v56, 5  ;;  %v6606_v12 = vsel %vm1616_vm6, %v6604_v39, %v6605_v40  ;;  %v11125_v44 = vld [vmem:[%s11530_s29] sm:$0xff]  ;;  %v11126_v56 = vld [vmem:[%s11530_s29 + $0x8] sm:$0xff]  ;;  %v11133_v59 = vld [vmem:[%s11530_s29 + $0x30] sm:$0xff] }
 0x713   : > { %10694 = vmatpush3.bf16.msra.mxu0 %v10951_v22  ;;  %v7382_v45 = vrot.slane %v7380_v49, 4  ;;  %v7385_v62 = vrot.slane %v7383_v17, 5  ;;  %v7888_v25 = vsel %vm3571_vm11, %v6606_v12, %v14719_v10  ;;  %v7391_v57 = vrot.slane %v7389_v30, 4 }
 0x714   : > { %10695 = vmatprep.subr.bf16.mxu0 %v10952_v48  ;;  %v7370_v33 = vsel %vm1681_vm7, %v7361_v23, %v7369_v42  ;;  %v7394_v11 = vrot.slane %v7392_v4, 5  ;;  %v7399_v43 = vrot.slane %v7397_v34, 4  ;;  %v7402_v24 = vrot.slane %v7400_v14, 5  ;;  %v11135_v14 = vld [vmem:[#allocation3 + $0x80] sm:$0xf0] }
 0x715   : > { %v7406_v5 = vshrl.u32 %v11124_v28, 16  ;;  %v7409_v46 = vshll.u32 %v11124_v28, 16  ;;  %v7414_v8 = vshrl.u32 %v7341_v58, 16  ;;  %v7417_v13 = vshll.u32 %v7341_v58, 16 }
 0x716   : > { %8555 = vmatmul.mubr.bf16.gmra.mrb[108].mxu0 %v7888_v25  ;;  %v7378_v10 = vor.u32 %v7377_v61, %v7374_v55  ;;  %v7386_v50 = vor.u32 %v7385_v62, %v7382_v45  ;;  %v9508_v0 = vpack.c.bf16 %v11126_v56, %v11125_v44  ;;  %v7423_v41 = vshrl.u32 %v11127_v18, 16  ;;  %v7345_v25 = vld [vmem:[#allocation3 + $0x98] sm:$0x1f] }
 0x717   : > { %10696 = vmatpush3.bf16.msra.mxu0 %v10952_v48  ;;  %10699 = vmatprep.mubr.msk.bf16.mxu0 %vm3571_vm11, %v7370_v33  ;;  %v7426_v19 = vshll.u32 %v11127_v18, 16  ;;  %v7431_v47 = vshrl.u32 %v7342_v32, 16  ;;  %v7434_v22 = vshll.u32 %v7342_v32, 16  ;;  %v7395_v15 = vor.u32 %v7394_v11, %v7391_v57 }
 0x718   : > { %10697 = vmatprep.subr.bf16.mxu0 %v10953_v16  ;;  %v7403_v29 = vor.u32 %v7402_v24, %v7399_v43  ;;  %10735 = vmatprep.mubr.msk.bf16.mxu1 %vm823_vm4, %v9508_v0  ;;  %v9509_v38 = vpack.c.bf16 %v11129_v7, %v11128_v54  ;;  %v7408_v51 = vrot.slane %v7406_v5, 4  ;;  %v7411_v2 = vrot.slane %v7409_v46, 5  ;;  %v11136_v43 = vld [vmem:[%s11530_s29 + $0x40] sm:$0xff]  ;;  %v11137_v24 = vld [vmem:[%s11530_s29 + $0x48] sm:$0xff] }
 0x719   : > { %v7416_v39 = vrot.slane %v7414_v8, 4  ;;  %v7419_v36 = vrot.slane %v7417_v13, 5  ;;  %v7387_v1 = vsel %vm1681_vm7, %v7378_v10, %v7386_v50  ;;  %v7425_v3 = vrot.slane %v7423_v41, 4  ;;  %v11138_v8 = vld [vmem:[#allocation3 + $0x90] sm:$0xf0] }
 0x71a   : > { %10736 = vmatmul.mubr.msk.bf16.vlgmr.msra.gmra.mrb[120].mxu1 %vm823_vm4, %v9509_v38  ;;  %v7428_v6 = vrot.slane %v7426_v19, 5  ;;  %v7433_v63 = vrot.slane %v7431_v47, 4  ;;  %v7436_v26 = vrot.slane %v7434_v22, 5  ;;  %v7404_v52 = vsel %vm1681_vm7, %v7395_v15, %v7403_v29  ;;  %v7346_v10 = vld [vmem:[#allocation3 + $0xa8] sm:$0x1f]  ;;  %v11140_v19 = vld [vmem:[%s11530_s29 + $0x50] sm:$0xff] }
 0x71b   : > { %10698 = vmatpush3.bf16.msra.mxu0 %v10953_v16  ;;  %v7412_v37 = vor.u32 %v7411_v2, %v7408_v51  ;;  %v7420_v20 = vor.u32 %v7419_v36, %v7416_v39  ;;  %v9510_v48 = vpack.c.bf16 %v11131_v27, %v11130_v60  ;;  %v7440_v40 = vshrl.u32 %v11132_v31, 16  ;;  %v11139_v0 = vld [vmem:[#allocation3 + $0xa0] sm:$0xf0]  ;;  %v11141_v47 = vld [vmem:[%s11530_s29 + $0x58] sm:$0xff] }
 0x71c   : > { %v7443_v49 = vshll.u32 %v11132_v31, 16  ;;  %v7448_v17 = vshrl.u32 %v7343_v53, 16  ;;  %v9511_v30 = vpack.c.bf16 %v11134_v21, %v11133_v59  ;;  %v7429_v23 = vor.u32 %v7428_v6, %v7425_v3  ;;  %v11142_v3 = vld [vmem:[%s11530_s29 + $0x60] sm:$0xff]  ;;  %v11143_v6 = vld [vmem:[%s11530_s29 + $0x68] sm:$0xff]  ;;  %v7347_v60 = vld [vmem:[#allocation3 + $0xb8] sm:$0x1f] }
 0x71d   : > { %v7437_v4 = vor.u32 %v7436_v26, %v7433_v63  ;;  %v7451_v34 = vshll.u32 %v7343_v53, 16  ;;  %v7457_v55 = vshrl.u32 %v11135_v14, 16  ;;  %10739 = vmatprep.mubr.msk.bf16.mxu1 %vm823_vm4, %v9510_v48  ;;  %v7460_v42 = vshll.u32 %v11135_v14, 16  ;;  %v7348_v31 = vld [vmem:[#allocation3 + $0xc8] sm:$0x1f]  ;;  %v11145_v21 = vld [vmem:[%s11530_s29 + $0x70] sm:$0xff] }
 0x71e   : > { %10700 = vmatmul.mubr.msk.bf16.vlgmr.msra.gmra.mrb[112].mxu0 %vm3571_vm11, %v7387_v1  ;;  %v7465_v61 = vshrl.u32 %v7344_v35, 16  ;;  %v7468_v12 = vshll.u32 %v7344_v35, 16  ;;  %v7421_v16 = vsel %vm1681_vm7, %v7412_v37, %v7420_v20  ;;  %v7442_v45 = vrot.slane %v7440_v40, 4 }
 0x71f   : > { %10703 = vmatprep.mubr.msk.bf16.mxu0 %vm3571_vm11, %v7404_v52  ;;  %v7445_v62 = vrot.slane %v7443_v49, 5  ;;  %v7450_v58 = vrot.slane %v7448_v17, 4  ;;  %v7438_v57 = vsel %vm1681_vm7, %v7429_v23, %v7437_v4  ;;  %v7453_v33 = vrot.slane %v7451_v34, 5  ;;  %v11144_v49 = vld [vmem:[#allocation3 + $0xb0] sm:$0xf0] }
 0x720   : > { %v7459_v11 = vrot.slane %v7457_v55, 4  ;;  %v9512_v32 = vpack.c.bf16 %v11137_v24, %v11136_v43  ;;  %v7462_v28 = vrot.slane %v7460_v42, 5  ;;  %v7467_v5 = vrot.slane %v7465_v61, 4  ;;  %v11147_v55 = vld [vmem:[%s11530_s29 + $0x80] sm:$0xff]  ;;  %v11148_v42 = vld [vmem:[%s11530_s29 + $0x88] sm:$0xff] }
 0x721   : > { %v7470_v46 = vrot.slane %v7468_v12, 5  ;;  %v7474_v13 = vshrl.u32 %v11138_v8, 16  ;;  %v7477_v50 = vshll.u32 %v11138_v8, 16  ;;  %v7482_v44 = vshrl.u32 %v7345_v25, 16  ;;  %v11149_v12 = vld [vmem:[#allocation3 + $0xc0] sm:$0xf0] }
 0x722   : > { %10740 = vmatmul.mubr.msk.bf16.gmra.mrb[124].mxu1 %vm823_vm4, %v9511_v30  ;;  %v7485_v56 = vshll.u32 %v7345_v25, 16  ;;  %v7491_v18 = vshrl.u32 %v11139_v0, 16  ;;  %v7494_v41 = vshll.u32 %v11139_v0, 16  ;;  %v9513_v22 = vpack.c.bf16 %v11141_v47, %v11140_v19  ;;  %v11146_v30 = vld [vmem:[%s11530_s29 + $0x78] sm:$0xff] }
 0x723   : > { %10743 = vmatprep.mubr.msk.bf16.mxu1 %vm823_vm4, %v9512_v32  ;;  %v7446_v15 = vor.u32 %v7445_v62, %v7442_v45  ;;  %v7454_v29 = vor.u32 %v7453_v33, %v7450_v58  ;;  %v7499_v54 = vshrl.u32 %v7346_v10, 16  ;;  %v7502_v7 = vshll.u32 %v7346_v10, 16  ;;  %v7349_v33 = vld [vmem:[#allocation3 + $0xd8] sm:$0x1f]  ;;  %v11150_v10 = vld [vmem:[#allocation3 + $0xd0] sm:$0xf0] }
 0x724   : > { %v7463_v38 = vor.u32 %v7462_v28, %v7459_v11  ;;  %v7471_v51 = vor.u32 %v7470_v46, %v7467_v5  ;;  %v7476_v2 = vrot.slane %v7474_v13, 4  ;;  %v7479_v39 = vrot.slane %v7477_v50, 5  ;;  %v7350_v13 = vld [vmem:[#allocation3 + $0xe8] sm:$0x1f] }
 0x725   : > { %v7484_v36 = vrot.slane %v7482_v44, 4  ;;  %v7487_v1 = vrot.slane %v7485_v56, 5  ;;  %v9514_v63 = vpack.c.bf16 %v11143_v6, %v11142_v3  ;;  %v7493_v26 = vrot.slane %v7491_v18, 4 }
 0x726   : > { %10704 = vmatmul.mubr.msk.bf16.gmra.mrb[116].mxu0 %vm3571_vm11, %v7421_v16  ;;  %v7496_v53 = vrot.slane %v7494_v41, 5  ;;  %v7455_v52 = vsel %vm1681_vm7, %v7446_v15, %v7454_v29  ;;  %v7501_v37 = vrot.slane %v7499_v54, 4  ;;  %v7504_v20 = vrot.slane %v7502_v7, 5  ;;  %v11151_v41 = vld [vmem:[#allocation3 + $0xe0] sm:$0xf0]  ;;  %v11153_v15 = vld [vmem:[%s11530_s29 + $0x98] sm:$0xff] }
 0x727   : > { %10707 = vmatprep.mubr.msk.bf16.mxu0 %vm3571_vm11, %v7438_v57  ;;  %v7472_v35 = vsel %vm1681_vm7, %v7463_v38, %v7471_v51  ;;  %v7480_v27 = vor.u32 %v7479_v39, %v7476_v2  ;;  %v7488_v48 = vor.u32 %v7487_v1, %v7484_v36  ;;  %v7508_v17 = vshrl.u32 %v11144_v49, 16  ;;  %v11154_v51 = vld [vmem:[%s11530_s29 + $0xa0] sm:$0xff]  ;;  %v11155_v2 = vld [vmem:[%s11530_s29 + $0xa8] sm:$0xff] }
 0x728   : > { %v7497_v40 = vor.u32 %v7496_v53, %v7493_v26  ;;  %v7511_v59 = vshll.u32 %v11144_v49, 16  ;;  %v9515_v23 = vpack.c.bf16 %v11146_v30, %v11145_v21  ;;  %v7505_v4 = vor.u32 %v7504_v20, %v7501_v37  ;;  %v11157_v30 = vld [vmem:[%s11530_s29 + $0xb0] sm:$0xff] }
 0x729   : > { %v7516_v34 = vshrl.u32 %v7347_v60, 16  ;;  %v7519_v14 = vshll.u32 %v7347_v60, 16  ;;  %v9516_v61 = vpack.c.bf16 %v11148_v42, %v11147_v55  ;;  %v7525_v16 = vshrl.u32 %v11149_v12, 16  ;;  %v11159_v42 = vld [vmem:[%s11530_s29 + $0xc0] sm:$0xff] }
 0x72a   : > { %10744 = vmatmul.mubr.msk.bf16.gmra.mrb[128].mxu1 %vm823_vm4, %v9513_v22  ;;  %v7528_v45 = vshll.u32 %v11149_v12, 16  ;;  %v7533_v62 = vshrl.u32 %v7348_v31, 16  ;;  %v7536_v58 = vshll.u32 %v7348_v31, 16  ;;  %v7510_v25 = vrot.slane %v7508_v17, 4  ;;  %v11152_v22 = vld [vmem:[%s11530_s29 + $0x90] sm:$0xff] }
 0x72b   : > { %10747 = vmatprep.mubr.msk.bf16.mxu1 %vm823_vm4, %v9514_v63  ;;  %v7513_v57 = vrot.slane %v7511_v59, 5  ;;  %v7489_v11 = vsel %vm1681_vm7, %v7480_v27, %v7488_v48  ;;  %v7506_v43 = vsel %vm1681_vm7, %v7497_v40, %v7505_v4  ;;  %v7518_v24 = vrot.slane %v7516_v34, 4  ;;  %v7351_v27 = vld [vmem:[#allocation3 + $0xf8] sm:$0x1f]  ;;  %v7352_v40 = vld [vmem:[#allocation3 + $0x108] sm:$0x1f] }
 0x72c   : > { %v7521_v32 = vrot.slane %v7519_v14, 5  ;;  %v7527_v28 = vrot.slane %v7525_v16, 4  ;;  %v7530_v5 = vrot.slane %v7528_v45, 5  ;;  %v7535_v46 = vrot.slane %v7533_v62, 4  ;;  %v11156_v17 = vld [vmem:[#allocation3 + $0xf0] sm:$0xf0] }
 0x72d   : > { %v7538_v8 = vrot.slane %v7536_v58, 5  ;;  %v7542_v50 = vshrl.u32 %v11150_v10, 16  ;;  %v7545_v44 = vshll.u32 %v11150_v10, 16  ;;  %v7550_v56 = vshrl.u32 %v7349_v33, 16  ;;  %v11161_v16 = vld [vmem:[#allocation3 + $0x100] sm:$0xf0] }
 0x72e   : > { %10708 = vmatmul.mubr.msk.bf16.gmra.mrb[120].mxu0 %vm3571_vm11, %v7455_v52  ;;  %v7553_v0 = vshll.u32 %v7349_v33, 16  ;;  %v7514_v18 = vor.u32 %v7513_v57, %v7510_v25  ;;  %v7559_v19 = vshrl.u32 %v11151_v41, 16  ;;  %v7562_v47 = vshll.u32 %v11151_v41, 16  ;;  %v11162_v10 = vld [vmem:[#allocation3 + $0x110] sm:$0xf0]  ;;  %v11164_v41 = vld [vmem:[%s11530_s29 + $0xd8] sm:$0xff] }
 0x72f   : > { %10711 = vmatprep.mubr.msk.bf16.mxu0 %vm3571_vm11, %v7472_v35  ;;  %v9517_v29 = vpack.c.bf16 %v11153_v15, %v11152_v22  ;;  %v7522_v54 = vor.u32 %v7521_v32, %v7518_v24  ;;  %v7567_v7 = vshrl.u32 %v7350_v13, 16  ;;  %v7570_v38 = vshll.u32 %v7350_v13, 16  ;;  %v11165_v15 = vld [vmem:[%s11530_s29 + $0xe0] sm:$0xff] }
 0x730   : > { %v9518_v39 = vpack.c.bf16 %v11155_v2, %v11154_v51  ;;  %v7531_v36 = vor.u32 %v7530_v5, %v7527_v28  ;;  %v7539_v1 = vor.u32 %v7538_v8, %v7535_v46  ;;  %v7544_v3 = vrot.slane %v7542_v50, 4 }
 0x731   : > { %v7547_v6 = vrot.slane %v7545_v44, 5  ;;  %v7552_v63 = vrot.slane %v7550_v56, 4  ;;  %v7555_v26 = vrot.slane %v7553_v0, 5  ;;  %v7561_v53 = vrot.slane %v7559_v19, 4 }
 0x732   : > { %10748 = vmatmul.mubr.msk.bf16.gmra.mrb[132].mxu1 %vm823_vm4, %v9515_v23  ;;  %v7564_v52 = vrot.slane %v7562_v47, 5  ;;  %v7523_v37 = vsel %vm1681_vm7, %v7514_v18, %v7522_v54  ;;  %v7569_v20 = vrot.slane %v7567_v7, 4  ;;  %v7572_v35 = vrot.slane %v7570_v38, 5  ;;  %v11158_v23 = vld [vmem:[%s11530_s29 + $0xb8] sm:$0xff]  ;;  %v11163_v18 = vld [vmem:[%s11530_s29 + $0xd0] sm:$0xff] }
 0x733   : > { %10751 = vmatprep.mubr.msk.bf16.mxu1 %vm823_vm4, %v9516_v61  ;;  %v7540_v60 = vsel %vm1681_vm7, %v7531_v36, %v7539_v1  ;;  %v7548_v48 = vor.u32 %v7547_v6, %v7544_v3  ;;  %v7556_v31 = vor.u32 %v7555_v26, %v7552_v63  ;;  %v7576_v59 = vshrl.u32 %v11156_v17, 16  ;;  %v11160_v61 = vld [vmem:[%s11530_s29 + $0xc8] sm:$0xff]  ;;  %v11167_v26 = vld [vmem:[%s11530_s29 + $0xf0] sm:$0xff] }
 0x734   : > { %v7565_v49 = vor.u32 %v7564_v52, %v7561_v53  ;;  %v7579_v21 = vshll.u32 %v11156_v17, 16  ;;  %v9519_v4 = vpack.c.bf16 %v11158_v23, %v11157_v30  ;;  %v7573_v34 = vor.u32 %v7572_v35, %v7569_v20  ;;  %v11168_v53 = vld [vmem:[%s11530_s29 + $0xf8] sm:$0xff] }
 0x735   : > { %v7584_v14 = vshrl.u32 %v7351_v27, 16  ;;  %v7587_v55 = vshll.u32 %v7351_v27, 16  ;;  %v9520_v12 = vpack.c.bf16 %v11160_v61, %v11159_v42  ;;  %v7593_v45 = vshrl.u32 %v11161_v16, 16 }
 0x736   : > { %10712 = vmatmul.mubr.msk.bf16.gmra.mrb[124].mxu0 %vm3571_vm11, %v7489_v11  ;;  %v7596_v62 = vshll.u32 %v11161_v16, 16  ;;  %v7601_v58 = vshrl.u32 %v7352_v40, 16  ;;  %v7604_v25 = vshll.u32 %v7352_v40, 16  ;;  %v7557_v57 = vsel %vm1681_vm7, %v7548_v48, %v7556_v31  ;;  %v7353_v11 = vld [vmem:[#allocation3 + $0x118] sm:$0x1f] }
 0x737   : > { %10715 = vmatprep.mubr.msk.bf16.mxu0 %vm3571_vm11, %v7506_v43  ;;  %v7578_v33 = vrot.slane %v7576_v59, 4  ;;  %v7574_v43 = vsel %vm1681_vm7, %v7565_v49, %v7573_v34  ;;  %v7581_v24 = vrot.slane %v7579_v21, 5  ;;  %v7586_v32 = vrot.slane %v7584_v14, 4 }
 0x738   : > { %v7589_v28 = vrot.slane %v7587_v55, 5  ;;  %v7595_v5 = vrot.slane %v7593_v45, 4  ;;  %v7598_v46 = vrot.slane %v7596_v62, 5  ;;  %v7603_v8 = vrot.slane %v7601_v58, 4 }
 0x739   : > { %v7606_v13 = vrot.slane %v7604_v25, 5  ;;  %v7610_v50 = vshrl.u32 %v11162_v10, 16  ;;  %v7613_v44 = vshll.u32 %v11162_v10, 16  ;;  %v7618_v56 = vshrl.u32 %v7353_v11, 16 }
 0x73a   : > { %10752 = vmatmul.mubr.msk.bf16.gmra.mrb[136].mxu1 %vm823_vm4, %v9517_v29  ;;  %v7621_v0 = vshll.u32 %v7353_v11, 16  ;;  %v9521_v19 = vpack.c.bf16 %v11164_v41, %v11163_v18  ;;  %v7582_v47 = vor.u32 %v7581_v24, %v7578_v33  ;;  %v7590_v22 = vor.u32 %v7589_v28, %v7586_v32  ;;  %v11166_v29 = vld [vmem:[%s11530_s29 + $0xe8] sm:$0xff] }
 0x73b   : > { %10755 = vmatprep.mubr.msk.bf16.mxu1 %vm823_vm4, %v9518_v39  ;;  %v9522_v54 = vpack.c.bf16 %v11166_v29, %v11165_v15  ;;  %v7599_v7 = vor.u32 %v7598_v46, %v7595_v5  ;;  %v7607_v38 = vor.u32 %v7606_v13, %v7603_v8  ;;  %v7612_v51 = vrot.slane %v7610_v50, 4 }
 0x73c   : > { %v7615_v2 = vrot.slane %v7613_v44, 5  ;;  %v7620_v39 = vrot.slane %v7618_v56, 4  ;;  %v7623_v36 = vrot.slane %v7621_v0, 5  ;;  %v7591_v1 = vsel %vm1681_vm7, %v7582_v47, %v7590_v22 }
 0x73d   : > { %v7608_v3 = vsel %vm1681_vm7, %v7599_v7, %v7607_v38  ;;  %v9523_v52 = vpack.c.bf16 %v11168_v53, %v11167_v26 }
 0x73e   : > { %10716 = vmatmul.mubr.msk.bf16.gmra.mrb[128].mxu0 %vm3571_vm11, %v7523_v37  ;;  %v7616_v6 = vor.u32 %v7615_v2, %v7612_v51  ;;  %v7624_v63 = vor.u32 %v7623_v36, %v7620_v39 }
 0x73f   : > { %10719 = vmatprep.mubr.msk.bf16.mxu0 %vm3571_vm11, %v7540_v60 }
 0x740   : > { %v7625_v20 = vsel %vm1681_vm7, %v7616_v6, %v7624_v63 }
 0x742   : > { %10756 = vmatmul.mubr.msk.bf16.gmra.mrb[140].mxu1 %vm823_vm4, %v9519_v4 }
 0x743   : > { %10759 = vmatprep.mubr.msk.bf16.mxu1 %vm823_vm4, %v9520_v12 }
 0x746   : > { %10720 = vmatmul.mubr.msk.bf16.gmra.mrb[132].mxu0 %vm3571_vm11, %v7557_v57 }
 0x747   : > { %10723 = vmatprep.mubr.msk.bf16.mxu0 %vm3571_vm11, %v7574_v43 }
 0x74a   : > { %10760 = vmatmul.mubr.msk.bf16.gmra.mrb[144].mxu1 %vm823_vm4, %v9521_v19 }
 0x74b   : > { %10763 = vmatprep.mubr.msk.bf16.mxu1 %vm823_vm4, %v9522_v54 }
 0x74e   : > { %10724 = vmatmul.mubr.msk.bf16.gmra.mrb[136].mxu0 %vm3571_vm11, %v7591_v1 }
 0x74f   : > { %10727 = vmatprep.mubr.msk.bf16.mxu0 %vm3571_vm11, %v7608_v3  ;;  %v14864_v3 = vld [vmem:[%s16039_s11] ss:$0 sm:$0xff]  ;;  %s16087_s11 = sld [smem:[#allocation80_spill]] }
 0x752   : > { %v10367_v37 = vpop.f32.mrb[40].mxu0  ;;  %10764 = vmatmul.mubr.msk.bf16.gmra.mrb[148].mxu1 %vm823_vm4, %v9523_v52 }
 0x753   : > { %v10368_v35 = vpop.f32.mrb[41].mxu0 }
 0x754   : > { %v14841_v60 = vadd.f32 %v10368_v35, %v10367_v37  ;;  %v10370_v27 = vpop.f32.mrb[42].mxu0 }
 0x755   : > { %v10371_v48 = vpop.f32.mrb[43].mxu0  ;;  %s15733_s12 = scalar_lea.hbm %s16087_s11, %s10199_s1 }
 0x756   : > { %10728 = vmatmul.mubr.msk.bf16.gmra.mrb[140].mxu0 %vm3571_vm11, %v7625_v20  ;;  %v14845_v31 = vadd.f32 %v10371_v48, %v10370_v27 }
 0x75a   : > { %v10373_v40 = vpop.f32.mrb[44].mxu0 }
 0x75b   : > { %v10374_v49 = vpop.f32.mrb[45].mxu0 }
 0x75c   : > { %v14847_v17 = vadd.f32 %v10374_v49, %v10373_v40  ;;  %v10376_v59 = vpop.f32.mrb[46].mxu0 }
 0x75d   : > { %v10377_v21 = vpop.f32.mrb[47].mxu0 }
 0x75e   : > { %v14849_v30 = vadd.f32 %v10377_v21, %v10376_v59 }
 0x762   : > { %v10379_v23 = vpop.f32.mrb[48].mxu0 }
 0x763   : > { %v10380_v4 = vpop.f32.mrb[49].mxu0 }
 0x764   : > { %v10381_v34 = vadd.f32 %v10380_v4, %v10379_v23  ;;  %v10382_v14 = vpop.f32.mrb[50].mxu0 }
 0x765   : > { %v10383_v55 = vpop.f32.mrb[51].mxu0 }
 0x766   : > { %v14851_v42 = vadd.f32 %v10383_v55, %v10382_v14  ;;  %v8404_v23 = vadd.f32 %v10381_v34, %v14864_v3 }
 0x76a   : > { %v10385_v61 = vpop.f32.mrb[52].mxu0 }
 0x76b   : > { %v10386_v12 = vpop.f32.mrb[53].mxu0 }
 0x76c   : > { %v10387_v16 = vadd.f32 %v10386_v12, %v10385_v61  ;;  %v10388_v45 = vpop.f32.mrb[54].mxu0 }
 0x76d   : > { %v10389_v62 = vpop.f32.mrb[55].mxu0  ;;  %v10491_v58 = vpop.f32.mrb[64].mxu1 }
 0x76e   : > { %v10390_v25 = vadd.f32 %v10389_v62, %v10388_v45  ;;  %v10492_v57 = vpop.f32.mrb[65].mxu1  ;;  %v8412_v26 = vadd.f32 %v10387_v16, %v14864_v3 }
 0x76f   : > { %v10493_v33 = vadd.f32 %v10492_v57, %v10491_v58  ;;  %v10494_v11 = vpop.f32.mrb[66].mxu1 }
 0x770   : > { %v10495_v43 = vpop.f32.mrb[67].mxu1  ;;  %v8415_v62 = vadd.f32 %v10390_v25, %v14864_v3 }
 0x771   : > { %v10496_v24 = vadd.f32 %v10495_v43, %v10494_v11  ;;  %v14874_v45 = vadd.f32 %v10493_v33, %v8404_v23  ;;  %v8407_v43 = vadd.f32 %v14851_v42, %v14864_v3 }
 0x772   : > { %v10391_v32 = vpop.f32.mrb[56].mxu0 }
 0x773   : > { %v10392_v28 = vpop.f32.mrb[57].mxu0 }
 0x774   : > { %v14853_v5 = vadd.f32 %v10392_v28, %v10391_v32  ;;  %v10394_v46 = vpop.f32.mrb[58].mxu0 }
 0x775   : > { %v10395_v8 = vpop.f32.mrb[59].mxu0  ;;  %v10497_v13 = vpop.f32.mrb[68].mxu1 }
 0x776   : > { %v14855_v10 = vadd.f32 %v10395_v8, %v10394_v46  ;;  %v10498_v50 = vpop.f32.mrb[69].mxu1  ;;  %v14883_v8 = vadd.f32 %v10496_v24, %v8407_v43 }
 0x777   : > { %v10499_v44 = vadd.f32 %v10498_v50, %v10497_v13  ;;  %v10500_v56 = vpop.f32.mrb[70].mxu1 }
 0x778   : > { %v10501_v0 = vpop.f32.mrb[71].mxu1 }
 0x779   : > { %v10502_v18 = vadd.f32 %v10501_v0, %v10500_v56  ;;  %v14871_v48 = vadd.f32 %v10499_v44, %v8412_v26 }
 0x77a   : > { %v10397_v41 = vpop.f32.mrb[60].mxu0 }
 0x77b   : > { %v10398_v19 = vpop.f32.mrb[61].mxu0  ;;  %v14881_v28 = vadd.f32 %v10502_v18, %v8415_v62 }
 0x77c   : > { %v10399_v47 = vadd.f32 %v10398_v19, %v10397_v41  ;;  %v10400_v22 = vpop.f32.mrb[62].mxu0 }
 0x77d   : > { %v10401_v15 = vpop.f32.mrb[63].mxu0  ;;  %v10503_v29 = vpop.f32.mrb[72].mxu1 }
 0x77e   : > { %v10402_v54 = vadd.f32 %v10401_v15, %v10400_v22  ;;  %v10504_v7 = vpop.f32.mrb[73].mxu1  ;;  %v8428_v50 = vadd.f32 %v10399_v47, %v14864_v3 }
 0x77f   : > { %v14857_v38 = vadd.f32 %v10504_v7, %v10503_v29  ;;  %v10506_v51 = vpop.f32.mrb[74].mxu1 }
 0x780   : > { %v10507_v2 = vpop.f32.mrb[75].mxu1 }
 0x781   : > { %v14859_v39 = vadd.f32 %v10507_v2, %v10506_v51  ;;  %v8420_v2 = vadd.f32 %v14853_v5, %v14864_v3 }
 0x782   : > { %v10403_v36 = vpop.f32.mrb[64].mxu0 }
 0x783   : > { %v10404_v1 = vpop.f32.mrb[65].mxu0 }
 0x784   : > { %v14866_v6 = vadd.f32 %v10404_v1, %v10403_v36  ;;  %v10406_v63 = vpop.f32.mrb[66].mxu0  ;;  %v8431_v1 = vadd.f32 %v10402_v54, %v14864_v3 }
 0x785   : > { %v10407_v53 = vpop.f32.mrb[67].mxu0  ;;  %v10509_v52 = vpop.f32.mrb[76].mxu1 }
 0x786   : > { %v14869_v37 = vadd.f32 %v10407_v53, %v10406_v63  ;;  %v10510_v20 = vpop.f32.mrb[77].mxu1 }
 0x787   : > { %v10511_v35 = vadd.f32 %v10510_v20, %v10509_v52  ;;  %v10512_v27 = vpop.f32.mrb[78].mxu1  ;;  %v8423_v52 = vadd.f32 %v14855_v10, %v14864_v3 }
 0x788   : > { %v10513_v40 = vpop.f32.mrb[79].mxu1 }
 0x789   : > { %v10514_v49 = vadd.f32 %v10513_v40, %v10512_v27  ;;  %v14890_v19 = vadd.f32 %v10511_v35, %v8428_v50  ;;  %v14898_v35 = vadd.f32 %v14857_v38, %v8420_v2 }
 0x78a   : > { %v10409_v59 = vpop.f32.mrb[68].mxu0 }
 0x78b   : > { %v10410_v21 = vpop.f32.mrb[69].mxu0  ;;  %v14900_v40 = vadd.f32 %v10514_v49, %v8431_v1 }
 0x78c   : > { %v10411_v4 = vadd.f32 %v10410_v21, %v10409_v59  ;;  %v10412_v14 = vpop.f32.mrb[70].mxu0  ;;  %v14903_v59 = vadd.f32 %v14859_v39, %v8423_v52  ;;  %v8436_v39 = vadd.f32 %v14866_v6, %v14864_v3 }
 0x78d   : > { %v10413_v55 = vpop.f32.mrb[71].mxu0  ;;  %v10515_v61 = vpop.f32.mrb[80].mxu1 }
 0x78e   : > { %v10414_v12 = vadd.f32 %v10413_v55, %v10412_v14  ;;  %v10516_v16 = vpop.f32.mrb[81].mxu1  ;;  %v8444_v5 = vadd.f32 %v10411_v4, %v14864_v3 }
 0x78f   : > { %v10517_v58 = vadd.f32 %v10516_v16, %v10515_v61  ;;  %v10518_v57 = vpop.f32.mrb[82].mxu1 }
 0x790   : > { %v10519_v11 = vpop.f32.mrb[83].mxu1 }
 0x791   : > { %v14879_v32 = vadd.f32 %v10519_v11, %v10518_v57  ;;  %v14915_v50 = vadd.f32 %v10517_v58, %v8436_v39 }
 0x792   : > { %v10415_v34 = vpop.f32.mrb[72].mxu0 }
 0x793   : > { %v10416_v46 = vpop.f32.mrb[73].mxu0 }
 0x794   : > { %v14885_v13 = vadd.f32 %v10416_v46, %v10415_v34  ;;  %v10418_v33 = vpop.f32.mrb[74].mxu0  ;;  %v8447_v34 = vadd.f32 %v10414_v12, %v14864_v3 }
 0x795   : > { %v10419_v25 = vpop.f32.mrb[75].mxu0  ;;  %v10521_v44 = vpop.f32.mrb[84].mxu1 }
 0x796   : > { %v14888_v56 = vadd.f32 %v10419_v25, %v10418_v33  ;;  %v10522_v0 = vpop.f32.mrb[85].mxu1  ;;  %v8439_v25 = vadd.f32 %v14869_v37, %v14864_v3 }
 0x797   : > { %v10523_v41 = vadd.f32 %v10522_v0, %v10521_v44  ;;  %v10524_v42 = vpop.f32.mrb[86].mxu1 }
 0x798   : > { %v10525_v18 = vpop.f32.mrb[87].mxu1 }
 0x799   : > { %v10526_v22 = vadd.f32 %v10525_v18, %v10524_v42  ;;  %v14906_v21 = vadd.f32 %v10523_v41, %v8444_v5 }
 0x79c   : > { %v10421_v15 = vpop.f32.mrb[76].mxu0 }
 0x79d   : > { %v10422_v29 = vpop.f32.mrb[77].mxu0 }
 0x79e   : > { %v10423_v24 = vadd.f32 %v10422_v29, %v10421_v15  ;;  %v10424_v7 = vpop.f32.mrb[78].mxu0  ;;  %v10527_v51 = vpop.f32.mrb[88].mxu1  ;;  %v14919_v29 = vadd.f32 %v10526_v22, %v8447_v34 }
 0x79f   : > { %v10425_v47 = vpop.f32.mrb[79].mxu0  ;;  %v10528_v36 = vpop.f32.mrb[89].mxu1 }
 0x7a0   : > { %v10426_v63 = vadd.f32 %v10425_v47, %v10424_v7  ;;  %v10529_v26 = vadd.f32 %v10528_v36, %v10527_v51  ;;  %v10530_v53 = vpop.f32.mrb[90].mxu1  ;;  %v14922_v51 = vadd.f32 %v14879_v32, %v8439_v25  ;;  %v8460_v12 = vadd.f32 %v10423_v24, %v14864_v3 }
 0x7a1   : > { %v10531_v20 = vpop.f32.mrb[91].mxu1  ;;  %v8452_v32 = vadd.f32 %v14885_v13, %v14864_v3 }
 0x7a2   : > { %v10532_v27 = vadd.f32 %v10531_v20, %v10530_v53  ;;  %v8463_v24 = vadd.f32 %v10426_v63, %v14864_v3 }
 0x7a7   : > { %v10427_v54 = vpop.f32.mrb[80].mxu0 }
 0x7a8   : > { %v10428_v23 = vpop.f32.mrb[81].mxu0  ;;  %v10533_v14 = vpop.f32.mrb[92].mxu1 }
 0x7a9   : > { %v14908_v55 = vadd.f32 %v10428_v23, %v10427_v54  ;;  %v10430_v10 = vpop.f32.mrb[82].mxu0  ;;  %v10534_v61 = vpop.f32.mrb[93].mxu1 }
 0x7aa   : > { %v10431_v16 = vpop.f32.mrb[83].mxu0  ;;  %v10535_v38 = vadd.f32 %v10534_v61, %v10533_v14  ;;  %v10536_v62 = vpop.f32.mrb[94].mxu1  ;;  %v14934_v14 = vadd.f32 %v10529_v26, %v8452_v32 }
 0x7ab   : > { %v14910_v57 = vadd.f32 %v10431_v16, %v10430_v10  ;;  %v10537_v49 = vpop.f32.mrb[95].mxu1  ;;  %v8455_v10 = vadd.f32 %v14888_v56, %v14864_v3 }
 0x7ac   : > { %v10538_v11 = vadd.f32 %v10537_v49, %v10536_v62  ;;  %v14925_v58 = vadd.f32 %v10535_v38, %v8460_v12 }
 0x7ad   : > { %v14941_v39 = vadd.f32 %v10532_v27, %v8455_v10 }
 0x7ae   : > { %v14938_v61 = vadd.f32 %v10538_v11, %v8463_v24 }
 0x7b1   : > { %v10433_v4 = vpop.f32.mrb[84].mxu0  ;;  %v10539_v43 = vpop.f32.mrb[96].mxu1 }
 0x7b2   : > { %v10434_v46 = vpop.f32.mrb[85].mxu0  ;;  %v10540_v33 = vpop.f32.mrb[97].mxu1 }
 0x7b3   : > { %v10435_v44 = vadd.f32 %v10434_v46, %v10433_v4  ;;  %v10436_v0 = vpop.f32.mrb[86].mxu0  ;;  %v10541_v41 = vadd.f32 %v10540_v33, %v10539_v43  ;;  %v10542_v42 = vpop.f32.mrb[98].mxu1 }
 0x7b4   : > { %v10437_v18 = vpop.f32.mrb[87].mxu0  ;;  %v10543_v15 = vpop.f32.mrb[99].mxu1 }
 0x7b5   : > { %v10438_v6 = vadd.f32 %v10437_v18, %v10436_v0  ;;  %v10544_v7 = vadd.f32 %v10543_v15, %v10542_v42  ;;  %v8476_v16 = vadd.f32 %v10435_v44, %v14864_v3 }
 0x7ba   : > { %v10439_v2 = vpop.f32.mrb[88].mxu0 }
 0x7bb   : > { %v10440_v47 = vpop.f32.mrb[89].mxu0 }
 0x7bc   : > { %v14927_v37 = vadd.f32 %v10440_v47, %v10439_v2  ;;  %v10442_v36 = vpop.f32.mrb[90].mxu0  ;;  %v10545_v53 = vpop.f32.mrb[100].mxu1  ;;  %v8468_v2 = vadd.f32 %v14908_v55, %v14864_v3 }
 0x7bd   : > { %v10443_v1 = vpop.f32.mrb[91].mxu0  ;;  %v10546_v22 = vpop.f32.mrb[101].mxu1 }
 0x7be   : > { %v14929_v52 = vadd.f32 %v10443_v1, %v10442_v36  ;;  %v10547_v20 = vadd.f32 %v10546_v22, %v10545_v53  ;;  %v10548_v5 = vpop.f32.mrb[102].mxu1  ;;  %v8479_v1 = vadd.f32 %v10438_v6, %v14864_v3 }
 0x7bf   : > { %v10549_v54 = vpop.f32.mrb[103].mxu1 }
 0x7c0   : > { %v10550_v23 = vadd.f32 %v10549_v54, %v10548_v5  ;;  %v14943_v13 = vadd.f32 %v10547_v20, %v8476_v16  ;;  %v8471_v20 = vadd.f32 %v14910_v57, %v14864_v3  ;;  %v14954_v5 = vadd.f32 %v10541_v41, %v8468_v2 }
 0x7c2   : > { %16040 = vst [vmem:[#allocation27_spill] sm:$0xff] %v14943_v13  ;;  %16041 = vst [vmem:[#allocation29_spill] sm:$0xff] %v14954_v5  ;;  %v14956_v54 = vadd.f32 %v10550_v23, %v8479_v1  ;;  %v14959_v24 = vadd.f32 %v10544_v7, %v8471_v20  ;;  %v8388_v7 = vadd.f32 %v14841_v60, %v14864_v3 }
 0x7c3   : > { %v8487_v60 = vadd.f32 %v14929_v52, %v14864_v3 }
 0x7c4   : > { %16042 = vst [vmem:[#allocation33_spill] sm:$0xff] %v14956_v54  ;;  %16043 = vst [vmem:[#allocation31_spill] sm:$0xff] %v14959_v24  ;;  %v9067_v24 = vld [vmem:[#allocation9 + $0x38] sm:$0xff] }
 0x7c5   : > { %v10445_v38 = vpop.f32.mrb[92].mxu0 }
 0x7c6   : > { %v10446_v62 = vpop.f32.mrb[93].mxu0  ;;  %v10551_v49 = vpop.f32.mrb[104].mxu1 }
 0x7c7   : > { %v10447_v4 = vadd.f32 %v10446_v62, %v10445_v38  ;;  %v10448_v43 = vpop.f32.mrb[94].mxu0  ;;  %v10552_v34 = vpop.f32.mrb[105].mxu1 }
 0x7c8   : > { %v10449_v63 = vpop.f32.mrb[95].mxu0  ;;  %v10553_v26 = vadd.f32 %v10552_v34, %v10551_v49  ;;  %v10554_v46 = vpop.f32.mrb[106].mxu1 }
 0x7c9   : > { %v10450_v33 = vadd.f32 %v10449_v63, %v10448_v43  ;;  %v10555_v25 = vpop.f32.mrb[107].mxu1  ;;  %v8492_v32 = vadd.f32 %v10447_v4, %v14864_v3 }
 0x7ca   : > { %v10556_v56 = vadd.f32 %v10555_v25, %v10554_v46  ;;  %v8484_v25 = vadd.f32 %v14927_v37, %v14864_v3 }
 0x7cf   : > { %v10451_v11 = vpop.f32.mrb[96].mxu0 }
 0x7d0   : > { %v10557_v0 = vpop.f32.mrb[108].mxu1  ;;  %v10452_v42 = vpop.f32.mrb[97].mxu0 }
 0x7d1   : > { %v10558_v44 = vpop.f32.mrb[109].mxu1  ;;  %v14945_v18 = vadd.f32 %v10452_v42, %v10451_v11  ;;  %v10454_v15 = vpop.f32.mrb[98].mxu0  ;;  %v8391_v42 = vadd.f32 %v14845_v31, %v14864_v3  ;;  %v14982_v31 = vadd.f32 %v10556_v56, %v8487_v60 }
 0x7d2   : > { %v10559_v27 = vadd.f32 %v10558_v44, %v10557_v0  ;;  %v10560_v12 = vpop.f32.mrb[110].mxu1  ;;  %v10455_v47 = vpop.f32.mrb[99].mxu0 }
 0x7d3   : > { %v10561_v36 = vpop.f32.mrb[111].mxu1  ;;  %v14950_v53 = vadd.f32 %v10455_v47, %v10454_v15  ;;  %16049 = vst [vmem:[#allocation38_spill] sm:$0xff] %v14982_v31 }
 0x7d4   : > { %v10562_v22 = vadd.f32 %v10561_v36, %v10560_v12  ;;  %v14961_v55 = vadd.f32 %v10559_v27, %v8492_v32  ;;  %v8495_v27 = vadd.f32 %v10450_v33, %v14864_v3  ;;  %v14974_v36 = vadd.f32 %v10553_v26, %v8484_v25 }
 0x7d5   : > { %v8396_v26 = vadd.f32 %v14847_v17, %v14864_v3  ;;  %v14994_v17 = vld [vmem:[%s16051_s3] ss:$0 sm:$0xff]  ;;  %v15000_v60 = vadd.f32 %v14950_v53, %v14864_v3 }
 0x7d6   : > { %16044 = vst [vmem:[#allocation30_spill] sm:$0xff] %v14961_v55  ;;  %16046 = vst [vmem:[#allocation37_spill] sm:$0xff] %v14974_v36 }
 0x7d7   : > { %16052 = vst [vmem:[#allocation40_spill] sm:$0xff] %v15000_v60 }
 0x7d9   : > { %v10457_v10 = vpop.f32.mrb[100].mxu0 }
 0x7da   : > { %v10458_v16 = vpop.f32.mrb[101].mxu0  ;;  %v10563_v38 = vpop.f32.mrb[112].mxu1 }
 0x7db   : > { %v10459_v6 = vadd.f32 %v10458_v16, %v10457_v10  ;;  %v10460_v62 = vpop.f32.mrb[102].mxu0  ;;  %v10564_v49 = vpop.f32.mrb[113].mxu1  ;;  %v14978_v10 = vadd.f32 %v10562_v22, %v8495_v27  ;;  %v8399_v22 = vadd.f32 %v14849_v30, %v14864_v3  ;;  %v8500_v30 = vadd.f32 %v14945_v18, %v14864_v3 }
 0x7dc   : > { %v10461_v43 = vpop.f32.mrb[103].mxu0  ;;  %v14963_v34 = vadd.f32 %v10564_v49, %v10563_v38  ;;  %v10566_v57 = vpop.f32.mrb[114].mxu1 }
 0x7dd   : > { %v10462_v41 = vadd.f32 %v10461_v43, %v10460_v62  ;;  %v10567_v63 = vpop.f32.mrb[115].mxu1  ;;  %16047 = vst [vmem:[#allocation36_spill] sm:$0xff] %v14978_v10  ;;  %v8508_v33 = vadd.f32 %v10459_v6, %v14864_v3  ;;  %v8838_v6 = vld [vmem:[#allocation8 + $0x10] sm:$0xff]  ;;  %v9064_v10 = vld [vmem:[#allocation9 + $0x20] sm:$0xff] }
 0x7de   : > { %v14965_v23 = vadd.f32 %v10567_v63, %v10566_v57 }
 0x7e0   : > { %16045 = vst [vmem:[#allocation55_spill] sm:$0xff] %v14965_v23 }
 0x7e1   : > { %v10479_v46 = vpop.f32.mrb[104].mxu0 }
 0x7e2   : > { %v10480_v4 = vpop.f32.mrb[105].mxu0 }
 0x7e3   : > { %v10481_v11 = vadd.f32 %v10480_v4, %v10479_v46  ;;  %v10482_v0 = vpop.f32.mrb[106].mxu0 }
 0x7e4   : > { %v10483_v44 = vpop.f32.mrb[107].mxu0  ;;  %v10569_v15 = vpop.f32.mrb[116].mxu1 }
 0x7e5   : > { %v10484_v12 = vadd.f32 %v10483_v44, %v10482_v0  ;;  %v10570_v2 = vpop.f32.mrb[117].mxu1  ;;  %v8549_v47 = vadd.f32 %v10481_v11, %v8388_v7  ;;  %v8836_v44 = vld [vmem:[#allocation8] sm:$0xff] }
 0x7e6   : > { %v10571_v1 = vadd.f32 %v10570_v2, %v10569_v15  ;;  %v10572_v20 = vpop.f32.mrb[118].mxu1  ;;  %v8839_v2 = vld [vmem:[#allocation8 + $0x18] sm:$0xff] }
 0x7e7   : > { %v10573_v37 = vpop.f32.mrb[119].mxu1  ;;  %v8552_v32 = vadd.f32 %v10484_v12, %v8391_v42 }
 0x7e8   : > { %v14980_v16 = vadd.f32 %v10573_v37, %v10572_v20  ;;  %v14987_v52 = vadd.f32 %v10571_v1, %v8508_v33  ;;  %v15003_v1 = vadd.f32 %v10462_v41, %v14864_v3 }
 0x7e9   : > { %v10485_v38 = vpop.f32.mrb[108].mxu0 }
 0x7ea   : > { %16048 = vst [vmem:[#allocation39_spill] sm:$0xff] %v14980_v16  ;;  %v10486_v62 = vpop.f32.mrb[109].mxu0  ;;  %16050 = vst [vmem:[#allocation41_spill] sm:$0xff] %v14987_v52  ;;  %v8843_v16 = vld [vmem:[#allocation8 + $0x38] sm:$0xff] }
 0x7eb   : > { %v10487_v49 = vadd.f32 %v10486_v62, %v10485_v38  ;;  %v10488_v43 = vpop.f32.mrb[110].mxu0  ;;  %16053 = vst [vmem:[#allocation42_spill] sm:$0xff] %v15003_v1  ;;  %v8837_v38 = vld [vmem:[#allocation8 + $0x8] sm:$0xff]  ;;  %v9062_v62 = vld [vmem:[#allocation9 + $0x10] sm:$0xff] }
 0x7ec   : > { %v10489_v57 = vpop.f32.mrb[111].mxu0 }
 0x7ed   : > { %v10490_v63 = vadd.f32 %v10489_v57, %v10488_v43  ;;  %v8557_v46 = vadd.f32 %v10487_v49, %v8396_v26  ;;  %v10737_v56 = vpop.f32.mrb[120].mxu1 }
 0x7ee   : > { %v9629_v7 = vpop.f32.mrb[121].mxu1  ;;  %v15006_v43 = vadd.f32 %v10737_v56, %v14994_v17 }
 0x7ef   : > { %v8560_v4 = vadd.f32 %v10490_v63, %v8399_v22  ;;  %v10738_v11 = vpop.f32.mrb[122].mxu1  ;;  %v15009_v18 = vadd.f32 %v14994_v17, %v9629_v7 }
 0x7f0   : > { %v9632_v15 = vpop.f32.mrb[123].mxu1  ;;  %v15012_v57 = vadd.f32 %v10738_v11, %v14994_v17 }
 0x7f1   : > { %v10701_v25 = vpop.f32.mrb[112].mxu0  ;;  %v15015_v3 = vadd.f32 %v14994_v17, %v9632_v15 }
 0x7f2   : > { %v8718_v0 = vadd.f32 %v10701_v25, %v8557_v46  ;;  %v8709_v42 = vpop.f32.mrb[113].mxu0  ;;  %v15023_v46 = vadd.f32 %v14963_v34, %v8500_v30 }
 0x7f3   : > { %v8710_v27 = vadd.f32 %v8709_v42, %v8549_v47  ;;  %v10702_v12 = vpop.f32.mrb[114].mxu0  ;;  %v9060_v47 = vld [vmem:[#allocation9] sm:$0xff] }
 0x7f4   : > { %v8870_v20 = vadd.f32 %v8838_v6, %v8718_v0  ;;  %v8721_v37 = vadd.f32 %v10702_v12, %v8560_v4  ;;  %v8712_v33 = vpop.f32.mrb[115].mxu0  ;;  %16054 = vst [vmem:[#allocation44_spill] sm:$0xff] %v15023_v46  ;;  %v8842_v12 = vld [vmem:[#allocation8 + $0x30] sm:$0xff] }
 0x7f5   : > { %v8868_v26 = vadd.f32 %v8836_v44, %v8710_v27  ;;  %v8713_v49 = vadd.f32 %v8712_v33, %v8552_v32  ;;  %v9063_v32 = vld [vmem:[#allocation9 + $0x18] sm:$0xff]  ;;  %v15020_v63 = vpop.f32.mrb[124].mxu1  ;;  %v9061_v27 = vld [vmem:[#allocation9 + $0x8] sm:$0xff] }
 0x7f6   : > { %vm8902_vm4 = vcmp.ge.f32.partialorder %v8870_v20, 4.0  ;;  %v8871_v53 = vadd.f32 %v8839_v2, %v8721_v37  ;;  %v15030_v25 = vpop.f32.mrb[125].mxu1 }
 0x7f7   : > { %v15018_v41 = vsel %vm8902_vm4, 1.0, %v15893_v9  ;;  %vm8900_vm6 = vcmp.ge.f32.partialorder %v8868_v26, 4.0  ;;  %v8869_v22 = vadd.f32 %v8837_v38, %v8713_v49  ;;  %v15037_v42 = vpop.f32.mrb[126].mxu1 }
 0x7f8   : > { %v8998_v4 = vmul.f32 4.0, %v15018_v41  ;;  %v9094_v56 = vadd.f32 %v15018_v41, %v9062_v62  ;;  %v15028_v7 = vsel %vm8900_vm6, 1.0, %v15893_v9  ;;  %vm8903_vm7 = vcmp.ge.f32.partialorder %v8871_v53, 4.0  ;;  %v15041_v37 = vpop.f32.mrb[127].mxu1 }
 0x7f9   : > { %v8996_v6 = vmul.f32 4.0, %v15028_v7  ;;  %v9092_v11 = vadd.f32 %v15028_v7, %v9060_v47  ;;  %v15035_v0 = vsel %vm8903_vm7, 1.0, %v15893_v9  ;;  %vm8901_vm10 = vcmp.ge.f32.partialorder %v8869_v22, 4.0  ;;  %v10705_v34 = vpop.f32.mrb[116].mxu0 }
 0x7fa   : > { %v9030_v44 = vsub.f32 %v8870_v20, %v8998_v4  ;;  %vm9158_vm1 = vcmp.gt.f32.partialorder %v9094_v56, 0.0  ;;  %v8999_v15 = vmul.f32 4.0, %v15035_v0  ;;  %v9095_v30 = vadd.f32 %v15035_v0, %v9063_v32  ;;  %v8725_v2 = vpop.f32.mrb[117].mxu0 }
 0x7fb   : > { %v9028_v33 = vsub.f32 %v8868_v26, %v8996_v6  ;;  %vm9156_vm2 = vcmp.gt.f32.partialorder %v9092_v11, 0.0  ;;  %v15044_v38 = vsel %vm8901_vm10, 1.0, %v15893_v9  ;;  %v8734_v62 = vadd.f32 %v10705_v34, %v14871_v48  ;;  %v10706_v49 = vpop.f32.mrb[118].mxu0 }
 0x7fc   : > { %vm9126_vm3 = vcmp.le.f32.partialorder %v9030_v44, -0.001  ;;  %v9031_v20 = vsub.f32 %v8871_v53, %v8999_v15  ;;  %vm9159_vm8 = vcmp.gt.f32.partialorder %v9095_v30, 0.0  ;;  %v8997_v47 = vmul.f32 4.0, %v15044_v38  ;;  %v8728_v4 = vpop.f32.mrb[119].mxu0 }
 0x7fd   : > { %vm9190_vm9 = vmand %vm9126_vm3, %vm9158_vm1  ;;  %vm9124_vm12 = vcmp.le.f32.partialorder %v9028_v33, -0.001  ;;  %v9093_v32 = vadd.f32 %v15044_v38, %v9061_v27  ;;  %v8874_v23 = vadd.f32 %v8842_v12, %v8734_v62  ;;  %v8726_v26 = vadd.f32 %v8725_v2, %v14874_v45  ;;  %v8840_v45 = vld [vmem:[#allocation8 + $0x20] sm:$0xff]  ;;  %v15062_v27 = vpop.f32.mrb[128].mxu1 }
 0x7fe   : > { %v15052_v6 = vsel %vm9190_vm9, 1.0, %v15893_v9  ;;  %vm9188_vm13 = vmand %vm9124_vm12, %vm9156_vm2  ;;  %vm9127_vm14 = vcmp.le.f32.partialorder %v9031_v20, -0.001  ;;  %v9029_v48 = vsub.f32 %v8869_v22, %v8997_v47  ;;  %v8737_v53 = vadd.f32 %v10706_v49, %v14881_v28  ;;  %v15069_v28 = vpop.f32.mrb[129].mxu1  ;;  %v9066_v47 = vld [vmem:[#allocation9 + $0x30] sm:$0xff] }
 0x7ff   : > { %v9286_v34 = vmul.f32 4.0, %v15052_v6  ;;  %v9382_v15 = vsub.f32 %v9094_v56, %v15052_v6  ;;  %v15059_v60 = vsel %vm9188_vm13, 1.0, %v15893_v9  ;;  %vm9191_vm15 = vmand %vm9127_vm14, %vm9159_vm8  ;;  %vm9157_vm5 = vcmp.gt.f32.partialorder %v9093_v32, 0.0 }
 0x800   : > { %v9284_v12 = vmul.f32 4.0, %v15059_v60  ;;  %v9380_v2 = vsub.f32 %v9092_v11, %v15059_v60  ;;  %v15067_v22 = vsel %vm9191_vm15, 1.0, %v15893_v9  ;;  %vm9125_vm0 = vcmp.le.f32.partialorder %v9029_v48, -0.001  ;;  %v15076_v11 = vpop.f32.mrb[130].mxu1 }
 0x801   : > { %v9318_v56 = vadd.f32 %v9286_v34, %v9030_v44  ;;  %9414 = vst.msk [vmem:[#allocation9 + $0x10] sm:$0xff] %vm3571_vm11, %v9382_v15  ;;  %v9287_v62 = vmul.f32 4.0, %v15067_v22  ;;  %v9383_v49 = vsub.f32 %v9095_v30, %v15067_v22  ;;  %vm9189_vm4 = vmand %vm9125_vm0, %vm9157_vm5  ;;  %vm8906_vm6 = vcmp.ge.f32.partialorder %v8874_v23, 4.0  ;;  %v15074_v1 = vpop.f32.mrb[120].mxu0  ;;  %v15087_v30 = vpop.f32.mrb[131].mxu1 }
 0x802   : > { %v9316_v46 = vadd.f32 %v9284_v12, %v9028_v33  ;;  %9412 = vst.msk [vmem:[#allocation9] sm:$0xff] %vm3571_vm11, %v9380_v2  ;;  %v15080_v52 = vsel %vm9189_vm4, 1.0, %v15893_v9  ;;  %v15083_v44 = vsel %vm8906_vm6, 1.0, %v15893_v9  ;;  %v8872_v34 = vadd.f32 %v8840_v45, %v8726_v26  ;;  %v15085_v15 = vpop.f32.mrb[121].mxu0 }
 0x803   : > { %9350 = vst.msk [vmem:[#allocation8 + $0x10] sm:$0xff] %vm3571_vm11, %v9318_v56  ;;  %v9319_v31 = vadd.f32 %v9287_v62, %v9031_v20  ;;  %9415 = vst.msk [vmem:[#allocation9 + $0x18] sm:$0xff] %vm3571_vm11, %v9383_v49  ;;  %v9285_v33 = vmul.f32 4.0, %v15080_v52  ;;  %v9381_v12 = vsub.f32 %v9093_v32, %v15080_v52  ;;  %v9002_v2 = vmul.f32 4.0, %v15083_v44  ;;  %v15094_v36 = vpop.f32.mrb[122].mxu0  ;;  %v8841_v20 = vld [vmem:[#allocation8 + $0x28] sm:$0xff] }
 0x804   : > { %9348 = vst.msk [vmem:[#allocation8] sm:$0xff] %vm3571_vm11, %v9316_v46  ;;  %v9098_v26 = vadd.f32 %v15083_v44, %v9066_v47  ;;  %vm8904_vm7 = vcmp.ge.f32.partialorder %v8872_v34, 4.0  ;;  %v8875_v45 = vadd.f32 %v8843_v16, %v8737_v53  ;;  %v8729_v56 = vadd.f32 %v8728_v4, %v14883_v8  ;;  %v15099_v62 = vpop.f32.mrb[123].mxu0 }
 0x805   : > { %9351 = vst.msk [vmem:[#allocation8 + $0x18] sm:$0xff] %vm3571_vm11, %v9319_v31  ;;  %v9317_v49 = vadd.f32 %v9285_v33, %v9029_v48  ;;  %9413 = vst.msk [vmem:[#allocation9 + $0x8] sm:$0xff] %vm3571_vm11, %v9381_v12  ;;  %v9034_v32 = vsub.f32 %v8874_v23, %v9002_v2  ;;  %v15104_v55 = vsel %vm8904_vm7, 1.0, %v15893_v9  ;;  %v9446_v46 = vsub.f32 %v15018_v41, %v15052_v6  ;;  %v15114_v48 = vpop.f32.mrb[132].mxu1 }
 0x806   : > { %vm9162_vm10 = vcmp.gt.f32.partialorder %v9098_v26, 0.0  ;;  %v9000_v16 = vmul.f32 4.0, %v15104_v55  ;;  %v9096_v8 = vadd.f32 %v15104_v55, %v9064_v10  ;;  %vm8907_vm1 = vcmp.ge.f32.partialorder %v8875_v45, 4.0  ;;  %v15118_v47 = vpop.f32.mrb[133].mxu1 }
 0x807   : > { %9349 = vst.msk [vmem:[#allocation8 + $0x8] sm:$0xff] %vm3571_vm11, %v9317_v49  ;;  %vm9130_vm2 = vcmp.le.f32.partialorder %v9034_v32, -0.001  ;;  %v15112_v31 = vsel %vm8907_vm1, 1.0, %v15893_v9  ;;  %v8873_v23 = vadd.f32 %v8841_v20, %v8729_v56  ;;  %v9478_v4 = vmul.f32 4.0, %v9446_v46  ;;  %v9065_v49 = vld [vmem:[#allocation9 + $0x28] sm:$0xff] }
 0x808   : > { %vm9194_vm3 = vmand %vm9130_vm2, %vm9162_vm10  ;;  %v9032_v53 = vsub.f32 %v8872_v34, %v9000_v16  ;;  %vm9160_vm8 = vcmp.gt.f32.partialorder %v9096_v8, 0.0  ;;  %v9003_v41 = vmul.f32 4.0, %v15112_v31  ;;  %v9099_v6 = vadd.f32 %v15112_v31, %v9067_v24  ;;  %v15128_v34 = vpop.f32.mrb[134].mxu1 }
 0x809   : > { %v15121_v10 = vsel %vm9194_vm3, 1.0, %v15893_v9  ;;  %vm8905_vm9 = vcmp.ge.f32.partialorder %v8873_v23, 4.0  ;;  %v9758_v33 = vadd.f32 %v15006_v43, %v9478_v4  ;;  %v9444_v12 = vsub.f32 %v15028_v7, %v15059_v60  ;;  %v15126_v2 = vpop.f32.mrb[124].mxu0  ;;  %v15134_v16 = vpop.f32.mrb[135].mxu1 }
 0x80a   : > { %v9290_v56 = vmul.f32 4.0, %v15121_v10  ;;  %v9386_v24 = vsub.f32 %v9098_v26, %v15121_v10  ;;  %vm9128_vm12 = vcmp.le.f32.partialorder %v9032_v53, -0.001  ;;  %v9035_v20 = vsub.f32 %v8875_v45, %v9003_v41  ;;  %v15132_v46 = vpop.f32.mrb[125].mxu0  ;;  %16055 = vst [vmem:[#allocation46_spill] sm:$0xff] %v15134_v16 }
 0x80b   : > { %vm9192_vm13 = vmand %vm9128_vm12, %vm9160_vm8  ;;  %vm9163_vm14 = vcmp.gt.f32.partialorder %v9099_v6, 0.0  ;;  %v15138_v60 = vsel %vm8905_vm9, 1.0, %v15893_v9  ;;  %9790 = vst.msk [vmem:[%s11543_s19 + $0x10] sm:$0xff] %vm3571_vm11, %v9758_v33  ;;  %v9476_v43 = vmul.f32 4.0, %v9444_v12  ;;  %v9447_v7 = vsub.f32 %v15035_v0, %v15067_v22  ;;  %v15144_v26 = vpop.f32.mrb[126].mxu0 }
 0x80c   : > { %v9322_v45 = vadd.f32 %v9290_v56, %v9034_v32  ;;  %9418 = vst.msk [vmem:[#allocation9 + $0x30] sm:$0xff] %vm3571_vm11, %v9386_v24  ;;  %v15148_v4 = vsel %vm9192_vm13, 1.0, %v15893_v9  ;;  %vm9131_vm15 = vcmp.le.f32.partialorder %v9035_v20, -0.001  ;;  %v9001_v41 = vmul.f32 4.0, %v15138_v60  ;;  %v15151_v54 = vpop.f32.mrb[127].mxu0 }
 0x80d   : > { %v9288_v33 = vmul.f32 4.0, %v15148_v4  ;;  %v9384_v12 = vsub.f32 %v9096_v8, %v15148_v4  ;;  %vm9195_vm5 = vmand %vm9131_vm15, %vm9163_vm14  ;;  %v9097_v0 = vadd.f32 %v15138_v60, %v9065_v49  ;;  %v9756_v22 = vadd.f32 %v15009_v18, %v9476_v43  ;;  %v8846_v18 = vld [vmem:[#allocation8 + $0x50] sm:$0xff]  ;;  %v15168_v49 = vpop.f32.mrb[136].mxu1 }
 0x80e   : > { %9354 = vst.msk [vmem:[#allocation8 + $0x30] sm:$0xff] %vm3571_vm11, %v9322_v45  ;;  %v15159_v32 = vsel %vm9195_vm5, 1.0, %v15893_v9  ;;  %v9033_v56 = vsub.f32 %v8873_v23, %v9001_v41  ;;  %v9479_v24 = vmul.f32 4.0, %v9447_v7  ;;  %v9445_v5 = vsub.f32 %v15044_v38, %v15080_v52  ;;  %v8844_v38 = vld [vmem:[#allocation8 + $0x40] sm:$0xff]  ;;  %v15173_v7 = vpop.f32.mrb[137].mxu1 }
 0x80f   : > { %v9320_v13 = vadd.f32 %v9288_v33, %v9032_v53  ;;  %9416 = vst.msk [vmem:[#allocation9 + $0x20] sm:$0xff] %vm3571_vm11, %v9384_v12  ;;  %v9291_v8 = vmul.f32 4.0, %v15159_v32  ;;  %v9387_v16 = vsub.f32 %v9099_v6, %v15159_v32  ;;  %vm9161_vm0 = vcmp.gt.f32.partialorder %v9097_v0, 0.0  ;;  %9788 = vst.msk [vmem:[%s11543_s19] sm:$0xff] %vm3571_vm11, %v9756_v22  ;;  %v8847_v53 = vld [vmem:[#allocation8 + $0x58] sm:$0xff]  ;;  %v15185_v41 = vpop.f32.mrb[138].mxu1 }
 0x810   : > { %vm9129_vm4 = vcmp.le.f32.partialorder %v9033_v56, -0.001  ;;  %v9759_v23 = vadd.f32 %v15012_v57, %v9479_v24  ;;  %v9477_v43 = vmul.f32 4.0, %v9445_v5  ;;  %v8750_v52 = vadd.f32 %v15074_v1, %v14890_v19  ;;  %v8845_v19 = vld [vmem:[#allocation8 + $0x48] sm:$0xff] }
 0x811   : > { %9352 = vst.msk [vmem:[#allocation8 + $0x20] sm:$0xff] %vm3571_vm11, %v9320_v13  ;;  %v9323_v6 = vadd.f32 %v9291_v8, %v9035_v20  ;;  %9419 = vst.msk [vmem:[#allocation9 + $0x38] sm:$0xff] %vm3571_vm11, %v9387_v16  ;;  %v8742_v45 = vadd.f32 %v15085_v15, %v14898_v35  ;;  %v8753_v5 = vadd.f32 %v15094_v36, %v14900_v40  ;;  %v15183_v1 = vpop.f32.mrb[128].mxu0  ;;  %v9070_v16 = vld [vmem:[#allocation9 + $0x50] sm:$0xff] }
 0x812   : > { %vm9193_vm6 = vmand %vm9129_vm4, %vm9161_vm0  ;;  %v8745_v57 = vadd.f32 %v15099_v62, %v14903_v59  ;;  %9791 = vst.msk [vmem:[%s11543_s19 + $0x18] sm:$0xff] %vm3571_vm11, %v9759_v23  ;;  %v9757_v20 = vadd.f32 %v15015_v3, %v9477_v43  ;;  %v8878_v35 = vadd.f32 %v8846_v18, %v8750_v52  ;;  %v9450_v40 = vsub.f32 %v15083_v44, %v15121_v10  ;;  %v15195_v36 = vpop.f32.mrb[129].mxu0  ;;  %v15197_v59 = vpop.f32.mrb[139].mxu1  ;;  %v9068_v3 = vld [vmem:[#allocation9 + $0x40] sm:$0xff]  ;;  %v9071_v44 = vld [vmem:[#allocation9 + $0x58] sm:$0xff] }
 0x813   : > { %v15188_v13 = vsel %vm9193_vm6, 1.0, %v15893_v9  ;;  %16056 = vst [vmem:[#allocation43_spill] sm:$0xff] %v15197_v59  ;;  %9355 = vst.msk [vmem:[#allocation8 + $0x38] sm:$0xff] %vm3571_vm11, %v9323_v6  ;;  %v8876_v33 = vadd.f32 %v8844_v38, %v8742_v45  ;;  %v8879_v12 = vadd.f32 %v8847_v53, %v8753_v5  ;;  %v15202_v22 = vpop.f32.mrb[130].mxu0  ;;  %v9654_v8 = vadd.f32 %v15020_v63, %v14994_v17 }
 0x814   : > { %v9289_v15 = vmul.f32 4.0, %v15188_v13  ;;  %v9385_v62 = vsub.f32 %v9097_v0, %v15188_v13  ;;  %9789 = vst.msk [vmem:[%s11543_s19 + $0x8] sm:$0xff] %vm3571_vm11, %v9757_v20  ;;  %vm8910_vm7 = vcmp.ge.f32.partialorder %v8878_v35, 4.0  ;;  %v8877_v10 = vadd.f32 %v8845_v19, %v8745_v57  ;;  %v15208_v18 = vpop.f32.mrb[131].mxu0  ;;  %v9069_v19 = vld [vmem:[#allocation9 + $0x48] sm:$0xff] }
 0x815   : > { %v9482_v24 = vmul.f32 4.0, %v9450_v40  ;;  %v15212_v0 = vsel %vm8910_vm7, 1.0, %v15893_v9  ;;  %vm8908_vm10 = vcmp.ge.f32.partialorder %v8876_v33, 4.0  ;;  %vm8911_vm1 = vcmp.ge.f32.partialorder %v8879_v12, 4.0  ;;  %v15227_v5 = vpop.f32.mrb[140].mxu1 }
 0x816   : > { %v9321_v23 = vadd.f32 %v9289_v15, %v9033_v56  ;;  %9417 = vst.msk [vmem:[#allocation9 + $0x28] sm:$0xff] %vm3571_vm11, %v9385_v62  ;;  %v9006_v43 = vmul.f32 4.0, %v15212_v0  ;;  %v9102_v52 = vadd.f32 %v15212_v0, %v9070_v16  ;;  %v15217_v38 = vsel %vm8908_vm10, 1.0, %v15893_v9  ;;  %16057 = vst [vmem:[#allocation45_spill] sm:$0xff] %v15227_v5  ;;  %v15229_v40 = vpop.f32.mrb[141].mxu1 }
 0x817   : > { %v15220_v53 = vsel %vm8911_vm1, 1.0, %v15893_v9  ;;  %v9004_v63 = vmul.f32 4.0, %v15217_v38  ;;  %v9100_v56 = vadd.f32 %v15217_v38, %v9068_v3  ;;  %vm8909_vm3 = vcmp.ge.f32.partialorder %v8877_v10, 4.0  ;;  %16058 = vst [vmem:[#allocation48_spill] sm:$0xff] %v15229_v40  ;;  %v15233_v3 = vpop.f32.mrb[142].mxu1 }
 0x818   : > { %9353 = vst.msk [vmem:[#allocation8 + $0x28] sm:$0xff] %vm3571_vm11, %v9321_v23  ;;  %v9007_v6 = vmul.f32 4.0, %v15220_v53  ;;  %v9103_v45 = vadd.f32 %v15220_v53, %v9071_v44  ;;  %v9038_v57 = vsub.f32 %v8878_v35, %v9006_v43  ;;  %vm9166_vm2 = vcmp.gt.f32.partialorder %v9102_v52, 0.0  ;;  %16059 = vst [vmem:[#allocation50_spill] sm:$0xff] %v15233_v3 }
 0x819   : > { %v9762_v20 = vadd.f32 %v9654_v8, %v9482_v24  ;;  %v9036_v15 = vsub.f32 %v8876_v33, %v9004_v63  ;;  %vm9164_vm8 = vcmp.gt.f32.partialorder %v9100_v56, 0.0  ;;  %v15231_v16 = vpop.f32.mrb[132].mxu0  ;;  %v15236_v44 = vsel %vm8909_vm3, 1.0, %v15893_v9 }
 0x81a   : > { %v9039_v62 = vsub.f32 %v8879_v12, %v9007_v6  ;;  %vm9167_vm9 = vcmp.gt.f32.partialorder %v9103_v45, 0.0  ;;  %vm9134_vm12 = vcmp.le.f32.partialorder %v9038_v57, -0.001  ;;  %v9448_v35 = vsub.f32 %v15104_v55, %v15148_v4  ;;  %v15244_v33 = vpop.f32.mrb[133].mxu0  ;;  %v15246_v12 = vpop.f32.mrb[143].mxu1 }
 0x81b   : > { %9794 = vst.msk [vmem:[%s11543_s19 + $0x30] sm:$0xff] %vm3571_vm11, %v9762_v20  ;;  %v9646_v24 = vadd.f32 %v14994_v17, %v15030_v25  ;;  %16060 = vst [vmem:[#allocation47_spill] sm:$0xff] %v15246_v12  ;;  %vm9132_vm14 = vcmp.le.f32.partialorder %v9036_v15, -0.001  ;;  %v9005_v8 = vmul.f32 4.0, %v15236_v44  ;;  %v9101_v23 = vadd.f32 %v15236_v44, %v9069_v19  ;;  %v15251_v43 = vpop.f32.mrb[134].mxu0 }
 0x81c   : > { %vm9198_vm13 = vmand %vm9134_vm12, %vm9166_vm2  ;;  %vm9135_vm15 = vcmp.le.f32.partialorder %v9039_v62, -0.001  ;;  %v9480_v55 = vmul.f32 4.0, %v9448_v35  ;;  %v9451_v25 = vsub.f32 %v15112_v31, %v15159_v32  ;;  %v9657_v4 = vadd.f32 %v15037_v42, %v14994_v17  ;;  %v15261_v6 = vpop.f32.mrb[135].mxu0 }
 0x81d   : > { %v15254_v63 = vsel %vm9198_vm13, 1.0, %v15893_v9  ;;  %vm9196_vm5 = vmand %vm9132_vm14, %vm9164_vm8  ;;  %v9037_v3 = vsub.f32 %v8877_v10, %v9005_v8  ;;  %vm9165_vm4 = vcmp.gt.f32.partialorder %v9101_v23, 0.0  ;;  %v15277_v5 = vpop.f32.mrb[144].mxu1  ;;  %v9449_v8 = vsub.f32 %v15138_v60, %v15188_v13 }
 0x81e   : > { %v9294_v20 = vmul.f32 4.0, %v15254_v63  ;;  %v9390_v19 = vsub.f32 %v9102_v52, %v15254_v63  ;;  %v15266_v12 = vsel %vm9196_vm5, 1.0, %v15893_v9  ;;  %vm9199_vm0 = vmand %vm9135_vm15, %vm9167_vm9  ;;  %v9760_v10 = vadd.f32 %v9646_v24, %v9480_v55  ;;  %v8848_v24 = vld [vmem:[#allocation8 + $0x60] sm:$0xff] }
 0x81f   : > { %v9292_v35 = vmul.f32 4.0, %v15266_v12  ;;  %v9388_v40 = vsub.f32 %v9100_v56, %v15266_v12  ;;  %v15272_v31 = vsel %vm9199_vm0, 1.0, %v15893_v9  ;;  %vm9133_vm6 = vcmp.le.f32.partialorder %v9037_v3, -0.001 }
 0x820   : > { %v9326_v42 = vadd.f32 %v9294_v20, %v9038_v57  ;;  %9422 = vst.msk [vmem:[#allocation9 + $0x50] sm:$0xff] %vm3571_vm11, %v9390_v19  ;;  %v9295_v32 = vmul.f32 4.0, %v15272_v31  ;;  %v9391_v52 = vsub.f32 %v9103_v45, %v15272_v31  ;;  %vm9197_vm7 = vmand %vm9133_vm6, %vm9165_vm4  ;;  %v9483_v56 = vmul.f32 4.0, %v9451_v25  ;;  %v8850_v57 = vld [vmem:[#allocation8 + $0x70] sm:$0xff]  ;;  %v15282_v20 = vpop.f32.mrb[145].mxu1 }
 0x821   : > { %v9324_v59 = vadd.f32 %v9292_v35, %v9036_v15  ;;  %9420 = vst.msk [vmem:[#allocation9 + $0x40] sm:$0xff] %vm3571_vm11, %v9388_v40  ;;  %v15287_v45 = vsel %vm9197_vm7, 1.0, %v15893_v9  ;;  %v9649_v40 = vadd.f32 %v14994_v17, %v15041_v37  ;;  %v8766_v15 = vadd.f32 %v15126_v2, %v14906_v21  ;;  %v15293_v55 = vpop.f32.mrb[136].mxu0  ;;  %v15295_v60 = vpop.f32.mrb[146].mxu1  ;;  %9792 = vst.msk [vmem:[%s11543_s19 + $0x20] sm:$0xff] %vm3571_vm11, %v9760_v10  ;;  %v8851_v37 = vld [vmem:[#allocation8 + $0x78] sm:$0xff] }
 0x822   : > { %9358 = vst.msk [vmem:[#allocation8 + $0x50] sm:$0xff] %vm3571_vm11, %v9326_v42  ;;  %v9327_v19 = vadd.f32 %v9295_v32, %v9039_v62  ;;  %9423 = vst.msk [vmem:[#allocation9 + $0x58] sm:$0xff] %vm3571_vm11, %v9391_v52  ;;  %v9293_v13 = vmul.f32 4.0, %v15287_v45  ;;  %v9389_v62 = vsub.f32 %v9101_v23, %v15287_v45  ;;  %v9763_v25 = vadd.f32 %v9657_v4, %v9483_v56  ;;  %v8849_v42 = vld [vmem:[#allocation8 + $0x68] sm:$0xff]  ;;  %v15302_v32 = vpop.f32.mrb[137].mxu0  ;;  %v15304_v21 = vpop.f32.mrb[147].mxu1 }
 0x823   : > { %9356 = vst.msk [vmem:[#allocation8 + $0x40] sm:$0xff] %vm3571_vm11, %v9324_v59  ;;  %v9481_v35 = vmul.f32 4.0, %v9449_v8  ;;  %v8882_v2 = vadd.f32 %v8850_v57, %v8766_v15  ;;  %v8758_v59 = vadd.f32 %v15132_v46, %v14915_v50  ;;  %v8769_v23 = vadd.f32 %v15144_v26, %v14919_v29  ;;  %v15313_v52 = vpop.f32.mrb[138].mxu0  ;;  %v9074_v8 = vld [vmem:[#allocation9 + $0x70] sm:$0xff]  ;;  %v9075_v15 = vld [vmem:[#allocation9 + $0x78] sm:$0xff] }
 0x824   : > { %9359 = vst.msk [vmem:[#allocation8 + $0x58] sm:$0xff] %vm3571_vm11, %v9327_v19  ;;  %v8761_v4 = vadd.f32 %v15151_v54, %v14922_v51  ;;  %v9325_v10 = vadd.f32 %v9293_v13, %v9037_v3  ;;  %9421 = vst.msk [vmem:[#allocation9 + $0x48] sm:$0xff] %vm3571_vm11, %v9389_v62  ;;  %v9454_v57 = vsub.f32 %v15212_v0, %v15254_v63  ;;  %v15322_v29 = vpop.f32.mrb[139].mxu0  ;;  %v9072_v3 = vld [vmem:[#allocation9 + $0x60] sm:$0xff] }
 0x825   : > { %9795 = vst.msk [vmem:[%s11543_s19 + $0x38] sm:$0xff] %vm3571_vm11, %v9763_v25  ;;  %v9761_v56 = vadd.f32 %v9649_v40, %v9481_v35  ;;  %v9670_v50 = vadd.f32 %v15062_v27, %v14994_v17  ;;  %vm8914_vm10 = vcmp.ge.f32.partialorder %v8882_v2, 4.0  ;;  %v8880_v46 = vadd.f32 %v8848_v24, %v8758_v59  ;;  %v15336_v24 = vpop.f32.mrb[148].mxu1 }
 0x826   : > { %v8883_v51 = vadd.f32 %v8851_v37, %v8769_v23  ;;  %v8881_v54 = vadd.f32 %v8849_v42, %v8761_v4  ;;  %9357 = vst.msk [vmem:[#allocation8 + $0x48] sm:$0xff] %vm3571_vm11, %v9325_v10  ;;  %v15328_v26 = vsel %vm8914_vm10, 1.0, %v15893_v9  ;;  %v9486_v19 = vmul.f32 4.0, %v9454_v57  ;;  %v9073_v37 = vld [vmem:[#allocation9 + $0x68] sm:$0xff] }
 0x827   : > { %9793 = vst.msk [vmem:[%s11543_s19 + $0x28] sm:$0xff] %vm3571_vm11, %v9761_v56  ;;  %v9452_v0 = vsub.f32 %v15217_v38, %v15266_v12  ;;  %v9662_v27 = vadd.f32 %v14994_v17, %v15069_v28  ;;  %v9010_v63 = vmul.f32 4.0, %v15328_v26  ;;  %v9106_v40 = vadd.f32 %v15328_v26, %v9074_v8  ;;  %v15344_v12 = vpop.f32.mrb[149].mxu1 }
 0x828   : > { %vm8912_vm1 = vcmp.ge.f32.partialorder %v8880_v46, 4.0  ;;  %vm8915_vm2 = vcmp.ge.f32.partialorder %v8883_v51, 4.0  ;;  %vm8913_vm3 = vcmp.ge.f32.partialorder %v8881_v54, 4.0  ;;  %v9766_v38 = vadd.f32 %v9670_v50, %v9486_v19  ;;  %16061 = vst [vmem:[#allocation49_spill] sm:$0xff] %v15344_v12  ;;  %v15350_v59 = vpop.f32.mrb[150].mxu1 }
 0x829   : > { %v15339_v13 = vsel %vm8912_vm1, 1.0, %v15893_v9  ;;  %v15342_v62 = vsel %vm8915_vm2, 1.0, %v15893_v9  ;;  %v9042_v28 = vsub.f32 %v8882_v2, %v9010_v63  ;;  %vm9170_vm8 = vcmp.gt.f32.partialorder %v9106_v40, 0.0  ;;  %v15348_v42 = vpop.f32.mrb[140].mxu0  ;;  %16062 = vst [vmem:[#allocation52_spill] sm:$0xff] %v15350_v59  ;;  %v15361_v8 = vpop.f32.mrb[151].mxu1 }
 0x82a   : > { %v9008_v25 = vmul.f32 4.0, %v15339_v13  ;;  %v9104_v35 = vadd.f32 %v15339_v13, %v9072_v3  ;;  %v9011_v23 = vmul.f32 4.0, %v15342_v62  ;;  %v9107_v4 = vadd.f32 %v15342_v62, %v9075_v15  ;;  %9798 = vst.msk [vmem:[%s11543_s19 + $0x50] sm:$0xff] %vm3571_vm11, %v9766_v38  ;;  %v15359_v56 = vpop.f32.mrb[141].mxu0  ;;  %16063 = vst [vmem:[#allocation54_spill] sm:$0xff] %v15361_v8 }
 0x82b   : > { %v15355_v10 = vsel %vm8913_vm3, 1.0, %v15893_v9  ;;  %v9484_v2 = vmul.f32 4.0, %v9452_v0  ;;  %vm9138_vm9 = vcmp.le.f32.partialorder %v9042_v28, -0.001  ;;  %v15364_v3 = vpop.f32.mrb[142].mxu0 }
 0x82c   : > { %v9040_v57 = vsub.f32 %v8880_v46, %v9008_v25  ;;  %vm9168_vm12 = vcmp.gt.f32.partialorder %v9104_v35, 0.0  ;;  %v9009_v50 = vmul.f32 4.0, %v15355_v10  ;;  %vm9202_vm13 = vmand %vm9138_vm9, %vm9170_vm8  ;;  %v9043_v19 = vsub.f32 %v8883_v51, %v9011_v23  ;;  %v15368_v0 = vpop.f32.mrb[143].mxu0 }
 0x82d   : > { %vm9171_vm14 = vcmp.gt.f32.partialorder %v9107_v4, 0.0  ;;  %v9105_v63 = vadd.f32 %v15355_v10, %v9073_v37  ;;  %v9764_v15 = vadd.f32 %v9662_v27, %v9484_v2  ;;  %v10160_v38 = vsel %vm9202_vm13, 1.0, %v15893_v9 }
 0x82e   : > { %vm9136_vm15 = vcmp.le.f32.partialorder %v9040_v57, -0.001  ;;  %v9041_v8 = vsub.f32 %v8881_v54, %v9009_v50  ;;  %v9455_v46 = vsub.f32 %v15220_v53, %v15272_v31  ;;  %v9298_v25 = vmul.f32 4.0, %v10160_v38 }
 0x82f   : > { %v9394_v59 = vsub.f32 %v9106_v40, %v10160_v38  ;;  %vm9200_vm5 = vmand %vm9136_vm15, %vm9168_vm12  ;;  %vm9139_vm0 = vcmp.le.f32.partialorder %v9043_v19, -0.001  ;;  %vm9169_vm4 = vcmp.gt.f32.partialorder %v9105_v63, 0.0  ;;  %9796 = vst.msk [vmem:[%s11543_s19 + $0x40] sm:$0xff] %vm3571_vm11, %v9764_v15  ;;  %v9673_v54 = vadd.f32 %v15076_v11, %v14994_v17 }
 0x830   : > { %v15377_v51 = vsel %vm9200_vm5, 1.0, %v15893_v9  ;;  %vm9203_vm6 = vmand %vm9139_vm0, %vm9171_vm14  ;;  %vm9137_vm7 = vcmp.le.f32.partialorder %v9041_v8, -0.001  ;;  %v9487_v27 = vmul.f32 4.0, %v9455_v46  ;;  %v9330_v37 = vadd.f32 %v9298_v25, %v9042_v28  ;;  %v8854_v46 = vld [vmem:[#allocation8 + $0x90] sm:$0xff]  ;;  %v8852_v25 = vld [vmem:[#allocation8 + $0x80] sm:$0xff] }
 0x831   : > { %9426 = vst.msk [vmem:[#allocation9 + $0x70] sm:$0xff] %vm3571_vm11, %v9394_v59  ;;  %v9296_v53 = vmul.f32 4.0, %v15377_v51  ;;  %v9392_v31 = vsub.f32 %v9104_v35, %v15377_v51  ;;  %v15386_v40 = vsel %vm9203_vm6, 1.0, %v15893_v9  ;;  %vm9201_vm10 = vmand %vm9137_vm7, %vm9169_vm4  ;;  %v9453_v15 = vsub.f32 %v15236_v44, %v15287_v45 }
 0x832   : > { %v9299_v23 = vmul.f32 4.0, %v15386_v40  ;;  %v9395_v2 = vsub.f32 %v9107_v4, %v15386_v40  ;;  %v15391_v50 = vsel %vm9201_vm10, 1.0, %v15893_v9  ;;  %v9767_v11 = vadd.f32 %v9673_v54, %v9487_v27  ;;  %9362 = vst.msk [vmem:[#allocation8 + $0x70] sm:$0xff] %vm3571_vm11, %v9330_v37  ;;  %v8853_v54 = vld [vmem:[#allocation8 + $0x88] sm:$0xff]  ;;  %v9078_v37 = vld [vmem:[#allocation9 + $0x90] sm:$0xff] }
 0x833   : > { %v9328_v28 = vadd.f32 %v9296_v53, %v9040_v57  ;;  %9424 = vst.msk [vmem:[#allocation9 + $0x60] sm:$0xff] %vm3571_vm11, %v9392_v31  ;;  %v9297_v35 = vmul.f32 4.0, %v15391_v50  ;;  %v9393_v59 = vsub.f32 %v9105_v63, %v15391_v50  ;;  %v9665_v4 = vadd.f32 %v14994_v17, %v15087_v30  ;;  %v8855_v63 = vld [vmem:[#allocation8 + $0x98] sm:$0xff]  ;;  %v9076_v53 = vld [vmem:[#allocation9 + $0x80] sm:$0xff] }
 0x834   : > { %v9331_v12 = vadd.f32 %v9299_v23, %v9043_v19  ;;  %9427 = vst.msk [vmem:[#allocation9 + $0x78] sm:$0xff] %vm3571_vm11, %v9395_v2  ;;  %9799 = vst.msk [vmem:[%s11543_s19 + $0x58] sm:$0xff] %vm3571_vm11, %v9767_v11  ;;  %v8782_v57 = vadd.f32 %v15183_v1, %v14925_v58  ;;  %v8774_v27 = vadd.f32 %v15195_v36, %v14934_v14  ;;  %v9485_v45 = vmul.f32 4.0, %v9453_v15  ;;  %v9077_v23 = vld [vmem:[#allocation9 + $0x88] sm:$0xff] }
 0x835   : > { %9360 = vst.msk [vmem:[#allocation8 + $0x60] sm:$0xff] %vm3571_vm11, %v9328_v28  ;;  %v9329_v44 = vadd.f32 %v9297_v35, %v9041_v8  ;;  %9425 = vst.msk [vmem:[#allocation9 + $0x68] sm:$0xff] %vm3571_vm11, %v9393_v59  ;;  %v8785_v19 = vadd.f32 %v15202_v22, %v14938_v61  ;;  %v8777_v30 = vadd.f32 %v15208_v18, %v14941_v39 }
 0x836   : > { %9363 = vst.msk [vmem:[#allocation8 + $0x78] sm:$0xff] %vm3571_vm11, %v9331_v12  ;;  %v8886_v58 = vadd.f32 %v8854_v46, %v8782_v57  ;;  %v8884_v1 = vadd.f32 %v8852_v25, %v8774_v27  ;;  %v9458_v14 = vsub.f32 %v15328_v26, %v10160_v38  ;;  %v9686_v36 = vadd.f32 %v15114_v48, %v14994_v17 }
 0x837   : > { %9361 = vst.msk [vmem:[#allocation8 + $0x68] sm:$0xff] %vm3571_vm11, %v9329_v44  ;;  %v9765_v8 = vadd.f32 %v9665_v4, %v9485_v45  ;;  %v8887_v31 = vadd.f32 %v8855_v63, %v8785_v19  ;;  %v8885_v61 = vadd.f32 %v8853_v54, %v8777_v30  ;;  %v9456_v39 = vsub.f32 %v15339_v13, %v15377_v51 }
 0x838   : > { %vm8918_vm1 = vcmp.ge.f32.partialorder %v8886_v58, 4.0  ;;  %vm8916_vm2 = vcmp.ge.f32.partialorder %v8884_v1, 4.0  ;;  %v9490_v22 = vmul.f32 4.0, %v9458_v14  ;;  %v9678_v18 = vadd.f32 %v14994_v17, %v15118_v47  ;;  %v9079_v47 = vld [vmem:[#allocation9 + $0x98] sm:$0xff] }
 0x839   : > { %9797 = vst.msk [vmem:[%s11543_s19 + $0x48] sm:$0xff] %vm3571_vm11, %v9765_v8  ;;  %v15426_v48 = vsel %vm8918_vm1, 1.0, %v15893_v9  ;;  %v15429_v26 = vsel %vm8916_vm2, 1.0, %v15893_v9  ;;  %vm8919_vm3 = vcmp.ge.f32.partialorder %v8887_v31, 4.0  ;;  %vm8917_vm8 = vcmp.ge.f32.partialorder %v8885_v61, 4.0 }
 0x83a   : > { %v9014_v12 = vmul.f32 4.0, %v15426_v48  ;;  %v9110_v13 = vadd.f32 %v15426_v48, %v9078_v37  ;;  %v9012_v38 = vmul.f32 4.0, %v15429_v26  ;;  %v9108_v51 = vadd.f32 %v15429_v26, %v9076_v53 }
 0x83b   : > { %v15436_v2 = vsel %vm8919_vm3, 1.0, %v15893_v9  ;;  %v15439_v11 = vsel %vm8917_vm8, 1.0, %v15893_v9  ;;  %v9770_v28 = vadd.f32 %v9686_v36, %v9490_v22  ;;  %v9488_v35 = vmul.f32 4.0, %v9456_v39 }
 0x83c   : > { %v9046_v59 = vsub.f32 %v8886_v58, %v9014_v12  ;;  %vm9174_vm9 = vcmp.gt.f32.partialorder %v9110_v13, 0.0  ;;  %v9044_v15 = vsub.f32 %v8884_v1, %v9012_v38  ;;  %vm9172_vm12 = vcmp.gt.f32.partialorder %v9108_v51, 0.0 }
 0x83d   : > { %v9015_v46 = vmul.f32 4.0, %v15436_v2  ;;  %v9111_v25 = vadd.f32 %v15436_v2, %v9079_v47  ;;  %v9013_v4 = vmul.f32 4.0, %v15439_v11  ;;  %v9109_v57 = vadd.f32 %v15439_v11, %v9077_v23  ;;  %9802 = vst.msk [vmem:[%s11543_s19 + $0x70] sm:$0xff] %vm3571_vm11, %v9770_v28  ;;  %v8856_v23 = vld [vmem:[#allocation8 + $0xa0] sm:$0xff]  ;;  %v8859_v28 = vld [vmem:[#allocation8 + $0xb8] sm:$0xff] }
 0x83e   : > { %vm9142_vm13 = vcmp.le.f32.partialorder %v9046_v59, -0.001  ;;  %vm9140_vm14 = vcmp.le.f32.partialorder %v9044_v15, -0.001  ;;  %v9768_v27 = vadd.f32 %v9678_v18, %v9488_v35  ;;  %v9459_v63 = vsub.f32 %v15342_v62, %v15386_v40  ;;  %v8858_v18 = vld [vmem:[#allocation8 + $0xb0] sm:$0xff]  ;;  %v8857_v35 = vld [vmem:[#allocation8 + $0xa8] sm:$0xff] }
 0x83f   : > { %vm9206_vm15 = vmand %vm9142_vm13, %vm9174_vm9  ;;  %v9047_v54 = vsub.f32 %v8887_v31, %v9015_v46  ;;  %vm9175_vm5 = vcmp.gt.f32.partialorder %v9111_v25, 0.0  ;;  %v9045_v44 = vsub.f32 %v8885_v61, %v9013_v4  ;;  %vm9173_vm0 = vcmp.gt.f32.partialorder %v9109_v57, 0.0 }
 0x840   : > { %v10164_v45 = vsel %vm9206_vm15, 1.0, %v15893_v9  ;;  %vm9204_vm4 = vmand %vm9140_vm14, %vm9172_vm12  ;;  %9800 = vst.msk [vmem:[%s11543_s19 + $0x60] sm:$0xff] %vm3571_vm11, %v9768_v27  ;;  %v9491_v19 = vmul.f32 4.0, %v9459_v63  ;;  %v9689_v30 = vadd.f32 %v15128_v34, %v14994_v17  ;;  %v9457_v58 = vsub.f32 %v15355_v10, %v15391_v50  ;;  %v16064_v50 = vld [vmem:[#allocation46_spill] sm:$0xff]  ;;  %v16068_v27 = vld [vmem:[#allocation31_spill] sm:$0xff] }
 0x841   : > { %v9302_v1 = vmul.f32 4.0, %v10164_v45  ;;  %v9398_v62 = vsub.f32 %v9110_v13, %v10164_v45  ;;  %v15458_v40 = vsel %vm9204_vm4, 1.0, %v15893_v9  ;;  %vm9143_vm6 = vcmp.le.f32.partialorder %v9047_v54, -0.001 }
 0x842   : > { %v9300_v14 = vmul.f32 4.0, %v15458_v40  ;;  %v9396_v36 = vsub.f32 %v9108_v51, %v15458_v40  ;;  %vm9207_vm7 = vmand %vm9143_vm6, %vm9175_vm5  ;;  %vm9141_vm10 = vcmp.le.f32.partialorder %v9045_v44, -0.001  ;;  %v9771_v8 = vadd.f32 %v9689_v30, %v9491_v19  ;;  %v16065_v51 = vld [vmem:[#allocation27_spill] sm:$0xff] }
 0x843   : > { %v9334_v37 = vadd.f32 %v9302_v1, %v9046_v59  ;;  %9430 = vst.msk [vmem:[#allocation9 + $0x90] sm:$0xff] %vm3571_vm11, %v9398_v62  ;;  %v15465_v34 = vsel %vm9207_vm7, 1.0, %v15893_v9  ;;  %vm9205_vm1 = vmand %vm9141_vm10, %vm9173_vm0  ;;  %v9489_v10 = vmul.f32 4.0, %v9457_v58  ;;  %v9681_v53 = vadd.f32 %v14994_v17, %v16064_v50  ;;  %v9083_v1 = vld [vmem:[#allocation9 + $0xb8] sm:$0xff] }
 0x844   : > { %v9332_v31 = vadd.f32 %v9300_v14, %v9044_v15  ;;  %9428 = vst.msk [vmem:[#allocation9 + $0x80] sm:$0xff] %vm3571_vm11, %v9396_v36  ;;  %v9303_v61 = vmul.f32 4.0, %v15465_v34  ;;  %v9399_v39 = vsub.f32 %v9111_v25, %v15465_v34  ;;  %v15474_v22 = vsel %vm9205_vm1, 1.0, %v15893_v9  ;;  %9803 = vst.msk [vmem:[%s11543_s19 + $0x78] sm:$0xff] %vm3571_vm11, %v9771_v8  ;;  %v16066_v15 = vld [vmem:[#allocation29_spill] sm:$0xff] }
 0x845   : > { %9366 = vst.msk [vmem:[#allocation8 + $0x90] sm:$0xff] %vm3571_vm11, %v9334_v37  ;;  %v9301_v12 = vmul.f32 4.0, %v15474_v22  ;;  %v9397_v13 = vsub.f32 %v9109_v57, %v15474_v22  ;;  %v9769_v38 = vadd.f32 %v9681_v53, %v9489_v10  ;;  %v8798_v47 = vadd.f32 %v15231_v16, %v16065_v51  ;;  %v16067_v25 = vld [vmem:[#allocation33_spill] sm:$0xff] }
 0x846   : > { %9364 = vst.msk [vmem:[#allocation8 + $0x80] sm:$0xff] %vm3571_vm11, %v9332_v31  ;;  %v9335_v59 = vadd.f32 %v9303_v61, %v9047_v54  ;;  %9431 = vst.msk [vmem:[#allocation9 + $0x98] sm:$0xff] %vm3571_vm11, %v9399_v39  ;;  %v8790_v46 = vadd.f32 %v15244_v33, %v16066_v15  ;;  %v8801_v4 = vadd.f32 %v15251_v43, %v16067_v25  ;;  %v9082_v33 = vld [vmem:[#allocation9 + $0xb0] sm:$0xff] }
 0x847   : > { %v8793_v57 = vadd.f32 %v15261_v6, %v16068_v27  ;;  %v9333_v63 = vadd.f32 %v9301_v12, %v9045_v44  ;;  %9429 = vst.msk [vmem:[#allocation9 + $0x88] sm:$0xff] %vm3571_vm11, %v9397_v13  ;;  %9801 = vst.msk [vmem:[%s11543_s19 + $0x68] sm:$0xff] %vm3571_vm11, %v9769_v38  ;;  %v8890_v16 = vadd.f32 %v8858_v18, %v8798_v47  ;;  %v9080_v44 = vld [vmem:[#allocation9 + $0xa0] sm:$0xff] }
 0x848   : > { %v9462_v19 = vsub.f32 %v15426_v48, %v10164_v45  ;;  %v9702_v54 = vadd.f32 %v15168_v49, %v14994_v17  ;;  %9367 = vst.msk [vmem:[#allocation8 + $0x98] sm:$0xff] %vm3571_vm11, %v9335_v59  ;;  %v8888_v30 = vadd.f32 %v8856_v23, %v8790_v46  ;;  %v8891_v58 = vadd.f32 %v8859_v28, %v8801_v4  ;;  %v15504_v48 = vld [vmem:[%s16051_s3] ss:$0 sm:$0xff] }
 0x849   : > { %v8889_v43 = vadd.f32 %v8857_v35, %v8793_v57  ;;  %v9460_v6 = vsub.f32 %v15429_v26, %v15458_v40  ;;  %9365 = vst.msk [vmem:[#allocation8 + $0x88] sm:$0xff] %vm3571_vm11, %v9333_v63  ;;  %vm8922_vm2 = vcmp.ge.f32.partialorder %v8890_v16, 4.0  ;;  %v9694_v17 = vadd.f32 %v15504_v48, %v15173_v7 }
 0x84a   : > { %v9494_v62 = vmul.f32 4.0, %v9462_v19  ;;  %v9463_v49 = vsub.f32 %v15436_v2, %v15465_v34  ;;  %v15511_v45 = vsel %vm8922_vm2, 1.0, %v15893_v9  ;;  %vm8920_vm3 = vcmp.ge.f32.partialorder %v8888_v30, 4.0  ;;  %v9081_v34 = vld [vmem:[#allocation9 + $0xa8] sm:$0xff] }
 0x84b   : > { %vm8923_vm8 = vcmp.ge.f32.partialorder %v8891_v58, 4.0  ;;  %vm8921_vm9 = vcmp.ge.f32.partialorder %v8889_v43, 4.0  ;;  %v9018_v26 = vmul.f32 4.0, %v15511_v45  ;;  %v9114_v40 = vadd.f32 %v15511_v45, %v9082_v33  ;;  %v16069_v33 = vld [vmem:[#allocation43_spill] sm:$0xff] }
 0x84c   : > { %v15516_v14 = vsel %vm8920_vm3, 1.0, %v15893_v9  ;;  %v15519_v36 = vsel %vm8923_vm8, 1.0, %v15893_v9  ;;  %v15526_v50 = vsel %vm8921_vm9, 1.0, %v15893_v9  ;;  %v9774_v53 = vadd.f32 %v9702_v54, %v9494_v62  ;;  %v8863_v62 = vld [vmem:[#allocation8 + $0xd8] sm:$0xff] }
 0x84d   : > { %v9016_v7 = vmul.f32 4.0, %v15516_v14  ;;  %v9112_v2 = vadd.f32 %v15516_v14, %v9080_v44  ;;  %v9019_v8 = vmul.f32 4.0, %v15519_v36  ;;  %v9115_v37 = vadd.f32 %v15519_v36, %v9083_v1  ;;  %v8860_v1 = vld [vmem:[#allocation8 + $0xc0] sm:$0xff] }
 0x84e   : > { %v9050_v10 = vsub.f32 %v8890_v16, %v9018_v26  ;;  %vm9178_vm12 = vcmp.gt.f32.partialorder %v9114_v40, 0.0  ;;  %v9017_v39 = vmul.f32 4.0, %v15526_v50  ;;  %v9113_v18 = vadd.f32 %v15526_v50, %v9081_v34  ;;  %9806 = vst.msk [vmem:[%s11543_s19 + $0x90] sm:$0xff] %vm3571_vm11, %v9774_v53  ;;  %v8862_v16 = vld [vmem:[#allocation8 + $0xd0] sm:$0xff]  ;;  %v16071_v26 = vld [vmem:[#allocation37_spill] sm:$0xff] }
 0x84f   : > { %v9048_v31 = vsub.f32 %v8888_v30, %v9016_v7  ;;  %vm9176_vm13 = vcmp.gt.f32.partialorder %v9112_v2, 0.0  ;;  %v9051_v61 = vsub.f32 %v8891_v58, %v9019_v8  ;;  %vm9179_vm14 = vcmp.gt.f32.partialorder %v9115_v37, 0.0  ;;  %v16070_v58 = vld [vmem:[#allocation30_spill] sm:$0xff] }
 0x850   : > { %vm9146_vm15 = vcmp.le.f32.partialorder %v9050_v10, -0.001  ;;  %v9492_v12 = vmul.f32 4.0, %v9460_v6  ;;  %v9495_v13 = vmul.f32 4.0, %v9463_v49  ;;  %v9705_v38 = vadd.f32 %v15504_v48, %v15185_v41 }
 0x851   : > { %vm9210_vm5 = vmand %vm9146_vm15, %vm9178_vm12  ;;  %vm9144_vm0 = vcmp.le.f32.partialorder %v9048_v31, -0.001  ;;  %vm9147_vm4 = vcmp.le.f32.partialorder %v9051_v61, -0.001  ;;  %v9049_v47 = vsub.f32 %v8889_v43, %v9017_v39  ;;  %vm9177_vm7 = vcmp.gt.f32.partialorder %v9113_v18, 0.0 }
 0x852   : > { %v10168_v51 = vsel %vm9210_vm5, 1.0, %v15893_v9  ;;  %vm9208_vm6 = vmand %vm9144_vm0, %vm9176_vm13  ;;  %v9772_v23 = vadd.f32 %v9694_v17, %v9492_v12  ;;  %v9775_v15 = vadd.f32 %v9705_v38, %v9495_v13  ;;  %v9461_v63 = vsub.f32 %v15439_v11, %v15474_v22  ;;  %v8861_v17 = vld [vmem:[#allocation8 + $0xc8] sm:$0xff] }
 0x853   : > { %v9306_v28 = vmul.f32 4.0, %v10168_v51  ;;  %v9402_v35 = vsub.f32 %v9114_v40, %v10168_v51  ;;  %v15536_v59 = vsel %vm9208_vm6, 1.0, %v15893_v9  ;;  %vm9211_vm10 = vmand %vm9147_vm4, %vm9179_vm14  ;;  %vm9145_vm1 = vcmp.le.f32.partialorder %v9049_v47, -0.001  ;;  %v16072_v40 = vld [vmem:[#allocation36_spill] sm:$0xff] }
 0x854   : > { %v9304_v46 = vmul.f32 4.0, %v15536_v59  ;;  %v9400_v25 = vsub.f32 %v9112_v2, %v15536_v59  ;;  %v15542_v41 = vsel %vm9211_vm10, 1.0, %v15893_v9  ;;  %9804 = vst.msk [vmem:[%s11543_s19 + $0x80] sm:$0xff] %vm3571_vm11, %v9772_v23  ;;  %vm9209_vm2 = vmand %vm9145_vm1, %vm9177_vm7  ;;  %v9697_v30 = vadd.f32 %v15504_v48, %v16069_v33  ;;  %v16073_v2 = vld [vmem:[#allocation38_spill] sm:$0xff]  ;;  %v9087_v23 = vld [vmem:[#allocation9 + $0xd8] sm:$0xff] }
 0x855   : > { %v9338_v4 = vadd.f32 %v9306_v28, %v9050_v10  ;;  %9434 = vst.msk [vmem:[#allocation9 + $0xb0] sm:$0xff] %vm3571_vm11, %v9402_v35  ;;  %v9307_v27 = vmul.f32 4.0, %v15542_v41  ;;  %v9403_v57 = vsub.f32 %v9115_v37, %v15542_v41  ;;  %9807 = vst.msk [vmem:[%s11543_s19 + $0x98] sm:$0xff] %vm3571_vm11, %v9775_v15  ;;  %v15556_v54 = vsel %vm9209_vm2, 1.0, %v15893_v9  ;;  %v9086_v10 = vld [vmem:[#allocation9 + $0xd0] sm:$0xff] }
 0x856   : > { %v9336_v19 = vadd.f32 %v9304_v46, %v9048_v31  ;;  %9432 = vst.msk [vmem:[#allocation9 + $0xa0] sm:$0xff] %vm3571_vm11, %v9400_v25  ;;  %v8814_v43 = vadd.f32 %v15293_v55, %v16070_v58  ;;  %v9305_v11 = vmul.f32 4.0, %v15556_v54  ;;  %v9401_v22 = vsub.f32 %v9113_v18, %v15556_v54  ;;  %v16074_v31 = vld [vmem:[#allocation45_spill] sm:$0xff] }
 0x857   : > { %9370 = vst.msk [vmem:[#allocation8 + $0xb0] sm:$0xff] %vm3571_vm11, %v9338_v4  ;;  %v9339_v6 = vadd.f32 %v9307_v27, %v9051_v61  ;;  %9435 = vst.msk [vmem:[#allocation9 + $0xb8] sm:$0xff] %vm3571_vm11, %v9403_v57  ;;  %v9493_v44 = vmul.f32 4.0, %v9461_v63  ;;  %v8806_v55 = vadd.f32 %v15302_v32, %v16071_v26  ;;  %v8817_v7 = vadd.f32 %v15313_v52, %v16072_v40  ;;  %v9085_v25 = vld [vmem:[#allocation9 + $0xc8] sm:$0xff] }
 0x858   : > { %9368 = vst.msk [vmem:[#allocation8 + $0xa0] sm:$0xff] %vm3571_vm11, %v9336_v19  ;;  %v8894_v49 = vadd.f32 %v8862_v16, %v8814_v43  ;;  %v8809_v8 = vadd.f32 %v15322_v29, %v16073_v2  ;;  %v9337_v37 = vadd.f32 %v9305_v11, %v9049_v47  ;;  %9433 = vst.msk [vmem:[#allocation9 + $0xa8] sm:$0xff] %vm3571_vm11, %v9401_v22  ;;  %v9084_v29 = vld [vmem:[#allocation9 + $0xc0] sm:$0xff] }
 0x859   : > { %9371 = vst.msk [vmem:[#allocation8 + $0xb8] sm:$0xff] %vm3571_vm11, %v9339_v6  ;;  %v9773_v34 = vadd.f32 %v9697_v30, %v9493_v44  ;;  %v9466_v53 = vsub.f32 %v15511_v45, %v10168_v51  ;;  %v9718_v61 = vadd.f32 %v15504_v48, %v16074_v31  ;;  %v8892_v32 = vadd.f32 %v8860_v1, %v8806_v55  ;;  %v16075_v45 = vld [vmem:[#allocation48_spill] sm:$0xff]  ;;  %v8866_v31 = vld [vmem:[#allocation8 + $0xf0] sm:$0xff] }
 0x85a   : > { %vm8926_vm3 = vcmp.ge.f32.partialorder %v8894_v49, 4.0  ;;  %v8895_v39 = vadd.f32 %v8863_v62, %v8817_v7  ;;  %v8893_v18 = vadd.f32 %v8861_v17, %v8809_v8  ;;  %9369 = vst.msk [vmem:[#allocation8 + $0xa8] sm:$0xff] %vm3571_vm11, %v9337_v37  ;;  %v9464_v13 = vsub.f32 %v15516_v14, %v15536_v59  ;;  %v16076_v17 = vld [vmem:[#allocation50_spill] sm:$0xff] }
 0x85b   : > { %9805 = vst.msk [vmem:[%s11543_s19 + $0x88] sm:$0xff] %vm3571_vm11, %v9773_v34  ;;  %v15582_v52 = vsel %vm8926_vm3, 1.0, %v15893_v9  ;;  %v9498_v12 = vmul.f32 4.0, %v9466_v53  ;;  %v9710_v38 = vadd.f32 %v15504_v48, %v16075_v45  ;;  %vm8924_vm8 = vcmp.ge.f32.partialorder %v8892_v32, 4.0 }
 0x85c   : > { %v9022_v51 = vmul.f32 4.0, %v15582_v52  ;;  %v9118_v47 = vadd.f32 %v15582_v52, %v9086_v10  ;;  %vm8927_vm9 = vcmp.ge.f32.partialorder %v8895_v39, 4.0  ;;  %v15591_v28 = vsel %vm8924_vm8, 1.0, %v15893_v9 }
 0x85d   : > { %v15594_v35 = vsel %vm8927_vm9, 1.0, %v15893_v9  ;;  %vm8925_vm12 = vcmp.ge.f32.partialorder %v8893_v18, 4.0  ;;  %v9778_v15 = vadd.f32 %v9718_v61, %v9498_v12  ;;  %v9020_v59 = vmul.f32 4.0, %v15591_v28  ;;  %v8864_v61 = vld [vmem:[#allocation8 + $0xe0] sm:$0xff] }
 0x85e   : > { %v9054_v14 = vsub.f32 %v8894_v49, %v9022_v51  ;;  %vm9182_vm13 = vcmp.gt.f32.partialorder %v9118_v47, 0.0  ;;  %v9116_v46 = vadd.f32 %v15591_v28, %v9084_v29  ;;  %v9023_v4 = vmul.f32 4.0, %v15594_v35  ;;  %v16078_v29 = vld [vmem:[#allocation41_spill] sm:$0xff]  ;;  %v16081_v51 = vld [vmem:[#allocation39_spill] sm:$0xff] }
 0x85f   : > { %v9119_v27 = vadd.f32 %v15594_v35, %v9087_v23  ;;  %v15601_v57 = vsel %vm8925_vm12, 1.0, %v15893_v9  ;;  %9810 = vst.msk [vmem:[%s11543_s19 + $0xb0] sm:$0xff] %vm3571_vm11, %v9778_v15  ;;  %v9496_v63 = vmul.f32 4.0, %v9464_v13  ;;  %v9052_v16 = vsub.f32 %v8892_v32, %v9020_v59  ;;  %v16079_v13 = vld [vmem:[#allocation44_spill] sm:$0xff]  ;;  %v16083_v15 = vld [vmem:[#allocation55_spill] sm:$0xff] }
 0x860   : > { %vm9150_vm14 = vcmp.le.f32.partialorder %v9054_v14, -0.001  ;;  %vm9180_vm15 = vcmp.gt.f32.partialorder %v9116_v46, 0.0  ;;  %v9021_v19 = vmul.f32 4.0, %v15601_v57  ;;  %v9055_v33 = vsub.f32 %v8895_v39, %v9023_v4  ;;  %v16077_v39 = vld [vmem:[#allocation47_spill] sm:$0xff]  ;;  %v16082_v23 = vld [vmem:[#allocation40_spill] sm:$0xff] }
 0x861   : > { %vm9214_vm5 = vmand %vm9150_vm14, %vm9182_vm13  ;;  %vm9183_vm0 = vcmp.gt.f32.partialorder %v9119_v27, 0.0  ;;  %v9117_v30 = vadd.f32 %v15601_v57, %v9085_v25  ;;  %v9776_v58 = vadd.f32 %v9710_v38, %v9496_v63  ;;  %vm9148_vm4 = vcmp.le.f32.partialorder %v9052_v16, -0.001  ;;  %v8865_v25 = vld [vmem:[#allocation8 + $0xe8] sm:$0xff]  ;;  %v9090_v63 = vld [vmem:[#allocation9 + $0xf0] sm:$0xff] }
 0x862   : > { %v10172_v43 = vsel %vm9214_vm5, 1.0, %v15893_v9  ;;  %v9053_v6 = vsub.f32 %v8893_v18, %v9021_v19  ;;  %v9467_v11 = vsub.f32 %v15519_v36, %v15542_v41  ;;  %vm9212_vm6 = vmand %vm9148_vm4, %vm9180_vm15  ;;  %vm9151_vm7 = vcmp.le.f32.partialorder %v9055_v33, -0.001 }
 0x863   : > { %v9310_v22 = vmul.f32 4.0, %v10172_v43  ;;  %v9406_v44 = vsub.f32 %v9118_v47, %v10172_v43  ;;  %vm9181_vm10 = vcmp.gt.f32.partialorder %v9117_v30, 0.0  ;;  %9808 = vst.msk [vmem:[%s11543_s19 + $0xa0] sm:$0xff] %vm3571_vm11, %v9776_v58  ;;  %v15613_v1 = vsel %vm9212_vm6, 1.0, %v15893_v9  ;;  %vm9215_vm1 = vmand %vm9151_vm7, %vm9183_vm0 }
 0x864   : > { %vm9149_vm2 = vcmp.le.f32.partialorder %v9053_v6, -0.001  ;;  %v9499_v62 = vmul.f32 4.0, %v9467_v11  ;;  %v9721_v49 = vadd.f32 %v15504_v48, %v16076_v17  ;;  %v9308_v36 = vmul.f32 4.0, %v15613_v1 }
 0x865   : > { %v9342_v26 = vadd.f32 %v9310_v22, %v9054_v14  ;;  %9438 = vst.msk [vmem:[#allocation9 + $0xd0] sm:$0xff] %vm3571_vm11, %v9406_v44  ;;  %v9404_v41 = vsub.f32 %v9116_v46, %v15613_v1  ;;  %v15621_v55 = vsel %vm9215_vm1, 1.0, %v15893_v9  ;;  %vm9213_vm3 = vmand %vm9149_vm2, %vm9181_vm10  ;;  %v9465_v53 = vsub.f32 %v15526_v50, %v15556_v54  ;;  %v16080_v54 = vld [vmem:[#allocation42_spill] sm:$0xff] }
 0x866   : > { %v9311_v40 = vmul.f32 4.0, %v15621_v55  ;;  %v9407_v7 = vsub.f32 %v9119_v27, %v15621_v55  ;;  %v15626_v2 = vsel %vm9213_vm3, 1.0, %v15893_v9  ;;  %v9779_v8 = vadd.f32 %v9721_v49, %v9499_v62  ;;  %v9089_v49 = vld [vmem:[#allocation9 + $0xe8] sm:$0xff] }
 0x867   : > { %9374 = vst.msk [vmem:[#allocation8 + $0xd0] sm:$0xff] %vm3571_vm11, %v9342_v26  ;;  %v9340_v37 = vadd.f32 %v9308_v36, %v9052_v16  ;;  %9436 = vst.msk [vmem:[#allocation9 + $0xc0] sm:$0xff] %vm3571_vm11, %v9404_v41  ;;  %v9309_v34 = vmul.f32 4.0, %v15626_v2  ;;  %v9405_v10 = vsub.f32 %v9117_v30, %v15626_v2  ;;  %v9713_v18 = vadd.f32 %v15504_v48, %v16077_v39  ;;  %v9088_v16 = vld [vmem:[#allocation9 + $0xe0] sm:$0xff] }
 0x868   : > { %v9343_v32 = vadd.f32 %v9311_v40, %v9055_v33  ;;  %9439 = vst.msk [vmem:[#allocation9 + $0xd8] sm:$0xff] %vm3571_vm11, %v9407_v7  ;;  %9811 = vst.msk [vmem:[%s11543_s19 + $0xb8] sm:$0xff] %vm3571_vm11, %v9779_v8  ;;  %v8830_v12 = vadd.f32 %v15348_v42, %v16078_v29  ;;  %v8822_v45 = vadd.f32 %v15359_v56, %v16079_v13  ;;  %v9497_v50 = vmul.f32 4.0, %v9465_v53  ;;  %v8867_v42 = vld [vmem:[#allocation8 + $0xf8] sm:$0xff] }
 0x869   : > { %9372 = vst.msk [vmem:[#allocation8 + $0xc0] sm:$0xff] %vm3571_vm11, %v9340_v37  ;;  %v9341_v38 = vadd.f32 %v9309_v34, %v9053_v6  ;;  %9437 = vst.msk [vmem:[#allocation9 + $0xc8] sm:$0xff] %vm3571_vm11, %v9405_v10  ;;  %v8672_v47 = vadd.f32 %v16081_v51, %v16080_v54  ;;  %v8664_v14 = vadd.f32 %v16083_v15, %v16082_v23 }
 0x86a   : > { %9375 = vst.msk [vmem:[#allocation8 + $0xd8] sm:$0xff] %vm3571_vm11, %v9343_v32  ;;  %v8898_v59 = vadd.f32 %v8866_v31, %v8830_v12  ;;  %v8896_v46 = vadd.f32 %v8864_v61, %v8822_v45  ;;  %v9470_v56 = vsub.f32 %v15582_v52, %v10172_v43  ;;  %v9734_v4 = vadd.f32 %v15504_v48, %v15277_v5 }
 0x86b   : > { %9373 = vst.msk [vmem:[#allocation8 + $0xc8] sm:$0xff] %vm3571_vm11, %v9341_v38  ;;  %v9777_v27 = vadd.f32 %v9713_v18, %v9497_v50  ;;  %v8833_v19 = vadd.f32 %v15364_v3, %v8672_v47  ;;  %v8825_v33 = vadd.f32 %v15368_v0, %v8664_v14  ;;  %v9468_v30 = vsub.f32 %v15591_v28, %v15613_v1 }
 0x86c   : > { %vm8930_vm8 = vcmp.ge.f32.partialorder %v8898_v59, 4.0  ;;  %vm8928_vm9 = vcmp.ge.f32.partialorder %v8896_v46, 4.0  ;;  %v9502_v58 = vmul.f32 4.0, %v9470_v56  ;;  %v9726_v52 = vadd.f32 %v15504_v48, %v15282_v20  ;;  %v9091_v20 = vld [vmem:[#allocation9 + $0xf8] sm:$0xff] }
 0x86d   : > { %9809 = vst.msk [vmem:[%s11543_s19 + $0xa8] sm:$0xff] %vm3571_vm11, %v9777_v27  ;;  %v15663_v5 = vsel %vm8930_vm8, 1.0, %v15893_v9  ;;  %v15666_v43 = vsel %vm8928_vm9, 1.0, %v15893_v9  ;;  %v8899_v3 = vadd.f32 %v8867_v42, %v8833_v19  ;;  %v8897_v6 = vadd.f32 %v8865_v25, %v8825_v33  ;;  %v16084_v42 = vld [vmem:[#allocation49_spill] sm:$0xff]  ;;  %v16085_v19 = vld [vmem:[#allocation52_spill] sm:$0xff] }
 0x86e   : > { %v9026_v0 = vmul.f32 4.0, %v15663_v5  ;;  %v9122_v28 = vadd.f32 %v15663_v5, %v9090_v63  ;;  %v9024_v11 = vmul.f32 4.0, %v15666_v43  ;;  %v9120_v22 = vadd.f32 %v15666_v43, %v9088_v16 }
 0x86f   : > { %vm8931_vm12 = vcmp.ge.f32.partialorder %v8899_v3, 4.0  ;;  %vm8929_vm13 = vcmp.ge.f32.partialorder %v8897_v6, 4.0  ;;  %v9782_v44 = vadd.f32 %v9734_v4, %v9502_v58  ;;  %v9500_v1 = vmul.f32 4.0, %v9468_v30  ;;  %v16086_v58 = vld [vmem:[#allocation54_spill] sm:$0xff] }
 0x870   : > { %v9058_v62 = vsub.f32 %v8898_v59, %v9026_v0  ;;  %vm9186_vm14 = vcmp.gt.f32.partialorder %v9122_v28, 0.0  ;;  %v9056_v17 = vsub.f32 %v8896_v46, %v9024_v11  ;;  %vm9184_vm15 = vcmp.gt.f32.partialorder %v9120_v22, 0.0 }
 0x871   : > { %v15673_v26 = vsel %vm8931_vm12, 1.0, %v15893_v9  ;;  %v15676_v36 = vsel %vm8929_vm13, 1.0, %v15893_v9  ;;  %9814 = vst.msk [vmem:[%s11543_s19 + $0xd0] sm:$0xff] %vm3571_vm11, %v9782_v44  ;;  %v9780_v41 = vadd.f32 %v9726_v52, %v9500_v1  ;;  %v9471_v40 = vsub.f32 %v15594_v35, %v15621_v55 }
 0x872   : > { %vm9154_vm5 = vcmp.le.f32.partialorder %v9058_v62, -0.001  ;;  %vm9152_vm0 = vcmp.le.f32.partialorder %v9056_v17, -0.001  ;;  %v9027_v7 = vmul.f32 4.0, %v15673_v26  ;;  %v9123_v8 = vadd.f32 %v15673_v26, %v9091_v20 }
 0x873   : > { %vm9218_vm4 = vmand %vm9154_vm5, %vm9186_vm14  ;;  %v9025_v37 = vmul.f32 4.0, %v15676_v36  ;;  %v9121_v34 = vadd.f32 %v15676_v36, %v9089_v49  ;;  %9812 = vst.msk [vmem:[%s11543_s19 + $0xc0] sm:$0xff] %vm3571_vm11, %v9780_v41  ;;  %v9503_v10 = vmul.f32 4.0, %v9471_v40  ;;  %v9737_v53 = vadd.f32 %v15504_v48, %v15295_v60 }
 0x874   : > { %v10176_v35 = vsel %vm9218_vm4, 1.0, %v15893_v9  ;;  %vm9216_vm6 = vmand %vm9152_vm0, %vm9184_vm15  ;;  %v9059_v55 = vsub.f32 %v8899_v3, %v9027_v7  ;;  %vm9187_vm7 = vcmp.gt.f32.partialorder %v9123_v8, 0.0  ;;  %v9469_v31 = vsub.f32 %v15601_v57, %v15626_v2 }
 0x875   : > { %v9314_v61 = vmul.f32 4.0, %v10176_v35  ;;  %v9410_v32 = vsub.f32 %v9122_v28, %v10176_v35  ;;  %v10174_v39 = vsel %vm9216_vm6, 1.0, %v15893_v9  ;;  %v9057_v18 = vsub.f32 %v8897_v6, %v9025_v37 }
 0x876   : > { %v9312_v29 = vmul.f32 4.0, %v10174_v39  ;;  %v9408_v12 = vsub.f32 %v9120_v22, %v10174_v39  ;;  %vm9155_vm10 = vcmp.le.f32.partialorder %v9059_v55, -0.001  ;;  %vm9185_vm1 = vcmp.gt.f32.partialorder %v9121_v34, 0.0 }
 0x877   : > { %v9346_v60 = vadd.f32 %v9314_v61, %v9058_v62  ;;  %9442 = vst.msk [vmem:[#allocation9 + $0xf0] sm:$0xff] %vm3571_vm11, %v9410_v32  ;;  %vm9219_vm2 = vmand %vm9155_vm10, %vm9187_vm7  ;;  %vm9153_vm3 = vcmp.le.f32.partialorder %v9057_v18, -0.001  ;;  %v9783_v13 = vadd.f32 %v9737_v53, %v9503_v10  ;;  %v9501_v45 = vmul.f32 4.0, %v9469_v31 }
 0x878   : > { %v9344_v57 = vadd.f32 %v9312_v29, %v9056_v17  ;;  %9440 = vst.msk [vmem:[#allocation9 + $0xe0] sm:$0xff] %vm3571_vm11, %v9408_v12  ;;  %v10177_v2 = vsel %vm9219_vm2, 1.0, %v15893_v9  ;;  %vm9217_vm8 = vmand %vm9153_vm3, %vm9185_vm1  ;;  %v9729_v38 = vadd.f32 %v15504_v48, %v15304_v21  ;;  %v9474_v50 = vsub.f32 %v15663_v5, %v10176_v35 }
 0x879   : > { %9378 = vst.msk [vmem:[#allocation8 + $0xf0] sm:$0xff] %vm3571_vm11, %v9346_v60  ;;  %v9315_v54 = vmul.f32 4.0, %v10177_v2  ;;  %v9411_v51 = vsub.f32 %v9123_v8, %v10177_v2  ;;  %v10175_v47 = vsel %vm9217_vm8, 1.0, %v15893_v9  ;;  %9815 = vst.msk [vmem:[%s11543_s19 + $0xd8] sm:$0xff] %vm3571_vm11, %v9783_v13  ;;  %v9750_v23 = vadd.f32 %v15504_v48, %v15336_v24 }
 0x87a   : > { %9376 = vst.msk [vmem:[#allocation8 + $0xe0] sm:$0xff] %vm3571_vm11, %v9344_v57  ;;  %v9313_v15 = vmul.f32 4.0, %v10175_v47  ;;  %v9409_v14 = vsub.f32 %v9121_v34, %v10175_v47  ;;  %v9781_v21 = vadd.f32 %v9729_v38, %v9501_v45  ;;  %v9506_v59 = vmul.f32 4.0, %v9474_v50 }
 0x87b   : > { %v9347_v46 = vadd.f32 %v9315_v54, %v9059_v55  ;;  %9443 = vst.msk [vmem:[#allocation9 + $0xf8] sm:$0xff] %vm3571_vm11, %v9411_v51  ;;  %v9472_v9 = vsub.f32 %v15666_v43, %v10174_v39  ;;  %v9742_v25 = vadd.f32 %v15504_v48, %v16084_v42  ;;  %v9475_v56 = vsub.f32 %v15673_v26, %v10177_v2 }
 0x87c   : > { %v9345_v24 = vadd.f32 %v9313_v15, %v9057_v18  ;;  %9441 = vst.msk [vmem:[#allocation9 + $0xe8] sm:$0xff] %vm3571_vm11, %v9409_v14  ;;  %9813 = vst.msk [vmem:[%s11543_s19 + $0xc8] sm:$0xff] %vm3571_vm11, %v9781_v21  ;;  %v9786_v4 = vadd.f32 %v9750_v23, %v9506_v59  ;;  %v9473_v27 = vsub.f32 %v15676_v36, %v10175_v47 }
 0x87d   : > { %9379 = vst.msk [vmem:[#allocation8 + $0xf8] sm:$0xff] %vm3571_vm11, %v9347_v46  ;;  %v9504_v63 = vmul.f32 4.0, %v9472_v9  ;;  %v9507_v16 = vmul.f32 4.0, %v9475_v56  ;;  %v9753_v33 = vadd.f32 %v15504_v48, %v16085_v19  ;;  %v9745_v52 = vadd.f32 %v15504_v48, %v16086_v58 }
 0x87e   : > { %9377 = vst.msk [vmem:[#allocation8 + $0xe8] sm:$0xff] %vm3571_vm11, %v9345_v24  ;;  %9818 = vst.msk [vmem:[%s11543_s19 + $0xf0] sm:$0xff] %vm3571_vm11, %v9786_v4  ;;  %v9505_v30 = vmul.f32 4.0, %v9473_v27 }
 0x87f   : > { %v9784_v5 = vadd.f32 %v9742_v25, %v9504_v63  ;;  %v9787_v43 = vadd.f32 %v9753_v33, %v9507_v16 }
 0x880   : > { %v9785_v3 = vadd.f32 %v9745_v52, %v9505_v30 }
 0x881   : > { %9816 = vst.msk [vmem:[%s11543_s19 + $0xe0] sm:$0xff] %vm3571_vm11, %v9784_v5  ;;  %9819 = vst.msk [vmem:[%s11543_s19 + $0xf8] sm:$0xff] %vm3571_vm11, %v9787_v43 }
 0x882   : > { %9817 = vst.msk [vmem:[%s11543_s19 + $0xe8] sm:$0xff] %vm3571_vm11, %v9785_v3 }
 0x883   : > { %11213 = shalt.err (!%p11210_p6)
}
 0x884   : > { %s11214_s19 = scalar_lea.hbm %s15733_s12, 4096  ;;  %s11218_s29 = scalar_lea.hbm %s16087_s11, 24576 }
 0x885   : > { %p11215_p7 = scmp.ne.s32.totalorder %s15733_s12, %s11214_s19  ;;  %p11219_p10 = scmp.lt.u32.totalorder %s15733_s12, %s16087_s11 }
 0x886   : > { %p11220_p9 = scmp.lt.u32.totalorder %s11218_s29, %s11214_s19  ;;  %p11222_p8 = scmp.lt.u32.totalorder %s11214_s19, %s15733_s12 }
 0x887   : > { %p11216_p2 = pnand %p11215_p7, %p16088_p0 }
 0x888   : > { %p11221_p12 = por %p11220_p9, %p11219_p10 }
 0x889   : > { %p11217_p4 = pneg %p11216_p2 }
 0x88a   : > { %p11223_p11 = por %p11222_p8, %p11221_p12 }
 0x88c   : > { %p11224_p13 = pnand %p11223_p11, %p11217_p4 }
 0x88e   : > { %11227 = shalt.err (!%p11224_p13)
}
 0x88f   : > { %s11313_s2 = smov 128   ;;  %s11314_s16 = smov 8  }
 0x890   : > { %10805 = dma.vmem_to_hbm [thread:$0]  (%p16088_p0), %s15728_s25, 4096, %s15733_s12, %s9821_s20, %s11313_s2, %s11313_s2, %s11314_s16  }
 0x891 PF: > { %s16089_s30 = sld [smem:[#allocation16_spill]]  ;;  %p10816_p1 = scmp.ge.s32.totalorder %s11298_s28, 2 }
 0x892   : > { %p16090_p3 = scmp.ne.s32.totalorder %s15874_s21, 0 }
 0x894   : > { %p10812_p5 = pnand %p10816_p1, %p16090_p3 }
 0x897   : > { %s9851_s24 = sand.u32 1, %s16089_s30  }
 0x898   : > { %s9852_s19 = scalar_lea.sflag [#allocation12], %s9851_s24 }
 0x899   : > { %11265 = dma.done.wait (!%p10812_p5), %s9852_s19, 4096  }
 0x89a   : > { %11267 = vsyncadd (!%p10812_p5), %s9852_s19, 4294963200  ;;  %s32_s28 = sadd.s32 1, %s11298_s28   ;;  %s16091_s1 = sld [smem:[#allocation19_spill]] }
 0x89b   : > { %p29_p6 = scmp.ge.s32.totalorder %s32_s28, 8   ;;  %s16092_s0 = sld [smem:[#allocation17_spill]] }
 0x89c   : > { %s16093_s17 = sld [smem:[#allocation18_spill]]  ;;  %s16094_s21 = smov %s11274_s22 }
 0x89d   : > { %s16095_s22 = smov %s11278_s23  ;;  %s16097_s24 = smov %s11290_s26 }
 0x89e   : > { %s16098_s25 = smov %s11294_s27  ;;  %31 = sbr.rel (!%p29_p6) target bundleno = 21 (0x15), region = 141 }
 0x8a0   : > { %s16096_s23 = smov %s16091_s1 }
 0x8a1   : > { %s16099_s26 = smov %s16092_s0 }
 0x8a2   : > { %s16100_s27 = smov %s16093_s17 }
 0x8a5   :  { %9857 = vsyncpa [#allocation11], 1 }
 0x8a6   :  { %9859 = vsyncpa [#allocation11 + $0x1], 1 }
 0x8a7   :  { %9860 = vsyncpa [#allocation12], 1 }
 0x8a8   :  { %9862 = vsyncpa [#allocation12 + $0x1], 1 }

</bundles_post_ra>
